<compile_context>
chip_gen: v6e
topology: v6e:2x2x1
jax: 0.10.0
libtpu: 0.0.40
codegen_flags: <defaults>
</compile_context>

<pallas_src>
import math

import jax
import jax.numpy as jnp
from jax.experimental import pallas as pl
from jax.experimental.pallas import tpu as pltpu

# ----------------------------- config (small) -------------------------------
BATCH     = 2
ENC_SEQ   = 8
DEC_SEQ   = 8
HIDDEN    = 32
NHEAD     = 4
DHEAD     = HIDDEN // NHEAD
FFN       = 64
NLAYERS   = 2
VOCAB_ENC = 64
VOCAB_DEC = 64
VPAD      = 128            # lane-dense padded vocab for LM-head matmul / logits store
PROJ      = 128            # lane-aligned projection group width inside fused QKV / KV
MAXPOS    = 16
NEG_INF   = -1e9
EPS_BERT  = 1e-12
EPS_GPT2  = 1e-5


# --------------------------- in-kernel helpers -------------------------------
def _ln(x, g, b, eps):
    mu = jnp.mean(x, axis=-1, keepdims=True)
    var = jnp.mean((x - mu) ** 2, axis=-1, keepdims=True)
    return (x - mu) * jax.lax.rsqrt(var + eps) * g + b


def _gelu(x):
    # tanh-approx GELU (GPT2 "gelu_new").
    # TODO(synk): HF BERT uses exact erf GELU for the encoder; tanh approx used here.
    return 0.5 * x * (1.0 + jnp.tanh(0.7978845608028654 * (x + 0.044715 * x * x * x)))


def _embed(ids, tok, pos):
    """One-hot embedding gather inside the kernel. ids:[S,1] i32, tok:[V,H], pos:[S,H]."""
    s, v = ids.shape[0], tok.shape[0]
    onehot = (jax.lax.broadcasted_iota(jnp.int32, (s, v), 1) == ids).astype(jnp.float32)
    return jnp.dot(onehot, tok, preferred_element_type=jnp.float32) + pos


def _attn(q, k, v, bias, wo, bo):
    """All-head attention for ONE batch element.

    q: [sq, HIDDEN]; k, v: [sk, HIDDEN]; bias: [NHEAD, sq, sk] additive or None.
    Per-head QK^T / PV stay as 2-D dots (no 4-D transposes in Mosaic); the softmax runs
    once on the stacked [NHEAD, sq, sk] slab and the output projection is a single matmul.
    1/sqrt(DHEAD) is already folded into the q-projection weights.
    """
    scores = jnp.stack(
        [jnp.einsum("qd,kd->qk",
                    q[:, h * DHEAD:(h + 1) * DHEAD],
                    k[:, h * DHEAD:(h + 1) * DHEAD],
                    preferred_element_type=jnp.float32)
         for h in range(NHEAD)], axis=0)                       # [NHEAD, sq, sk]
    if bias is not None:
        scores = scores + bias
    m = jnp.max(scores, axis=-1, keepdims=True)
    p = jnp.exp(scores - m)
    p = p * pl.reciprocal(jnp.sum(p, axis=-1, keepdims=True), approx=True)
    ctx = jnp.concatenate(
        [jnp.dot(p[h], v[:, h * DHEAD:(h + 1) * DHEAD],
                 preferred_element_type=jnp.float32)
         for h in range(NHEAD)], axis=-1)                      # [sq, HIDDEN]
    return jnp.dot(ctx, wo, preferred_element_type=jnp.float32) + bo


# ------------------------------ fused kernel ---------------------------------
def _seq2seq_kernel(
        # per-batch data (grid axis 0 = batch, "parallel")
        eid_ref, ebias_ref, did_ref, sbias_ref, lab_ref,
        # encoder weights
        etok_ref, epos_ref, eg_ref, ebk_ref,
        ewqkv_ref, ebqkv_ref, ewo_ref, ebo_ref,
        eln1g_ref, eln1b_ref, eln2g_ref, eln2b_ref,
        ew1_ref, eb1_ref, ew2_ref, eb2_ref,
        # decoder weights
        dtok_ref, dpos_ref,
        dwqkv_ref, dbqkv_ref, dwo_ref, dbo_ref,
        dln1g_ref, dln1b_ref, dlncg_ref, dlncb_ref, dln2g_ref, dln2b_ref,
        dcwq_ref, dcbq_ref, dcwkv_ref, dcbkv_ref, dcwo_ref, dcbo_ref,
        dw1_ref, db1_ref, dw2_ref, db2_ref,
        dlnfg_ref, dlnfb_ref, lmw_ref,
        # outputs
        logits_ref, loss_ref):
    # ---------------- encoder (mini BERT, post-LN) ----------------
    # TODO(synk): token_type embeddings of HF BERT not modeled.
    x = _embed(eid_ref[0], etok_ref[...], epos_ref[...])                 # [Se, H]
    x = _ln(x, eg_ref[...], ebk_ref[...], EPS_BERT)
    ebias = ebias_ref[0].reshape(NHEAD, ENC_SEQ, ENC_SEQ)                # hoisted once
    for l in range(NLAYERS):
        qkv = jnp.dot(x, ewqkv_ref[l], preferred_element_type=jnp.float32) + ebqkv_ref[l]
        a = _attn(qkv[:, :HIDDEN], qkv[:, PROJ:PROJ + HIDDEN],
                  qkv[:, 2 * PROJ:2 * PROJ + HIDDEN], ebias, ewo_ref[l], ebo_ref[l])
        x = _ln(x + a, eln1g_ref[l], eln1b_ref[l], EPS_BERT)
        h = _gelu(jnp.dot(x, ew1_ref[l], preferred_element_type=jnp.float32) + eb1_ref[l])
        h = jnp.dot(h, ew2_ref[l], preferred_element_type=jnp.float32) + eb2_ref[l]
        x = _ln(x + h, eln2g_ref[l], eln2b_ref[l], EPS_BERT)
    ench = x                                                             # stays in vregs/VMEM

    # ---------------- decoder (mini GPT2 + cross-attn, pre-LN) ----------------
    x = _embed(did_ref[0], dtok_ref[...], dpos_ref[...])                 # [Sd, H]
    sbias = sbias_ref[0].reshape(NHEAD, DEC_SEQ, DEC_SEQ)                # hoisted once
    for l in range(NLAYERS):
        # masked causal self-attention
        h = _ln(x, dln1g_ref[l], dln1b_ref[l], EPS_GPT2)
        qkv = jnp.dot(h, dwqkv_ref[l], preferred_element_type=jnp.float32) + dbqkv_ref[l]
        x = x + _attn(qkv[:, :HIDDEN], qkv[:, PROJ:PROJ + HIDDEN],
                      qkv[:, 2 * PROJ:2 * PROJ + HIDDEN], sbias, dwo_ref[l], dbo_ref[l])
        # cross-attention (reference forward() never passes encoder_attention_mask -> no bias)
        h = _ln(x, dlncg_ref[l], dlncb_ref[l], EPS_GPT2)
        q = jnp.dot(h, dcwq_ref[l], preferred_element_type=jnp.float32) + dcbq_ref[l]
        kv = jnp.dot(ench, dcwkv_ref[l], preferred_element_type=jnp.float32) + dcbkv_ref[l]
        x = x + _attn(q, kv[:, :HIDDEN], kv[:, PROJ:PROJ + HIDDEN],
                      None, dcwo_ref[l], dcbo_ref[l])
        # MLP
        h = _ln(x, dln2g_ref[l], dln2b_ref[l], EPS_GPT2)
        h = _gelu(jnp.dot(h, dw1_ref[l], preferred_element_type=jnp.float32) + db1_ref[l])
        x = x + jnp.dot(h, dw2_ref[l], preferred_element_type=jnp.float32) + db2_ref[l]

    # final LN + tied LM head (lane-dense VPAD logits, no bias)
    x = _ln(x, dlnfg_ref[...], dlnfb_ref[...], EPS_GPT2)
    logits = jnp.dot(x, lmw_ref[...], preferred_element_type=jnp.float32)    # [Sd, VPAD]
    logits_ref[...] = logits.reshape(1, DEC_SEQ, VPAD)

    # shifted-token cross entropy: per-batch partial SUM (mean taken in JAX over valid count)
    labels = lab_ref[0]                                                      # [Sd, 1], -1 = shift pad
    vocab = jax.lax.broadcasted_iota(jnp.int32, (DEC_SEQ, VPAD), 1)
    lmasked = jnp.where(vocab < VOCAB_DEC, logits, NEG_INF)
    m = jnp.max(lmasked, axis=-1, keepdims=True)
    lse = jnp.log(jnp.sum(jnp.exp(lmasked - m), axis=-1, keepdims=True)) + m
    picked = jnp.sum(jnp.where(vocab == labels, lmasked, 0.0), axis=-1, keepdims=True)
    valid = (labels >= 0).astype(jnp.float32)
    loss_ref[...] = jnp.sum(valid * (lse - picked), axis=0, keepdims=True).reshape(1, 1, 1)


# ------------------------------ forward pass ----------------------------------
@jax.jit
def custom_model_forward(params, enc_ids, enc_mask, dec_ids, dec_mask):
    B, Se = enc_ids.shape
    _, Sd = dec_ids.shape

    # host glue: mask -> additive bias (pre-stacked per head), label shift
    ebias = jnp.where(enc_mask[:, None, :] > 0, 0.0, NEG_INF).astype(jnp.float32)      # [B,1,Se]
    ebias = jnp.broadcast_to(ebias[:, None, :, :], (B, NHEAD, Se, Se)).reshape(B, NHEAD * Se, Se)

    causal = jnp.arange(Sd)[None, :] <= jnp.arange(Sd)[:, None]
    keep = causal[None, :, :] & (dec_mask[:, None, :] > 0)
    sbias = jnp.where(keep, 0.0, NEG_INF).astype(jnp.float32)                           # [B,Sd,Sd]
    sbias = jnp.broadcast_to(sbias[:, None, :, :], (B, NHEAD, Sd, Sd)).reshape(B, NHEAD * Sd, Sd)

    labels = jnp.concatenate([dec_ids[:, 1:], jnp.full((B, 1), -1, dec_ids.dtype)], axis=1)

    batched = [enc_ids[:, :, None].astype(jnp.int32), ebias,
               dec_ids[:, :, None].astype(jnp.int32), sbias,
               labels[:, :, None].astype(jnp.int32)]
    weights = [params["enc_tok_emb"], params["enc_pos_emb"][:Se],
               params["enc_emb_ln_g"], params["enc_emb_ln_b"],
               params["enc_wqkv"], params["enc_bqkv"], params["enc_wo"], params["enc_bo"],
               params["enc_ln1_g"], params["enc_ln1_b"], params["enc_ln2_g"], params["enc_ln2_b"],
               params["enc_w1"], params["enc_b1"], params["enc_w2"], params["enc_b2"],
               params["dec_tok_emb"], params["dec_pos_emb"][:Sd],
               params["dec_wqkv"], params["dec_bqkv"], params["dec_wo"], params["dec_bo"],
               params["dec_ln1_g"], params["dec_ln1_b"], params["dec_lnc_g"], params["dec_lnc_b"],
               params["dec_ln2_g"], params["dec_ln2_b"],
               params["dec_cwq"], params["dec_cbq"], params["dec_cwkv"], params["dec_cbkv"],
               params["dec_cwo"], params["dec_cbo"],
               params["dec_w1"], params["dec_b1"], params["dec_w2"], params["dec_b2"],
               params["dec_lnf_g"], params["dec_lnf_b"], params["lm_head_wt"]]

    def bspec(a):                      # per-batch sliced block
        nd = a.ndim
        return pl.BlockSpec((1,) + a.shape[1:], lambda b, _n=nd: (b,) + (0,) * (_n - 1))

    def wspec(a):                      # weight resident every step (re-fetch elided)
        nd = a.ndim
        return pl.BlockSpec(a.shape, lambda b, _n=nd: (0,) * _n)

    logits_pad, loss_part = pl.pallas_call(
        _seq2seq_kernel,
        grid=(B,),
        in_specs=[bspec(a) for a in batched] + [wspec(a) for a in weights],
        out_specs=(pl.BlockSpec((1, Sd, VPAD), lambda b: (b, 0, 0)),
                   pl.BlockSpec((1, 1, 1), lambda b: (b, 0, 0))),
        out_shape=(jax.ShapeDtypeStruct((B, Sd, VPAD), jnp.float32),
                   jax.ShapeDtypeStruct((B, 1, 1), jnp.float32)),
        compiler_params=pltpu.CompilerParams(dimension_semantics=("parallel",)),
    )(*batched, *weights)

    # HF CrossEntropyLoss: mean over non-ignored labels
    denom = jnp.maximum(jnp.sum((labels >= 0).astype(jnp.float32)), 1.0)
    loss = jnp.sum(loss_part) / denom
    logits = logits_pad[:, :, :VOCAB_DEC]
    return loss, logits
# TODO(synk): dropout (module runs eval-style here) and HF .generate() sampling loop not ported.
# TODO(synk): bf16 weight/activation storage deferred (negligible at toy size; f32 kept for parity).


# ------------------------------ parameter init -------------------------------
def init_params(key):
    keys = iter(jax.random.split(key, 64))

    def nrm(shape):
        return jax.random.normal(next(keys), shape, jnp.float32) * 0.02

    L, H, F = NLAYERS, HIDDEN, FFN
    scale = 1.0 / math.sqrt(DHEAD)       # folded into q projections (weights only; biases zero)

    def qkv_w():
        # fused QKV in 128-lane projection groups (tile-aligned splits in-kernel)
        w = jnp.zeros((L, H, 3 * PROJ), jnp.float32)
        w = w.at[:, :, 0:H].set(nrm((L, H, H)) * scale)              # Q (scaled)
        w = w.at[:, :, PROJ:PROJ + H].set(nrm((L, H, H)))            # K
        w = w.at[:, :, 2 * PROJ:2 * PROJ + H].set(nrm((L, H, H)))    # V
        return w

    def kv_w():
        w = jnp.zeros((L, H, 2 * PROJ), jnp.float32)
        w = w.at[:, :, 0:H].set(nrm((L, H, H)))                      # K
        w = w.at[:, :, PROJ:PROJ + H].set(nrm((L, H, H)))            # V
        return w

    def ones_h():  return jnp.ones((L, 1, H), jnp.float32)
    def zeros_h(): return jnp.zeros((L, 1, H), jnp.float32)

    enc_tok = nrm((VOCAB_ENC, H))
    dec_tok = nrm((VOCAB_DEC, H))

    params = {
        # mini BERT encoder
        "enc_tok_emb": enc_tok,
        "enc_pos_emb": nrm((MAXPOS, H)),
        "enc_emb_ln_g": jnp.ones((1, H), jnp.float32),
        "enc_emb_ln_b": jnp.zeros((1, H), jnp.float32),
        "enc_wqkv": qkv_w(), "enc_bqkv": jnp.zeros((L, 1, 3 * PROJ), jnp.float32),
        "enc_wo": nrm((L, H, H)), "enc_bo": zeros_h(),
        "enc_ln1_g": ones_h(), "enc_ln1_b": zeros_h(),
        "enc_ln2_g": ones_h(), "enc_ln2_b": zeros_h(),
        "enc_w1": nrm((L, H, F)), "enc_b1": jnp.zeros((L, 1, F), jnp.float32),
        "enc_w2": nrm((L, F, H)), "enc_b2": zeros_h(),
        # mini GPT2 decoder with cross-attention
        "dec_tok_emb": dec_tok,
        "dec_pos_emb": nrm((MAXPOS, H)),
        "dec_wqkv": qkv_w(), "dec_bqkv": jnp.zeros((L, 1, 3 * PROJ), jnp.float32),
        "dec_wo": nrm((L, H, H)), "dec_bo": zeros_h(),
        "dec_ln1_g": ones_h(), "dec_ln1_b": zeros_h(),
        "dec_lnc_g": ones_h(), "dec_lnc_b": zeros_h(),
        "dec_ln2_g": ones_h(), "dec_ln2_b": zeros_h(),
        "dec_cwq": nrm((L, H, H)) * scale, "dec_cbq": zeros_h(),
        "dec_cwkv": kv_w(), "dec_cbkv": jnp.zeros((L, 1, 2 * PROJ), jnp.float32),
        "dec_cwo": nrm((L, H, H)), "dec_cbo": zeros_h(),
        "dec_w1": nrm((L, H, F)), "dec_b1": jnp.zeros((L, 1, F), jnp.float32),
        "dec_w2": nrm((L, F, H)), "dec_b2": zeros_h(),
        "dec_lnf_g": jnp.ones((1, H), jnp.float32),
        "dec_lnf_b": jnp.zeros((1, H), jnp.float32),
        # tied LM head: padded to 128 lanes and pre-transposed ONCE at init (no bias)
        "lm_head_wt": jnp.pad(dec_tok, ((0, VPAD - VOCAB_DEC), (0, 0))).T,
    }
    return params


# ----------------------------------- main ------------------------------------
if __name__ == "__main__":
    key = jax.random.PRNGKey(0)
    kp, k1, k2 = jax.random.split(key, 3)
    params = init_params(kp)

    encoder_input_ids = jax.random.randint(k1, (BATCH, ENC_SEQ), 0, VOCAB_ENC, dtype=jnp.int32)
    decoder_input_ids = jax.random.randint(k2, (BATCH, DEC_SEQ), 0, VOCAB_DEC, dtype=jnp.int32)

    encoder_attention_mask = jnp.ones((BATCH, ENC_SEQ), jnp.int32).at[1, 6:].set(0)
    decoder_attention_mask = jnp.ones((BATCH, DEC_SEQ), jnp.int32)

    loss, logits = custom_model_forward(
        params, encoder_input_ids, encoder_attention_mask,
        decoder_input_ids, decoder_attention_mask)
    jax.block_until_ready((loss, logits))

    assert logits.shape == (BATCH, DEC_SEQ, VOCAB_DEC)
    assert loss.shape == ()
    assert bool(jnp.isfinite(loss))
    print("KERNEL_OK")
</pallas_src>

<mosaic_0001>
module attributes {stable_mosaic.version = 11 : i64} {
  func.func @_seq2seq_kernel(%arg0: i32, %arg1: memref<1x8x1xi32, #tpu.memory_space<vmem>>, %arg2: memref<1x32x8xf32, #tpu.memory_space<vmem>>, %arg3: memref<1x8x1xi32, #tpu.memory_space<vmem>>, %arg4: memref<1x32x8xf32, #tpu.memory_space<vmem>>, %arg5: memref<1x8x1xi32, #tpu.memory_space<vmem>>, %arg6: memref<64x32xf32, #tpu.memory_space<vmem>>, %arg7: memref<8x32xf32, #tpu.memory_space<vmem>>, %arg8: memref<1x32xf32, #tpu.memory_space<vmem>>, %arg9: memref<1x32xf32, #tpu.memory_space<vmem>>, %arg10: memref<2x32x384xf32, #tpu.memory_space<vmem>>, %arg11: memref<2x1x384xf32, #tpu.memory_space<vmem>>, %arg12: memref<2x32x32xf32, #tpu.memory_space<vmem>>, %arg13: memref<2x1x32xf32, #tpu.memory_space<vmem>>, %arg14: memref<2x1x32xf32, #tpu.memory_space<vmem>>, %arg15: memref<2x1x32xf32, #tpu.memory_space<vmem>>, %arg16: memref<2x1x32xf32, #tpu.memory_space<vmem>>, %arg17: memref<2x1x32xf32, #tpu.memory_space<vmem>>, %arg18: memref<2x32x64xf32, #tpu.memory_space<vmem>>, %arg19: memref<2x1x64xf32, #tpu.memory_space<vmem>>, %arg20: memref<2x64x32xf32, #tpu.memory_space<vmem>>, %arg21: memref<2x1x32xf32, #tpu.memory_space<vmem>>, %arg22: memref<64x32xf32, #tpu.memory_space<vmem>>, %arg23: memref<8x32xf32, #tpu.memory_space<vmem>>, %arg24: memref<2x32x384xf32, #tpu.memory_space<vmem>>, %arg25: memref<2x1x384xf32, #tpu.memory_space<vmem>>, %arg26: memref<2x32x32xf32, #tpu.memory_space<vmem>>, %arg27: memref<2x1x32xf32, #tpu.memory_space<vmem>>, %arg28: memref<2x1x32xf32, #tpu.memory_space<vmem>>, %arg29: memref<2x1x32xf32, #tpu.memory_space<vmem>>, %arg30: memref<2x1x32xf32, #tpu.memory_space<vmem>>, %arg31: memref<2x1x32xf32, #tpu.memory_space<vmem>>, %arg32: memref<2x1x32xf32, #tpu.memory_space<vmem>>, %arg33: memref<2x1x32xf32, #tpu.memory_space<vmem>>, %arg34: memref<2x32x32xf32, #tpu.memory_space<vmem>>, %arg35: memref<2x1x32xf32, #tpu.memory_space<vmem>>, %arg36: memref<2x32x256xf32, #tpu.memory_space<vmem>>, %arg37: memref<2x1x256xf32, #tpu.memory_space<vmem>>, %arg38: memref<2x32x32xf32, #tpu.memory_space<vmem>>, %arg39: memref<2x1x32xf32, #tpu.memory_space<vmem>>, %arg40: memref<2x32x64xf32, #tpu.memory_space<vmem>>, %arg41: memref<2x1x64xf32, #tpu.memory_space<vmem>>, %arg42: memref<2x64x32xf32, #tpu.memory_space<vmem>>, %arg43: memref<2x1x32xf32, #tpu.memory_space<vmem>>, %arg44: memref<1x32xf32, #tpu.memory_space<vmem>>, %arg45: memref<1x32xf32, #tpu.memory_space<vmem>>, %arg46: memref<32x128xf32, #tpu.memory_space<vmem>>, %arg47: memref<1x8x128xf32, #tpu.memory_space<vmem>>, %arg48: memref<1x1x1xf32, #tpu.memory_space<vmem>>) attributes {dimension_semantics = [#tpu.dimension_semantics<parallel>], iteration_bounds = array<i64: 2>, scalar_prefetch = 0 : i64, scratch_operands = 0 : i64, tpu.core_type = #tpu.core_type<tc>, window_params = [{transform_indices = @transform_0, window_bounds = array<i64: 1, 8, 1>}, {transform_indices = @transform_1, window_bounds = array<i64: 1, 32, 8>}, {transform_indices = @transform_2, window_bounds = array<i64: 1, 8, 1>}, {transform_indices = @transform_3, window_bounds = array<i64: 1, 32, 8>}, {transform_indices = @transform_4, window_bounds = array<i64: 1, 8, 1>}, {pipeline_mode = #tpu.pipeline_mode<synchronous>, transform_indices = @transform_5, window_bounds = array<i64: 64, 32>}, {pipeline_mode = #tpu.pipeline_mode<synchronous>, transform_indices = @transform_6, window_bounds = array<i64: 8, 32>}, {pipeline_mode = #tpu.pipeline_mode<synchronous>, transform_indices = @transform_7, window_bounds = array<i64: 1, 32>}, {pipeline_mode = #tpu.pipeline_mode<synchronous>, transform_indices = @transform_8, window_bounds = array<i64: 1, 32>}, {pipeline_mode = #tpu.pipeline_mode<synchronous>, transform_indices = @transform_9, window_bounds = array<i64: 2, 32, 384>}, {pipeline_mode = #tpu.pipeline_mode<synchronous>, transform_indices = @transform_10, window_bounds = array<i64: 2, 1, 384>}, {pipeline_mode = #tpu.pipeline_mode<synchronous>, transform_indices = @transform_11, window_bounds = array<i64: 2, 32, 32>}, {pipeline_mode = #tpu.pipeline_mode<synchronous>, transform_indices = @transform_12, window_bounds = array<i64: 2, 1, 32>}, {pipeline_mode = #tpu.pipeline_mode<synchronous>, transform_indices = @transform_13, window_bounds = array<i64: 2, 1, 32>}, {pipeline_mode = #tpu.pipeline_mode<synchronous>, transform_indices = @transform_14, window_bounds = array<i64: 2, 1, 32>}, {pipeline_mode = #tpu.pipeline_mode<synchronous>, transform_indices = @transform_15, window_bounds = array<i64: 2, 1, 32>}, {pipeline_mode = #tpu.pipeline_mode<synchronous>, transform_indices = @transform_16, window_bounds = array<i64: 2, 1, 32>}, {pipeline_mode = #tpu.pipeline_mode<synchronous>, transform_indices = @transform_17, window_bounds = array<i64: 2, 32, 64>}, {pipeline_mode = #tpu.pipeline_mode<synchronous>, transform_indices = @transform_18, window_bounds = array<i64: 2, 1, 64>}, {pipeline_mode = #tpu.pipeline_mode<synchronous>, transform_indices = @transform_19, window_bounds = array<i64: 2, 64, 32>}, {pipeline_mode = #tpu.pipeline_mode<synchronous>, transform_indices = @transform_20, window_bounds = array<i64: 2, 1, 32>}, {pipeline_mode = #tpu.pipeline_mode<synchronous>, transform_indices = @transform_21, window_bounds = array<i64: 64, 32>}, {pipeline_mode = #tpu.pipeline_mode<synchronous>, transform_indices = @transform_22, window_bounds = array<i64: 8, 32>}, {pipeline_mode = #tpu.pipeline_mode<synchronous>, transform_indices = @transform_23, window_bounds = array<i64: 2, 32, 384>}, {pipeline_mode = #tpu.pipeline_mode<synchronous>, transform_indices = @transform_24, window_bounds = array<i64: 2, 1, 384>}, {pipeline_mode = #tpu.pipeline_mode<synchronous>, transform_indices = @transform_25, window_bounds = array<i64: 2, 32, 32>}, {pipeline_mode = #tpu.pipeline_mode<synchronous>, transform_indices = @transform_26, window_bounds = array<i64: 2, 1, 32>}, {pipeline_mode = #tpu.pipeline_mode<synchronous>, transform_indices = @transform_27, window_bounds = array<i64: 2, 1, 32>}, {pipeline_mode = #tpu.pipeline_mode<synchronous>, transform_indices = @transform_28, window_bounds = array<i64: 2, 1, 32>}, {pipeline_mode = #tpu.pipeline_mode<synchronous>, transform_indices = @transform_29, window_bounds = array<i64: 2, 1, 32>}, {pipeline_mode = #tpu.pipeline_mode<synchronous>, transform_indices = @transform_30, window_bounds = array<i64: 2, 1, 32>}, {pipeline_mode = #tpu.pipeline_mode<synchronous>, transform_indices = @transform_31, window_bounds = array<i64: 2, 1, 32>}, {pipeline_mode = #tpu.pipeline_mode<synchronous>, transform_indices = @transform_32, window_bounds = array<i64: 2, 1, 32>}, {pipeline_mode = #tpu.pipeline_mode<synchronous>, transform_indices = @transform_33, window_bounds = array<i64: 2, 32, 32>}, {pipeline_mode = #tpu.pipeline_mode<synchronous>, transform_indices = @transform_34, window_bounds = array<i64: 2, 1, 32>}, {pipeline_mode = #tpu.pipeline_mode<synchronous>, transform_indices = @transform_35, window_bounds = array<i64: 2, 32, 256>}, {pipeline_mode = #tpu.pipeline_mode<synchronous>, transform_indices = @transform_36, window_bounds = array<i64: 2, 1, 256>}, {pipeline_mode = #tpu.pipeline_mode<synchronous>, transform_indices = @transform_37, window_bounds = array<i64: 2, 32, 32>}, {pipeline_mode = #tpu.pipeline_mode<synchronous>, transform_indices = @transform_38, window_bounds = array<i64: 2, 1, 32>}, {pipeline_mode = #tpu.pipeline_mode<synchronous>, transform_indices = @transform_39, window_bounds = array<i64: 2, 32, 64>}, {pipeline_mode = #tpu.pipeline_mode<synchronous>, transform_indices = @transform_40, window_bounds = array<i64: 2, 1, 64>}, {pipeline_mode = #tpu.pipeline_mode<synchronous>, transform_indices = @transform_41, window_bounds = array<i64: 2, 64, 32>}, {pipeline_mode = #tpu.pipeline_mode<synchronous>, transform_indices = @transform_42, window_bounds = array<i64: 2, 1, 32>}, {pipeline_mode = #tpu.pipeline_mode<synchronous>, transform_indices = @transform_43, window_bounds = array<i64: 1, 32>}, {pipeline_mode = #tpu.pipeline_mode<synchronous>, transform_indices = @transform_44, window_bounds = array<i64: 1, 32>}, {pipeline_mode = #tpu.pipeline_mode<synchronous>, transform_indices = @transform_45, window_bounds = array<i64: 32, 128>}, {transform_indices = @transform_46, window_bounds = array<i64: 1, 8, 128>}, {transform_indices = @transform_47, window_bounds = array<i64: 1, 1, 1>}]} {
    %c0 = arith.constant 0 : index
    %c0_0 = arith.constant 0 : index
    %c0_1 = arith.constant 0 : index
    %0 = vector.load %arg1[%c0, %c0_0, %c0_1] : memref<1x8x1xi32, #tpu.memory_space<vmem>>, vector<1x8x1xi32>
    %1 = vector.shape_cast %0 : vector<1x8x1xi32> to vector<8x1xi32>
    %c0_2 = arith.constant 0 : index
    %c0_3 = arith.constant 0 : index
    %2 = vector.load %arg6[%c0_2, %c0_3] : memref<64x32xf32, #tpu.memory_space<vmem>>, vector<64x32xf32>
    %c0_4 = arith.constant 0 : index
    %c0_5 = arith.constant 0 : index
    %3 = vector.load %arg7[%c0_4, %c0_5] : memref<8x32xf32, #tpu.memory_space<vmem>>, vector<8x32xf32>
    %4 = tpu.iota {dimensions = array<i32: 1>} : vector<8x64xi32>
    %5 = vector.broadcast %1 : vector<8x1xi32> to vector<8x64xi32>
    %6 = arith.cmpi eq, %4, %5 : vector<8x64xi32>
    %7 = arith.extui %6 : vector<8x64xi1> to vector<8x64xi32>
    %8 = arith.sitofp %7 : vector<8x64xi32> to vector<8x64xf32>
    %cst = arith.constant dense<0.000000e+00> : vector<8x32xf32>
    %9 = tpu.matmul %8, %2, %cst {dimension_numbers = #tpu.dot_dimension_numbers<[1], [0], [0], [1], [0, 0, 1, 1], [], []>} : vector<8x64xf32>, vector<64x32xf32>, vector<8x32xf32> -> vector<8x32xf32>
    %10 = arith.addf %9, %3 : vector<8x32xf32>
    %c0_6 = arith.constant 0 : index
    %c0_7 = arith.constant 0 : index
    %11 = vector.load %arg8[%c0_6, %c0_7] : memref<1x32xf32, #tpu.memory_space<vmem>>, vector<1x32xf32>
    %c0_8 = arith.constant 0 : index
    %c0_9 = arith.constant 0 : index
    %12 = vector.load %arg9[%c0_8, %c0_9] : memref<1x32xf32, #tpu.memory_space<vmem>>, vector<1x32xf32>
    %cst_10 = arith.constant dense<0.000000e+00> : vector<8xf32>
    %13 = vector.multi_reduction <add>, %10, %cst_10 [1] : vector<8x32xf32> to vector<8xf32>
    %14 = vector.shape_cast %13 : vector<8xf32> to vector<8x1xf32>
    %cst_11 = arith.constant 3.200000e+01 : f32
    %15 = vector.broadcast %cst_11 : f32 to vector<8x1xf32>
    %16 = arith.divf %14, %15 : vector<8x1xf32>
    %17 = vector.broadcast %16 : vector<8x1xf32> to vector<8x32xf32>
    %18 = arith.subf %10, %17 : vector<8x32xf32>
    %19 = arith.mulf %18, %18 : vector<8x32xf32>
    %cst_12 = arith.constant dense<0.000000e+00> : vector<8xf32>
    %20 = vector.multi_reduction <add>, %19, %cst_12 [1] : vector<8x32xf32> to vector<8xf32>
    %21 = vector.shape_cast %20 : vector<8xf32> to vector<8x1xf32>
    %cst_13 = arith.constant 3.200000e+01 : f32
    %22 = vector.broadcast %cst_13 : f32 to vector<8x1xf32>
    %23 = arith.divf %21, %22 : vector<8x1xf32>
    %24 = vector.broadcast %16 : vector<8x1xf32> to vector<8x32xf32>
    %25 = arith.subf %10, %24 : vector<8x32xf32>
    %cst_14 = arith.constant 9.99999996E-13 : f32
    %26 = vector.broadcast %cst_14 : f32 to vector<8x1xf32>
    %27 = arith.addf %23, %26 : vector<8x1xf32>
    %28 = math.rsqrt %27 : vector<8x1xf32>
    %29 = vector.broadcast %28 : vector<8x1xf32> to vector<8x32xf32>
    %30 = arith.mulf %25, %29 : vector<8x32xf32>
    %31 = vector.broadcast %11 : vector<1x32xf32> to vector<8x32xf32>
    %32 = arith.mulf %30, %31 : vector<8x32xf32>
    %33 = vector.broadcast %12 : vector<1x32xf32> to vector<8x32xf32>
    %34 = arith.addf %32, %33 : vector<8x32xf32>
    %c0_15 = arith.constant 0 : index
    %c0_16 = arith.constant 0 : index
    %c0_17 = arith.constant 0 : index
    %35 = vector.load %arg2[%c0_15, %c0_16, %c0_17] : memref<1x32x8xf32, #tpu.memory_space<vmem>>, vector<1x32x8xf32>
    %36 = vector.shape_cast %35 : vector<1x32x8xf32> to vector<32x8xf32>
    %37 = vector.shape_cast %36 : vector<32x8xf32> to vector<4x8x8xf32>
    %c0_18 = arith.constant 0 : index
    %c0_19 = arith.constant 0 : index
    %c0_20 = arith.constant 0 : index
    %38 = vector.load %arg10[%c0_18, %c0_19, %c0_20] : memref<2x32x384xf32, #tpu.memory_space<vmem>>, vector<1x32x384xf32>
    %39 = vector.shape_cast %38 : vector<1x32x384xf32> to vector<32x384xf32>
    %cst_21 = arith.constant dense<0.000000e+00> : vector<8x384xf32>
    %40 = tpu.matmul %34, %39, %cst_21 {dimension_numbers = #tpu.dot_dimension_numbers<[1], [0], [0], [1], [0, 0, 1, 1], [], []>} : vector<8x32xf32>, vector<32x384xf32>, vector<8x384xf32> -> vector<8x384xf32>
    %c0_22 = arith.constant 0 : index
    %c0_23 = arith.constant 0 : index
    %c0_24 = arith.constant 0 : index
    %41 = vector.load %arg11[%c0_22, %c0_23, %c0_24] : memref<2x1x384xf32, #tpu.memory_space<vmem>>, vector<1x1x384xf32>
    %42 = vector.shape_cast %41 : vector<1x1x384xf32> to vector<1x384xf32>
    %43 = vector.broadcast %42 : vector<1x384xf32> to vector<8x384xf32>
    %44 = arith.addf %40, %43 : vector<8x384xf32>
    %45 = vector.extract_strided_slice %44 {offsets = [0, 0], sizes = [8, 32], strides = [1, 1]} : vector<8x384xf32> to vector<8x32xf32>
    %46 = vector.extract_strided_slice %44 {offsets = [0, 128], sizes = [8, 32], strides = [1, 1]} : vector<8x384xf32> to vector<8x32xf32>
    %47 = vector.extract_strided_slice %44 {offsets = [0, 256], sizes = [8, 32], strides = [1, 1]} : vector<8x384xf32> to vector<8x32xf32>
    %c0_25 = arith.constant 0 : index
    %c0_26 = arith.constant 0 : index
    %c0_27 = arith.constant 0 : index
    %48 = vector.load %arg12[%c0_25, %c0_26, %c0_27] : memref<2x32x32xf32, #tpu.memory_space<vmem>>, vector<1x32x32xf32>
    %49 = vector.shape_cast %48 : vector<1x32x32xf32> to vector<32x32xf32>
    %c0_28 = arith.constant 0 : index
    %c0_29 = arith.constant 0 : index
    %c0_30 = arith.constant 0 : index
    %50 = vector.load %arg13[%c0_28, %c0_29, %c0_30] : memref<2x1x32xf32, #tpu.memory_space<vmem>>, vector<1x1x32xf32>
    %51 = vector.shape_cast %50 : vector<1x1x32xf32> to vector<1x32xf32>
    %52 = vector.extract_strided_slice %45 {offsets = [0, 0], sizes = [8, 8], strides = [1, 1]} : vector<8x32xf32> to vector<8x8xf32>
    %53 = vector.extract_strided_slice %46 {offsets = [0, 0], sizes = [8, 8], strides = [1, 1]} : vector<8x32xf32> to vector<8x8xf32>
    "tpu.trace_start"() <{level = 10 : i32, message = "qd,kd->qk"}> : () -> ()
    %cst_31 = arith.constant dense<0.000000e+00> : vector<8x8xf32>
    %54 = tpu.matmul %52, %53, %cst_31 {dimension_numbers = #tpu.dot_dimension_numbers<[1], [1], [0], [0], [0, 0, 1, 0], [], []>} : vector<8x8xf32>, vector<8x8xf32>, vector<8x8xf32> -> vector<8x8xf32>
    "tpu.trace_stop"() : () -> ()
    %55 = vector.extract_strided_slice %45 {offsets = [0, 8], sizes = [8, 8], strides = [1, 1]} : vector<8x32xf32> to vector<8x8xf32>
    %56 = vector.extract_strided_slice %46 {offsets = [0, 8], sizes = [8, 8], strides = [1, 1]} : vector<8x32xf32> to vector<8x8xf32>
    "tpu.trace_start"() <{level = 10 : i32, message = "qd,kd->qk"}> : () -> ()
    %cst_32 = arith.constant dense<0.000000e+00> : vector<8x8xf32>
    %57 = tpu.matmul %55, %56, %cst_32 {dimension_numbers = #tpu.dot_dimension_numbers<[1], [1], [0], [0], [0, 0, 1, 0], [], []>} : vector<8x8xf32>, vector<8x8xf32>, vector<8x8xf32> -> vector<8x8xf32>
    "tpu.trace_stop"() : () -> ()
    %58 = vector.extract_strided_slice %45 {offsets = [0, 16], sizes = [8, 8], strides = [1, 1]} : vector<8x32xf32> to vector<8x8xf32>
    %59 = vector.extract_strided_slice %46 {offsets = [0, 16], sizes = [8, 8], strides = [1, 1]} : vector<8x32xf32> to vector<8x8xf32>
    "tpu.trace_start"() <{level = 10 : i32, message = "qd,kd->qk"}> : () -> ()
    %cst_33 = arith.constant dense<0.000000e+00> : vector<8x8xf32>
    %60 = tpu.matmul %58, %59, %cst_33 {dimension_numbers = #tpu.dot_dimension_numbers<[1], [1], [0], [0], [0, 0, 1, 0], [], []>} : vector<8x8xf32>, vector<8x8xf32>, vector<8x8xf32> -> vector<8x8xf32>
    "tpu.trace_stop"() : () -> ()
    %61 = vector.extract_strided_slice %45 {offsets = [0, 24], sizes = [8, 8], strides = [1, 1]} : vector<8x32xf32> to vector<8x8xf32>
    %62 = vector.extract_strided_slice %46 {offsets = [0, 24], sizes = [8, 8], strides = [1, 1]} : vector<8x32xf32> to vector<8x8xf32>
    "tpu.trace_start"() <{level = 10 : i32, message = "qd,kd->qk"}> : () -> ()
    %cst_34 = arith.constant dense<0.000000e+00> : vector<8x8xf32>
    %63 = tpu.matmul %61, %62, %cst_34 {dimension_numbers = #tpu.dot_dimension_numbers<[1], [1], [0], [0], [0, 0, 1, 0], [], []>} : vector<8x8xf32>, vector<8x8xf32>, vector<8x8xf32> -> vector<8x8xf32>
    "tpu.trace_stop"() : () -> ()
    %64 = vector.shape_cast %54 : vector<8x8xf32> to vector<1x8x8xf32>
    %65 = vector.shape_cast %57 : vector<8x8xf32> to vector<1x8x8xf32>
    %66 = vector.shape_cast %60 : vector<8x8xf32> to vector<1x8x8xf32>
    %67 = vector.shape_cast %63 : vector<8x8xf32> to vector<1x8x8xf32>
    %68 = tpu.concatenate %64, %65, %66, %67 in 0 : vector<1x8x8xf32>, vector<1x8x8xf32>, vector<1x8x8xf32>, vector<1x8x8xf32> -> vector<4x8x8xf32>
    %69 = arith.addf %68, %37 : vector<4x8x8xf32>
    %cst_35 = arith.constant dense<0xFF800000> : vector<4x8xf32>
    %70 = vector.multi_reduction <maximumf>, %69, %cst_35 [2] : vector<4x8x8xf32> to vector<4x8xf32>
    %71 = vector.shape_cast %70 : vector<4x8xf32> to vector<4x8x1xf32>
    %72 = vector.broadcast %71 : vector<4x8x1xf32> to vector<4x8x8xf32>
    %73 = arith.subf %69, %72 : vector<4x8x8xf32>
    %74 = math.exp %73 : vector<4x8x8xf32>
    %cst_36 = arith.constant dense<0.000000e+00> : vector<4x8xf32>
    %75 = vector.multi_reduction <add>, %74, %cst_36 [2] : vector<4x8x8xf32> to vector<4x8xf32>
    %76 = vector.shape_cast %75 : vector<4x8xf32> to vector<4x8x1xf32>
    %77 = tpu.reciprocal %76 {approx = true} : vector<4x8x1xf32> -> vector<4x8x1xf32>
    %78 = vector.broadcast %77 : vector<4x8x1xf32> to vector<4x8x8xf32>
    %79 = arith.mulf %74, %78 : vector<4x8x8xf32>
    %80 = vector.extract_strided_slice %79 {offsets = [0, 0, 0], sizes = [1, 8, 8], strides = [1, 1, 1]} : vector<4x8x8xf32> to vector<1x8x8xf32>
    %81 = vector.shape_cast %80 : vector<1x8x8xf32> to vector<8x8xf32>
    %82 = vector.extract_strided_slice %47 {offsets = [0, 0], sizes = [8, 8], strides = [1, 1]} : vector<8x32xf32> to vector<8x8xf32>
    %cst_37 = arith.constant dense<0.000000e+00> : vector<8x8xf32>
    %83 = tpu.matmul %81, %82, %cst_37 {dimension_numbers = #tpu.dot_dimension_numbers<[1], [0], [0], [1], [0, 0, 1, 1], [], []>} : vector<8x8xf32>, vector<8x8xf32>, vector<8x8xf32> -> vector<8x8xf32>
    %84 = vector.extract_strided_slice %79 {offsets = [1, 0, 0], sizes = [1, 8, 8], strides = [1, 1, 1]} : vector<4x8x8xf32> to vector<1x8x8xf32>
    %85 = vector.shape_cast %84 : vector<1x8x8xf32> to vector<8x8xf32>
    %86 = vector.extract_strided_slice %47 {offsets = [0, 8], sizes = [8, 8], strides = [1, 1]} : vector<8x32xf32> to vector<8x8xf32>
    %cst_38 = arith.constant dense<0.000000e+00> : vector<8x8xf32>
    %87 = tpu.matmul %85, %86, %cst_38 {dimension_numbers = #tpu.dot_dimension_numbers<[1], [0], [0], [1], [0, 0, 1, 1], [], []>} : vector<8x8xf32>, vector<8x8xf32>, vector<8x8xf32> -> vector<8x8xf32>
    %88 = vector.extract_strided_slice %79 {offsets = [2, 0, 0], sizes = [1, 8, 8], strides = [1, 1, 1]} : vector<4x8x8xf32> to vector<1x8x8xf32>
    %89 = vector.shape_cast %88 : vector<1x8x8xf32> to vector<8x8xf32>
    %90 = vector.extract_strided_slice %47 {offsets = [0, 16], sizes = [8, 8], strides = [1, 1]} : vector<8x32xf32> to vector<8x8xf32>
    %cst_39 = arith.constant dense<0.000000e+00> : vector<8x8xf32>
    %91 = tpu.matmul %89, %90, %cst_39 {dimension_numbers = #tpu.dot_dimension_numbers<[1], [0], [0], [1], [0, 0, 1, 1], [], []>} : vector<8x8xf32>, vector<8x8xf32>, vector<8x8xf32> -> vector<8x8xf32>
    %92 = vector.extract_strided_slice %79 {offsets = [3, 0, 0], sizes = [1, 8, 8], strides = [1, 1, 1]} : vector<4x8x8xf32> to vector<1x8x8xf32>
    %93 = vector.shape_cast %92 : vector<1x8x8xf32> to vector<8x8xf32>
    %94 = vector.extract_strided_slice %47 {offsets = [0, 24], sizes = [8, 8], strides = [1, 1]} : vector<8x32xf32> to vector<8x8xf32>
    %cst_40 = arith.constant dense<0.000000e+00> : vector<8x8xf32>
    %95 = tpu.matmul %93, %94, %cst_40 {dimension_numbers = #tpu.dot_dimension_numbers<[1], [0], [0], [1], [0, 0, 1, 1], [], []>} : vector<8x8xf32>, vector<8x8xf32>, vector<8x8xf32> -> vector<8x8xf32>
    %96 = tpu.concatenate %83, %87, %91, %95 in 1 : vector<8x8xf32>, vector<8x8xf32>, vector<8x8xf32>, vector<8x8xf32> -> vector<8x32xf32>
    %cst_41 = arith.constant dense<0.000000e+00> : vector<8x32xf32>
    %97 = tpu.matmul %96, %49, %cst_41 {dimension_numbers = #tpu.dot_dimension_numbers<[1], [0], [0], [1], [0, 0, 1, 1], [], []>} : vector<8x32xf32>, vector<32x32xf32>, vector<8x32xf32> -> vector<8x32xf32>
    %98 = vector.broadcast %51 : vector<1x32xf32> to vector<8x32xf32>
    %99 = arith.addf %97, %98 : vector<8x32xf32>
    %100 = arith.addf %34, %99 : vector<8x32xf32>
    %c0_42 = arith.constant 0 : index
    %c0_43 = arith.constant 0 : index
    %c0_44 = arith.constant 0 : index
    %101 = vector.load %arg14[%c0_42, %c0_43, %c0_44] : memref<2x1x32xf32, #tpu.memory_space<vmem>>, vector<1x1x32xf32>
    %102 = vector.shape_cast %101 : vector<1x1x32xf32> to vector<1x32xf32>
    %c0_45 = arith.constant 0 : index
    %c0_46 = arith.constant 0 : index
    %c0_47 = arith.constant 0 : index
    %103 = vector.load %arg15[%c0_45, %c0_46, %c0_47] : memref<2x1x32xf32, #tpu.memory_space<vmem>>, vector<1x1x32xf32>
    %104 = vector.shape_cast %103 : vector<1x1x32xf32> to vector<1x32xf32>
    %cst_48 = arith.constant dense<0.000000e+00> : vector<8xf32>
    %105 = vector.multi_reduction <add>, %100, %cst_48 [1] : vector<8x32xf32> to vector<8xf32>
    %106 = vector.shape_cast %105 : vector<8xf32> to vector<8x1xf32>
    %cst_49 = arith.constant 3.200000e+01 : f32
    %107 = vector.broadcast %cst_49 : f32 to vector<8x1xf32>
    %108 = arith.divf %106, %107 : vector<8x1xf32>
    %109 = vector.broadcast %108 : vector<8x1xf32> to vector<8x32xf32>
    %110 = arith.subf %100, %109 : vector<8x32xf32>
    %111 = arith.mulf %110, %110 : vector<8x32xf32>
    %cst_50 = arith.constant dense<0.000000e+00> : vector<8xf32>
    %112 = vector.multi_reduction <add>, %111, %cst_50 [1] : vector<8x32xf32> to vector<8xf32>
    %113 = vector.shape_cast %112 : vector<8xf32> to vector<8x1xf32>
    %cst_51 = arith.constant 3.200000e+01 : f32
    %114 = vector.broadcast %cst_51 : f32 to vector<8x1xf32>
    %115 = arith.divf %113, %114 : vector<8x1xf32>
    %116 = vector.broadcast %108 : vector<8x1xf32> to vector<8x32xf32>
    %117 = arith.subf %100, %116 : vector<8x32xf32>
    %cst_52 = arith.constant 9.99999996E-13 : f32
    %118 = vector.broadcast %cst_52 : f32 to vector<8x1xf32>
    %119 = arith.addf %115, %118 : vector<8x1xf32>
    %120 = math.rsqrt %119 : vector<8x1xf32>
    %121 = vector.broadcast %120 : vector<8x1xf32> to vector<8x32xf32>
    %122 = arith.mulf %117, %121 : vector<8x32xf32>
    %123 = vector.broadcast %102 : vector<1x32xf32> to vector<8x32xf32>
    %124 = arith.mulf %122, %123 : vector<8x32xf32>
    %125 = vector.broadcast %104 : vector<1x32xf32> to vector<8x32xf32>
    %126 = arith.addf %124, %125 : vector<8x32xf32>
    %c0_53 = arith.constant 0 : index
    %c0_54 = arith.constant 0 : index
    %c0_55 = arith.constant 0 : index
    %127 = vector.load %arg18[%c0_53, %c0_54, %c0_55] : memref<2x32x64xf32, #tpu.memory_space<vmem>>, vector<1x32x64xf32>
    %128 = vector.shape_cast %127 : vector<1x32x64xf32> to vector<32x64xf32>
    %cst_56 = arith.constant dense<0.000000e+00> : vector<8x64xf32>
    %129 = tpu.matmul %126, %128, %cst_56 {dimension_numbers = #tpu.dot_dimension_numbers<[1], [0], [0], [1], [0, 0, 1, 1], [], []>} : vector<8x32xf32>, vector<32x64xf32>, vector<8x64xf32> -> vector<8x64xf32>
    %c0_57 = arith.constant 0 : index
    %c0_58 = arith.constant 0 : index
    %c0_59 = arith.constant 0 : index
    %130 = vector.load %arg19[%c0_57, %c0_58, %c0_59] : memref<2x1x64xf32, #tpu.memory_space<vmem>>, vector<1x1x64xf32>
    %131 = vector.shape_cast %130 : vector<1x1x64xf32> to vector<1x64xf32>
    %132 = vector.broadcast %131 : vector<1x64xf32> to vector<8x64xf32>
    %133 = arith.addf %129, %132 : vector<8x64xf32>
    %cst_60 = arith.constant 5.000000e-01 : f32
    %134 = vector.broadcast %cst_60 : f32 to vector<8x64xf32>
    %135 = arith.mulf %134, %133 : vector<8x64xf32>
    %cst_61 = arith.constant 4.471500e-02 : f32
    %136 = vector.broadcast %cst_61 : f32 to vector<8x64xf32>
    %137 = arith.mulf %136, %133 : vector<8x64xf32>
    %138 = arith.mulf %137, %133 : vector<8x64xf32>
    %139 = arith.mulf %138, %133 : vector<8x64xf32>
    %140 = arith.addf %133, %139 : vector<8x64xf32>
    %cst_62 = arith.constant 0.797884583 : f32
    %141 = vector.broadcast %cst_62 : f32 to vector<8x64xf32>
    %142 = arith.mulf %141, %140 : vector<8x64xf32>
    %143 = math.tanh %142 : vector<8x64xf32>
    %cst_63 = arith.constant 1.000000e+00 : f32
    %144 = vector.broadcast %cst_63 : f32 to vector<8x64xf32>
    %145 = arith.addf %144, %143 : vector<8x64xf32>
    %146 = arith.mulf %135, %145 : vector<8x64xf32>
    %c0_64 = arith.constant 0 : index
    %c0_65 = arith.constant 0 : index
    %c0_66 = arith.constant 0 : index
    %147 = vector.load %arg20[%c0_64, %c0_65, %c0_66] : memref<2x64x32xf32, #tpu.memory_space<vmem>>, vector<1x64x32xf32>
    %148 = vector.shape_cast %147 : vector<1x64x32xf32> to vector<64x32xf32>
    %cst_67 = arith.constant dense<0.000000e+00> : vector<8x32xf32>
    %149 = tpu.matmul %146, %148, %cst_67 {dimension_numbers = #tpu.dot_dimension_numbers<[1], [0], [0], [1], [0, 0, 1, 1], [], []>} : vector<8x64xf32>, vector<64x32xf32>, vector<8x32xf32> -> vector<8x32xf32>
    %c0_68 = arith.constant 0 : index
    %c0_69 = arith.constant 0 : index
    %c0_70 = arith.constant 0 : index
    %150 = vector.load %arg21[%c0_68, %c0_69, %c0_70] : memref<2x1x32xf32, #tpu.memory_space<vmem>>, vector<1x1x32xf32>
    %151 = vector.shape_cast %150 : vector<1x1x32xf32> to vector<1x32xf32>
    %152 = vector.broadcast %151 : vector<1x32xf32> to vector<8x32xf32>
    %153 = arith.addf %149, %152 : vector<8x32xf32>
    %154 = arith.addf %126, %153 : vector<8x32xf32>
    %c0_71 = arith.constant 0 : index
    %c0_72 = arith.constant 0 : index
    %c0_73 = arith.constant 0 : index
    %155 = vector.load %arg16[%c0_71, %c0_72, %c0_73] : memref<2x1x32xf32, #tpu.memory_space<vmem>>, vector<1x1x32xf32>
    %156 = vector.shape_cast %155 : vector<1x1x32xf32> to vector<1x32xf32>
    %c0_74 = arith.constant 0 : index
    %c0_75 = arith.constant 0 : index
    %c0_76 = arith.constant 0 : index
    %157 = vector.load %arg17[%c0_74, %c0_75, %c0_76] : memref<2x1x32xf32, #tpu.memory_space<vmem>>, vector<1x1x32xf32>
    %158 = vector.shape_cast %157 : vector<1x1x32xf32> to vector<1x32xf32>
    %cst_77 = arith.constant dense<0.000000e+00> : vector<8xf32>
    %159 = vector.multi_reduction <add>, %154, %cst_77 [1] : vector<8x32xf32> to vector<8xf32>
    %160 = vector.shape_cast %159 : vector<8xf32> to vector<8x1xf32>
    %cst_78 = arith.constant 3.200000e+01 : f32
    %161 = vector.broadcast %cst_78 : f32 to vector<8x1xf32>
    %162 = arith.divf %160, %161 : vector<8x1xf32>
    %163 = vector.broadcast %162 : vector<8x1xf32> to vector<8x32xf32>
    %164 = arith.subf %154, %163 : vector<8x32xf32>
    %165 = arith.mulf %164, %164 : vector<8x32xf32>
    %cst_79 = arith.constant dense<0.000000e+00> : vector<8xf32>
    %166 = vector.multi_reduction <add>, %165, %cst_79 [1] : vector<8x32xf32> to vector<8xf32>
    %167 = vector.shape_cast %166 : vector<8xf32> to vector<8x1xf32>
    %cst_80 = arith.constant 3.200000e+01 : f32
    %168 = vector.broadcast %cst_80 : f32 to vector<8x1xf32>
    %169 = arith.divf %167, %168 : vector<8x1xf32>
    %170 = vector.broadcast %162 : vector<8x1xf32> to vector<8x32xf32>
    %171 = arith.subf %154, %170 : vector<8x32xf32>
    %cst_81 = arith.constant 9.99999996E-13 : f32
    %172 = vector.broadcast %cst_81 : f32 to vector<8x1xf32>
    %173 = arith.addf %169, %172 : vector<8x1xf32>
    %174 = math.rsqrt %173 : vector<8x1xf32>
    %175 = vector.broadcast %174 : vector<8x1xf32> to vector<8x32xf32>
    %176 = arith.mulf %171, %175 : vector<8x32xf32>
    %177 = vector.broadcast %156 : vector<1x32xf32> to vector<8x32xf32>
    %178 = arith.mulf %176, %177 : vector<8x32xf32>
    %179 = vector.broadcast %158 : vector<1x32xf32> to vector<8x32xf32>
    %180 = arith.addf %178, %179 : vector<8x32xf32>
    %c1 = arith.constant 1 : index
    %c0_82 = arith.constant 0 : index
    %c0_83 = arith.constant 0 : index
    %181 = vector.load %arg10[%c1, %c0_82, %c0_83] : memref<2x32x384xf32, #tpu.memory_space<vmem>>, vector<1x32x384xf32>
    %182 = vector.shape_cast %181 : vector<1x32x384xf32> to vector<32x384xf32>
    %cst_84 = arith.constant dense<0.000000e+00> : vector<8x384xf32>
    %183 = tpu.matmul %180, %182, %cst_84 {dimension_numbers = #tpu.dot_dimension_numbers<[1], [0], [0], [1], [0, 0, 1, 1], [], []>} : vector<8x32xf32>, vector<32x384xf32>, vector<8x384xf32> -> vector<8x384xf32>
    %c1_85 = arith.constant 1 : index
    %c0_86 = arith.constant 0 : index
    %c0_87 = arith.constant 0 : index
    %184 = vector.load %arg11[%c1_85, %c0_86, %c0_87] : memref<2x1x384xf32, #tpu.memory_space<vmem>>, vector<1x1x384xf32>
    %185 = vector.shape_cast %184 : vector<1x1x384xf32> to vector<1x384xf32>
    %186 = vector.broadcast %185 : vector<1x384xf32> to vector<8x384xf32>
    %187 = arith.addf %183, %186 : vector<8x384xf32>
    %188 = vector.extract_strided_slice %187 {offsets = [0, 0], sizes = [8, 32], strides = [1, 1]} : vector<8x384xf32> to vector<8x32xf32>
    %189 = vector.extract_strided_slice %187 {offsets = [0, 128], sizes = [8, 32], strides = [1, 1]} : vector<8x384xf32> to vector<8x32xf32>
    %190 = vector.extract_strided_slice %187 {offsets = [0, 256], sizes = [8, 32], strides = [1, 1]} : vector<8x384xf32> to vector<8x32xf32>
    %c1_88 = arith.constant 1 : index
    %c0_89 = arith.constant 0 : index
    %c0_90 = arith.constant 0 : index
    %191 = vector.load %arg12[%c1_88, %c0_89, %c0_90] : memref<2x32x32xf32, #tpu.memory_space<vmem>>, vector<1x32x32xf32>
    %192 = vector.shape_cast %191 : vector<1x32x32xf32> to vector<32x32xf32>
    %c1_91 = arith.constant 1 : index
    %c0_92 = arith.constant 0 : index
    %c0_93 = arith.constant 0 : index
    %193 = vector.load %arg13[%c1_91, %c0_92, %c0_93] : memref<2x1x32xf32, #tpu.memory_space<vmem>>, vector<1x1x32xf32>
    %194 = vector.shape_cast %193 : vector<1x1x32xf32> to vector<1x32xf32>
    %195 = vector.extract_strided_slice %188 {offsets = [0, 0], sizes = [8, 8], strides = [1, 1]} : vector<8x32xf32> to vector<8x8xf32>
    %196 = vector.extract_strided_slice %189 {offsets = [0, 0], sizes = [8, 8], strides = [1, 1]} : vector<8x32xf32> to vector<8x8xf32>
    "tpu.trace_start"() <{level = 10 : i32, message = "qd,kd->qk"}> : () -> ()
    %cst_94 = arith.constant dense<0.000000e+00> : vector<8x8xf32>
    %197 = tpu.matmul %195, %196, %cst_94 {dimension_numbers = #tpu.dot_dimension_numbers<[1], [1], [0], [0], [0, 0, 1, 0], [], []>} : vector<8x8xf32>, vector<8x8xf32>, vector<8x8xf32> -> vector<8x8xf32>
    "tpu.trace_stop"() : () -> ()
    %198 = vector.extract_strided_slice %188 {offsets = [0, 8], sizes = [8, 8], strides = [1, 1]} : vector<8x32xf32> to vector<8x8xf32>
    %199 = vector.extract_strided_slice %189 {offsets = [0, 8], sizes = [8, 8], strides = [1, 1]} : vector<8x32xf32> to vector<8x8xf32>
    "tpu.trace_start"() <{level = 10 : i32, message = "qd,kd->qk"}> : () -> ()
    %cst_95 = arith.constant dense<0.000000e+00> : vector<8x8xf32>
    %200 = tpu.matmul %198, %199, %cst_95 {dimension_numbers = #tpu.dot_dimension_numbers<[1], [1], [0], [0], [0, 0, 1, 0], [], []>} : vector<8x8xf32>, vector<8x8xf32>, vector<8x8xf32> -> vector<8x8xf32>
    "tpu.trace_stop"() : () -> ()
    %201 = vector.extract_strided_slice %188 {offsets = [0, 16], sizes = [8, 8], strides = [1, 1]} : vector<8x32xf32> to vector<8x8xf32>
    %202 = vector.extract_strided_slice %189 {offsets = [0, 16], sizes = [8, 8], strides = [1, 1]} : vector<8x32xf32> to vector<8x8xf32>
    "tpu.trace_start"() <{level = 10 : i32, message = "qd,kd->qk"}> : () -> ()
    %cst_96 = arith.constant dense<0.000000e+00> : vector<8x8xf32>
    %203 = tpu.matmul %201, %202, %cst_96 {dimension_numbers = #tpu.dot_dimension_numbers<[1], [1], [0], [0], [0, 0, 1, 0], [], []>} : vector<8x8xf32>, vector<8x8xf32>, vector<8x8xf32> -> vector<8x8xf32>
    "tpu.trace_stop"() : () -> ()
    %204 = vector.extract_strided_slice %188 {offsets = [0, 24], sizes = [8, 8], strides = [1, 1]} : vector<8x32xf32> to vector<8x8xf32>
    %205 = vector.extract_strided_slice %189 {offsets = [0, 24], sizes = [8, 8], strides = [1, 1]} : vector<8x32xf32> to vector<8x8xf32>
    "tpu.trace_start"() <{level = 10 : i32, message = "qd,kd->qk"}> : () -> ()
    %cst_97 = arith.constant dense<0.000000e+00> : vector<8x8xf32>
    %206 = tpu.matmul %204, %205, %cst_97 {dimension_numbers = #tpu.dot_dimension_numbers<[1], [1], [0], [0], [0, 0, 1, 0], [], []>} : vector<8x8xf32>, vector<8x8xf32>, vector<8x8xf32> -> vector<8x8xf32>
    "tpu.trace_stop"() : () -> ()
    %207 = vector.shape_cast %197 : vector<8x8xf32> to vector<1x8x8xf32>
    %208 = vector.shape_cast %200 : vector<8x8xf32> to vector<1x8x8xf32>
    %209 = vector.shape_cast %203 : vector<8x8xf32> to vector<1x8x8xf32>
    %210 = vector.shape_cast %206 : vector<8x8xf32> to vector<1x8x8xf32>
    %211 = tpu.concatenate %207, %208, %209, %210 in 0 : vector<1x8x8xf32>, vector<1x8x8xf32>, vector<1x8x8xf32>, vector<1x8x8xf32> -> vector<4x8x8xf32>
    %212 = arith.addf %211, %37 : vector<4x8x8xf32>
    %cst_98 = arith.constant dense<0xFF800000> : vector<4x8xf32>
    %213 = vector.multi_reduction <maximumf>, %212, %cst_98 [2] : vector<4x8x8xf32> to vector<4x8xf32>
    %214 = vector.shape_cast %213 : vector<4x8xf32> to vector<4x8x1xf32>
    %215 = vector.broadcast %214 : vector<4x8x1xf32> to vector<4x8x8xf32>
    %216 = arith.subf %212, %215 : vector<4x8x8xf32>
    %217 = math.exp %216 : vector<4x8x8xf32>
    %cst_99 = arith.constant dense<0.000000e+00> : vector<4x8xf32>
    %218 = vector.multi_reduction <add>, %217, %cst_99 [2] : vector<4x8x8xf32> to vector<4x8xf32>
    %219 = vector.shape_cast %218 : vector<4x8xf32> to vector<4x8x1xf32>
    %220 = tpu.reciprocal %219 {approx = true} : vector<4x8x1xf32> -> vector<4x8x1xf32>
    %221 = vector.broadcast %220 : vector<4x8x1xf32> to vector<4x8x8xf32>
    %222 = arith.mulf %217, %221 : vector<4x8x8xf32>
    %223 = vector.extract_strided_slice %222 {offsets = [0, 0, 0], sizes = [1, 8, 8], strides = [1, 1, 1]} : vector<4x8x8xf32> to vector<1x8x8xf32>
    %224 = vector.shape_cast %223 : vector<1x8x8xf32> to vector<8x8xf32>
    %225 = vector.extract_strided_slice %190 {offsets = [0, 0], sizes = [8, 8], strides = [1, 1]} : vector<8x32xf32> to vector<8x8xf32>
    %cst_100 = arith.constant dense<0.000000e+00> : vector<8x8xf32>
    %226 = tpu.matmul %224, %225, %cst_100 {dimension_numbers = #tpu.dot_dimension_numbers<[1], [0], [0], [1], [0, 0, 1, 1], [], []>} : vector<8x8xf32>, vector<8x8xf32>, vector<8x8xf32> -> vector<8x8xf32>
    %227 = vector.extract_strided_slice %222 {offsets = [1, 0, 0], sizes = [1, 8, 8], strides = [1, 1, 1]} : vector<4x8x8xf32> to vector<1x8x8xf32>
    %228 = vector.shape_cast %227 : vector<1x8x8xf32> to vector<8x8xf32>
    %229 = vector.extract_strided_slice %190 {offsets = [0, 8], sizes = [8, 8], strides = [1, 1]} : vector<8x32xf32> to vector<8x8xf32>
    %cst_101 = arith.constant dense<0.000000e+00> : vector<8x8xf32>
    %230 = tpu.matmul %228, %229, %cst_101 {dimension_numbers = #tpu.dot_dimension_numbers<[1], [0], [0], [1], [0, 0, 1, 1], [], []>} : vector<8x8xf32>, vector<8x8xf32>, vector<8x8xf32> -> vector<8x8xf32>
    %231 = vector.extract_strided_slice %222 {offsets = [2, 0, 0], sizes = [1, 8, 8], strides = [1, 1, 1]} : vector<4x8x8xf32> to vector<1x8x8xf32>
    %232 = vector.shape_cast %231 : vector<1x8x8xf32> to vector<8x8xf32>
    %233 = vector.extract_strided_slice %190 {offsets = [0, 16], sizes = [8, 8], strides = [1, 1]} : vector<8x32xf32> to vector<8x8xf32>
    %cst_102 = arith.constant dense<0.000000e+00> : vector<8x8xf32>
    %234 = tpu.matmul %232, %233, %cst_102 {dimension_numbers = #tpu.dot_dimension_numbers<[1], [0], [0], [1], [0, 0, 1, 1], [], []>} : vector<8x8xf32>, vector<8x8xf32>, vector<8x8xf32> -> vector<8x8xf32>
    %235 = vector.extract_strided_slice %222 {offsets = [3, 0, 0], sizes = [1, 8, 8], strides = [1, 1, 1]} : vector<4x8x8xf32> to vector<1x8x8xf32>
    %236 = vector.shape_cast %235 : vector<1x8x8xf32> to vector<8x8xf32>
    %237 = vector.extract_strided_slice %190 {offsets = [0, 24], sizes = [8, 8], strides = [1, 1]} : vector<8x32xf32> to vector<8x8xf32>
    %cst_103 = arith.constant dense<0.000000e+00> : vector<8x8xf32>
    %238 = tpu.matmul %236, %237, %cst_103 {dimension_numbers = #tpu.dot_dimension_numbers<[1], [0], [0], [1], [0, 0, 1, 1], [], []>} : vector<8x8xf32>, vector<8x8xf32>, vector<8x8xf32> -> vector<8x8xf32>
    %239 = tpu.concatenate %226, %230, %234, %238 in 1 : vector<8x8xf32>, vector<8x8xf32>, vector<8x8xf32>, vector<8x8xf32> -> vector<8x32xf32>
    %cst_104 = arith.constant dense<0.000000e+00> : vector<8x32xf32>
    %240 = tpu.matmul %239, %192, %cst_104 {dimension_numbers = #tpu.dot_dimension_numbers<[1], [0], [0], [1], [0, 0, 1, 1], [], []>} : vector<8x32xf32>, vector<32x32xf32>, vector<8x32xf32> -> vector<8x32xf32>
    %241 = vector.broadcast %194 : vector<1x32xf32> to vector<8x32xf32>
    %242 = arith.addf %240, %241 : vector<8x32xf32>
    %243 = arith.addf %180, %242 : vector<8x32xf32>
    %c1_105 = arith.constant 1 : index
    %c0_106 = arith.constant 0 : index
    %c0_107 = arith.constant 0 : index
    %244 = vector.load %arg14[%c1_105, %c0_106, %c0_107] : memref<2x1x32xf32, #tpu.memory_space<vmem>>, vector<1x1x32xf32>
    %245 = vector.shape_cast %244 : vector<1x1x32xf32> to vector<1x32xf32>
    %c1_108 = arith.constant 1 : index
    %c0_109 = arith.constant 0 : index
    %c0_110 = arith.constant 0 : index
    %246 = vector.load %arg15[%c1_108, %c0_109, %c0_110] : memref<2x1x32xf32, #tpu.memory_space<vmem>>, vector<1x1x32xf32>
    %247 = vector.shape_cast %246 : vector<1x1x32xf32> to vector<1x32xf32>
    %cst_111 = arith.constant dense<0.000000e+00> : vector<8xf32>
    %248 = vector.multi_reduction <add>, %243, %cst_111 [1] : vector<8x32xf32> to vector<8xf32>
    %249 = vector.shape_cast %248 : vector<8xf32> to vector<8x1xf32>
    %cst_112 = arith.constant 3.200000e+01 : f32
    %250 = vector.broadcast %cst_112 : f32 to vector<8x1xf32>
    %251 = arith.divf %249, %250 : vector<8x1xf32>
    %252 = vector.broadcast %251 : vector<8x1xf32> to vector<8x32xf32>
    %253 = arith.subf %243, %252 : vector<8x32xf32>
    %254 = arith.mulf %253, %253 : vector<8x32xf32>
    %cst_113 = arith.constant dense<0.000000e+00> : vector<8xf32>
    %255 = vector.multi_reduction <add>, %254, %cst_113 [1] : vector<8x32xf32> to vector<8xf32>
    %256 = vector.shape_cast %255 : vector<8xf32> to vector<8x1xf32>
    %cst_114 = arith.constant 3.200000e+01 : f32
    %257 = vector.broadcast %cst_114 : f32 to vector<8x1xf32>
    %258 = arith.divf %256, %257 : vector<8x1xf32>
    %259 = vector.broadcast %251 : vector<8x1xf32> to vector<8x32xf32>
    %260 = arith.subf %243, %259 : vector<8x32xf32>
    %cst_115 = arith.constant 9.99999996E-13 : f32
    %261 = vector.broadcast %cst_115 : f32 to vector<8x1xf32>
    %262 = arith.addf %258, %261 : vector<8x1xf32>
    %263 = math.rsqrt %262 : vector<8x1xf32>
    %264 = vector.broadcast %263 : vector<8x1xf32> to vector<8x32xf32>
    %265 = arith.mulf %260, %264 : vector<8x32xf32>
    %266 = vector.broadcast %245 : vector<1x32xf32> to vector<8x32xf32>
    %267 = arith.mulf %265, %266 : vector<8x32xf32>
    %268 = vector.broadcast %247 : vector<1x32xf32> to vector<8x32xf32>
    %269 = arith.addf %267, %268 : vector<8x32xf32>
    %c1_116 = arith.constant 1 : index
    %c0_117 = arith.constant 0 : index
    %c0_118 = arith.constant 0 : index
    %270 = vector.load %arg18[%c1_116, %c0_117, %c0_118] : memref<2x32x64xf32, #tpu.memory_space<vmem>>, vector<1x32x64xf32>
    %271 = vector.shape_cast %270 : vector<1x32x64xf32> to vector<32x64xf32>
    %cst_119 = arith.constant dense<0.000000e+00> : vector<8x64xf32>
    %272 = tpu.matmul %269, %271, %cst_119 {dimension_numbers = #tpu.dot_dimension_numbers<[1], [0], [0], [1], [0, 0, 1, 1], [], []>} : vector<8x32xf32>, vector<32x64xf32>, vector<8x64xf32> -> vector<8x64xf32>
    %c1_120 = arith.constant 1 : index
    %c0_121 = arith.constant 0 : index
    %c0_122 = arith.constant 0 : index
    %273 = vector.load %arg19[%c1_120, %c0_121, %c0_122] : memref<2x1x64xf32, #tpu.memory_space<vmem>>, vector<1x1x64xf32>
    %274 = vector.shape_cast %273 : vector<1x1x64xf32> to vector<1x64xf32>
    %275 = vector.broadcast %274 : vector<1x64xf32> to vector<8x64xf32>
    %276 = arith.addf %272, %275 : vector<8x64xf32>
    %cst_123 = arith.constant 5.000000e-01 : f32
    %277 = vector.broadcast %cst_123 : f32 to vector<8x64xf32>
    %278 = arith.mulf %277, %276 : vector<8x64xf32>
    %cst_124 = arith.constant 4.471500e-02 : f32
    %279 = vector.broadcast %cst_124 : f32 to vector<8x64xf32>
    %280 = arith.mulf %279, %276 : vector<8x64xf32>
    %281 = arith.mulf %280, %276 : vector<8x64xf32>
    %282 = arith.mulf %281, %276 : vector<8x64xf32>
    %283 = arith.addf %276, %282 : vector<8x64xf32>
    %cst_125 = arith.constant 0.797884583 : f32
    %284 = vector.broadcast %cst_125 : f32 to vector<8x64xf32>
    %285 = arith.mulf %284, %283 : vector<8x64xf32>
    %286 = math.tanh %285 : vector<8x64xf32>
    %cst_126 = arith.constant 1.000000e+00 : f32
    %287 = vector.broadcast %cst_126 : f32 to vector<8x64xf32>
    %288 = arith.addf %287, %286 : vector<8x64xf32>
    %289 = arith.mulf %278, %288 : vector<8x64xf32>
    %c1_127 = arith.constant 1 : index
    %c0_128 = arith.constant 0 : index
    %c0_129 = arith.constant 0 : index
    %290 = vector.load %arg20[%c1_127, %c0_128, %c0_129] : memref<2x64x32xf32, #tpu.memory_space<vmem>>, vector<1x64x32xf32>
    %291 = vector.shape_cast %290 : vector<1x64x32xf32> to vector<64x32xf32>
    %cst_130 = arith.constant dense<0.000000e+00> : vector<8x32xf32>
    %292 = tpu.matmul %289, %291, %cst_130 {dimension_numbers = #tpu.dot_dimension_numbers<[1], [0], [0], [1], [0, 0, 1, 1], [], []>} : vector<8x64xf32>, vector<64x32xf32>, vector<8x32xf32> -> vector<8x32xf32>
    %c1_131 = arith.constant 1 : index
    %c0_132 = arith.constant 0 : index
    %c0_133 = arith.constant 0 : index
    %293 = vector.load %arg21[%c1_131, %c0_132, %c0_133] : memref<2x1x32xf32, #tpu.memory_space<vmem>>, vector<1x1x32xf32>
    %294 = vector.shape_cast %293 : vector<1x1x32xf32> to vector<1x32xf32>
    %295 = vector.broadcast %294 : vector<1x32xf32> to vector<8x32xf32>
    %296 = arith.addf %292, %295 : vector<8x32xf32>
    %297 = arith.addf %269, %296 : vector<8x32xf32>
    %c1_134 = arith.constant 1 : index
    %c0_135 = arith.constant 0 : index
    %c0_136 = arith.constant 0 : index
    %298 = vector.load %arg16[%c1_134, %c0_135, %c0_136] : memref<2x1x32xf32, #tpu.memory_space<vmem>>, vector<1x1x32xf32>
    %299 = vector.shape_cast %298 : vector<1x1x32xf32> to vector<1x32xf32>
    %c1_137 = arith.constant 1 : index
    %c0_138 = arith.constant 0 : index
    %c0_139 = arith.constant 0 : index
    %300 = vector.load %arg17[%c1_137, %c0_138, %c0_139] : memref<2x1x32xf32, #tpu.memory_space<vmem>>, vector<1x1x32xf32>
    %301 = vector.shape_cast %300 : vector<1x1x32xf32> to vector<1x32xf32>
    %cst_140 = arith.constant dense<0.000000e+00> : vector<8xf32>
    %302 = vector.multi_reduction <add>, %297, %cst_140 [1] : vector<8x32xf32> to vector<8xf32>
    %303 = vector.shape_cast %302 : vector<8xf32> to vector<8x1xf32>
    %cst_141 = arith.constant 3.200000e+01 : f32
    %304 = vector.broadcast %cst_141 : f32 to vector<8x1xf32>
    %305 = arith.divf %303, %304 : vector<8x1xf32>
    %306 = vector.broadcast %305 : vector<8x1xf32> to vector<8x32xf32>
    %307 = arith.subf %297, %306 : vector<8x32xf32>
    %308 = arith.mulf %307, %307 : vector<8x32xf32>
    %cst_142 = arith.constant dense<0.000000e+00> : vector<8xf32>
    %309 = vector.multi_reduction <add>, %308, %cst_142 [1] : vector<8x32xf32> to vector<8xf32>
    %310 = vector.shape_cast %309 : vector<8xf32> to vector<8x1xf32>
    %cst_143 = arith.constant 3.200000e+01 : f32
    %311 = vector.broadcast %cst_143 : f32 to vector<8x1xf32>
    %312 = arith.divf %310, %311 : vector<8x1xf32>
    %313 = vector.broadcast %305 : vector<8x1xf32> to vector<8x32xf32>
    %314 = arith.subf %297, %313 : vector<8x32xf32>
    %cst_144 = arith.constant 9.99999996E-13 : f32
    %315 = vector.broadcast %cst_144 : f32 to vector<8x1xf32>
    %316 = arith.addf %312, %315 : vector<8x1xf32>
    %317 = math.rsqrt %316 : vector<8x1xf32>
    %318 = vector.broadcast %317 : vector<8x1xf32> to vector<8x32xf32>
    %319 = arith.mulf %314, %318 : vector<8x32xf32>
    %320 = vector.broadcast %299 : vector<1x32xf32> to vector<8x32xf32>
    %321 = arith.mulf %319, %320 : vector<8x32xf32>
    %322 = vector.broadcast %301 : vector<1x32xf32> to vector<8x32xf32>
    %323 = arith.addf %321, %322 : vector<8x32xf32>
    %c0_145 = arith.constant 0 : index
    %c0_146 = arith.constant 0 : index
    %c0_147 = arith.constant 0 : index
    %324 = vector.load %arg3[%c0_145, %c0_146, %c0_147] : memref<1x8x1xi32, #tpu.memory_space<vmem>>, vector<1x8x1xi32>
    %325 = vector.shape_cast %324 : vector<1x8x1xi32> to vector<8x1xi32>
    %c0_148 = arith.constant 0 : index
    %c0_149 = arith.constant 0 : index
    %326 = vector.load %arg22[%c0_148, %c0_149] : memref<64x32xf32, #tpu.memory_space<vmem>>, vector<64x32xf32>
    %c0_150 = arith.constant 0 : index
    %c0_151 = arith.constant 0 : index
    %327 = vector.load %arg23[%c0_150, %c0_151] : memref<8x32xf32, #tpu.memory_space<vmem>>, vector<8x32xf32>
    %328 = tpu.iota {dimensions = array<i32: 1>} : vector<8x64xi32>
    %329 = vector.broadcast %325 : vector<8x1xi32> to vector<8x64xi32>
    %330 = arith.cmpi eq, %328, %329 : vector<8x64xi32>
    %331 = arith.extui %330 : vector<8x64xi1> to vector<8x64xi32>
    %332 = arith.sitofp %331 : vector<8x64xi32> to vector<8x64xf32>
    %cst_152 = arith.constant dense<0.000000e+00> : vector<8x32xf32>
    %333 = tpu.matmul %332, %326, %cst_152 {dimension_numbers = #tpu.dot_dimension_numbers<[1], [0], [0], [1], [0, 0, 1, 1], [], []>} : vector<8x64xf32>, vector<64x32xf32>, vector<8x32xf32> -> vector<8x32xf32>
    %334 = arith.addf %333, %327 : vector<8x32xf32>
    %c0_153 = arith.constant 0 : index
    %c0_154 = arith.constant 0 : index
    %c0_155 = arith.constant 0 : index
    %335 = vector.load %arg4[%c0_153, %c0_154, %c0_155] : memref<1x32x8xf32, #tpu.memory_space<vmem>>, vector<1x32x8xf32>
    %336 = vector.shape_cast %335 : vector<1x32x8xf32> to vector<32x8xf32>
    %337 = vector.shape_cast %336 : vector<32x8xf32> to vector<4x8x8xf32>
    %c0_156 = arith.constant 0 : index
    %c0_157 = arith.constant 0 : index
    %c0_158 = arith.constant 0 : index
    %338 = vector.load %arg28[%c0_156, %c0_157, %c0_158] : memref<2x1x32xf32, #tpu.memory_space<vmem>>, vector<1x1x32xf32>
    %339 = vector.shape_cast %338 : vector<1x1x32xf32> to vector<1x32xf32>
    %c0_159 = arith.constant 0 : index
    %c0_160 = arith.constant 0 : index
    %c0_161 = arith.constant 0 : index
    %340 = vector.load %arg29[%c0_159, %c0_160, %c0_161] : memref<2x1x32xf32, #tpu.memory_space<vmem>>, vector<1x1x32xf32>
    %341 = vector.shape_cast %340 : vector<1x1x32xf32> to vector<1x32xf32>
    %cst_162 = arith.constant dense<0.000000e+00> : vector<8xf32>
    %342 = vector.multi_reduction <add>, %334, %cst_162 [1] : vector<8x32xf32> to vector<8xf32>
    %343 = vector.shape_cast %342 : vector<8xf32> to vector<8x1xf32>
    %cst_163 = arith.constant 3.200000e+01 : f32
    %344 = vector.broadcast %cst_163 : f32 to vector<8x1xf32>
    %345 = arith.divf %343, %344 : vector<8x1xf32>
    %346 = vector.broadcast %345 : vector<8x1xf32> to vector<8x32xf32>
    %347 = arith.subf %334, %346 : vector<8x32xf32>
    %348 = arith.mulf %347, %347 : vector<8x32xf32>
    %cst_164 = arith.constant dense<0.000000e+00> : vector<8xf32>
    %349 = vector.multi_reduction <add>, %348, %cst_164 [1] : vector<8x32xf32> to vector<8xf32>
    %350 = vector.shape_cast %349 : vector<8xf32> to vector<8x1xf32>
    %cst_165 = arith.constant 3.200000e+01 : f32
    %351 = vector.broadcast %cst_165 : f32 to vector<8x1xf32>
    %352 = arith.divf %350, %351 : vector<8x1xf32>
    %353 = vector.broadcast %345 : vector<8x1xf32> to vector<8x32xf32>
    %354 = arith.subf %334, %353 : vector<8x32xf32>
    %cst_166 = arith.constant 9.99999974E-6 : f32
    %355 = vector.broadcast %cst_166 : f32 to vector<8x1xf32>
    %356 = arith.addf %352, %355 : vector<8x1xf32>
    %357 = math.rsqrt %356 : vector<8x1xf32>
    %358 = vector.broadcast %357 : vector<8x1xf32> to vector<8x32xf32>
    %359 = arith.mulf %354, %358 : vector<8x32xf32>
    %360 = vector.broadcast %339 : vector<1x32xf32> to vector<8x32xf32>
    %361 = arith.mulf %359, %360 : vector<8x32xf32>
    %362 = vector.broadcast %341 : vector<1x32xf32> to vector<8x32xf32>
    %363 = arith.addf %361, %362 : vector<8x32xf32>
    %c0_167 = arith.constant 0 : index
    %c0_168 = arith.constant 0 : index
    %c0_169 = arith.constant 0 : index
    %364 = vector.load %arg24[%c0_167, %c0_168, %c0_169] : memref<2x32x384xf32, #tpu.memory_space<vmem>>, vector<1x32x384xf32>
    %365 = vector.shape_cast %364 : vector<1x32x384xf32> to vector<32x384xf32>
    %cst_170 = arith.constant dense<0.000000e+00> : vector<8x384xf32>
    %366 = tpu.matmul %363, %365, %cst_170 {dimension_numbers = #tpu.dot_dimension_numbers<[1], [0], [0], [1], [0, 0, 1, 1], [], []>} : vector<8x32xf32>, vector<32x384xf32>, vector<8x384xf32> -> vector<8x384xf32>
    %c0_171 = arith.constant 0 : index
    %c0_172 = arith.constant 0 : index
    %c0_173 = arith.constant 0 : index
    %367 = vector.load %arg25[%c0_171, %c0_172, %c0_173] : memref<2x1x384xf32, #tpu.memory_space<vmem>>, vector<1x1x384xf32>
    %368 = vector.shape_cast %367 : vector<1x1x384xf32> to vector<1x384xf32>
    %369 = vector.broadcast %368 : vector<1x384xf32> to vector<8x384xf32>
    %370 = arith.addf %366, %369 : vector<8x384xf32>
    %371 = vector.extract_strided_slice %370 {offsets = [0, 0], sizes = [8, 32], strides = [1, 1]} : vector<8x384xf32> to vector<8x32xf32>
    %372 = vector.extract_strided_slice %370 {offsets = [0, 128], sizes = [8, 32], strides = [1, 1]} : vector<8x384xf32> to vector<8x32xf32>
    %373 = vector.extract_strided_slice %370 {offsets = [0, 256], sizes = [8, 32], strides = [1, 1]} : vector<8x384xf32> to vector<8x32xf32>
    %c0_174 = arith.constant 0 : index
    %c0_175 = arith.constant 0 : index
    %c0_176 = arith.constant 0 : index
    %374 = vector.load %arg26[%c0_174, %c0_175, %c0_176] : memref<2x32x32xf32, #tpu.memory_space<vmem>>, vector<1x32x32xf32>
    %375 = vector.shape_cast %374 : vector<1x32x32xf32> to vector<32x32xf32>
    %c0_177 = arith.constant 0 : index
    %c0_178 = arith.constant 0 : index
    %c0_179 = arith.constant 0 : index
    %376 = vector.load %arg27[%c0_177, %c0_178, %c0_179] : memref<2x1x32xf32, #tpu.memory_space<vmem>>, vector<1x1x32xf32>
    %377 = vector.shape_cast %376 : vector<1x1x32xf32> to vector<1x32xf32>
    %378 = vector.extract_strided_slice %371 {offsets = [0, 0], sizes = [8, 8], strides = [1, 1]} : vector<8x32xf32> to vector<8x8xf32>
    %379 = vector.extract_strided_slice %372 {offsets = [0, 0], sizes = [8, 8], strides = [1, 1]} : vector<8x32xf32> to vector<8x8xf32>
    "tpu.trace_start"() <{level = 10 : i32, message = "qd,kd->qk"}> : () -> ()
    %cst_180 = arith.constant dense<0.000000e+00> : vector<8x8xf32>
    %380 = tpu.matmul %378, %379, %cst_180 {dimension_numbers = #tpu.dot_dimension_numbers<[1], [1], [0], [0], [0, 0, 1, 0], [], []>} : vector<8x8xf32>, vector<8x8xf32>, vector<8x8xf32> -> vector<8x8xf32>
    "tpu.trace_stop"() : () -> ()
    %381 = vector.extract_strided_slice %371 {offsets = [0, 8], sizes = [8, 8], strides = [1, 1]} : vector<8x32xf32> to vector<8x8xf32>
    %382 = vector.extract_strided_slice %372 {offsets = [0, 8], sizes = [8, 8], strides = [1, 1]} : vector<8x32xf32> to vector<8x8xf32>
    "tpu.trace_start"() <{level = 10 : i32, message = "qd,kd->qk"}> : () -> ()
    %cst_181 = arith.constant dense<0.000000e+00> : vector<8x8xf32>
    %383 = tpu.matmul %381, %382, %cst_181 {dimension_numbers = #tpu.dot_dimension_numbers<[1], [1], [0], [0], [0, 0, 1, 0], [], []>} : vector<8x8xf32>, vector<8x8xf32>, vector<8x8xf32> -> vector<8x8xf32>
    "tpu.trace_stop"() : () -> ()
    %384 = vector.extract_strided_slice %371 {offsets = [0, 16], sizes = [8, 8], strides = [1, 1]} : vector<8x32xf32> to vector<8x8xf32>
    %385 = vector.extract_strided_slice %372 {offsets = [0, 16], sizes = [8, 8], strides = [1, 1]} : vector<8x32xf32> to vector<8x8xf32>
    "tpu.trace_start"() <{level = 10 : i32, message = "qd,kd->qk"}> : () -> ()
    %cst_182 = arith.constant dense<0.000000e+00> : vector<8x8xf32>
    %386 = tpu.matmul %384, %385, %cst_182 {dimension_numbers = #tpu.dot_dimension_numbers<[1], [1], [0], [0], [0, 0, 1, 0], [], []>} : vector<8x8xf32>, vector<8x8xf32>, vector<8x8xf32> -> vector<8x8xf32>
    "tpu.trace_stop"() : () -> ()
    %387 = vector.extract_strided_slice %371 {offsets = [0, 24], sizes = [8, 8], strides = [1, 1]} : vector<8x32xf32> to vector<8x8xf32>
    %388 = vector.extract_strided_slice %372 {offsets = [0, 24], sizes = [8, 8], strides = [1, 1]} : vector<8x32xf32> to vector<8x8xf32>
    "tpu.trace_start"() <{level = 10 : i32, message = "qd,kd->qk"}> : () -> ()
    %cst_183 = arith.constant dense<0.000000e+00> : vector<8x8xf32>
    %389 = tpu.matmul %387, %388, %cst_183 {dimension_numbers = #tpu.dot_dimension_numbers<[1], [1], [0], [0], [0, 0, 1, 0], [], []>} : vector<8x8xf32>, vector<8x8xf32>, vector<8x8xf32> -> vector<8x8xf32>
    "tpu.trace_stop"() : () -> ()
    %390 = vector.shape_cast %380 : vector<8x8xf32> to vector<1x8x8xf32>
    %391 = vector.shape_cast %383 : vector<8x8xf32> to vector<1x8x8xf32>
    %392 = vector.shape_cast %386 : vector<8x8xf32> to vector<1x8x8xf32>
    %393 = vector.shape_cast %389 : vector<8x8xf32> to vector<1x8x8xf32>
    %394 = tpu.concatenate %390, %391, %392, %393 in 0 : vector<1x8x8xf32>, vector<1x8x8xf32>, vector<1x8x8xf32>, vector<1x8x8xf32> -> vector<4x8x8xf32>
    %395 = arith.addf %394, %337 : vector<4x8x8xf32>
    %cst_184 = arith.constant dense<0xFF800000> : vector<4x8xf32>
    %396 = vector.multi_reduction <maximumf>, %395, %cst_184 [2] : vector<4x8x8xf32> to vector<4x8xf32>
    %397 = vector.shape_cast %396 : vector<4x8xf32> to vector<4x8x1xf32>
    %398 = vector.broadcast %397 : vector<4x8x1xf32> to vector<4x8x8xf32>
    %399 = arith.subf %395, %398 : vector<4x8x8xf32>
    %400 = math.exp %399 : vector<4x8x8xf32>
    %cst_185 = arith.constant dense<0.000000e+00> : vector<4x8xf32>
    %401 = vector.multi_reduction <add>, %400, %cst_185 [2] : vector<4x8x8xf32> to vector<4x8xf32>
    %402 = vector.shape_cast %401 : vector<4x8xf32> to vector<4x8x1xf32>
    %403 = tpu.reciprocal %402 {approx = true} : vector<4x8x1xf32> -> vector<4x8x1xf32>
    %404 = vector.broadcast %403 : vector<4x8x1xf32> to vector<4x8x8xf32>
    %405 = arith.mulf %400, %404 : vector<4x8x8xf32>
    %406 = vector.extract_strided_slice %405 {offsets = [0, 0, 0], sizes = [1, 8, 8], strides = [1, 1, 1]} : vector<4x8x8xf32> to vector<1x8x8xf32>
    %407 = vector.shape_cast %406 : vector<1x8x8xf32> to vector<8x8xf32>
    %408 = vector.extract_strided_slice %373 {offsets = [0, 0], sizes = [8, 8], strides = [1, 1]} : vector<8x32xf32> to vector<8x8xf32>
    %cst_186 = arith.constant dense<0.000000e+00> : vector<8x8xf32>
    %409 = tpu.matmul %407, %408, %cst_186 {dimension_numbers = #tpu.dot_dimension_numbers<[1], [0], [0], [1], [0, 0, 1, 1], [], []>} : vector<8x8xf32>, vector<8x8xf32>, vector<8x8xf32> -> vector<8x8xf32>
    %410 = vector.extract_strided_slice %405 {offsets = [1, 0, 0], sizes = [1, 8, 8], strides = [1, 1, 1]} : vector<4x8x8xf32> to vector<1x8x8xf32>
    %411 = vector.shape_cast %410 : vector<1x8x8xf32> to vector<8x8xf32>
    %412 = vector.extract_strided_slice %373 {offsets = [0, 8], sizes = [8, 8], strides = [1, 1]} : vector<8x32xf32> to vector<8x8xf32>
    %cst_187 = arith.constant dense<0.000000e+00> : vector<8x8xf32>
    %413 = tpu.matmul %411, %412, %cst_187 {dimension_numbers = #tpu.dot_dimension_numbers<[1], [0], [0], [1], [0, 0, 1, 1], [], []>} : vector<8x8xf32>, vector<8x8xf32>, vector<8x8xf32> -> vector<8x8xf32>
    %414 = vector.extract_strided_slice %405 {offsets = [2, 0, 0], sizes = [1, 8, 8], strides = [1, 1, 1]} : vector<4x8x8xf32> to vector<1x8x8xf32>
    %415 = vector.shape_cast %414 : vector<1x8x8xf32> to vector<8x8xf32>
    %416 = vector.extract_strided_slice %373 {offsets = [0, 16], sizes = [8, 8], strides = [1, 1]} : vector<8x32xf32> to vector<8x8xf32>
    %cst_188 = arith.constant dense<0.000000e+00> : vector<8x8xf32>
    %417 = tpu.matmul %415, %416, %cst_188 {dimension_numbers = #tpu.dot_dimension_numbers<[1], [0], [0], [1], [0, 0, 1, 1], [], []>} : vector<8x8xf32>, vector<8x8xf32>, vector<8x8xf32> -> vector<8x8xf32>
    %418 = vector.extract_strided_slice %405 {offsets = [3, 0, 0], sizes = [1, 8, 8], strides = [1, 1, 1]} : vector<4x8x8xf32> to vector<1x8x8xf32>
    %419 = vector.shape_cast %418 : vector<1x8x8xf32> to vector<8x8xf32>
    %420 = vector.extract_strided_slice %373 {offsets = [0, 24], sizes = [8, 8], strides = [1, 1]} : vector<8x32xf32> to vector<8x8xf32>
    %cst_189 = arith.constant dense<0.000000e+00> : vector<8x8xf32>
    %421 = tpu.matmul %419, %420, %cst_189 {dimension_numbers = #tpu.dot_dimension_numbers<[1], [0], [0], [1], [0, 0, 1, 1], [], []>} : vector<8x8xf32>, vector<8x8xf32>, vector<8x8xf32> -> vector<8x8xf32>
    %422 = tpu.concatenate %409, %413, %417, %421 in 1 : vector<8x8xf32>, vector<8x8xf32>, vector<8x8xf32>, vector<8x8xf32> -> vector<8x32xf32>
    %cst_190 = arith.constant dense<0.000000e+00> : vector<8x32xf32>
    %423 = tpu.matmul %422, %375, %cst_190 {dimension_numbers = #tpu.dot_dimension_numbers<[1], [0], [0], [1], [0, 0, 1, 1], [], []>} : vector<8x32xf32>, vector<32x32xf32>, vector<8x32xf32> -> vector<8x32xf32>
    %424 = vector.broadcast %377 : vector<1x32xf32> to vector<8x32xf32>
    %425 = arith.addf %423, %424 : vector<8x32xf32>
    %426 = arith.addf %334, %425 : vector<8x32xf32>
    %c0_191 = arith.constant 0 : index
    %c0_192 = arith.constant 0 : index
    %c0_193 = arith.constant 0 : index
    %427 = vector.load %arg30[%c0_191, %c0_192, %c0_193] : memref<2x1x32xf32, #tpu.memory_space<vmem>>, vector<1x1x32xf32>
    %428 = vector.shape_cast %427 : vector<1x1x32xf32> to vector<1x32xf32>
    %c0_194 = arith.constant 0 : index
    %c0_195 = arith.constant 0 : index
    %c0_196 = arith.constant 0 : index
    %429 = vector.load %arg31[%c0_194, %c0_195, %c0_196] : memref<2x1x32xf32, #tpu.memory_space<vmem>>, vector<1x1x32xf32>
    %430 = vector.shape_cast %429 : vector<1x1x32xf32> to vector<1x32xf32>
    %cst_197 = arith.constant dense<0.000000e+00> : vector<8xf32>
    %431 = vector.multi_reduction <add>, %426, %cst_197 [1] : vector<8x32xf32> to vector<8xf32>
    %432 = vector.shape_cast %431 : vector<8xf32> to vector<8x1xf32>
    %cst_198 = arith.constant 3.200000e+01 : f32
    %433 = vector.broadcast %cst_198 : f32 to vector<8x1xf32>
    %434 = arith.divf %432, %433 : vector<8x1xf32>
    %435 = vector.broadcast %434 : vector<8x1xf32> to vector<8x32xf32>
    %436 = arith.subf %426, %435 : vector<8x32xf32>
    %437 = arith.mulf %436, %436 : vector<8x32xf32>
    %cst_199 = arith.constant dense<0.000000e+00> : vector<8xf32>
    %438 = vector.multi_reduction <add>, %437, %cst_199 [1] : vector<8x32xf32> to vector<8xf32>
    %439 = vector.shape_cast %438 : vector<8xf32> to vector<8x1xf32>
    %cst_200 = arith.constant 3.200000e+01 : f32
    %440 = vector.broadcast %cst_200 : f32 to vector<8x1xf32>
    %441 = arith.divf %439, %440 : vector<8x1xf32>
    %442 = vector.broadcast %434 : vector<8x1xf32> to vector<8x32xf32>
    %443 = arith.subf %426, %442 : vector<8x32xf32>
    %cst_201 = arith.constant 9.99999974E-6 : f32
    %444 = vector.broadcast %cst_201 : f32 to vector<8x1xf32>
    %445 = arith.addf %441, %444 : vector<8x1xf32>
    %446 = math.rsqrt %445 : vector<8x1xf32>
    %447 = vector.broadcast %446 : vector<8x1xf32> to vector<8x32xf32>
    %448 = arith.mulf %443, %447 : vector<8x32xf32>
    %449 = vector.broadcast %428 : vector<1x32xf32> to vector<8x32xf32>
    %450 = arith.mulf %448, %449 : vector<8x32xf32>
    %451 = vector.broadcast %430 : vector<1x32xf32> to vector<8x32xf32>
    %452 = arith.addf %450, %451 : vector<8x32xf32>
    %c0_202 = arith.constant 0 : index
    %c0_203 = arith.constant 0 : index
    %c0_204 = arith.constant 0 : index
    %453 = vector.load %arg34[%c0_202, %c0_203, %c0_204] : memref<2x32x32xf32, #tpu.memory_space<vmem>>, vector<1x32x32xf32>
    %454 = vector.shape_cast %453 : vector<1x32x32xf32> to vector<32x32xf32>
    %cst_205 = arith.constant dense<0.000000e+00> : vector<8x32xf32>
    %455 = tpu.matmul %452, %454, %cst_205 {dimension_numbers = #tpu.dot_dimension_numbers<[1], [0], [0], [1], [0, 0, 1, 1], [], []>} : vector<8x32xf32>, vector<32x32xf32>, vector<8x32xf32> -> vector<8x32xf32>
    %c0_206 = arith.constant 0 : index
    %c0_207 = arith.constant 0 : index
    %c0_208 = arith.constant 0 : index
    %456 = vector.load %arg35[%c0_206, %c0_207, %c0_208] : memref<2x1x32xf32, #tpu.memory_space<vmem>>, vector<1x1x32xf32>
    %457 = vector.shape_cast %456 : vector<1x1x32xf32> to vector<1x32xf32>
    %458 = vector.broadcast %457 : vector<1x32xf32> to vector<8x32xf32>
    %459 = arith.addf %455, %458 : vector<8x32xf32>
    %c0_209 = arith.constant 0 : index
    %c0_210 = arith.constant 0 : index
    %c0_211 = arith.constant 0 : index
    %460 = vector.load %arg36[%c0_209, %c0_210, %c0_211] : memref<2x32x256xf32, #tpu.memory_space<vmem>>, vector<1x32x256xf32>
    %461 = vector.shape_cast %460 : vector<1x32x256xf32> to vector<32x256xf32>
    %cst_212 = arith.constant dense<0.000000e+00> : vector<8x256xf32>
    %462 = tpu.matmul %323, %461, %cst_212 {dimension_numbers = #tpu.dot_dimension_numbers<[1], [0], [0], [1], [0, 0, 1, 1], [], []>} : vector<8x32xf32>, vector<32x256xf32>, vector<8x256xf32> -> vector<8x256xf32>
    %c0_213 = arith.constant 0 : index
    %c0_214 = arith.constant 0 : index
    %c0_215 = arith.constant 0 : index
    %463 = vector.load %arg37[%c0_213, %c0_214, %c0_215] : memref<2x1x256xf32, #tpu.memory_space<vmem>>, vector<1x1x256xf32>
    %464 = vector.shape_cast %463 : vector<1x1x256xf32> to vector<1x256xf32>
    %465 = vector.broadcast %464 : vector<1x256xf32> to vector<8x256xf32>
    %466 = arith.addf %462, %465 : vector<8x256xf32>
    %467 = vector.extract_strided_slice %466 {offsets = [0, 0], sizes = [8, 32], strides = [1, 1]} : vector<8x256xf32> to vector<8x32xf32>
    %468 = vector.extract_strided_slice %466 {offsets = [0, 128], sizes = [8, 32], strides = [1, 1]} : vector<8x256xf32> to vector<8x32xf32>
    %c0_216 = arith.constant 0 : index
    %c0_217 = arith.constant 0 : index
    %c0_218 = arith.constant 0 : index
    %469 = vector.load %arg38[%c0_216, %c0_217, %c0_218] : memref<2x32x32xf32, #tpu.memory_space<vmem>>, vector<1x32x32xf32>
    %470 = vector.shape_cast %469 : vector<1x32x32xf32> to vector<32x32xf32>
    %c0_219 = arith.constant 0 : index
    %c0_220 = arith.constant 0 : index
    %c0_221 = arith.constant 0 : index
    %471 = vector.load %arg39[%c0_219, %c0_220, %c0_221] : memref<2x1x32xf32, #tpu.memory_space<vmem>>, vector<1x1x32xf32>
    %472 = vector.shape_cast %471 : vector<1x1x32xf32> to vector<1x32xf32>
    %473 = vector.extract_strided_slice %459 {offsets = [0, 0], sizes = [8, 8], strides = [1, 1]} : vector<8x32xf32> to vector<8x8xf32>
    %474 = vector.extract_strided_slice %467 {offsets = [0, 0], sizes = [8, 8], strides = [1, 1]} : vector<8x32xf32> to vector<8x8xf32>
    "tpu.trace_start"() <{level = 10 : i32, message = "qd,kd->qk"}> : () -> ()
    %cst_222 = arith.constant dense<0.000000e+00> : vector<8x8xf32>
    %475 = tpu.matmul %473, %474, %cst_222 {dimension_numbers = #tpu.dot_dimension_numbers<[1], [1], [0], [0], [0, 0, 1, 0], [], []>} : vector<8x8xf32>, vector<8x8xf32>, vector<8x8xf32> -> vector<8x8xf32>
    "tpu.trace_stop"() : () -> ()
    %476 = vector.extract_strided_slice %459 {offsets = [0, 8], sizes = [8, 8], strides = [1, 1]} : vector<8x32xf32> to vector<8x8xf32>
    %477 = vector.extract_strided_slice %467 {offsets = [0, 8], sizes = [8, 8], strides = [1, 1]} : vector<8x32xf32> to vector<8x8xf32>
    "tpu.trace_start"() <{level = 10 : i32, message = "qd,kd->qk"}> : () -> ()
    %cst_223 = arith.constant dense<0.000000e+00> : vector<8x8xf32>
    %478 = tpu.matmul %476, %477, %cst_223 {dimension_numbers = #tpu.dot_dimension_numbers<[1], [1], [0], [0], [0, 0, 1, 0], [], []>} : vector<8x8xf32>, vector<8x8xf32>, vector<8x8xf32> -> vector<8x8xf32>
    "tpu.trace_stop"() : () -> ()
    %479 = vector.extract_strided_slice %459 {offsets = [0, 16], sizes = [8, 8], strides = [1, 1]} : vector<8x32xf32> to vector<8x8xf32>
    %480 = vector.extract_strided_slice %467 {offsets = [0, 16], sizes = [8, 8], strides = [1, 1]} : vector<8x32xf32> to vector<8x8xf32>
    "tpu.trace_start"() <{level = 10 : i32, message = "qd,kd->qk"}> : () -> ()
    %cst_224 = arith.constant dense<0.000000e+00> : vector<8x8xf32>
    %481 = tpu.matmul %479, %480, %cst_224 {dimension_numbers = #tpu.dot_dimension_numbers<[1], [1], [0], [0], [0, 0, 1, 0], [], []>} : vector<8x8xf32>, vector<8x8xf32>, vector<8x8xf32> -> vector<8x8xf32>
    "tpu.trace_stop"() : () -> ()
    %482 = vector.extract_strided_slice %459 {offsets = [0, 24], sizes = [8, 8], strides = [1, 1]} : vector<8x32xf32> to vector<8x8xf32>
    %483 = vector.extract_strided_slice %467 {offsets = [0, 24], sizes = [8, 8], strides = [1, 1]} : vector<8x32xf32> to vector<8x8xf32>
    "tpu.trace_start"() <{level = 10 : i32, message = "qd,kd->qk"}> : () -> ()
    %cst_225 = arith.constant dense<0.000000e+00> : vector<8x8xf32>
    %484 = tpu.matmul %482, %483, %cst_225 {dimension_numbers = #tpu.dot_dimension_numbers<[1], [1], [0], [0], [0, 0, 1, 0], [], []>} : vector<8x8xf32>, vector<8x8xf32>, vector<8x8xf32> -> vector<8x8xf32>
    "tpu.trace_stop"() : () -> ()
    %485 = vector.shape_cast %475 : vector<8x8xf32> to vector<1x8x8xf32>
    %486 = vector.shape_cast %478 : vector<8x8xf32> to vector<1x8x8xf32>
    %487 = vector.shape_cast %481 : vector<8x8xf32> to vector<1x8x8xf32>
    %488 = vector.shape_cast %484 : vector<8x8xf32> to vector<1x8x8xf32>
    %489 = tpu.concatenate %485, %486, %487, %488 in 0 : vector<1x8x8xf32>, vector<1x8x8xf32>, vector<1x8x8xf32>, vector<1x8x8xf32> -> vector<4x8x8xf32>
    %cst_226 = arith.constant dense<0xFF800000> : vector<4x8xf32>
    %490 = vector.multi_reduction <maximumf>, %489, %cst_226 [2] : vector<4x8x8xf32> to vector<4x8xf32>
    %491 = vector.shape_cast %490 : vector<4x8xf32> to vector<4x8x1xf32>
    %492 = vector.broadcast %491 : vector<4x8x1xf32> to vector<4x8x8xf32>
    %493 = arith.subf %489, %492 : vector<4x8x8xf32>
    %494 = math.exp %493 : vector<4x8x8xf32>
    %cst_227 = arith.constant dense<0.000000e+00> : vector<4x8xf32>
    %495 = vector.multi_reduction <add>, %494, %cst_227 [2] : vector<4x8x8xf32> to vector<4x8xf32>
    %496 = vector.shape_cast %495 : vector<4x8xf32> to vector<4x8x1xf32>
    %497 = tpu.reciprocal %496 {approx = true} : vector<4x8x1xf32> -> vector<4x8x1xf32>
    %498 = vector.broadcast %497 : vector<4x8x1xf32> to vector<4x8x8xf32>
    %499 = arith.mulf %494, %498 : vector<4x8x8xf32>
    %500 = vector.extract_strided_slice %499 {offsets = [0, 0, 0], sizes = [1, 8, 8], strides = [1, 1, 1]} : vector<4x8x8xf32> to vector<1x8x8xf32>
    %501 = vector.shape_cast %500 : vector<1x8x8xf32> to vector<8x8xf32>
    %502 = vector.extract_strided_slice %468 {offsets = [0, 0], sizes = [8, 8], strides = [1, 1]} : vector<8x32xf32> to vector<8x8xf32>
    %cst_228 = arith.constant dense<0.000000e+00> : vector<8x8xf32>
    %503 = tpu.matmul %501, %502, %cst_228 {dimension_numbers = #tpu.dot_dimension_numbers<[1], [0], [0], [1], [0, 0, 1, 1], [], []>} : vector<8x8xf32>, vector<8x8xf32>, vector<8x8xf32> -> vector<8x8xf32>
    %504 = vector.extract_strided_slice %499 {offsets = [1, 0, 0], sizes = [1, 8, 8], strides = [1, 1, 1]} : vector<4x8x8xf32> to vector<1x8x8xf32>
    %505 = vector.shape_cast %504 : vector<1x8x8xf32> to vector<8x8xf32>
    %506 = vector.extract_strided_slice %468 {offsets = [0, 8], sizes = [8, 8], strides = [1, 1]} : vector<8x32xf32> to vector<8x8xf32>
    %cst_229 = arith.constant dense<0.000000e+00> : vector<8x8xf32>
    %507 = tpu.matmul %505, %506, %cst_229 {dimension_numbers = #tpu.dot_dimension_numbers<[1], [0], [0], [1], [0, 0, 1, 1], [], []>} : vector<8x8xf32>, vector<8x8xf32>, vector<8x8xf32> -> vector<8x8xf32>
    %508 = vector.extract_strided_slice %499 {offsets = [2, 0, 0], sizes = [1, 8, 8], strides = [1, 1, 1]} : vector<4x8x8xf32> to vector<1x8x8xf32>
    %509 = vector.shape_cast %508 : vector<1x8x8xf32> to vector<8x8xf32>
    %510 = vector.extract_strided_slice %468 {offsets = [0, 16], sizes = [8, 8], strides = [1, 1]} : vector<8x32xf32> to vector<8x8xf32>
    %cst_230 = arith.constant dense<0.000000e+00> : vector<8x8xf32>
    %511 = tpu.matmul %509, %510, %cst_230 {dimension_numbers = #tpu.dot_dimension_numbers<[1], [0], [0], [1], [0, 0, 1, 1], [], []>} : vector<8x8xf32>, vector<8x8xf32>, vector<8x8xf32> -> vector<8x8xf32>
    %512 = vector.extract_strided_slice %499 {offsets = [3, 0, 0], sizes = [1, 8, 8], strides = [1, 1, 1]} : vector<4x8x8xf32> to vector<1x8x8xf32>
    %513 = vector.shape_cast %512 : vector<1x8x8xf32> to vector<8x8xf32>
    %514 = vector.extract_strided_slice %468 {offsets = [0, 24], sizes = [8, 8], strides = [1, 1]} : vector<8x32xf32> to vector<8x8xf32>
    %cst_231 = arith.constant dense<0.000000e+00> : vector<8x8xf32>
    %515 = tpu.matmul %513, %514, %cst_231 {dimension_numbers = #tpu.dot_dimension_numbers<[1], [0], [0], [1], [0, 0, 1, 1], [], []>} : vector<8x8xf32>, vector<8x8xf32>, vector<8x8xf32> -> vector<8x8xf32>
    %516 = tpu.concatenate %503, %507, %511, %515 in 1 : vector<8x8xf32>, vector<8x8xf32>, vector<8x8xf32>, vector<8x8xf32> -> vector<8x32xf32>
    %cst_232 = arith.constant dense<0.000000e+00> : vector<8x32xf32>
    %517 = tpu.matmul %516, %470, %cst_232 {dimension_numbers = #tpu.dot_dimension_numbers<[1], [0], [0], [1], [0, 0, 1, 1], [], []>} : vector<8x32xf32>, vector<32x32xf32>, vector<8x32xf32> -> vector<8x32xf32>
    %518 = vector.broadcast %472 : vector<1x32xf32> to vector<8x32xf32>
    %519 = arith.addf %517, %518 : vector<8x32xf32>
    %520 = arith.addf %426, %519 : vector<8x32xf32>
    %c0_233 = arith.constant 0 : index
    %c0_234 = arith.constant 0 : index
    %c0_235 = arith.constant 0 : index
    %521 = vector.load %arg32[%c0_233, %c0_234, %c0_235] : memref<2x1x32xf32, #tpu.memory_space<vmem>>, vector<1x1x32xf32>
    %522 = vector.shape_cast %521 : vector<1x1x32xf32> to vector<1x32xf32>
    %c0_236 = arith.constant 0 : index
    %c0_237 = arith.constant 0 : index
    %c0_238 = arith.constant 0 : index
    %523 = vector.load %arg33[%c0_236, %c0_237, %c0_238] : memref<2x1x32xf32, #tpu.memory_space<vmem>>, vector<1x1x32xf32>
    %524 = vector.shape_cast %523 : vector<1x1x32xf32> to vector<1x32xf32>
    %cst_239 = arith.constant dense<0.000000e+00> : vector<8xf32>
    %525 = vector.multi_reduction <add>, %520, %cst_239 [1] : vector<8x32xf32> to vector<8xf32>
    %526 = vector.shape_cast %525 : vector<8xf32> to vector<8x1xf32>
    %cst_240 = arith.constant 3.200000e+01 : f32
    %527 = vector.broadcast %cst_240 : f32 to vector<8x1xf32>
    %528 = arith.divf %526, %527 : vector<8x1xf32>
    %529 = vector.broadcast %528 : vector<8x1xf32> to vector<8x32xf32>
    %530 = arith.subf %520, %529 : vector<8x32xf32>
    %531 = arith.mulf %530, %530 : vector<8x32xf32>
    %cst_241 = arith.constant dense<0.000000e+00> : vector<8xf32>
    %532 = vector.multi_reduction <add>, %531, %cst_241 [1] : vector<8x32xf32> to vector<8xf32>
    %533 = vector.shape_cast %532 : vector<8xf32> to vector<8x1xf32>
    %cst_242 = arith.constant 3.200000e+01 : f32
    %534 = vector.broadcast %cst_242 : f32 to vector<8x1xf32>
    %535 = arith.divf %533, %534 : vector<8x1xf32>
    %536 = vector.broadcast %528 : vector<8x1xf32> to vector<8x32xf32>
    %537 = arith.subf %520, %536 : vector<8x32xf32>
    %cst_243 = arith.constant 9.99999974E-6 : f32
    %538 = vector.broadcast %cst_243 : f32 to vector<8x1xf32>
    %539 = arith.addf %535, %538 : vector<8x1xf32>
    %540 = math.rsqrt %539 : vector<8x1xf32>
    %541 = vector.broadcast %540 : vector<8x1xf32> to vector<8x32xf32>
    %542 = arith.mulf %537, %541 : vector<8x32xf32>
    %543 = vector.broadcast %522 : vector<1x32xf32> to vector<8x32xf32>
    %544 = arith.mulf %542, %543 : vector<8x32xf32>
    %545 = vector.broadcast %524 : vector<1x32xf32> to vector<8x32xf32>
    %546 = arith.addf %544, %545 : vector<8x32xf32>
    %c0_244 = arith.constant 0 : index
    %c0_245 = arith.constant 0 : index
    %c0_246 = arith.constant 0 : index
    %547 = vector.load %arg40[%c0_244, %c0_245, %c0_246] : memref<2x32x64xf32, #tpu.memory_space<vmem>>, vector<1x32x64xf32>
    %548 = vector.shape_cast %547 : vector<1x32x64xf32> to vector<32x64xf32>
    %cst_247 = arith.constant dense<0.000000e+00> : vector<8x64xf32>
    %549 = tpu.matmul %546, %548, %cst_247 {dimension_numbers = #tpu.dot_dimension_numbers<[1], [0], [0], [1], [0, 0, 1, 1], [], []>} : vector<8x32xf32>, vector<32x64xf32>, vector<8x64xf32> -> vector<8x64xf32>
    %c0_248 = arith.constant 0 : index
    %c0_249 = arith.constant 0 : index
    %c0_250 = arith.constant 0 : index
    %550 = vector.load %arg41[%c0_248, %c0_249, %c0_250] : memref<2x1x64xf32, #tpu.memory_space<vmem>>, vector<1x1x64xf32>
    %551 = vector.shape_cast %550 : vector<1x1x64xf32> to vector<1x64xf32>
    %552 = vector.broadcast %551 : vector<1x64xf32> to vector<8x64xf32>
    %553 = arith.addf %549, %552 : vector<8x64xf32>
    %cst_251 = arith.constant 5.000000e-01 : f32
    %554 = vector.broadcast %cst_251 : f32 to vector<8x64xf32>
    %555 = arith.mulf %554, %553 : vector<8x64xf32>
    %cst_252 = arith.constant 4.471500e-02 : f32
    %556 = vector.broadcast %cst_252 : f32 to vector<8x64xf32>
    %557 = arith.mulf %556, %553 : vector<8x64xf32>
    %558 = arith.mulf %557, %553 : vector<8x64xf32>
    %559 = arith.mulf %558, %553 : vector<8x64xf32>
    %560 = arith.addf %553, %559 : vector<8x64xf32>
    %cst_253 = arith.constant 0.797884583 : f32
    %561 = vector.broadcast %cst_253 : f32 to vector<8x64xf32>
    %562 = arith.mulf %561, %560 : vector<8x64xf32>
    %563 = math.tanh %562 : vector<8x64xf32>
    %cst_254 = arith.constant 1.000000e+00 : f32
    %564 = vector.broadcast %cst_254 : f32 to vector<8x64xf32>
    %565 = arith.addf %564, %563 : vector<8x64xf32>
    %566 = arith.mulf %555, %565 : vector<8x64xf32>
    %c0_255 = arith.constant 0 : index
    %c0_256 = arith.constant 0 : index
    %c0_257 = arith.constant 0 : index
    %567 = vector.load %arg42[%c0_255, %c0_256, %c0_257] : memref<2x64x32xf32, #tpu.memory_space<vmem>>, vector<1x64x32xf32>
    %568 = vector.shape_cast %567 : vector<1x64x32xf32> to vector<64x32xf32>
    %cst_258 = arith.constant dense<0.000000e+00> : vector<8x32xf32>
    %569 = tpu.matmul %566, %568, %cst_258 {dimension_numbers = #tpu.dot_dimension_numbers<[1], [0], [0], [1], [0, 0, 1, 1], [], []>} : vector<8x64xf32>, vector<64x32xf32>, vector<8x32xf32> -> vector<8x32xf32>
    %570 = arith.addf %520, %569 : vector<8x32xf32>
    %c0_259 = arith.constant 0 : index
    %c0_260 = arith.constant 0 : index
    %c0_261 = arith.constant 0 : index
    %571 = vector.load %arg43[%c0_259, %c0_260, %c0_261] : memref<2x1x32xf32, #tpu.memory_space<vmem>>, vector<1x1x32xf32>
    %572 = vector.shape_cast %571 : vector<1x1x32xf32> to vector<1x32xf32>
    %573 = vector.broadcast %572 : vector<1x32xf32> to vector<8x32xf32>
    %574 = arith.addf %570, %573 : vector<8x32xf32>
    %c1_262 = arith.constant 1 : index
    %c0_263 = arith.constant 0 : index
    %c0_264 = arith.constant 0 : index
    %575 = vector.load %arg28[%c1_262, %c0_263, %c0_264] : memref<2x1x32xf32, #tpu.memory_space<vmem>>, vector<1x1x32xf32>
    %576 = vector.shape_cast %575 : vector<1x1x32xf32> to vector<1x32xf32>
    %c1_265 = arith.constant 1 : index
    %c0_266 = arith.constant 0 : index
    %c0_267 = arith.constant 0 : index
    %577 = vector.load %arg29[%c1_265, %c0_266, %c0_267] : memref<2x1x32xf32, #tpu.memory_space<vmem>>, vector<1x1x32xf32>
    %578 = vector.shape_cast %577 : vector<1x1x32xf32> to vector<1x32xf32>
    %cst_268 = arith.constant dense<0.000000e+00> : vector<8xf32>
    %579 = vector.multi_reduction <add>, %574, %cst_268 [1] : vector<8x32xf32> to vector<8xf32>
    %580 = vector.shape_cast %579 : vector<8xf32> to vector<8x1xf32>
    %cst_269 = arith.constant 3.200000e+01 : f32
    %581 = vector.broadcast %cst_269 : f32 to vector<8x1xf32>
    %582 = arith.divf %580, %581 : vector<8x1xf32>
    %583 = vector.broadcast %582 : vector<8x1xf32> to vector<8x32xf32>
    %584 = arith.subf %574, %583 : vector<8x32xf32>
    %585 = arith.mulf %584, %584 : vector<8x32xf32>
    %cst_270 = arith.constant dense<0.000000e+00> : vector<8xf32>
    %586 = vector.multi_reduction <add>, %585, %cst_270 [1] : vector<8x32xf32> to vector<8xf32>
    %587 = vector.shape_cast %586 : vector<8xf32> to vector<8x1xf32>
    %cst_271 = arith.constant 3.200000e+01 : f32
    %588 = vector.broadcast %cst_271 : f32 to vector<8x1xf32>
    %589 = arith.divf %587, %588 : vector<8x1xf32>
    %590 = vector.broadcast %582 : vector<8x1xf32> to vector<8x32xf32>
    %591 = arith.subf %574, %590 : vector<8x32xf32>
    %cst_272 = arith.constant 9.99999974E-6 : f32
    %592 = vector.broadcast %cst_272 : f32 to vector<8x1xf32>
    %593 = arith.addf %589, %592 : vector<8x1xf32>
    %594 = math.rsqrt %593 : vector<8x1xf32>
    %595 = vector.broadcast %594 : vector<8x1xf32> to vector<8x32xf32>
    %596 = arith.mulf %591, %595 : vector<8x32xf32>
    %597 = vector.broadcast %576 : vector<1x32xf32> to vector<8x32xf32>
    %598 = arith.mulf %596, %597 : vector<8x32xf32>
    %599 = vector.broadcast %578 : vector<1x32xf32> to vector<8x32xf32>
    %600 = arith.addf %598, %599 : vector<8x32xf32>
    %c1_273 = arith.constant 1 : index
    %c0_274 = arith.constant 0 : index
    %c0_275 = arith.constant 0 : index
    %601 = vector.load %arg24[%c1_273, %c0_274, %c0_275] : memref<2x32x384xf32, #tpu.memory_space<vmem>>, vector<1x32x384xf32>
    %602 = vector.shape_cast %601 : vector<1x32x384xf32> to vector<32x384xf32>
    %cst_276 = arith.constant dense<0.000000e+00> : vector<8x384xf32>
    %603 = tpu.matmul %600, %602, %cst_276 {dimension_numbers = #tpu.dot_dimension_numbers<[1], [0], [0], [1], [0, 0, 1, 1], [], []>} : vector<8x32xf32>, vector<32x384xf32>, vector<8x384xf32> -> vector<8x384xf32>
    %c1_277 = arith.constant 1 : index
    %c0_278 = arith.constant 0 : index
    %c0_279 = arith.constant 0 : index
    %604 = vector.load %arg25[%c1_277, %c0_278, %c0_279] : memref<2x1x384xf32, #tpu.memory_space<vmem>>, vector<1x1x384xf32>
    %605 = vector.shape_cast %604 : vector<1x1x384xf32> to vector<1x384xf32>
    %606 = vector.broadcast %605 : vector<1x384xf32> to vector<8x384xf32>
    %607 = arith.addf %603, %606 : vector<8x384xf32>
    %608 = vector.extract_strided_slice %607 {offsets = [0, 0], sizes = [8, 32], strides = [1, 1]} : vector<8x384xf32> to vector<8x32xf32>
    %609 = vector.extract_strided_slice %607 {offsets = [0, 128], sizes = [8, 32], strides = [1, 1]} : vector<8x384xf32> to vector<8x32xf32>
    %610 = vector.extract_strided_slice %607 {offsets = [0, 256], sizes = [8, 32], strides = [1, 1]} : vector<8x384xf32> to vector<8x32xf32>
    %c1_280 = arith.constant 1 : index
    %c0_281 = arith.constant 0 : index
    %c0_282 = arith.constant 0 : index
    %611 = vector.load %arg26[%c1_280, %c0_281, %c0_282] : memref<2x32x32xf32, #tpu.memory_space<vmem>>, vector<1x32x32xf32>
    %612 = vector.shape_cast %611 : vector<1x32x32xf32> to vector<32x32xf32>
    %c1_283 = arith.constant 1 : index
    %c0_284 = arith.constant 0 : index
    %c0_285 = arith.constant 0 : index
    %613 = vector.load %arg27[%c1_283, %c0_284, %c0_285] : memref<2x1x32xf32, #tpu.memory_space<vmem>>, vector<1x1x32xf32>
    %614 = vector.shape_cast %613 : vector<1x1x32xf32> to vector<1x32xf32>
    %615 = vector.extract_strided_slice %608 {offsets = [0, 0], sizes = [8, 8], strides = [1, 1]} : vector<8x32xf32> to vector<8x8xf32>
    %616 = vector.extract_strided_slice %609 {offsets = [0, 0], sizes = [8, 8], strides = [1, 1]} : vector<8x32xf32> to vector<8x8xf32>
    "tpu.trace_start"() <{level = 10 : i32, message = "qd,kd->qk"}> : () -> ()
    %cst_286 = arith.constant dense<0.000000e+00> : vector<8x8xf32>
    %617 = tpu.matmul %615, %616, %cst_286 {dimension_numbers = #tpu.dot_dimension_numbers<[1], [1], [0], [0], [0, 0, 1, 0], [], []>} : vector<8x8xf32>, vector<8x8xf32>, vector<8x8xf32> -> vector<8x8xf32>
    "tpu.trace_stop"() : () -> ()
    %618 = vector.extract_strided_slice %608 {offsets = [0, 8], sizes = [8, 8], strides = [1, 1]} : vector<8x32xf32> to vector<8x8xf32>
    %619 = vector.extract_strided_slice %609 {offsets = [0, 8], sizes = [8, 8], strides = [1, 1]} : vector<8x32xf32> to vector<8x8xf32>
    "tpu.trace_start"() <{level = 10 : i32, message = "qd,kd->qk"}> : () -> ()
    %cst_287 = arith.constant dense<0.000000e+00> : vector<8x8xf32>
    %620 = tpu.matmul %618, %619, %cst_287 {dimension_numbers = #tpu.dot_dimension_numbers<[1], [1], [0], [0], [0, 0, 1, 0], [], []>} : vector<8x8xf32>, vector<8x8xf32>, vector<8x8xf32> -> vector<8x8xf32>
    "tpu.trace_stop"() : () -> ()
    %621 = vector.extract_strided_slice %608 {offsets = [0, 16], sizes = [8, 8], strides = [1, 1]} : vector<8x32xf32> to vector<8x8xf32>
    %622 = vector.extract_strided_slice %609 {offsets = [0, 16], sizes = [8, 8], strides = [1, 1]} : vector<8x32xf32> to vector<8x8xf32>
    "tpu.trace_start"() <{level = 10 : i32, message = "qd,kd->qk"}> : () -> ()
    %cst_288 = arith.constant dense<0.000000e+00> : vector<8x8xf32>
    %623 = tpu.matmul %621, %622, %cst_288 {dimension_numbers = #tpu.dot_dimension_numbers<[1], [1], [0], [0], [0, 0, 1, 0], [], []>} : vector<8x8xf32>, vector<8x8xf32>, vector<8x8xf32> -> vector<8x8xf32>
    "tpu.trace_stop"() : () -> ()
    %624 = vector.extract_strided_slice %608 {offsets = [0, 24], sizes = [8, 8], strides = [1, 1]} : vector<8x32xf32> to vector<8x8xf32>
    %625 = vector.extract_strided_slice %609 {offsets = [0, 24], sizes = [8, 8], strides = [1, 1]} : vector<8x32xf32> to vector<8x8xf32>
    "tpu.trace_start"() <{level = 10 : i32, message = "qd,kd->qk"}> : () -> ()
    %cst_289 = arith.constant dense<0.000000e+00> : vector<8x8xf32>
    %626 = tpu.matmul %624, %625, %cst_289 {dimension_numbers = #tpu.dot_dimension_numbers<[1], [1], [0], [0], [0, 0, 1, 0], [], []>} : vector<8x8xf32>, vector<8x8xf32>, vector<8x8xf32> -> vector<8x8xf32>
    "tpu.trace_stop"() : () -> ()
    %627 = vector.shape_cast %617 : vector<8x8xf32> to vector<1x8x8xf32>
    %628 = vector.shape_cast %620 : vector<8x8xf32> to vector<1x8x8xf32>
    %629 = vector.shape_cast %623 : vector<8x8xf32> to vector<1x8x8xf32>
    %630 = vector.shape_cast %626 : vector<8x8xf32> to vector<1x8x8xf32>
    %631 = tpu.concatenate %627, %628, %629, %630 in 0 : vector<1x8x8xf32>, vector<1x8x8xf32>, vector<1x8x8xf32>, vector<1x8x8xf32> -> vector<4x8x8xf32>
    %632 = arith.addf %631, %337 : vector<4x8x8xf32>
    %cst_290 = arith.constant dense<0xFF800000> : vector<4x8xf32>
    %633 = vector.multi_reduction <maximumf>, %632, %cst_290 [2] : vector<4x8x8xf32> to vector<4x8xf32>
    %634 = vector.shape_cast %633 : vector<4x8xf32> to vector<4x8x1xf32>
    %635 = vector.broadcast %634 : vector<4x8x1xf32> to vector<4x8x8xf32>
    %636 = arith.subf %632, %635 : vector<4x8x8xf32>
    %637 = math.exp %636 : vector<4x8x8xf32>
    %cst_291 = arith.constant dense<0.000000e+00> : vector<4x8xf32>
    %638 = vector.multi_reduction <add>, %637, %cst_291 [2] : vector<4x8x8xf32> to vector<4x8xf32>
    %639 = vector.shape_cast %638 : vector<4x8xf32> to vector<4x8x1xf32>
    %640 = tpu.reciprocal %639 {approx = true} : vector<4x8x1xf32> -> vector<4x8x1xf32>
    %641 = vector.broadcast %640 : vector<4x8x1xf32> to vector<4x8x8xf32>
    %642 = arith.mulf %637, %641 : vector<4x8x8xf32>
    %643 = vector.extract_strided_slice %642 {offsets = [0, 0, 0], sizes = [1, 8, 8], strides = [1, 1, 1]} : vector<4x8x8xf32> to vector<1x8x8xf32>
    %644 = vector.shape_cast %643 : vector<1x8x8xf32> to vector<8x8xf32>
    %645 = vector.extract_strided_slice %610 {offsets = [0, 0], sizes = [8, 8], strides = [1, 1]} : vector<8x32xf32> to vector<8x8xf32>
    %cst_292 = arith.constant dense<0.000000e+00> : vector<8x8xf32>
    %646 = tpu.matmul %644, %645, %cst_292 {dimension_numbers = #tpu.dot_dimension_numbers<[1], [0], [0], [1], [0, 0, 1, 1], [], []>} : vector<8x8xf32>, vector<8x8xf32>, vector<8x8xf32> -> vector<8x8xf32>
    %647 = vector.extract_strided_slice %642 {offsets = [1, 0, 0], sizes = [1, 8, 8], strides = [1, 1, 1]} : vector<4x8x8xf32> to vector<1x8x8xf32>
    %648 = vector.shape_cast %647 : vector<1x8x8xf32> to vector<8x8xf32>
    %649 = vector.extract_strided_slice %610 {offsets = [0, 8], sizes = [8, 8], strides = [1, 1]} : vector<8x32xf32> to vector<8x8xf32>
    %cst_293 = arith.constant dense<0.000000e+00> : vector<8x8xf32>
    %650 = tpu.matmul %648, %649, %cst_293 {dimension_numbers = #tpu.dot_dimension_numbers<[1], [0], [0], [1], [0, 0, 1, 1], [], []>} : vector<8x8xf32>, vector<8x8xf32>, vector<8x8xf32> -> vector<8x8xf32>
    %651 = vector.extract_strided_slice %642 {offsets = [2, 0, 0], sizes = [1, 8, 8], strides = [1, 1, 1]} : vector<4x8x8xf32> to vector<1x8x8xf32>
    %652 = vector.shape_cast %651 : vector<1x8x8xf32> to vector<8x8xf32>
    %653 = vector.extract_strided_slice %610 {offsets = [0, 16], sizes = [8, 8], strides = [1, 1]} : vector<8x32xf32> to vector<8x8xf32>
    %cst_294 = arith.constant dense<0.000000e+00> : vector<8x8xf32>
    %654 = tpu.matmul %652, %653, %cst_294 {dimension_numbers = #tpu.dot_dimension_numbers<[1], [0], [0], [1], [0, 0, 1, 1], [], []>} : vector<8x8xf32>, vector<8x8xf32>, vector<8x8xf32> -> vector<8x8xf32>
    %655 = vector.extract_strided_slice %642 {offsets = [3, 0, 0], sizes = [1, 8, 8], strides = [1, 1, 1]} : vector<4x8x8xf32> to vector<1x8x8xf32>
    %656 = vector.shape_cast %655 : vector<1x8x8xf32> to vector<8x8xf32>
    %657 = vector.extract_strided_slice %610 {offsets = [0, 24], sizes = [8, 8], strides = [1, 1]} : vector<8x32xf32> to vector<8x8xf32>
    %cst_295 = arith.constant dense<0.000000e+00> : vector<8x8xf32>
    %658 = tpu.matmul %656, %657, %cst_295 {dimension_numbers = #tpu.dot_dimension_numbers<[1], [0], [0], [1], [0, 0, 1, 1], [], []>} : vector<8x8xf32>, vector<8x8xf32>, vector<8x8xf32> -> vector<8x8xf32>
    %659 = tpu.concatenate %646, %650, %654, %658 in 1 : vector<8x8xf32>, vector<8x8xf32>, vector<8x8xf32>, vector<8x8xf32> -> vector<8x32xf32>
    %cst_296 = arith.constant dense<0.000000e+00> : vector<8x32xf32>
    %660 = tpu.matmul %659, %612, %cst_296 {dimension_numbers = #tpu.dot_dimension_numbers<[1], [0], [0], [1], [0, 0, 1, 1], [], []>} : vector<8x32xf32>, vector<32x32xf32>, vector<8x32xf32> -> vector<8x32xf32>
    %661 = vector.broadcast %614 : vector<1x32xf32> to vector<8x32xf32>
    %662 = arith.addf %660, %661 : vector<8x32xf32>
    %663 = arith.addf %574, %662 : vector<8x32xf32>
    %c1_297 = arith.constant 1 : index
    %c0_298 = arith.constant 0 : index
    %c0_299 = arith.constant 0 : index
    %664 = vector.load %arg30[%c1_297, %c0_298, %c0_299] : memref<2x1x32xf32, #tpu.memory_space<vmem>>, vector<1x1x32xf32>
    %665 = vector.shape_cast %664 : vector<1x1x32xf32> to vector<1x32xf32>
    %c1_300 = arith.constant 1 : index
    %c0_301 = arith.constant 0 : index
    %c0_302 = arith.constant 0 : index
    %666 = vector.load %arg31[%c1_300, %c0_301, %c0_302] : memref<2x1x32xf32, #tpu.memory_space<vmem>>, vector<1x1x32xf32>
    %667 = vector.shape_cast %666 : vector<1x1x32xf32> to vector<1x32xf32>
    %cst_303 = arith.constant dense<0.000000e+00> : vector<8xf32>
    %668 = vector.multi_reduction <add>, %663, %cst_303 [1] : vector<8x32xf32> to vector<8xf32>
    %669 = vector.shape_cast %668 : vector<8xf32> to vector<8x1xf32>
    %cst_304 = arith.constant 3.200000e+01 : f32
    %670 = vector.broadcast %cst_304 : f32 to vector<8x1xf32>
    %671 = arith.divf %669, %670 : vector<8x1xf32>
    %672 = vector.broadcast %671 : vector<8x1xf32> to vector<8x32xf32>
    %673 = arith.subf %663, %672 : vector<8x32xf32>
    %674 = arith.mulf %673, %673 : vector<8x32xf32>
    %cst_305 = arith.constant dense<0.000000e+00> : vector<8xf32>
    %675 = vector.multi_reduction <add>, %674, %cst_305 [1] : vector<8x32xf32> to vector<8xf32>
    %676 = vector.shape_cast %675 : vector<8xf32> to vector<8x1xf32>
    %cst_306 = arith.constant 3.200000e+01 : f32
    %677 = vector.broadcast %cst_306 : f32 to vector<8x1xf32>
    %678 = arith.divf %676, %677 : vector<8x1xf32>
    %679 = vector.broadcast %671 : vector<8x1xf32> to vector<8x32xf32>
    %680 = arith.subf %663, %679 : vector<8x32xf32>
    %cst_307 = arith.constant 9.99999974E-6 : f32
    %681 = vector.broadcast %cst_307 : f32 to vector<8x1xf32>
    %682 = arith.addf %678, %681 : vector<8x1xf32>
    %683 = math.rsqrt %682 : vector<8x1xf32>
    %684 = vector.broadcast %683 : vector<8x1xf32> to vector<8x32xf32>
    %685 = arith.mulf %680, %684 : vector<8x32xf32>
    %686 = vector.broadcast %665 : vector<1x32xf32> to vector<8x32xf32>
    %687 = arith.mulf %685, %686 : vector<8x32xf32>
    %688 = vector.broadcast %667 : vector<1x32xf32> to vector<8x32xf32>
    %689 = arith.addf %687, %688 : vector<8x32xf32>
    %c1_308 = arith.constant 1 : index
    %c0_309 = arith.constant 0 : index
    %c0_310 = arith.constant 0 : index
    %690 = vector.load %arg34[%c1_308, %c0_309, %c0_310] : memref<2x32x32xf32, #tpu.memory_space<vmem>>, vector<1x32x32xf32>
    %691 = vector.shape_cast %690 : vector<1x32x32xf32> to vector<32x32xf32>
    %cst_311 = arith.constant dense<0.000000e+00> : vector<8x32xf32>
    %692 = tpu.matmul %689, %691, %cst_311 {dimension_numbers = #tpu.dot_dimension_numbers<[1], [0], [0], [1], [0, 0, 1, 1], [], []>} : vector<8x32xf32>, vector<32x32xf32>, vector<8x32xf32> -> vector<8x32xf32>
    %c1_312 = arith.constant 1 : index
    %c0_313 = arith.constant 0 : index
    %c0_314 = arith.constant 0 : index
    %693 = vector.load %arg35[%c1_312, %c0_313, %c0_314] : memref<2x1x32xf32, #tpu.memory_space<vmem>>, vector<1x1x32xf32>
    %694 = vector.shape_cast %693 : vector<1x1x32xf32> to vector<1x32xf32>
    %695 = vector.broadcast %694 : vector<1x32xf32> to vector<8x32xf32>
    %696 = arith.addf %692, %695 : vector<8x32xf32>
    %c1_315 = arith.constant 1 : index
    %c0_316 = arith.constant 0 : index
    %c0_317 = arith.constant 0 : index
    %697 = vector.load %arg36[%c1_315, %c0_316, %c0_317] : memref<2x32x256xf32, #tpu.memory_space<vmem>>, vector<1x32x256xf32>
    %698 = vector.shape_cast %697 : vector<1x32x256xf32> to vector<32x256xf32>
    %cst_318 = arith.constant dense<0.000000e+00> : vector<8x256xf32>
    %699 = tpu.matmul %323, %698, %cst_318 {dimension_numbers = #tpu.dot_dimension_numbers<[1], [0], [0], [1], [0, 0, 1, 1], [], []>} : vector<8x32xf32>, vector<32x256xf32>, vector<8x256xf32> -> vector<8x256xf32>
    %c1_319 = arith.constant 1 : index
    %c0_320 = arith.constant 0 : index
    %c0_321 = arith.constant 0 : index
    %700 = vector.load %arg37[%c1_319, %c0_320, %c0_321] : memref<2x1x256xf32, #tpu.memory_space<vmem>>, vector<1x1x256xf32>
    %701 = vector.shape_cast %700 : vector<1x1x256xf32> to vector<1x256xf32>
    %702 = vector.broadcast %701 : vector<1x256xf32> to vector<8x256xf32>
    %703 = arith.addf %699, %702 : vector<8x256xf32>
    %704 = vector.extract_strided_slice %703 {offsets = [0, 0], sizes = [8, 32], strides = [1, 1]} : vector<8x256xf32> to vector<8x32xf32>
    %705 = vector.extract_strided_slice %703 {offsets = [0, 128], sizes = [8, 32], strides = [1, 1]} : vector<8x256xf32> to vector<8x32xf32>
    %c1_322 = arith.constant 1 : index
    %c0_323 = arith.constant 0 : index
    %c0_324 = arith.constant 0 : index
    %706 = vector.load %arg38[%c1_322, %c0_323, %c0_324] : memref<2x32x32xf32, #tpu.memory_space<vmem>>, vector<1x32x32xf32>
    %707 = vector.shape_cast %706 : vector<1x32x32xf32> to vector<32x32xf32>
    %c1_325 = arith.constant 1 : index
    %c0_326 = arith.constant 0 : index
    %c0_327 = arith.constant 0 : index
    %708 = vector.load %arg39[%c1_325, %c0_326, %c0_327] : memref<2x1x32xf32, #tpu.memory_space<vmem>>, vector<1x1x32xf32>
    %709 = vector.shape_cast %708 : vector<1x1x32xf32> to vector<1x32xf32>
    %710 = vector.extract_strided_slice %696 {offsets = [0, 0], sizes = [8, 8], strides = [1, 1]} : vector<8x32xf32> to vector<8x8xf32>
    %711 = vector.extract_strided_slice %704 {offsets = [0, 0], sizes = [8, 8], strides = [1, 1]} : vector<8x32xf32> to vector<8x8xf32>
    "tpu.trace_start"() <{level = 10 : i32, message = "qd,kd->qk"}> : () -> ()
    %cst_328 = arith.constant dense<0.000000e+00> : vector<8x8xf32>
    %712 = tpu.matmul %710, %711, %cst_328 {dimension_numbers = #tpu.dot_dimension_numbers<[1], [1], [0], [0], [0, 0, 1, 0], [], []>} : vector<8x8xf32>, vector<8x8xf32>, vector<8x8xf32> -> vector<8x8xf32>
    "tpu.trace_stop"() : () -> ()
    %713 = vector.extract_strided_slice %696 {offsets = [0, 8], sizes = [8, 8], strides = [1, 1]} : vector<8x32xf32> to vector<8x8xf32>
    %714 = vector.extract_strided_slice %704 {offsets = [0, 8], sizes = [8, 8], strides = [1, 1]} : vector<8x32xf32> to vector<8x8xf32>
    "tpu.trace_start"() <{level = 10 : i32, message = "qd,kd->qk"}> : () -> ()
    %cst_329 = arith.constant dense<0.000000e+00> : vector<8x8xf32>
    %715 = tpu.matmul %713, %714, %cst_329 {dimension_numbers = #tpu.dot_dimension_numbers<[1], [1], [0], [0], [0, 0, 1, 0], [], []>} : vector<8x8xf32>, vector<8x8xf32>, vector<8x8xf32> -> vector<8x8xf32>
    "tpu.trace_stop"() : () -> ()
    %716 = vector.extract_strided_slice %696 {offsets = [0, 16], sizes = [8, 8], strides = [1, 1]} : vector<8x32xf32> to vector<8x8xf32>
    %717 = vector.extract_strided_slice %704 {offsets = [0, 16], sizes = [8, 8], strides = [1, 1]} : vector<8x32xf32> to vector<8x8xf32>
    "tpu.trace_start"() <{level = 10 : i32, message = "qd,kd->qk"}> : () -> ()
    %cst_330 = arith.constant dense<0.000000e+00> : vector<8x8xf32>
    %718 = tpu.matmul %716, %717, %cst_330 {dimension_numbers = #tpu.dot_dimension_numbers<[1], [1], [0], [0], [0, 0, 1, 0], [], []>} : vector<8x8xf32>, vector<8x8xf32>, vector<8x8xf32> -> vector<8x8xf32>
    "tpu.trace_stop"() : () -> ()
    %719 = vector.extract_strided_slice %696 {offsets = [0, 24], sizes = [8, 8], strides = [1, 1]} : vector<8x32xf32> to vector<8x8xf32>
    %720 = vector.extract_strided_slice %704 {offsets = [0, 24], sizes = [8, 8], strides = [1, 1]} : vector<8x32xf32> to vector<8x8xf32>
    "tpu.trace_start"() <{level = 10 : i32, message = "qd,kd->qk"}> : () -> ()
    %cst_331 = arith.constant dense<0.000000e+00> : vector<8x8xf32>
    %721 = tpu.matmul %719, %720, %cst_331 {dimension_numbers = #tpu.dot_dimension_numbers<[1], [1], [0], [0], [0, 0, 1, 0], [], []>} : vector<8x8xf32>, vector<8x8xf32>, vector<8x8xf32> -> vector<8x8xf32>
    "tpu.trace_stop"() : () -> ()
    %722 = vector.shape_cast %712 : vector<8x8xf32> to vector<1x8x8xf32>
    %723 = vector.shape_cast %715 : vector<8x8xf32> to vector<1x8x8xf32>
    %724 = vector.shape_cast %718 : vector<8x8xf32> to vector<1x8x8xf32>
    %725 = vector.shape_cast %721 : vector<8x8xf32> to vector<1x8x8xf32>
    %726 = tpu.concatenate %722, %723, %724, %725 in 0 : vector<1x8x8xf32>, vector<1x8x8xf32>, vector<1x8x8xf32>, vector<1x8x8xf32> -> vector<4x8x8xf32>
    %cst_332 = arith.constant dense<0xFF800000> : vector<4x8xf32>
    %727 = vector.multi_reduction <maximumf>, %726, %cst_332 [2] : vector<4x8x8xf32> to vector<4x8xf32>
    %728 = vector.shape_cast %727 : vector<4x8xf32> to vector<4x8x1xf32>
    %729 = vector.broadcast %728 : vector<4x8x1xf32> to vector<4x8x8xf32>
    %730 = arith.subf %726, %729 : vector<4x8x8xf32>
    %731 = math.exp %730 : vector<4x8x8xf32>
    %cst_333 = arith.constant dense<0.000000e+00> : vector<4x8xf32>
    %732 = vector.multi_reduction <add>, %731, %cst_333 [2] : vector<4x8x8xf32> to vector<4x8xf32>
    %733 = vector.shape_cast %732 : vector<4x8xf32> to vector<4x8x1xf32>
    %734 = tpu.reciprocal %733 {approx = true} : vector<4x8x1xf32> -> vector<4x8x1xf32>
    %735 = vector.broadcast %734 : vector<4x8x1xf32> to vector<4x8x8xf32>
    %736 = arith.mulf %731, %735 : vector<4x8x8xf32>
    %737 = vector.extract_strided_slice %736 {offsets = [0, 0, 0], sizes = [1, 8, 8], strides = [1, 1, 1]} : vector<4x8x8xf32> to vector<1x8x8xf32>
    %738 = vector.shape_cast %737 : vector<1x8x8xf32> to vector<8x8xf32>
    %739 = vector.extract_strided_slice %705 {offsets = [0, 0], sizes = [8, 8], strides = [1, 1]} : vector<8x32xf32> to vector<8x8xf32>
    %cst_334 = arith.constant dense<0.000000e+00> : vector<8x8xf32>
    %740 = tpu.matmul %738, %739, %cst_334 {dimension_numbers = #tpu.dot_dimension_numbers<[1], [0], [0], [1], [0, 0, 1, 1], [], []>} : vector<8x8xf32>, vector<8x8xf32>, vector<8x8xf32> -> vector<8x8xf32>
    %741 = vector.extract_strided_slice %736 {offsets = [1, 0, 0], sizes = [1, 8, 8], strides = [1, 1, 1]} : vector<4x8x8xf32> to vector<1x8x8xf32>
    %742 = vector.shape_cast %741 : vector<1x8x8xf32> to vector<8x8xf32>
    %743 = vector.extract_strided_slice %705 {offsets = [0, 8], sizes = [8, 8], strides = [1, 1]} : vector<8x32xf32> to vector<8x8xf32>
    %cst_335 = arith.constant dense<0.000000e+00> : vector<8x8xf32>
    %744 = tpu.matmul %742, %743, %cst_335 {dimension_numbers = #tpu.dot_dimension_numbers<[1], [0], [0], [1], [0, 0, 1, 1], [], []>} : vector<8x8xf32>, vector<8x8xf32>, vector<8x8xf32> -> vector<8x8xf32>
    %745 = vector.extract_strided_slice %736 {offsets = [2, 0, 0], sizes = [1, 8, 8], strides = [1, 1, 1]} : vector<4x8x8xf32> to vector<1x8x8xf32>
    %746 = vector.shape_cast %745 : vector<1x8x8xf32> to vector<8x8xf32>
    %747 = vector.extract_strided_slice %705 {offsets = [0, 16], sizes = [8, 8], strides = [1, 1]} : vector<8x32xf32> to vector<8x8xf32>
    %cst_336 = arith.constant dense<0.000000e+00> : vector<8x8xf32>
    %748 = tpu.matmul %746, %747, %cst_336 {dimension_numbers = #tpu.dot_dimension_numbers<[1], [0], [0], [1], [0, 0, 1, 1], [], []>} : vector<8x8xf32>, vector<8x8xf32>, vector<8x8xf32> -> vector<8x8xf32>
    %749 = vector.extract_strided_slice %736 {offsets = [3, 0, 0], sizes = [1, 8, 8], strides = [1, 1, 1]} : vector<4x8x8xf32> to vector<1x8x8xf32>
    %750 = vector.shape_cast %749 : vector<1x8x8xf32> to vector<8x8xf32>
    %751 = vector.extract_strided_slice %705 {offsets = [0, 24], sizes = [8, 8], strides = [1, 1]} : vector<8x32xf32> to vector<8x8xf32>
    %cst_337 = arith.constant dense<0.000000e+00> : vector<8x8xf32>
    %752 = tpu.matmul %750, %751, %cst_337 {dimension_numbers = #tpu.dot_dimension_numbers<[1], [0], [0], [1], [0, 0, 1, 1], [], []>} : vector<8x8xf32>, vector<8x8xf32>, vector<8x8xf32> -> vector<8x8xf32>
    %753 = tpu.concatenate %740, %744, %748, %752 in 1 : vector<8x8xf32>, vector<8x8xf32>, vector<8x8xf32>, vector<8x8xf32> -> vector<8x32xf32>
    %cst_338 = arith.constant dense<0.000000e+00> : vector<8x32xf32>
    %754 = tpu.matmul %753, %707, %cst_338 {dimension_numbers = #tpu.dot_dimension_numbers<[1], [0], [0], [1], [0, 0, 1, 1], [], []>} : vector<8x32xf32>, vector<32x32xf32>, vector<8x32xf32> -> vector<8x32xf32>
    %755 = vector.broadcast %709 : vector<1x32xf32> to vector<8x32xf32>
    %756 = arith.addf %754, %755 : vector<8x32xf32>
    %757 = arith.addf %663, %756 : vector<8x32xf32>
    %c1_339 = arith.constant 1 : index
    %c0_340 = arith.constant 0 : index
    %c0_341 = arith.constant 0 : index
    %758 = vector.load %arg32[%c1_339, %c0_340, %c0_341] : memref<2x1x32xf32, #tpu.memory_space<vmem>>, vector<1x1x32xf32>
    %759 = vector.shape_cast %758 : vector<1x1x32xf32> to vector<1x32xf32>
    %c1_342 = arith.constant 1 : index
    %c0_343 = arith.constant 0 : index
    %c0_344 = arith.constant 0 : index
    %760 = vector.load %arg33[%c1_342, %c0_343, %c0_344] : memref<2x1x32xf32, #tpu.memory_space<vmem>>, vector<1x1x32xf32>
    %761 = vector.shape_cast %760 : vector<1x1x32xf32> to vector<1x32xf32>
    %cst_345 = arith.constant dense<0.000000e+00> : vector<8xf32>
    %762 = vector.multi_reduction <add>, %757, %cst_345 [1] : vector<8x32xf32> to vector<8xf32>
    %763 = vector.shape_cast %762 : vector<8xf32> to vector<8x1xf32>
    %cst_346 = arith.constant 3.200000e+01 : f32
    %764 = vector.broadcast %cst_346 : f32 to vector<8x1xf32>
    %765 = arith.divf %763, %764 : vector<8x1xf32>
    %766 = vector.broadcast %765 : vector<8x1xf32> to vector<8x32xf32>
    %767 = arith.subf %757, %766 : vector<8x32xf32>
    %768 = arith.mulf %767, %767 : vector<8x32xf32>
    %cst_347 = arith.constant dense<0.000000e+00> : vector<8xf32>
    %769 = vector.multi_reduction <add>, %768, %cst_347 [1] : vector<8x32xf32> to vector<8xf32>
    %770 = vector.shape_cast %769 : vector<8xf32> to vector<8x1xf32>
    %cst_348 = arith.constant 3.200000e+01 : f32
    %771 = vector.broadcast %cst_348 : f32 to vector<8x1xf32>
    %772 = arith.divf %770, %771 : vector<8x1xf32>
    %773 = vector.broadcast %765 : vector<8x1xf32> to vector<8x32xf32>
    %774 = arith.subf %757, %773 : vector<8x32xf32>
    %cst_349 = arith.constant 9.99999974E-6 : f32
    %775 = vector.broadcast %cst_349 : f32 to vector<8x1xf32>
    %776 = arith.addf %772, %775 : vector<8x1xf32>
    %777 = math.rsqrt %776 : vector<8x1xf32>
    %778 = vector.broadcast %777 : vector<8x1xf32> to vector<8x32xf32>
    %779 = arith.mulf %774, %778 : vector<8x32xf32>
    %780 = vector.broadcast %759 : vector<1x32xf32> to vector<8x32xf32>
    %781 = arith.mulf %779, %780 : vector<8x32xf32>
    %782 = vector.broadcast %761 : vector<1x32xf32> to vector<8x32xf32>
    %783 = arith.addf %781, %782 : vector<8x32xf32>
    %c1_350 = arith.constant 1 : index
    %c0_351 = arith.constant 0 : index
    %c0_352 = arith.constant 0 : index
    %784 = vector.load %arg40[%c1_350, %c0_351, %c0_352] : memref<2x32x64xf32, #tpu.memory_space<vmem>>, vector<1x32x64xf32>
    %785 = vector.shape_cast %784 : vector<1x32x64xf32> to vector<32x64xf32>
    %cst_353 = arith.constant dense<0.000000e+00> : vector<8x64xf32>
    %786 = tpu.matmul %783, %785, %cst_353 {dimension_numbers = #tpu.dot_dimension_numbers<[1], [0], [0], [1], [0, 0, 1, 1], [], []>} : vector<8x32xf32>, vector<32x64xf32>, vector<8x64xf32> -> vector<8x64xf32>
    %c1_354 = arith.constant 1 : index
    %c0_355 = arith.constant 0 : index
    %c0_356 = arith.constant 0 : index
    %787 = vector.load %arg41[%c1_354, %c0_355, %c0_356] : memref<2x1x64xf32, #tpu.memory_space<vmem>>, vector<1x1x64xf32>
    %788 = vector.shape_cast %787 : vector<1x1x64xf32> to vector<1x64xf32>
    %789 = vector.broadcast %788 : vector<1x64xf32> to vector<8x64xf32>
    %790 = arith.addf %786, %789 : vector<8x64xf32>
    %cst_357 = arith.constant 5.000000e-01 : f32
    %791 = vector.broadcast %cst_357 : f32 to vector<8x64xf32>
    %792 = arith.mulf %791, %790 : vector<8x64xf32>
    %cst_358 = arith.constant 4.471500e-02 : f32
    %793 = vector.broadcast %cst_358 : f32 to vector<8x64xf32>
    %794 = arith.mulf %793, %790 : vector<8x64xf32>
    %795 = arith.mulf %794, %790 : vector<8x64xf32>
    %796 = arith.mulf %795, %790 : vector<8x64xf32>
    %797 = arith.addf %790, %796 : vector<8x64xf32>
    %cst_359 = arith.constant 0.797884583 : f32
    %798 = vector.broadcast %cst_359 : f32 to vector<8x64xf32>
    %799 = arith.mulf %798, %797 : vector<8x64xf32>
    %800 = math.tanh %799 : vector<8x64xf32>
    %cst_360 = arith.constant 1.000000e+00 : f32
    %801 = vector.broadcast %cst_360 : f32 to vector<8x64xf32>
    %802 = arith.addf %801, %800 : vector<8x64xf32>
    %803 = arith.mulf %792, %802 : vector<8x64xf32>
    %c1_361 = arith.constant 1 : index
    %c0_362 = arith.constant 0 : index
    %c0_363 = arith.constant 0 : index
    %804 = vector.load %arg42[%c1_361, %c0_362, %c0_363] : memref<2x64x32xf32, #tpu.memory_space<vmem>>, vector<1x64x32xf32>
    %805 = vector.shape_cast %804 : vector<1x64x32xf32> to vector<64x32xf32>
    %cst_364 = arith.constant dense<0.000000e+00> : vector<8x32xf32>
    %806 = tpu.matmul %803, %805, %cst_364 {dimension_numbers = #tpu.dot_dimension_numbers<[1], [0], [0], [1], [0, 0, 1, 1], [], []>} : vector<8x64xf32>, vector<64x32xf32>, vector<8x32xf32> -> vector<8x32xf32>
    %807 = arith.addf %757, %806 : vector<8x32xf32>
    %c1_365 = arith.constant 1 : index
    %c0_366 = arith.constant 0 : index
    %c0_367 = arith.constant 0 : index
    %808 = vector.load %arg43[%c1_365, %c0_366, %c0_367] : memref<2x1x32xf32, #tpu.memory_space<vmem>>, vector<1x1x32xf32>
    %809 = vector.shape_cast %808 : vector<1x1x32xf32> to vector<1x32xf32>
    %810 = vector.broadcast %809 : vector<1x32xf32> to vector<8x32xf32>
    %811 = arith.addf %807, %810 : vector<8x32xf32>
    %c0_368 = arith.constant 0 : index
    %c0_369 = arith.constant 0 : index
    %812 = vector.load %arg44[%c0_368, %c0_369] : memref<1x32xf32, #tpu.memory_space<vmem>>, vector<1x32xf32>
    %c0_370 = arith.constant 0 : index
    %c0_371 = arith.constant 0 : index
    %813 = vector.load %arg45[%c0_370, %c0_371] : memref<1x32xf32, #tpu.memory_space<vmem>>, vector<1x32xf32>
    %cst_372 = arith.constant dense<0.000000e+00> : vector<8xf32>
    %814 = vector.multi_reduction <add>, %811, %cst_372 [1] : vector<8x32xf32> to vector<8xf32>
    %815 = vector.shape_cast %814 : vector<8xf32> to vector<8x1xf32>
    %cst_373 = arith.constant 3.200000e+01 : f32
    %816 = vector.broadcast %cst_373 : f32 to vector<8x1xf32>
    %817 = arith.divf %815, %816 : vector<8x1xf32>
    %818 = vector.broadcast %817 : vector<8x1xf32> to vector<8x32xf32>
    %819 = arith.subf %811, %818 : vector<8x32xf32>
    %820 = arith.mulf %819, %819 : vector<8x32xf32>
    %cst_374 = arith.constant dense<0.000000e+00> : vector<8xf32>
    %821 = vector.multi_reduction <add>, %820, %cst_374 [1] : vector<8x32xf32> to vector<8xf32>
    %822 = vector.shape_cast %821 : vector<8xf32> to vector<8x1xf32>
    %cst_375 = arith.constant 3.200000e+01 : f32
    %823 = vector.broadcast %cst_375 : f32 to vector<8x1xf32>
    %824 = arith.divf %822, %823 : vector<8x1xf32>
    %825 = vector.broadcast %817 : vector<8x1xf32> to vector<8x32xf32>
    %826 = arith.subf %811, %825 : vector<8x32xf32>
    %cst_376 = arith.constant 9.99999974E-6 : f32
    %827 = vector.broadcast %cst_376 : f32 to vector<8x1xf32>
    %828 = arith.addf %824, %827 : vector<8x1xf32>
    %829 = math.rsqrt %828 : vector<8x1xf32>
    %830 = vector.broadcast %829 : vector<8x1xf32> to vector<8x32xf32>
    %831 = arith.mulf %826, %830 : vector<8x32xf32>
    %832 = vector.broadcast %812 : vector<1x32xf32> to vector<8x32xf32>
    %833 = arith.mulf %831, %832 : vector<8x32xf32>
    %834 = vector.broadcast %813 : vector<1x32xf32> to vector<8x32xf32>
    %835 = arith.addf %833, %834 : vector<8x32xf32>
    %c0_377 = arith.constant 0 : index
    %c0_378 = arith.constant 0 : index
    %836 = vector.load %arg46[%c0_377, %c0_378] : memref<32x128xf32, #tpu.memory_space<vmem>>, vector<32x128xf32>
    %cst_379 = arith.constant dense<0.000000e+00> : vector<8x128xf32>
    %837 = tpu.matmul %835, %836, %cst_379 {dimension_numbers = #tpu.dot_dimension_numbers<[1], [0], [0], [1], [0, 0, 1, 1], [], []>} : vector<8x32xf32>, vector<32x128xf32>, vector<8x128xf32> -> vector<8x128xf32>
    %838 = vector.shape_cast %837 : vector<8x128xf32> to vector<1x8x128xf32>
    %c0_380 = arith.constant 0 : index
    %c0_381 = arith.constant 0 : index
    %c0_382 = arith.constant 0 : index
    %839 = vector.load %arg47[%c0_380, %c0_381, %c0_382] : memref<1x8x128xf32, #tpu.memory_space<vmem>>, vector<1x8x128xf32>
    tpu.vector_store %arg47[%c0_380, %c0_381, %c0_382], %838 {strides = array<i32>} : memref<1x8x128xf32, #tpu.memory_space<vmem>>, vector<1x8x128xf32>,
    %c0_383 = arith.constant 0 : index
    %c0_384 = arith.constant 0 : index
    %c0_385 = arith.constant 0 : index
    %840 = vector.load %arg5[%c0_383, %c0_384, %c0_385] : memref<1x8x1xi32, #tpu.memory_space<vmem>>, vector<1x8x1xi32>
    %841 = vector.shape_cast %840 : vector<1x8x1xi32> to vector<8x1xi32>
    %842 = tpu.iota {dimensions = array<i32: 1>} : vector<8x128xi32>
    %c64_i32 = arith.constant 64 : i32
    %843 = vector.broadcast %c64_i32 : i32 to vector<8x128xi32>
    %844 = arith.cmpi slt, %842, %843 : vector<8x128xi32>
    %cst_386 = arith.constant -1.000000e+09 : f32
    %845 = vector.broadcast %cst_386 : f32 to vector<8x128xf32>
    %846 = arith.select %844, %837, %845 : vector<8x128xi1>, vector<8x128xf32>
    %cst_387 = arith.constant dense<0xFF800000> : vector<8xf32>
    %847 = vector.multi_reduction <maximumf>, %846, %cst_387 [1] : vector<8x128xf32> to vector<8xf32>
    %848 = vector.shape_cast %847 : vector<8xf32> to vector<8x1xf32>
    %849 = vector.broadcast %848 : vector<8x1xf32> to vector<8x128xf32>
    %850 = arith.subf %846, %849 : vector<8x128xf32>
    %851 = math.exp %850 : vector<8x128xf32>
    %cst_388 = arith.constant dense<0.000000e+00> : vector<8xf32>
    %852 = vector.multi_reduction <add>, %851, %cst_388 [1] : vector<8x128xf32> to vector<8xf32>
    %853 = vector.shape_cast %852 : vector<8xf32> to vector<8x1xf32>
    %854 = math.log %853 : vector<8x1xf32>
    %855 = arith.addf %854, %848 : vector<8x1xf32>
    %856 = vector.broadcast %841 : vector<8x1xi32> to vector<8x128xi32>
    %857 = arith.cmpi eq, %842, %856 : vector<8x128xi32>
    %cst_389 = arith.constant 0.000000e+00 : f32
    %858 = vector.broadcast %cst_389 : f32 to vector<8x128xf32>
    %859 = arith.select %857, %846, %858 : vector<8x128xi1>, vector<8x128xf32>
    %cst_390 = arith.constant dense<0.000000e+00> : vector<8xf32>
    %860 = vector.multi_reduction <add>, %859, %cst_390 [1] : vector<8x128xf32> to vector<8xf32>
    %861 = vector.shape_cast %860 : vector<8xf32> to vector<8x1xf32>
    %c0_i32 = arith.constant 0 : i32
    %862 = vector.broadcast %c0_i32 : i32 to vector<8x1xi32>
    %863 = arith.cmpi sge, %841, %862 : vector<8x1xi32>
    %864 = arith.extui %863 : vector<8x1xi1> to vector<8x1xi32>
    %865 = arith.sitofp %864 : vector<8x1xi32> to vector<8x1xf32>
    %866 = arith.subf %855, %861 : vector<8x1xf32>
    %867 = arith.mulf %865, %866 : vector<8x1xf32>
    %cst_391 = arith.constant dense<0.000000e+00> : vector<1xf32>
    %868 = vector.multi_reduction <add>, %867, %cst_391 [0] : vector<8x1xf32> to vector<1xf32>
    %869 = vector.shape_cast %868 : vector<1xf32> to vector<1x1xf32>
    %870 = vector.shape_cast %869 : vector<1x1xf32> to vector<1x1x1xf32>
    %c0_392 = arith.constant 0 : index
    %c0_393 = arith.constant 0 : index
    %c0_394 = arith.constant 0 : index
    %871 = vector.load %arg48[%c0_392, %c0_393, %c0_394] : memref<1x1x1xf32, #tpu.memory_space<vmem>>, vector<1x1x1xf32>
    tpu.vector_store %arg48[%c0_392, %c0_393, %c0_394], %870 {strides = array<i32>} : memref<1x1x1xf32, #tpu.memory_space<vmem>>, vector<1x1x1xf32>,
    return
  }
  func.func @transform_0(%arg0: i32) -> (i32, i32, i32) {
    %c0_i32 = arith.constant 0 : i32
    %c0_i32_0 = arith.constant 0 : i32
    %c0_i32_1 = arith.constant 0 : i32
    return %arg0, %c0_i32, %c0_i32_0 : i32, i32, i32
  }
  func.func @transform_1(%arg0: i32) -> (i32, i32, i32) {
    %c0_i32 = arith.constant 0 : i32
    %c0_i32_0 = arith.constant 0 : i32
    %c0_i32_1 = arith.constant 0 : i32
    return %arg0, %c0_i32, %c0_i32_0 : i32, i32, i32
  }
  func.func @transform_2(%arg0: i32) -> (i32, i32, i32) {
    %c0_i32 = arith.constant 0 : i32
    %c0_i32_0 = arith.constant 0 : i32
    %c0_i32_1 = arith.constant 0 : i32
    return %arg0, %c0_i32, %c0_i32_0 : i32, i32, i32
  }
  func.func @transform_3(%arg0: i32) -> (i32, i32, i32) {
    %c0_i32 = arith.constant 0 : i32
    %c0_i32_0 = arith.constant 0 : i32
    %c0_i32_1 = arith.constant 0 : i32
    return %arg0, %c0_i32, %c0_i32_0 : i32, i32, i32
  }
  func.func @transform_4(%arg0: i32) -> (i32, i32, i32) {
    %c0_i32 = arith.constant 0 : i32
    %c0_i32_0 = arith.constant 0 : i32
    %c0_i32_1 = arith.constant 0 : i32
    return %arg0, %c0_i32, %c0_i32_0 : i32, i32, i32
  }
  func.func @transform_5(%arg0: i32) -> (i32, i32) {
    %c0_i32 = arith.constant 0 : i32
    %c0_i32_0 = arith.constant 0 : i32
    %c0_i32_1 = arith.constant 0 : i32
    return %c0_i32, %c0_i32_0 : i32, i32
  }
  func.func @transform_6(%arg0: i32) -> (i32, i32) {
    %c0_i32 = arith.constant 0 : i32
    %c0_i32_0 = arith.constant 0 : i32
    %c0_i32_1 = arith.constant 0 : i32
    return %c0_i32, %c0_i32_0 : i32, i32
  }
  func.func @transform_7(%arg0: i32) -> (i32, i32) {
    %c0_i32 = arith.constant 0 : i32
    %c0_i32_0 = arith.constant 0 : i32
    %c0_i32_1 = arith.constant 0 : i32
    return %c0_i32, %c0_i32_0 : i32, i32
  }
  func.func @transform_8(%arg0: i32) -> (i32, i32) {
    %c0_i32 = arith.constant 0 : i32
    %c0_i32_0 = arith.constant 0 : i32
    %c0_i32_1 = arith.constant 0 : i32
    return %c0_i32, %c0_i32_0 : i32, i32
  }
  func.func @transform_9(%arg0: i32) -> (i32, i32, i32) {
    %c0_i32 = arith.constant 0 : i32
    %c0_i32_0 = arith.constant 0 : i32
    %c0_i32_1 = arith.constant 0 : i32
    %c0_i32_2 = arith.constant 0 : i32
    return %c0_i32, %c0_i32_0, %c0_i32_1 : i32, i32, i32
  }
  func.func @transform_10(%arg0: i32) -> (i32, i32, i32) {
    %c0_i32 = arith.constant 0 : i32
    %c0_i32_0 = arith.constant 0 : i32
    %c0_i32_1 = arith.constant 0 : i32
    %c0_i32_2 = arith.constant 0 : i32
    return %c0_i32, %c0_i32_0, %c0_i32_1 : i32, i32, i32
  }
  func.func @transform_11(%arg0: i32) -> (i32, i32, i32) {
    %c0_i32 = arith.constant 0 : i32
    %c0_i32_0 = arith.constant 0 : i32
    %c0_i32_1 = arith.constant 0 : i32
    %c0_i32_2 = arith.constant 0 : i32
    return %c0_i32, %c0_i32_0, %c0_i32_1 : i32, i32, i32
  }
  func.func @transform_12(%arg0: i32) -> (i32, i32, i32) {
    %c0_i32 = arith.constant 0 : i32
    %c0_i32_0 = arith.constant 0 : i32
    %c0_i32_1 = arith.constant 0 : i32
    %c0_i32_2 = arith.constant 0 : i32
    return %c0_i32, %c0_i32_0, %c0_i32_1 : i32, i32, i32
  }
  func.func @transform_13(%arg0: i32) -> (i32, i32, i32) {
    %c0_i32 = arith.constant 0 : i32
    %c0_i32_0 = arith.constant 0 : i32
    %c0_i32_1 = arith.constant 0 : i32
    %c0_i32_2 = arith.constant 0 : i32
    return %c0_i32, %c0_i32_0, %c0_i32_1 : i32, i32, i32
  }
  func.func @transform_14(%arg0: i32) -> (i32, i32, i32) {
    %c0_i32 = arith.constant 0 : i32
    %c0_i32_0 = arith.constant 0 : i32
    %c0_i32_1 = arith.constant 0 : i32
    %c0_i32_2 = arith.constant 0 : i32
    return %c0_i32, %c0_i32_0, %c0_i32_1 : i32, i32, i32
  }
  func.func @transform_15(%arg0: i32) -> (i32, i32, i32) {
    %c0_i32 = arith.constant 0 : i32
    %c0_i32_0 = arith.constant 0 : i32
    %c0_i32_1 = arith.constant 0 : i32
    %c0_i32_2 = arith.constant 0 : i32
    return %c0_i32, %c0_i32_0, %c0_i32_1 : i32, i32, i32
  }
  func.func @transform_16(%arg0: i32) -> (i32, i32, i32) {
    %c0_i32 = arith.constant 0 : i32
    %c0_i32_0 = arith.constant 0 : i32
    %c0_i32_1 = arith.constant 0 : i32
    %c0_i32_2 = arith.constant 0 : i32
    return %c0_i32, %c0_i32_0, %c0_i32_1 : i32, i32, i32
  }
  func.func @transform_17(%arg0: i32) -> (i32, i32, i32) {
    %c0_i32 = arith.constant 0 : i32
    %c0_i32_0 = arith.constant 0 : i32
    %c0_i32_1 = arith.constant 0 : i32
    %c0_i32_2 = arith.constant 0 : i32
    return %c0_i32, %c0_i32_0, %c0_i32_1 : i32, i32, i32
  }
  func.func @transform_18(%arg0: i32) -> (i32, i32, i32) {
    %c0_i32 = arith.constant 0 : i32
    %c0_i32_0 = arith.constant 0 : i32
    %c0_i32_1 = arith.constant 0 : i32
    %c0_i32_2 = arith.constant 0 : i32
    return %c0_i32, %c0_i32_0, %c0_i32_1 : i32, i32, i32
  }
  func.func @transform_19(%arg0: i32) -> (i32, i32, i32) {
    %c0_i32 = arith.constant 0 : i32
    %c0_i32_0 = arith.constant 0 : i32
    %c0_i32_1 = arith.constant 0 : i32
    %c0_i32_2 = arith.constant 0 : i32
    return %c0_i32, %c0_i32_0, %c0_i32_1 : i32, i32, i32
  }
  func.func @transform_20(%arg0: i32) -> (i32, i32, i32) {
    %c0_i32 = arith.constant 0 : i32
    %c0_i32_0 = arith.constant 0 : i32
    %c0_i32_1 = arith.constant 0 : i32
    %c0_i32_2 = arith.constant 0 : i32
    return %c0_i32, %c0_i32_0, %c0_i32_1 : i32, i32, i32
  }
  func.func @transform_21(%arg0: i32) -> (i32, i32) {
    %c0_i32 = arith.constant 0 : i32
    %c0_i32_0 = arith.constant 0 : i32
    %c0_i32_1 = arith.constant 0 : i32
    return %c0_i32, %c0_i32_0 : i32, i32
  }
  func.func @transform_22(%arg0: i32) -> (i32, i32) {
    %c0_i32 = arith.constant 0 : i32
    %c0_i32_0 = arith.constant 0 : i32
    %c0_i32_1 = arith.constant 0 : i32
    return %c0_i32, %c0_i32_0 : i32, i32
  }
  func.func @transform_23(%arg0: i32) -> (i32, i32, i32) {
    %c0_i32 = arith.constant 0 : i32
    %c0_i32_0 = arith.constant 0 : i32
    %c0_i32_1 = arith.constant 0 : i32
    %c0_i32_2 = arith.constant 0 : i32
    return %c0_i32, %c0_i32_0, %c0_i32_1 : i32, i32, i32
  }
  func.func @transform_24(%arg0: i32) -> (i32, i32, i32) {
    %c0_i32 = arith.constant 0 : i32
    %c0_i32_0 = arith.constant 0 : i32
    %c0_i32_1 = arith.constant 0 : i32
    %c0_i32_2 = arith.constant 0 : i32
    return %c0_i32, %c0_i32_0, %c0_i32_1 : i32, i32, i32
  }
  func.func @transform_25(%arg0: i32) -> (i32, i32, i32) {
    %c0_i32 = arith.constant 0 : i32
    %c0_i32_0 = arith.constant 0 : i32
    %c0_i32_1 = arith.constant 0 : i32
    %c0_i32_2 = arith.constant 0 : i32
    return %c0_i32, %c0_i32_0, %c0_i32_1 : i32, i32, i32
  }
  func.func @transform_26(%arg0: i32) -> (i32, i32, i32) {
    %c0_i32 = arith.constant 0 : i32
    %c0_i32_0 = arith.constant 0 : i32
    %c0_i32_1 = arith.constant 0 : i32
    %c0_i32_2 = arith.constant 0 : i32
    return %c0_i32, %c0_i32_0, %c0_i32_1 : i32, i32, i32
  }
  func.func @transform_27(%arg0: i32) -> (i32, i32, i32) {
    %c0_i32 = arith.constant 0 : i32
    %c0_i32_0 = arith.constant 0 : i32
    %c0_i32_1 = arith.constant 0 : i32
    %c0_i32_2 = arith.constant 0 : i32
    return %c0_i32, %c0_i32_0, %c0_i32_1 : i32, i32, i32
  }
  func.func @transform_28(%arg0: i32) -> (i32, i32, i32) {
    %c0_i32 = arith.constant 0 : i32
    %c0_i32_0 = arith.constant 0 : i32
    %c0_i32_1 = arith.constant 0 : i32
    %c0_i32_2 = arith.constant 0 : i32
    return %c0_i32, %c0_i32_0, %c0_i32_1 : i32, i32, i32
  }
  func.func @transform_29(%arg0: i32) -> (i32, i32, i32) {
    %c0_i32 = arith.constant 0 : i32
    %c0_i32_0 = arith.constant 0 : i32
    %c0_i32_1 = arith.constant 0 : i32
    %c0_i32_2 = arith.constant 0 : i32
    return %c0_i32, %c0_i32_0, %c0_i32_1 : i32, i32, i32
  }
  func.func @transform_30(%arg0: i32) -> (i32, i32, i32) {
    %c0_i32 = arith.constant 0 : i32
    %c0_i32_0 = arith.constant 0 : i32
    %c0_i32_1 = arith.constant 0 : i32
    %c0_i32_2 = arith.constant 0 : i32
    return %c0_i32, %c0_i32_0, %c0_i32_1 : i32, i32, i32
  }
  func.func @transform_31(%arg0: i32) -> (i32, i32, i32) {
    %c0_i32 = arith.constant 0 : i32
    %c0_i32_0 = arith.constant 0 : i32
    %c0_i32_1 = arith.constant 0 : i32
    %c0_i32_2 = arith.constant 0 : i32
    return %c0_i32, %c0_i32_0, %c0_i32_1 : i32, i32, i32
  }
  func.func @transform_32(%arg0: i32) -> (i32, i32, i32) {
    %c0_i32 = arith.constant 0 : i32
    %c0_i32_0 = arith.constant 0 : i32
    %c0_i32_1 = arith.constant 0 : i32
    %c0_i32_2 = arith.constant 0 : i32
    return %c0_i32, %c0_i32_0, %c0_i32_1 : i32, i32, i32
  }
  func.func @transform_33(%arg0: i32) -> (i32, i32, i32) {
    %c0_i32 = arith.constant 0 : i32
    %c0_i32_0 = arith.constant 0 : i32
    %c0_i32_1 = arith.constant 0 : i32
    %c0_i32_2 = arith.constant 0 : i32
    return %c0_i32, %c0_i32_0, %c0_i32_1 : i32, i32, i32
  }
  func.func @transform_34(%arg0: i32) -> (i32, i32, i32) {
    %c0_i32 = arith.constant 0 : i32
    %c0_i32_0 = arith.constant 0 : i32
    %c0_i32_1 = arith.constant 0 : i32
    %c0_i32_2 = arith.constant 0 : i32
    return %c0_i32, %c0_i32_0, %c0_i32_1 : i32, i32, i32
  }
  func.func @transform_35(%arg0: i32) -> (i32, i32, i32) {
    %c0_i32 = arith.constant 0 : i32
    %c0_i32_0 = arith.constant 0 : i32
    %c0_i32_1 = arith.constant 0 : i32
    %c0_i32_2 = arith.constant 0 : i32
    return %c0_i32, %c0_i32_0, %c0_i32_1 : i32, i32, i32
  }
  func.func @transform_36(%arg0: i32) -> (i32, i32, i32) {
    %c0_i32 = arith.constant 0 : i32
    %c0_i32_0 = arith.constant 0 : i32
    %c0_i32_1 = arith.constant 0 : i32
    %c0_i32_2 = arith.constant 0 : i32
    return %c0_i32, %c0_i32_0, %c0_i32_1 : i32, i32, i32
  }
  func.func @transform_37(%arg0: i32) -> (i32, i32, i32) {
    %c0_i32 = arith.constant 0 : i32
    %c0_i32_0 = arith.constant 0 : i32
    %c0_i32_1 = arith.constant 0 : i32
    %c0_i32_2 = arith.constant 0 : i32
    return %c0_i32, %c0_i32_0, %c0_i32_1 : i32, i32, i32
  }
  func.func @transform_38(%arg0: i32) -> (i32, i32, i32) {
    %c0_i32 = arith.constant 0 : i32
    %c0_i32_0 = arith.constant 0 : i32
    %c0_i32_1 = arith.constant 0 : i32
    %c0_i32_2 = arith.constant 0 : i32
    return %c0_i32, %c0_i32_0, %c0_i32_1 : i32, i32, i32
  }
  func.func @transform_39(%arg0: i32) -> (i32, i32, i32) {
    %c0_i32 = arith.constant 0 : i32
    %c0_i32_0 = arith.constant 0 : i32
    %c0_i32_1 = arith.constant 0 : i32
    %c0_i32_2 = arith.constant 0 : i32
    return %c0_i32, %c0_i32_0, %c0_i32_1 : i32, i32, i32
  }
  func.func @transform_40(%arg0: i32) -> (i32, i32, i32) {
    %c0_i32 = arith.constant 0 : i32
    %c0_i32_0 = arith.constant 0 : i32
    %c0_i32_1 = arith.constant 0 : i32
    %c0_i32_2 = arith.constant 0 : i32
    return %c0_i32, %c0_i32_0, %c0_i32_1 : i32, i32, i32
  }
  func.func @transform_41(%arg0: i32) -> (i32, i32, i32) {
    %c0_i32 = arith.constant 0 : i32
    %c0_i32_0 = arith.constant 0 : i32
    %c0_i32_1 = arith.constant 0 : i32
    %c0_i32_2 = arith.constant 0 : i32
    return %c0_i32, %c0_i32_0, %c0_i32_1 : i32, i32, i32
  }
  func.func @transform_42(%arg0: i32) -> (i32, i32, i32) {
    %c0_i32 = arith.constant 0 : i32
    %c0_i32_0 = arith.constant 0 : i32
    %c0_i32_1 = arith.constant 0 : i32
    %c0_i32_2 = arith.constant 0 : i32
    return %c0_i32, %c0_i32_0, %c0_i32_1 : i32, i32, i32
  }
  func.func @transform_43(%arg0: i32) -> (i32, i32) {
    %c0_i32 = arith.constant 0 : i32
    %c0_i32_0 = arith.constant 0 : i32
    %c0_i32_1 = arith.constant 0 : i32
    return %c0_i32, %c0_i32_0 : i32, i32
  }
  func.func @transform_44(%arg0: i32) -> (i32, i32) {
    %c0_i32 = arith.constant 0 : i32
    %c0_i32_0 = arith.constant 0 : i32
    %c0_i32_1 = arith.constant 0 : i32
    return %c0_i32, %c0_i32_0 : i32, i32
  }
  func.func @transform_45(%arg0: i32) -> (i32, i32) {
    %c0_i32 = arith.constant 0 : i32
    %c0_i32_0 = arith.constant 0 : i32
    %c0_i32_1 = arith.constant 0 : i32
    return %c0_i32, %c0_i32_0 : i32, i32
  }
  func.func @transform_46(%arg0: i32) -> (i32, i32, i32) {
    %c0_i32 = arith.constant 0 : i32
    %c0_i32_0 = arith.constant 0 : i32
    %c0_i32_1 = arith.constant 0 : i32
    return %arg0, %c0_i32, %c0_i32_0 : i32, i32, i32
  }
  func.func @transform_47(%arg0: i32) -> (i32, i32, i32) {
    %c0_i32 = arith.constant 0 : i32
    %c0_i32_0 = arith.constant 0 : i32
    %c0_i32_1 = arith.constant 0 : i32
    return %arg0, %c0_i32, %c0_i32_0 : i32, i32, i32
  }
}

</mosaic_0001>

<bundles_post_ra>
// kernel: custom_model_forward.1
= control target key start
LH: loop header
LB: loop body
LE: loop exit
PB: predicated region body
PF: predicated region fallthrough
CT: control target
= control target key end

     0   :  { %s11660_s6 = smov 1   ;;  %s11661_s10 = smov 2   ;;  %s13228_s0 = inlined_call_operand.smem [shape: u32[48], index: -1, kind: input, shape index: {}] }
   0x1   :  { %s11759_s5 = sld [smem:[%s13228_s0]]   ;;  %s11662_s14 = smov 3  }
   0x2   :  { %s11764_s9 = sld [smem:[%s13228_s0 + %s11660_s6]]   ;;  %s11663_s18 = smov 4  }
   0x3   :  { %s11769_s13 = sld [smem:[%s13228_s0 + %s11661_s10]]   ;;  %s11664_s22 = smov 5  }
   0x4   :  { %s11774_s17 = sld [smem:[%s13228_s0 + %s11662_s14]]   ;;  %s11665_s26 = smov 6  }
   0x5   :  { %s11779_s21 = sld [smem:[%s13228_s0 + %s11663_s18]]   ;;  %s11666_s30 = smov 7  }
   0x6   :  { %s11784_s25 = sld [smem:[%s13228_s0 + %s11664_s22]]   ;;  %s11667_s4 = smov 8  }
   0x7   :  { %13283 = sst [smem:[#allocation59_spill]] %s11759_s5  ;;  %s11668_s10 = smov 9  }
   0x8   :  { %13284 = sst [smem:[#allocation60_spill]] %s11764_s9  ;;  %s11669_s15 = smov 10  }
   0x9   :  { %13285 = sst [smem:[#allocation61_spill]] %s11769_s13  ;;  %s11670_s20 = smov 11  }
   0xa   :  { %13286 = sst [smem:[#allocation62_spill]] %s11774_s17  ;;  %s11672_s1 = smov 13  }
   0xb   :  { %13287 = sst [smem:[#allocation63_spill]] %s11779_s21  ;;  %s11673_s7 = smov 14  }
   0xc   :  { %13288 = sst [smem:[#allocation64_spill]] %s11784_s25  ;;  %s11675_s22 = smov 16  }
   0xd   :  { %s11789_s29 = sld [smem:[%s13228_s0 + %s11665_s26]]   ;;  %s11671_s26 = smov 12  }
   0xe   :  { %s11794_s3 = sld [smem:[%s13228_s0 + %s11666_s30]]   ;;  %s11676_s28 = smov 17  }
   0xf   :  { %s11799_s8 = sld [smem:[%s13228_s0 + %s11667_s4]]  }
  0x10   :  { %s11804_s14 = sld [smem:[%s13228_s0 + %s11668_s10]]  }
  0x11   :  { %s11809_s19 = sld [smem:[%s13228_s0 + %s11669_s15]]   ;;  %s11674_s15 = smov 15  }
  0x12   :  { %s11814_s24 = sld [smem:[%s13228_s0 + %s11670_s20]]  }
  0x13   :  { %13289 = sst [smem:[#allocation65_spill]] %s11789_s29 }
  0x14   :  { %13290 = sst [smem:[#allocation66_spill]] %s11794_s3 }
  0x15   :  { %13291 = sst [smem:[#allocation67_spill]] %s11799_s8 }
  0x16   :  { %13292 = sst [smem:[#allocation68_spill]] %s11804_s14 }
  0x17   :  { %s11819_s30 = sld [smem:[%s13228_s0 + %s11671_s26]]  }
  0x18   :  { %13293 = sst [smem:[#allocation69_spill]] %s11814_s24 }
  0x19   :  { %s11824_s6 = sld [smem:[%s13228_s0 + %s11672_s1]]  }
  0x1a   :  { %s11829_s12 = sld [smem:[%s13228_s0 + %s11673_s7]]   ;;  %s11677_s7 = smov 18  }
  0x1b   :  { %s11834_s20 = sld [smem:[%s13228_s0 + %s11674_s15]]   ;;  %s11678_s15 = smov 19  }
  0x1c   :  { %s11839_s27 = sld [smem:[%s13228_s0 + %s11675_s22]]   ;;  %s11679_s22 = smov 20  }
  0x1d   :  { %13294 = sst [smem:[#allocation70_spill]] %s11819_s30 }
  0x1e   :  { %s11844_s4 = sld [smem:[%s13228_s0 + %s11676_s28]]   ;;  %s11680_s28 = smov 21  }
  0x1f   :  { %13295 = sst [smem:[#allocation71_spill]] %s11824_s6 }
  0x20   :  { %13296 = sst [smem:[#allocation72_spill]] %s11829_s12 }
  0x21   :  { %13297 = sst [smem:[#allocation73_spill]] %s11834_s20 }
  0x22   :  { %13298 = sst [smem:[#allocation74_spill]] %s11839_s27 }
  0x23   :  { %s11849_s21 = sld [smem:[%s13228_s0 + %s11677_s7]]   ;;  %s11681_s7 = smov 22  }
  0x24   :  { %13299 = sst [smem:[#allocation75_spill]] %s11844_s4 }
  0x25   :  { %s11854_s17 = sld [smem:[%s13228_s0 + %s11678_s15]]   ;;  %s11682_s15 = smov 23  }
  0x26   :  { %s11859_s13 = sld [smem:[%s13228_s0 + %s11679_s22]]   ;;  %s11683_s22 = smov 24  }
  0x27   :  { %s11864_s20 = sld [smem:[%s13228_s0 + %s11680_s28]]   ;;  %s11684_s28 = smov 25  }
  0x28   :  { %s11869_s6 = sld [smem:[%s13228_s0 + %s11681_s7]]   ;;  %s11685_s7 = smov 26  }
  0x29   :  { %s11879_s4 = sld [smem:[%s13228_s0 + %s11683_s22]]   ;;  %s11687_s22 = smov 28  }
  0x2a   :  { %s11899_s30 = sld [smem:[%s13228_s0 + %s11687_s22]]   ;;  %s11691_s22 = smov 32  }
  0x2b   :  { %13300 = sst [smem:[#allocation76_spill]] %s11854_s17 }
  0x2c   :  { %13301 = sst [smem:[#allocation77_spill]] %s11859_s13 }
  0x2d   :  { %13302 = sst [smem:[#allocation78_spill]] %s11864_s20 }
  0x2e   :  { %13303 = sst [smem:[#allocation79_spill]] %s11869_s6 }
  0x2f   :  { %s11874_s17 = sld [smem:[%s13228_s0 + %s11682_s15]]   ;;  %s11686_s15 = smov 27  }
  0x30   :  { %13305 = sst [smem:[#allocation81_spill]] %s11879_s4 }
  0x31   :  { %s11884_s20 = sld [smem:[%s13228_s0 + %s11684_s28]]   ;;  %s11688_s28 = smov 29  }
  0x32   :  { %s11889_s6 = sld [smem:[%s13228_s0 + %s11685_s7]]   ;;  %s11689_s7 = smov 30  }
  0x33   :  { %13308 = sst [smem:[#allocation84_spill]] %s11899_s30 }
  0x34   :  { %s11909_s24 = sld [smem:[%s13228_s0 + %s11689_s7]]   ;;  %s11693_s7 = smov 34  }
  0x35   :  { %13304 = sst [smem:[#allocation80_spill]] %s11874_s17 }
  0x36   :  { %s11894_s17 = sld [smem:[%s13228_s0 + %s11686_s15]]   ;;  %s11690_s15 = smov 31  }
  0x37   :  { %13306 = sst [smem:[#allocation82_spill]] %s11884_s20 }
  0x38   :  { %13307 = sst [smem:[#allocation83_spill]] %s11889_s6 }
  0x39   :  { %s11904_s20 = sld [smem:[%s13228_s0 + %s11688_s28]]   ;;  %s11692_s28 = smov 33  }
  0x3a   :  { %13309 = sst [smem:[#allocation85_spill]] %s11909_s24 }
  0x3b   :  { %s11914_s9 = sld [smem:[%s13228_s0 + %s11690_s15]]   ;;  %s11694_s15 = smov 35  }
  0x3c   :  { %s11919_s14 = sld [smem:[%s13228_s0 + %s11691_s22]]   ;;  %s11695_s22 = smov 36  }
  0x3d   :  { %s11924_s29 = sld [smem:[%s13228_s0 + %s11692_s28]]   ;;  %s11696_s28 = smov 37  }
  0x3e   :  { %s11929_s25 = sld [smem:[%s13228_s0 + %s11693_s7]]   ;;  %s11697_s7 = smov 38  }
  0x3f   :  { %s11934_s5 = sld [smem:[%s13228_s0 + %s11694_s15]]   ;;  %s11698_s15 = smov 39  }
  0x40   :  { %s11944_s24 = sld [smem:[%s13228_s0 + %s11696_s28]]   ;;  %s11700_s28 = smov 41  }
  0x41   :  { %13310 = sst [smem:[#allocation86_spill]] %s11914_s9 }
  0x42   :  { %13311 = sst [smem:[#allocation87_spill]] %s11919_s14 }
  0x43   :  { %s11939_s14 = sld [smem:[%s13228_s0 + %s11695_s22]]   ;;  %s11699_s22 = smov 40  }
  0x44   :  { %13312 = sst [smem:[#allocation88_spill]] %s11929_s25 }
  0x45   :  { %13313 = sst [smem:[#allocation89_spill]] %s11934_s5 }
  0x46   :  { %13314 = sst [smem:[#allocation90_spill]] %s11944_s24 }
  0x47   :  { %s11949_s25 = sld [smem:[%s13228_s0 + %s11697_s7]]   ;;  %s11701_s7 = smov 42  }
  0x48   :  { %s11954_s5 = sld [smem:[%s13228_s0 + %s11698_s15]]   ;;  %s11702_s15 = smov 43  }
  0x49   :  { %s11959_s30 = sld [smem:[%s13228_s0 + %s11699_s22]]   ;;  %s11703_s22 = smov 44  }
  0x4a   :  { %s11964_s24 = sld [smem:[%s13228_s0 + %s11700_s28]]   ;;  %s11704_s28 = smov 45  }
  0x4b   :  { %s11969_s6 = sld [smem:[%s13228_s0 + %s11701_s7]]   ;;  %s11705_s7 = smov 46  }
  0x4c   :  { %s11979_s13 = sld [smem:[%s13228_s0 + %s11703_s22]]  }
  0x4e   :  { %13315 = sst [smem:[#allocation91_spill]] %s11954_s5 }
  0x4f   :  { %s11974_s5 = sld [smem:[%s13228_s0 + %s11702_s15]]   ;;  %s11706_s15 = smov 47  }
  0x50   :  { %13316 = sst [smem:[#allocation92_spill]] %s11964_s24 }
  0x51   :  { %13317 = sst [smem:[#allocation93_spill]] %s11969_s6 }
  0x52   :  { %s11984_s24 = sld [smem:[%s13228_s0 + %s11704_s28]]  }
  0x53   :  { %s11989_s6 = sld [smem:[%s13228_s0 + %s11705_s7]]  }
  0x54   :  { %s11994_s27 = sld [smem:[%s13228_s0 + %s11706_s15]]  }
  0x55   :  { %13318 = sst [smem:[#allocation94_spill]] %s11974_s5 }
  0x56   :  { %101 = vsyncpa [#allocation3], 0 }
  0x57   :  { %102 = vsyncpa [#allocation6], 0 }
  0x58   :  { %103 = vsyncpa [#allocation9], 0 }
  0x59   :  { %104 = vsyncpa [#allocation12], 0 }
  0x5a   :  { %105 = vsyncpa [#allocation15], 0 }
  0x5b   :  { %106 = vsyncpa [#allocation18], 0 }
  0x5c   :  { %107 = vsyncpa [#allocation21], 0 }
  0x5d   :  { %108 = vsyncpa [#allocation24], 0 }
  0x5e   :  { %109 = vsyncpa [#allocation27], 0 }
  0x5f   :  { %110 = vsyncpa [#allocation30], 0 }
  0x60   :  { %111 = vsyncpa [#allocation33], 0 }
  0x61   :  { %112 = vsyncpa [#allocation36], 0 }
  0x62   :  { %113 = vsyncpa [#allocation39], 0 }
  0x63   :  { %114 = vsyncpa [#allocation42], 0 }
  0x64   :  { %115 = vsyncpa [#allocation4], 0 }
  0x65   :  { %117 = vsyncpa [#allocation4 + $0x1], 0  ;;  %s11996_s22 = smov 0   ;;  %s11998_s0 = smov 0  }
  0x66   :  { %s12000_s23 = smov 0   ;;  %s12002_s26 = smov 0  }
  0x67 LB: > { %13319 = sst [smem:[#allocation95_spill]] %s11646_s22  ;;  %s12017_s28 = sadd.s32 4294967295, %s11658_s26   ;;  %s11658_s26 = sphi %s12002_s26, %s13417_s26   ;;  %s11654_s23 = sphi %s12000_s23, %s13419_s23   ;;  %s11650_s0 = sphi %s11998_s0, %s13421_s0   ;;  %s11646_s22 = sphi %s11996_s22, %s13420_s22  }
  0x68   : > { %13320 = sst [smem:[#allocation96_spill]] %s11654_s23  ;;  %s9312_s1 = sadd.s32 4294967294, %s11658_s26  }
  0x69   : > { %13321 = sst [smem:[#allocation97_spill]] %s11658_s26  ;;  %s12021_s2 = sadd.s32 1, %s11658_s26  }
  0x6a   : > { %13322 = sst [smem:[#allocation98_spill]] %s12021_s2  ;;  %s1121_s7 = sadd.s32 1, %s11654_s23 }
  0x6b   : > { %s1118_s10 = ssub.s32 %s11658_s26, %s12021_s2  ;;  %p1131_p0 = scmp.ne.s32.totalorder %s11654_s23, %s11650_s0 }
  0x6c   : > { %p1119_p1 = scmp.eq.s32.totalorder %s1118_s10, 0  ;;  %p1132_p2 = scmp.eq.s32.totalorder %s12017_s28, 1 }
  0x6d   : > { %p1137_p3 = scmp.ne.s32.totalorder %s11650_s0, %s11646_s22  ;;  %p1138_p4 = scmp.eq.s32.totalorder %s9312_s1, 1 }
  0x6e   : > { %s12032_s11 = scalar_select %p1119_p1, %s11654_s23, %s1121_s7  }
  0x6f   : > { %p12034_p5 = por %p1132_p2, %p1131_p0  ;;  %p12038_p6 = por %p1138_p4, %p1137_p3 }
  0x70   : > { %13323 = sst [smem:[#allocation99_spill]] %s12032_s11  ;;  %p9313_p7 = scmp.ge.s32.totalorder %s11658_s26, 1 }
  0x71   : > { %s13324_s15 = scalar_select %p12034_p5, 1, 0 }
  0x72   : > { %s13325_s16 = scalar_select %p12038_p6, 1, 0 }
  0x73   : > { %p1171_p8 = scmp.lt.s32.totalorder %s11658_s26, 3  ;;  %p13247_p9 = scmp.eq.s32.totalorder %s12017_s28, 0 }
  0x74   : > { %13326 = sst [smem:[#allocation100_spill]] %s13325_s16  ;;  %s11707_s10 = smov [#allocation5]  }
  0x75   : > { %p12045_p10 = pnand %p9313_p7, %p1171_p8  ;;  %s1201_s1 = sshll.u32 %s11707_s10, 4  ;;  %s1202_s1 = int_to_ptr.vmem [resolvable:$true] %s1201_s1 }
  0x76   : > { %s11708_s7 = smov [#allocation8]   ;;  %s11709_s2 = smov [#allocation11]  }
  0x77   : > { %s13327_s18 = scalar_select %p12045_p10, 1, 0 }
  0x78   : > { %p10471_p11 = pneg %p12045_p10  ;;  %s1236_s11 = sshll.u32 %s11708_s7, 4  ;;  %s12057_s11 = int_to_ptr.vmem [resolvable:$true] %s1236_s11 }
  0x79   : > { %s1268_s16 = sshll.u32 %s11709_s2, 4  ;;  %s10877_s10 = scalar_lea.vmem %s1202_s1, 16  ;;  %s1269_s16 = int_to_ptr.vmem [resolvable:$true] %s1268_s16 }
  0x7a   : > { %p12053_p12 = pnand %p13247_p9, %p10471_p11  ;;  %p10878_p0 = scmp.ne.s32.totalorder %s1202_s1, %s10877_s10 }
  0x7b   : > { %s10884_s7 = scalar_lea.vmem %s1202_s1, 32  ;;  %p10885_p3 = scmp.lt.s32.totalorder %s1202_s1, %s1202_s1 }
  0x7c   : > { %p12061_p13 = pneg %p12053_p12  ;;  %p10886_p4 = scmp.lt.s32.totalorder %s10884_s7, %s10877_s10 }
  0x7e   : > { %p10880_p1 = pnand %p10878_p0, %p12061_p13  ;;  %p10887_p7 = por %p10886_p4, %p10885_p3 }
  0x80   : > { %p10881_p2 = pneg %p10880_p1 }
  0x82   : > { %p10888_p8 = pnand %p10887_p7, %p10881_p2 }
  0x84   : > { %10891 = shalt.err (!%p10888_p8)
}
  0x85   : > { %s13330_s8 = sld [smem:[#allocation67_spill]]  ;;  %s10903_s2 = scalar_lea.vmem %s12057_s11, 32 }
  0x86   : > { %p10904_p11 = scmp.ne.s32.totalorder %s12057_s11, %s10903_s2  ;;  %p10911_p1 = scmp.lt.s32.totalorder %s12057_s11, %s12057_s11 }
  0x87   : > { %p10912_p6 = scmp.lt.s32.totalorder %s10903_s2, %s10903_s2 }
  0x88   : > { %p10906_p9 = pnand %p10904_p11, %p12061_p13 }
  0x89   : > { %p10913_p5 = por %p10912_p6, %p10911_p1 }
  0x8a   : > { %p10907_p0 = pneg %p10906_p9 }
  0x8b   : > { %10477 = dma.hbm_to_vmem [thread:$0]  (!%p12053_p12), %s13330_s8, 16, %s1202_s1, [#allocation6]  }
  0x8c   : > { %p10914_p3 = pnand %p10913_p5, %p10907_p0 }
  0x8e   : > { %10917 = shalt.err (!%p10914_p3)
}
  0x8f   : > { %s13252_s10 = smov 16   ;;  %s13331_s12 = sld [smem:[#allocation72_spill]] }
  0x90   : > { %s13258_s7 = smov 1   ;;  %s10929_s1 = scalar_lea.vmem %s1269_s16, 32 }
  0x91   : > { %p10930_p9 = scmp.ne.s32.totalorder %s1269_s16, %s10929_s1  ;;  %p10937_p6 = scmp.lt.s32.totalorder %s1269_s16, %s1269_s16 }
  0x92   : > { %p10938_p5 = scmp.lt.s32.totalorder %s10929_s1, %s10929_s1 }
  0x93   : > { %p10932_p2 = pnand %p10930_p9, %p12061_p13 }
  0x94   : > { %p10939_p7 = por %p10938_p5, %p10937_p6 }
  0x95   : > { %10483 = dma.hbm_to_vmem [thread:$0]  (!%p12053_p12), %s13331_s12, 32, %s12057_s11, [#allocation9], %s13252_s10, %s13252_s10, %s13258_s7  }
  0x96   : > { %p10933_p4 = pneg %p10932_p2 }
  0x98   : > { %p10940_p8 = pnand %p10939_p7, %p10933_p4 }
  0x9a   : > { %10943 = shalt.err (!%p10940_p8)
}
  0x9b   : > { %10489 = dma.hbm_to_vmem [thread:$0]  (!%p12053_p12), %s11849_s21, 32, %s1269_s16, [#allocation12], %s13252_s10, %s13252_s10, %s13258_s7  }
  0x9c   : > { %s11712_s11 = smov [#allocation14]   ;;  %s11713_s8 = smov [#allocation17]  }
  0x9d   : > { %s1306_s2 = sshll.u32 %s11712_s11, 4  ;;  %s1335_s12 = sshll.u32 %s11713_s8, 4  ;;  %s1307_s2 = int_to_ptr.vmem [resolvable:$true] %s1306_s2  ;;  %s1336_s12 = int_to_ptr.vmem [resolvable:$true] %s1335_s12 }
  0x9e   : > { %s10955_s26 = scalar_lea.vmem %s1307_s2, 96  ;;  %p10963_p3 = scmp.lt.s32.totalorder %s1307_s2, %s1307_s2 }
  0x9f   : > { %p10956_p11 = scmp.ne.s32.totalorder %s1307_s2, %s10955_s26  ;;  %p10964_p9 = scmp.lt.s32.totalorder %s10955_s26, %s10955_s26 }
  0xa1   : > { %p10958_p0 = pnand %p10956_p11, %p12061_p13  ;;  %p10965_p2 = por %p10964_p9, %p10963_p3 }
  0xa3   : > { %p10959_p1 = pneg %p10958_p0 }
  0xa5   : > { %p10966_p4 = pnand %p10965_p2, %p10959_p1 }
  0xa7   : > { %10969 = shalt.err (!%p10966_p4)
}
  0xa8   : > { %s13250_s1 = smov 48   ;;  %s13332_s4 = sld [smem:[#allocation81_spill]] }
  0xa9   : > { %s13251_s16 = smov 3   ;;  %s10981_s8 = scalar_lea.vmem %s1336_s12, 32 }
  0xaa   : > { %p10982_p6 = scmp.ne.s32.totalorder %s1336_s12, %s10981_s8  ;;  %p10989_p8 = scmp.lt.s32.totalorder %s1336_s12, %s1336_s12 }
  0xab   : > { %p10990_p11 = scmp.lt.s32.totalorder %s10981_s8, %s10981_s8 }
  0xac   : > { %p10984_p5 = pnand %p10982_p6, %p12061_p13 }
  0xad   : > { %p10991_p0 = por %p10990_p11, %p10989_p8 }
  0xae   : > { %10495 = dma.hbm_to_vmem [thread:$0]  (!%p12053_p12), %s13332_s4, 96, %s1307_s2, [#allocation15], %s13250_s1, %s13250_s1, %s13251_s16  }
  0xaf   : > { %p10985_p7 = pneg %p10984_p5 }
  0xb1   : > { %p10992_p1 = pnand %p10991_p0, %p10985_p7 }
  0xb3   : > { %10995 = shalt.err (!%p10992_p1)
}
  0xb4   : > { %10501 = dma.hbm_to_vmem [thread:$0]  (!%p12053_p12), %s11894_s17, 32, %s1336_s12, [#allocation18], %s13252_s10, %s13252_s10, %s13258_s7  }
  0xb5   : > { %s11716_s26 = smov [#allocation20]   ;;  %s11717_s2 = smov [#allocation23]  }
  0xb6   : > { %s1361_s11 = sshll.u32 %s11716_s26, 4  ;;  %s1387_s1 = sshll.u32 %s11717_s2, 4  ;;  %s1362_s11 = int_to_ptr.vmem [resolvable:$true] %s1361_s11  ;;  %s1388_s1 = int_to_ptr.vmem [resolvable:$true] %s1387_s1 }
  0xb7   : > { %s11007_s16 = scalar_lea.vmem %s1362_s11, 32  ;;  %p11015_p4 = scmp.lt.s32.totalorder %s1362_s11, %s1362_s11 }
  0xb8   : > { %p11008_p3 = scmp.ne.s32.totalorder %s1362_s11, %s11007_s16  ;;  %p11016_p6 = scmp.lt.s32.totalorder %s11007_s16, %s11007_s16 }
  0xba   : > { %p11010_p9 = pnand %p11008_p3, %p12061_p13  ;;  %p11017_p5 = por %p11016_p6, %p11015_p4 }
  0xbc   : > { %p11011_p2 = pneg %p11010_p9 }
  0xbe   : > { %p11018_p7 = pnand %p11017_p5, %p11011_p2 }
  0xc0   : > { %11021 = shalt.err (!%p11018_p7)
}
  0xc1   : > { %10507 = dma.hbm_to_vmem [thread:$0]  (!%p12053_p12), %s11904_s20, 32, %s1362_s11, [#allocation21], %s13252_s10, %s13252_s10, %s13258_s7  }
  0xc2   : > { %s11033_s12 = scalar_lea.vmem %s1388_s1, 32  ;;  %p11041_p1 = scmp.lt.s32.totalorder %s1388_s1, %s1388_s1 }
  0xc3   : > { %p11034_p8 = scmp.ne.s32.totalorder %s1388_s1, %s11033_s12  ;;  %p11042_p3 = scmp.lt.s32.totalorder %s11033_s12, %s11033_s12 }
  0xc5   : > { %p11036_p11 = pnand %p11034_p8, %p12061_p13  ;;  %p11043_p9 = por %p11042_p3, %p11041_p1 }
  0xc7   : > { %p11037_p0 = pneg %p11036_p11 }
  0xc9   : > { %p11044_p4 = pnand %p11043_p9, %p11037_p0 }
  0xcb   : > { %11047 = shalt.err (!%p11044_p4)
}
  0xcc   : > { %s13333_s9 = sld [smem:[#allocation86_spill]]  ;;  %s11718_s16 = smov [#allocation26]  }
  0xcd   : > { %s1413_s8 = sshll.u32 %s11718_s16, 4  ;;  %s1414_s8 = int_to_ptr.vmem [resolvable:$true] %s1413_s8 }
  0xce   : > { %s11059_s26 = scalar_lea.vmem %s1414_s8, 1024  ;;  %p11067_p7 = scmp.lt.s32.totalorder %s1414_s8, %s1414_s8 }
  0xcf   : > { %p11060_p2 = scmp.ne.s32.totalorder %s1414_s8, %s11059_s26  ;;  %p11068_p8 = scmp.lt.s32.totalorder %s11059_s26, %s11059_s26 }
  0xd1   : > { %p11062_p6 = pnand %p11060_p2, %p12061_p13  ;;  %p11069_p11 = por %p11068_p8, %p11067_p7 }
  0xd2   : > { %10513 = dma.hbm_to_vmem [thread:$0]  (!%p12053_p12), %s13333_s9, 32, %s1388_s1, [#allocation24], %s13252_s10, %s13252_s10, %s13258_s7  }
  0xd3   : > { %p11063_p5 = pneg %p11062_p6 }
  0xd5   : > { %p11070_p0 = pnand %p11069_p11, %p11063_p5 }
  0xd7   : > { %11073 = shalt.err (!%p11070_p0)
}
  0xd8   : > { %s13254_s11 = smov 128   ;;  %s13256_s2 = smov 8  }
  0xd9   : > { %10519 = dma.hbm_to_vmem [thread:$0]  (!%p12053_p12), %s11924_s29, 1024, %s1414_s8, [#allocation27], %s13254_s11, %s13254_s11, %s13256_s2  }
  0xda   : > { %s11721_s1 = smov [#allocation29]  }
  0xdb   : > { %s1442_s12 = sshll.u32 %s11721_s1, 4  ;;  %s1443_s12 = int_to_ptr.vmem [resolvable:$true] %s1442_s12 }
  0xdc   : > { %s11085_s16 = scalar_lea.vmem %s1443_s12, 64  ;;  %p11093_p4 = scmp.lt.s32.totalorder %s1443_s12, %s1443_s12 }
  0xdd   : > { %p11086_p1 = scmp.ne.s32.totalorder %s1443_s12, %s11085_s16  ;;  %p11094_p2 = scmp.lt.s32.totalorder %s11085_s16, %s11085_s16 }
  0xdf   : > { %p11088_p3 = pnand %p11086_p1, %p12061_p13  ;;  %p11095_p6 = por %p11094_p2, %p11093_p4 }
  0xe1   : > { %p11089_p9 = pneg %p11088_p3 }
  0xe3   : > { %p11096_p5 = pnand %p11095_p6, %p11089_p9 }
  0xe5   : > { %11099 = shalt.err (!%p11096_p5)
}
  0xe6   : > { %s11722_s26 = smov 32   ;;  %s11723_s10 = smov 2  }
  0xe7   : > { %10525 = dma.hbm_to_vmem [thread:$0]  (!%p12053_p12), %s11939_s14, 64, %s1443_s12, [#allocation30], %s11722_s26, %s11722_s26, %s11723_s10  }
  0xe8   : > { %s11724_s8 = smov [#allocation32]   ;;  %s11725_s11 = smov [#allocation35]  }
  0xe9   : > { %s1468_s1 = sshll.u32 %s11724_s8, 4  ;;  %s1494_s2 = sshll.u32 %s11725_s11, 4  ;;  %s1469_s1 = int_to_ptr.vmem [resolvable:$true] %s1468_s1  ;;  %s1495_s2 = int_to_ptr.vmem [resolvable:$true] %s1494_s2 }
  0xea   : > { %s11111_s7 = scalar_lea.vmem %s1469_s1, 32  ;;  %p11119_p0 = scmp.lt.s32.totalorder %s1469_s1, %s1469_s1 }
  0xeb   : > { %p11112_p7 = scmp.ne.s32.totalorder %s1469_s1, %s11111_s7  ;;  %p11120_p1 = scmp.lt.s32.totalorder %s11111_s7, %s11111_s7 }
  0xed   : > { %p11114_p8 = pnand %p11112_p7, %p12061_p13  ;;  %p11121_p3 = por %p11120_p1, %p11119_p0 }
  0xef   : > { %p11115_p11 = pneg %p11114_p8 }
  0xf1   : > { %p11122_p9 = pnand %p11121_p3, %p11115_p11 }
  0xf3   : > { %11125 = shalt.err (!%p11122_p9)
}
  0xf4   : > { %s13334_s16 = smov 1   ;;  %s13335_s4 = smov 16  }
  0xf5   : > { %10531 = dma.hbm_to_vmem [thread:$0]  (!%p12053_p12), %s11949_s25, 32, %s1469_s1, [#allocation33], %s13335_s4, %s13335_s4, %s13334_s16  }
  0xf6   : > { %s11137_s10 = scalar_lea.vmem %s1495_s2, 32  ;;  %p11145_p5 = scmp.lt.s32.totalorder %s1495_s2, %s1495_s2 }
  0xf7   : > { %p11138_p4 = scmp.ne.s32.totalorder %s1495_s2, %s11137_s10  ;;  %p11146_p7 = scmp.lt.s32.totalorder %s11137_s10, %s11137_s10 }
  0xf9   : > { %p11140_p2 = pnand %p11138_p4, %p12061_p13  ;;  %p11147_p8 = por %p11146_p7, %p11145_p5 }
  0xfb   : > { %p11141_p6 = pneg %p11140_p2 }
  0xfd   : > { %p11148_p0 = pnand %p11147_p8, %p11141_p6 }
  0xff   : > { %11151 = shalt.err (!%p11148_p0)
}
 0x100   : > { %10537 = dma.hbm_to_vmem [thread:$0]  (!%p12053_p12), %s11959_s30, 32, %s1495_s2, [#allocation36], %s13335_s4, %s13335_s4, %s13334_s16  }
 0x101   : > { %s11726_s7 = smov [#allocation38]   ;;  %s11727_s12 = smov [#allocation2]  }
 0x102   : > { %s1524_s11 = sshll.u32 %s11726_s7, 4  ;;  %s1190_s26 = sshll.u32 %s11727_s12, 4  ;;  %s1525_s11 = int_to_ptr.vmem [resolvable:$true] %s1524_s11  ;;  %s1191_s26 = int_to_ptr.vmem [resolvable:$true] %s1190_s26 }
 0x103   : > { %s11163_s8 = scalar_lea.vmem %s1525_s11, 16  ;;  %s11170_s1 = scalar_lea.vmem %s1525_s11, 32 }
 0x104   : > { %p11164_p11 = scmp.ne.s32.totalorder %s1525_s11, %s11163_s8  ;;  %p11171_p9 = scmp.lt.s32.totalorder %s1525_s11, %s1525_s11 }
 0x105   : > { %p11172_p4 = scmp.lt.s32.totalorder %s11170_s1, %s11163_s8 }
 0x106   : > { %p11166_p1 = pnand %p11164_p11, %p12061_p13 }
 0x107   : > { %p11173_p2 = por %p11172_p4, %p11171_p9 }
 0x108   : > { %p11167_p3 = pneg %p11166_p1 }
 0x10a   : > { %p11174_p6 = pnand %p11173_p2, %p11167_p3 }
 0x10c   : > { %11177 = shalt.err (!%p11174_p6)
}
 0x10d   : > { %s13336_s5 = sld [smem:[#allocation94_spill]]  ;;  %s11189_s2 = scalar_lea.vmem %s1191_s26, 16 }
 0x10e   : > { %p11190_p5 = scmp.ne.s32.totalorder %s1191_s26, %s11189_s2  ;;  %s11196_s10 = scalar_lea.vmem %s1191_s26, 32 }
 0x10f   : > { %p11197_p0 = scmp.lt.s32.totalorder %s1191_s26, %s1191_s26  ;;  %p11198_p11 = scmp.lt.s32.totalorder %s11196_s10, %s11189_s2 }
 0x110   : > { %p11192_p7 = pnand %p11190_p5, %p12061_p13 }
 0x111   : > { %p11199_p1 = por %p11198_p11, %p11197_p0 }
 0x112   : > { %p11193_p8 = pneg %p11192_p7 }
 0x113   : > { %10543 = dma.hbm_to_vmem [thread:$0]  (!%p12053_p12), %s13336_s5, 16, %s1525_s11, [#allocation39]  }
 0x114   : > { %p11200_p10 = pnand %p11199_p1, %p11193_p8 }
 0x116   : > { %11203 = shalt.err (!%p11200_p10)
}
 0x117   : > { %s13337_s3 = sld [smem:[#allocation66_spill]]  ;;  %s11728_s7 = smov [#allocation7]  }
 0x118   : > { %s1214_s12 = sshll.u32 %s11728_s7, 4  ;;  %s11729_s11 = smov [#allocation10]   ;;  %s1215_s12 = int_to_ptr.vmem [resolvable:$true] %s1214_s12 }
 0x119   : > { %s1252_s8 = sshll.u32 %s11729_s11, 4  ;;  %s11215_s1 = scalar_lea.vmem %s1215_s12, 96  ;;  %s1253_s8 = int_to_ptr.vmem [resolvable:$true] %s1252_s8 }
 0x11a   : > { %p11216_p3 = scmp.ne.s32.totalorder %s1215_s12, %s11215_s1  ;;  %p11223_p2 = scmp.lt.s32.totalorder %s1215_s12, %s1215_s12 }
 0x11b   : > { %p11224_p6 = scmp.lt.s32.totalorder %s11215_s1, %s11215_s1 }
 0x11c   : > { %p11218_p9 = pnand %p11216_p3, %p12061_p13 }
 0x11d   : > { %10474 = dma.hbm_to_vmem [thread:$0]  (!%p12053_p12), %s13337_s3, 16, %s1191_s26, [#allocation3]  }
 0x11e   : > { %p11219_p4 = pneg %p11218_p9  ;;  %p11225_p5 = por %p11224_p6, %p11223_p2 }
 0x120   : > { %p11226_p7 = pnand %p11225_p5, %p11219_p4 }
 0x122   : > { %11229 = shalt.err (!%p11226_p7)
}
 0x123   : > { %s13338_s2 = smov 3   ;;  %s13339_s10 = smov 48  }
 0x124   : > { %10480 = dma.hbm_to_vmem [thread:$0]  (!%p12053_p12), %s11809_s19, 96, %s1215_s12, [#allocation6], %s13339_s10, %s13339_s10, %s13338_s2  }
 0x125   : > { %s11241_s26 = scalar_lea.vmem %s1253_s8, 32  ;;  %p11249_p11 = scmp.lt.s32.totalorder %s1253_s8, %s1253_s8 }
 0x126   : > { %p11242_p10 = scmp.ne.s32.totalorder %s1253_s8, %s11241_s26  ;;  %p11250_p1 = scmp.lt.s32.totalorder %s11241_s26, %s11241_s26 }
 0x128   : > { %p11244_p8 = pnand %p11242_p10, %p12061_p13  ;;  %p11251_p3 = por %p11250_p1, %p11249_p11 }
 0x12a   : > { %p11245_p0 = pneg %p11244_p8 }
 0x12c   : > { %p11252_p9 = pnand %p11251_p3, %p11245_p0 }
 0x12e   : > { %11255 = shalt.err (!%p11252_p9)
}
 0x12f   : > { %s13340_s7 = sld [smem:[#allocation74_spill]]  ;;  %s11730_s12 = smov [#allocation13]  }
 0x130   : > { %s1284_s11 = sshll.u32 %s11730_s12, 4  ;;  %s11731_s1 = smov [#allocation16]   ;;  %s1285_s11 = int_to_ptr.vmem [resolvable:$true] %s1284_s11 }
 0x131   : > { %s1322_s2 = sshll.u32 %s11731_s1, 4  ;;  %s11267_s10 = scalar_lea.vmem %s1285_s11, 32  ;;  %s1323_s2 = int_to_ptr.vmem [resolvable:$true] %s1322_s2 }
 0x132   : > { %p11268_p4 = scmp.ne.s32.totalorder %s1285_s11, %s11267_s10  ;;  %p11275_p5 = scmp.lt.s32.totalorder %s1285_s11, %s1285_s11 }
 0x133   : > { %p11276_p7 = scmp.lt.s32.totalorder %s11267_s10, %s11267_s10 }
 0x134   : > { %p11270_p2 = pnand %p11268_p4, %p12061_p13 }
 0x135   : > { %10486 = dma.hbm_to_vmem [thread:$0]  (!%p12053_p12), %s13340_s7, 32, %s1253_s8, [#allocation9], %s13335_s4, %s13335_s4, %s13334_s16  }
 0x136   : > { %p11271_p6 = pneg %p11270_p2  ;;  %p11277_p10 = por %p11276_p7, %p11275_p5 }
 0x138   : > { %p11278_p8 = pnand %p11277_p10, %p11271_p6 }
 0x13a   : > { %11281 = shalt.err (!%p11278_p8)
}
 0x13b   : > { %s13341_s8 = sld [smem:[#allocation77_spill]]  ;;  %s11293_s26 = scalar_lea.vmem %s1323_s2, 32 }
 0x13c   : > { %p11294_p0 = scmp.ne.s32.totalorder %s1323_s2, %s11293_s26  ;;  %p11301_p3 = scmp.lt.s32.totalorder %s1323_s2, %s1323_s2 }
 0x13d   : > { %p11302_p9 = scmp.lt.s32.totalorder %s11293_s26, %s11293_s26 }
 0x13e   : > { %p11296_p11 = pnand %p11294_p0, %p12061_p13 }
 0x13f   : > { %p11303_p4 = por %p11302_p9, %p11301_p3 }
 0x140   : > { %p11297_p1 = pneg %p11296_p11 }
 0x141   : > { %10492 = dma.hbm_to_vmem [thread:$0]  (!%p12053_p12), %s13341_s8, 32, %s1285_s11, [#allocation12], %s13335_s4, %s13335_s4, %s13334_s16  }
 0x142   : > { %p11304_p2 = pnand %p11303_p4, %p11297_p1 }
 0x144   : > { %11307 = shalt.err (!%p11304_p2)
}
 0x145   : > { %s13342_s7 = sld [smem:[#allocation83_spill]]  ;;  %s11732_s12 = smov [#allocation19]  }
 0x146   : > { %s1348_s11 = sshll.u32 %s11732_s12, 4  ;;  %s11733_s1 = smov [#allocation22]   ;;  %s1349_s11 = int_to_ptr.vmem [resolvable:$true] %s1348_s11 }
 0x147   : > { %s1374_s10 = sshll.u32 %s11733_s1, 4  ;;  %s11319_s8 = scalar_lea.vmem %s1349_s11, 32  ;;  %s1375_s10 = int_to_ptr.vmem [resolvable:$true] %s1374_s10 }
 0x148   : > { %p11320_p6 = scmp.ne.s32.totalorder %s1349_s11, %s11319_s8  ;;  %p11327_p10 = scmp.lt.s32.totalorder %s1349_s11, %s1349_s11 }
 0x149   : > { %p11328_p8 = scmp.lt.s32.totalorder %s11319_s8, %s11319_s8 }
 0x14a   : > { %p11322_p5 = pnand %p11320_p6, %p12061_p13 }
 0x14b   : > { %10498 = dma.hbm_to_vmem [thread:$0]  (!%p12053_p12), %s13342_s7, 32, %s1323_s2, [#allocation15], %s13335_s4, %s13335_s4, %s13334_s16  }
 0x14c   : > { %p11323_p7 = pneg %p11322_p5  ;;  %p11329_p0 = por %p11328_p8, %p11327_p10 }
 0x14e   : > { %p11330_p11 = pnand %p11329_p0, %p11323_p7 }
 0x150   : > { %11333 = shalt.err (!%p11330_p11)
}
 0x151   : > { %s13343_s2 = sld [smem:[#allocation84_spill]]  ;;  %s11345_s26 = scalar_lea.vmem %s1375_s10, 32 }
 0x152   : > { %p11346_p1 = scmp.ne.s32.totalorder %s1375_s10, %s11345_s26  ;;  %p11353_p4 = scmp.lt.s32.totalorder %s1375_s10, %s1375_s10 }
 0x153   : > { %p11354_p2 = scmp.lt.s32.totalorder %s11345_s26, %s11345_s26 }
 0x154   : > { %p11348_p3 = pnand %p11346_p1, %p12061_p13 }
 0x155   : > { %p11355_p6 = por %p11354_p2, %p11353_p4 }
 0x156   : > { %p11349_p9 = pneg %p11348_p3 }
 0x157   : > { %10504 = dma.hbm_to_vmem [thread:$0]  (!%p12053_p12), %s13343_s2, 32, %s1349_s11, [#allocation18], %s13335_s4, %s13335_s4, %s13334_s16  }
 0x158   : > { %p11356_p5 = pnand %p11355_p6, %p11349_p9 }
 0x15a   : > { %11359 = shalt.err (!%p11356_p5)
}
 0x15b   : > { %s13344_s7 = sld [smem:[#allocation85_spill]]  ;;  %s11734_s12 = smov [#allocation25]  }
 0x15c   : > { %s1400_s11 = sshll.u32 %s11734_s12, 4  ;;  %s11735_s1 = smov [#allocation28]   ;;  %s1401_s11 = int_to_ptr.vmem [resolvable:$true] %s1400_s11 }
 0x15d   : > { %s1426_s8 = sshll.u32 %s11735_s1, 4  ;;  %s11371_s2 = scalar_lea.vmem %s1401_s11, 32  ;;  %s1427_s8 = int_to_ptr.vmem [resolvable:$true] %s1426_s8 }
 0x15e   : > { %p11372_p7 = scmp.ne.s32.totalorder %s1401_s11, %s11371_s2  ;;  %p11379_p0 = scmp.lt.s32.totalorder %s1401_s11, %s1401_s11 }
 0x15f   : > { %p11380_p11 = scmp.lt.s32.totalorder %s11371_s2, %s11371_s2 }
 0x160   : > { %p11374_p10 = pnand %p11372_p7, %p12061_p13 }
 0x161   : > { %10510 = dma.hbm_to_vmem [thread:$0]  (!%p12053_p12), %s13344_s7, 32, %s1375_s10, [#allocation21], %s13335_s4, %s13335_s4, %s13334_s16  }
 0x162   : > { %p11375_p8 = pneg %p11374_p10  ;;  %p11381_p1 = por %p11380_p11, %p11379_p0 }
 0x164   : > { %p11382_p3 = pnand %p11381_p1, %p11375_p8 }
 0x166   : > { %11385 = shalt.err (!%p11382_p3)
}
 0x167   : > { %s13345_s10 = sld [smem:[#allocation87_spill]]  ;;  %s11397_s26 = scalar_lea.vmem %s1427_s8, 32 }
 0x168   : > { %p11398_p9 = scmp.ne.s32.totalorder %s1427_s8, %s11397_s26  ;;  %p11405_p6 = scmp.lt.s32.totalorder %s1427_s8, %s1427_s8 }
 0x169   : > { %p11406_p5 = scmp.lt.s32.totalorder %s11397_s26, %s11397_s26 }
 0x16a   : > { %p11400_p4 = pnand %p11398_p9, %p12061_p13 }
 0x16b   : > { %p11407_p7 = por %p11406_p5, %p11405_p6 }
 0x16c   : > { %p11401_p2 = pneg %p11400_p4 }
 0x16d   : > { %10516 = dma.hbm_to_vmem [thread:$0]  (!%p12053_p12), %s13345_s10, 32, %s1401_s11, [#allocation24], %s13335_s4, %s13335_s4, %s13334_s16  }
 0x16e   : > { %p11408_p10 = pnand %p11407_p7, %p11401_p2 }
 0x170   : > { %11411 = shalt.err (!%p11408_p10)
}
 0x171   : > { %s13346_s7 = sld [smem:[#allocation88_spill]]  ;;  %s11736_s12 = smov [#allocation31]  }
 0x172   : > { %s1455_s11 = sshll.u32 %s11736_s12, 4  ;;  %s11737_s1 = smov [#allocation34]   ;;  %s1456_s11 = int_to_ptr.vmem [resolvable:$true] %s1455_s11 }
 0x173   : > { %s1481_s2 = sshll.u32 %s11737_s1, 4  ;;  %s11423_s10 = scalar_lea.vmem %s1456_s11, 1024  ;;  %s1482_s2 = int_to_ptr.vmem [resolvable:$true] %s1481_s2 }
 0x174   : > { %p11424_p8 = scmp.ne.s32.totalorder %s1456_s11, %s11423_s10  ;;  %p11431_p1 = scmp.lt.s32.totalorder %s1456_s11, %s1456_s11 }
 0x175   : > { %p11432_p3 = scmp.lt.s32.totalorder %s11423_s10, %s11423_s10 }
 0x176   : > { %p11426_p0 = pnand %p11424_p8, %p12061_p13 }
 0x177   : > { %10522 = dma.hbm_to_vmem [thread:$0]  (!%p12053_p12), %s13346_s7, 32, %s1427_s8, [#allocation27], %s13335_s4, %s13335_s4, %s13334_s16  }
 0x178   : > { %p11427_p11 = pneg %p11426_p0  ;;  %p11433_p9 = por %p11432_p3, %p11431_p1 }
 0x17a   : > { %p11434_p4 = pnand %p11433_p9, %p11427_p11 }
 0x17c   : > { %11437 = shalt.err (!%p11434_p4)
}
 0x17d   : > { %s13347_s26 = smov 8   ;;  %s13348_s3 = smov 128  }
 0x17e   : > { %s13349_s8 = sld [smem:[#allocation90_spill]]  ;;  %s11449_s7 = scalar_lea.vmem %s1482_s2, 1024 }
 0x17f   : > { %p11450_p2 = scmp.ne.s32.totalorder %s1482_s2, %s11449_s7  ;;  %p11457_p7 = scmp.lt.s32.totalorder %s1482_s2, %s1482_s2 }
 0x180   : > { %p11458_p10 = scmp.lt.s32.totalorder %s11449_s7, %s11449_s7 }
 0x181   : > { %p11452_p6 = pnand %p11450_p2, %p12061_p13 }
 0x182   : > { %p11459_p8 = por %p11458_p10, %p11457_p7 }
 0x183   : > { %p11453_p5 = pneg %p11452_p6 }
 0x184   : > { %10528 = dma.hbm_to_vmem [thread:$0]  (!%p12053_p12), %s13349_s8, 1024, %s1456_s11, [#allocation30], %s13348_s3, %s13348_s3, %s13347_s26  }
 0x185   : > { %p11460_p0 = pnand %p11459_p8, %p11453_p5 }
 0x187   : > { %11463 = shalt.err (!%p11460_p0)
}
 0x188   : > { %s13350_s12 = sld [smem:[#allocation91_spill]]  ;;  %s11738_s11 = smov [#allocation37]  }
 0x189   : > { %s1510_s1 = sshll.u32 %s11738_s11, 4  ;;  %s11739_s10 = smov [#allocation40]   ;;  %s1511_s1 = int_to_ptr.vmem [resolvable:$true] %s1510_s1 }
 0x18a   : > { %s1535_s8 = sshll.u32 %s11739_s10, 4  ;;  %s11475_s5 = scalar_lea.vmem %s1511_s1, 32  ;;  %s1536_s8 = int_to_ptr.vmem [resolvable:$true] %s1535_s8 }
 0x18b   : > { %p11476_p11 = scmp.ne.s32.totalorder %s1511_s1, %s11475_s5  ;;  %p11483_p9 = scmp.lt.s32.totalorder %s1511_s1, %s1511_s1 }
 0x18c   : > { %p11484_p4 = scmp.lt.s32.totalorder %s11475_s5, %s11475_s5 }
 0x18d   : > { %p11478_p1 = pnand %p11476_p11, %p12061_p13 }
 0x18e   : > { %10534 = dma.hbm_to_vmem [thread:$0]  (!%p12053_p12), %s13350_s12, 1024, %s1482_s2, [#allocation33], %s13348_s3, %s13348_s3, %s13347_s26  }
 0x18f   : > { %p11479_p3 = pneg %p11478_p1  ;;  %p11485_p2 = por %p11484_p4, %p11483_p9 }
 0x191   : > { %p11486_p6 = pnand %p11485_p2, %p11479_p3 }
 0x193   : > { %11489 = shalt.err (!%p11486_p6)
}
 0x194   : > { %s13351_s2 = sld [smem:[#allocation93_spill]]  ;;  %s11501_s7 = scalar_lea.vmem %s1536_s8, 16 }
 0x195   : > { %p11502_p5 = scmp.ne.s32.totalorder %s1536_s8, %s11501_s7  ;;  %s11508_s12 = scalar_lea.vmem %s1536_s8, 32 }
 0x196   : > { %p11509_p8 = scmp.lt.s32.totalorder %s1536_s8, %s1536_s8  ;;  %p11510_p0 = scmp.lt.s32.totalorder %s11508_s12, %s11501_s7 }
 0x197   : > { %p11504_p7 = pnand %p11502_p5, %p12061_p13 }
 0x198   : > { %p11511_p11 = por %p11510_p0, %p11509_p8 }
 0x199   : > { %p11505_p10 = pneg %p11504_p7 }
 0x19a   : > { %10540 = dma.hbm_to_vmem [thread:$0]  (!%p12053_p12), %s13351_s2, 32, %s1511_s1, [#allocation36], %s13335_s4, %s13335_s4, %s13334_s16  }
 0x19b   : > { %p11512_p1 = pnand %p11511_p11, %p11505_p10 }
 0x19d   : > { %11515 = shalt.err (!%p11512_p1)
}
 0x19e   : > { %10546 = dma.hbm_to_vmem [thread:$0]  (!%p12053_p12), %s11979_s13, 16, %s1536_s8, [#allocation39]  }
 0x19f   : > { %s11740_s5 = smov [#allocation41]  }
 0x1a0   : > { %s1545_s11 = sshll.u32 %s11740_s5, 4  ;;  %s1546_s11 = int_to_ptr.vmem [resolvable:$true] %s1545_s11 }
 0x1a1   : > { %s11527_s4 = scalar_lea.vmem %s1546_s11, 512  ;;  %p11535_p2 = scmp.lt.s32.totalorder %s1546_s11, %s1546_s11 }
 0x1a2   : > { %p11528_p3 = scmp.ne.s32.totalorder %s1546_s11, %s11527_s4  ;;  %p11536_p6 = scmp.lt.s32.totalorder %s11527_s4, %s11527_s4 }
 0x1a4   : > { %p11530_p9 = pnand %p11528_p3, %p12061_p13  ;;  %p11537_p5 = por %p11536_p6, %p11535_p2 }
 0x1a6   : > { %p11531_p4 = pneg %p11530_p9 }
 0x1a8   : > { %p11538_p7 = pnand %p11537_p5, %p11531_p4 }
 0x1aa   : > { %11541 = shalt.err (!%p11538_p7)
}
 0x1ab   : > { %10549 = dma.hbm_to_vmem [thread:$0]  (!%p12053_p12), %s11984_s24, 512, %s1546_s11, [#allocation42], %s13348_s3, %s13348_s3, %s13347_s26  }
 0x1ac   : > { %p13352_p10 = scmp.ne.s32.totalorder %s13327_s18, 0 }
 0x1ad   : > { %p13353_p8 = scmp.eq.s32.totalorder (!%p13352_p10), %s12017_s28, 0 }
 0x1ae   : > { %1598 = sbr.rel (%p13352_p10) target bundleno = 14278 (0x37c6), region = 204 }
 0x1b3   : > { %11585 = dma.done.wait (%p13353_p8), [#allocation3], 16   ;;  %p13354_p13 = pmov %p13353_p8 }
 0x1b4   : > { %p13355_p0 = pmov %p13353_p8 }
 0x1b5   : > { %11587 = vsyncadd (%p13354_p13), [#allocation3], 4294967280 }
 0x1b6   : > { %11589 = dma.done.wait (%p13355_p0), [#allocation6], 112   ;;  %p13356_p11 = pmov %p13355_p0 }
 0x1b7   : > { %p13357_p1 = pmov %p13355_p0 }
 0x1b8   : > { %11591 = vsyncadd (%p13356_p11), [#allocation6], 4294967184 }
 0x1b9   : > { %11593 = dma.done.wait (%p13357_p1), [#allocation9], 64   ;;  %p13358_p12 = pmov %p13355_p0 }
 0x1ba   : > { %p13359_p3 = pmov %p13355_p0 }
 0x1bb   : > { %11595 = vsyncadd (%p13358_p12), [#allocation9], 4294967232 }
 0x1bc   : > { %11597 = dma.done.wait (%p13359_p3), [#allocation12], 64   ;;  %p13360_p9 = pmov %p13355_p0 }
 0x1bd   : > { %p13361_p4 = pmov %p13355_p0 }
 0x1be   : > { %11599 = vsyncadd (%p13360_p9), [#allocation12], 4294967232 }
 0x1bf   : > { %11601 = dma.done.wait (%p13361_p4), [#allocation15], 128   ;;  %p13362_p2 = pmov %p13355_p0 }
 0x1c0   : > { %p13363_p6 = pmov %p13355_p0 }
 0x1c1   : > { %11603 = vsyncadd (%p13362_p2), [#allocation15], 4294967168 }
 0x1c2   : > { %11605 = dma.done.wait (%p13363_p6), [#allocation18], 64   ;;  %p13364_p5 = pmov %p13355_p0 }
 0x1c3   : > { %p13365_p7 = pmov %p13355_p0 }
 0x1c4   : > { %11607 = vsyncadd (%p13364_p5), [#allocation18], 4294967232 }
 0x1c5   : > { %11609 = dma.done.wait (%p13365_p7), [#allocation21], 64   ;;  %p13366_p10 = pmov %p13355_p0 }
 0x1c6   : > { %p13367_p8 = pmov %p13355_p0 }
 0x1c7   : > { %11611 = vsyncadd (%p13366_p10), [#allocation21], 4294967232 }
 0x1c8   : > { %11613 = dma.done.wait (%p13367_p8), [#allocation24], 64   ;;  %p13368_p13 = pmov %p13355_p0 }
 0x1ca   : > { %11615 = vsyncadd (%p13368_p13), [#allocation24], 4294967232 }
 0x1cb   : > { %11617 = dma.done.wait (%p13355_p0), [#allocation27], 1056   ;;  %p13369_p11 = pmov %p13355_p0 }
 0x1cc   : > { %p13370_p1 = pmov %p13355_p0 }
 0x1cd   : > { %11619 = vsyncadd (%p13369_p11), [#allocation27], 4294966240 }
 0x1ce   : > { %11621 = dma.done.wait (%p13370_p1), [#allocation30], 1088   ;;  %p13371_p12 = pmov %p13355_p0 }
 0x1cf   : > { %p13372_p3 = pmov %p13355_p0 }
 0x1d0   : > { %11623 = vsyncadd (%p13371_p12), [#allocation30], 4294966208 }
 0x1d1   : > { %11625 = dma.done.wait (%p13372_p3), [#allocation33], 1056   ;;  %p13373_p9 = pmov %p13355_p0 }
 0x1d2   : > { %p13374_p4 = pmov %p13355_p0 }
 0x1d3   : > { %11627 = vsyncadd (%p13373_p9), [#allocation33], 4294966240 }
 0x1d4   : > { %11629 = dma.done.wait (%p13374_p4), [#allocation36], 64   ;;  %p13375_p2 = pmov %p13355_p0 }
 0x1d5   : > { %p13376_p6 = pmov %p13355_p0 }
 0x1d6   : > { %11631 = vsyncadd (%p13375_p2), [#allocation36], 4294967232 }
 0x1d7   : > { %11633 = dma.done.wait (%p13376_p6), [#allocation39], 32   ;;  %p13377_p5 = pmov %p13355_p0 }
 0x1d8   : > { %p13378_p7 = pmov %p13355_p0 }
 0x1d9   : > { %11635 = vsyncadd (%p13377_p5), [#allocation39], 4294967264 }
 0x1da   : > { %11637 = dma.done.wait (%p13378_p7), [#allocation42], 512   ;;  %p13379_p10 = pmov %p13355_p0 }
 0x1db   : > { %s13380_s3 = sld [smem:[#allocation59_spill]]  ;;  %p1830_p8 = scmp.lt.s32.totalorder %s12017_s28, 1  ;;  %v11741_v0 = vmov 0   ;;  %v11742_v1 = vmov 0.0   ;;  %vm11743_vm0 = vmmov 0   ;;  %v1865_v11 = vlaneseq }
 0x1dc   : > { %11639 = vsyncadd (%p13379_p10), [#allocation42], 4294966784  ;;  %s13381_s22 = sld [smem:[#allocation64_spill]]  ;;  %10729 = vset.pattern.permute.xlu0 %v11741_v0  ;;  %9824 = vmatprep.subr.mxu0 %v11742_v1  ;;  %vm1873_vm1 = vcmask 523264   ;;  %vm1949_vm3 = vcmask 261120   ;;  %vm2160_vm4 = vcmask 64512  }
 0x1dd   : > { %s12324_s23 = scalar_select %p1830_p8, %s12017_s28, 1  ;;  %2078 = vmatprep.mubr.f32.mxu1 %v11742_v1  ;;  %9840 = vmatprep.mubr.msk.f32.mxu0 %vm11743_vm0, %v11742_v1  ;;  %v12351_v12 = vand.u32 127, %v1865_v11  ;;  %v9378_v37 = vld [vmem:[#allocation2] ss:$0 sm:$0xff]  ;;  %v9379_v39 = vld [vmem:[#allocation5] ss:$0 sm:$0xff] }
 0x1de   : > { %s13383_s1 = sld [smem:[#allocation65_spill]]  ;;  %v1997_v46 = vshrl.u32 %v1865_v11, 7  ;;  %v1994_v48 = vld [vmem:[#allocation7] sm:$0x7]  ;;  %s13266_s8 = smov 104   ;;  %vm2834_vm5 = vcmask 130048  }
 0x1df   : > { %s12328_s16 = sshll.u32 %s12324_s23, 3  ;;  %s13384_s10 = sld [smem:[#allocation68_spill]]  ;;  %vm2836_vm6 = vcmask 195584   ;;  %vm8835_vm8 = vcmp.lt.s32.totalorder %v12351_v12, 64 }
 0x1e0   : > { %v12389_v47 = vsub.s32 0, %v1997_v46  ;;  %v12391_v49 = vsub.s32 1, %v1997_v46  ;;  %s13272_s2 = smov 120   ;;  %s13270_s7 = smov 112   ;;  %v12408_v60 = vsub.s32 2, %v1997_v46 }
 0x1e1   : > { %s1833_s26 = scalar_lea.vmem %s13380_s3, %s12328_s16  ;;  %s13385_s12 = sld [smem:[#allocation60_spill]] }
 0x1e2   : > { %s13382_s18 = smov %s13381_s22  ;;  %v1855_v2 = vld [vmem:[%s1833_s26] sm:$0xff]  ;;  %v1863_v3 = vld [vmem:[%s13381_s22 + $0x38] sm:$0xff]  ;;  %v1999_v50 = vrot.slane %v1994_v48, %v12389_v47  ;;  %v2003_v51 = vrot.slane %v1994_v48, %v12391_v49  ;;  %v2007_v62 = vrot.slane %v1994_v48, %v12408_v60  ;;  %s13261_s5 = sshll.u32 %s12324_s23, 5 }
 0x1e3   : > { %v1862_v4 = vld [vmem:[%s13382_s18 + $0x30] sm:$0xff]  ;;  %1868 = vperm.xlu0 %10729, %v1855_v2   ;;  %9825 = vmatpush3.msra.mxu0 %v1863_v3  ;;  %v1861_v5 = vld [vmem:[%s13382_s18 + $0x28] sm:$0xff]  ;;  %v1860_v6 = vld [vmem:[%s13382_s18 + $0x20] sm:$0xff]  ;;  %s13386_s4 = sld [smem:[#allocation69_spill]]  ;;  %s13264_s3 = smov 8  }
 0x1e4   : > { %9826 = vmatprep.subr.mxu0 %v11742_v1  ;;  %v1859_v7 = vld [vmem:[%s13382_s18 + $0x18] sm:$0xff]  ;;  %v1858_v8 = vld [vmem:[%s13382_s18 + $0x10] sm:$0xff]  ;;  %v1857_v9 = vld [vmem:[%s13382_s18 + $0x8] sm:$0xff]  ;;  %s13268_s22 = smov 16   ;;  %s13387_s26 = sld [smem:[#allocation70_spill]] }
 0x1e5   : > { %9827 = vmatpush3.msra.mxu0 %v1862_v4  ;;  %v1856_v10 = vld [vmem:[%s13382_s18] sm:$0xff]  ;;  %v1992_v25 = vld [vmem:[%s13384_s10 + $0x50] sm:$0xff]  ;;  %v1991_v26 = vld [vmem:[%s13384_s10 + $0x48] sm:$0xff]  ;;  %p13412_p0 = scmp.ne.s32.totalorder %s13324_s15, 0 }
 0x1e6   : > { %9828 = vmatprep.subr.mxu0 %v11742_v1  ;;  %v1864_v15 = vld [vmem:[%s13383_s1] sm:$0xff]  ;;  %v1989_v27 = vld [vmem:[%s13384_s10 + $0x38] sm:$0xff]  ;;  %2038 = vmatprep.subr.mxu1 %v1992_v25  ;;  %v1988_v28 = vld [vmem:[%s13384_s10 + $0x30] sm:$0xff] }
 0x1e7   : > { %9829 = vmatpush3.msra.mxu0 %v1861_v5  ;;  %2039 = vmatpush1.msra.mxu1 %v1991_v26  ;;  %v1986_v29 = vld [vmem:[%s13384_s10 + $0x20] sm:$0xff]  ;;  %v1985_v30 = vld [vmem:[%s13384_s10 + $0x18] sm:$0xff]  ;;  %v1983_v31 = vld [vmem:[%s13384_s10 + $0x8] sm:$0xff]  ;;  %s1838_s11 = scalar_lea.vmem %s13385_s12, %s13261_s5  ;;  %s13262_s12 = smov 24  }
 0x1e8   : > { %9830 = vmatprep.subr.mxu0 %v11742_v1  ;;  %2040 = vmatprep.subr.mxu1 %v1989_v27  ;;  %v1982_v32 = vld [vmem:[%s13384_s10] sm:$0xff]  ;;  %v1993_v42 = vld [vmem:[%s13384_s10 + $0x58] sm:$0xff]  ;;  %v1987_v44 = vld [vmem:[%s13384_s10 + $0x28] sm:$0xff]  ;;  %s13390_s5 = sld [smem:[#allocation71_spill]] }
 0x1e9   : > { %9831 = vmatpush3.msra.mxu0 %v1860_v6  ;;  %2041 = vmatpush1.msra.mxu1 %v1988_v28  ;;  %v1990_v43 = vld [vmem:[%s13384_s10 + $0x40] sm:$0xff]  ;;  %v1984_v45 = vld [vmem:[%s13384_s10 + $0x10] sm:$0xff] }
 0x1ea   : > { %9832 = vmatprep.subr.mxu0 %v11742_v1  ;;  %2042 = vmatprep.subr.mxu1 %v1986_v29  ;;  %v12432_v4 = vld [vmem:[%s1838_s11] sm:$0xff]  ;;  %s13388_s1 = smov %s13387_s26 }
 0x1eb   : > { %9833 = vmatpush3.msra.mxu0 %v1859_v7  ;;  %2043 = vmatpush1.msra.mxu1 %v1985_v30 }
 0x1ec   : > { %9834 = vmatprep.subr.mxu0 %v11742_v1  ;;  %2044 = vmatprep.subr.mxu1 %v1983_v31 }
 0x1ed   : > { %9835 = vmatpush3.msra.mxu0 %v1858_v8  ;;  %2045 = vmatpush1.msra.mxu1 %v1982_v32 }
 0x1ee   : > { %9836 = vmatprep.subr.mxu0 %v11742_v1  ;;  %9843 = vmatprep.subr.mxu1 %v11742_v1 }
 0x1ef   : > { %9837 = vmatpush3.msra.mxu0 %v1857_v9  ;;  %v12436_v9 = vld [vmem:[%s1838_s11 + $0x8] sm:$0xff] }
 0x1f0   : > { %9838 = vmatprep.subr.mxu0 %v11742_v1 }
 0x1f1   : > { %9839 = vmatpush3.msra.mxu0 %v1856_v10 }
 0x1f2   : > { %9864 = vmatprep.subr.mxu0 %v11742_v1 }
 0x25e   : > { %v1869_v13 = vpop.permute.xlu0 %1868 }
 0x25f   : > { %vm1870_vm2 = vcmp.eq.s32.totalorder %v12351_v12, %v1869_v13 }
 0x260   : > { %v9376_v14 = vsel %vm1870_vm2, 1.0, %v11742_v1 }
 0x261   : > { %9841 = vmatmul.mubr.msk.f32.vlgmr.msra.gmra.mxu0 %vm1873_vm1, %v9376_v14 }
 0x262   : > { %9866 = vmatprep.mubr.msk.f32.mxu0 %vm11743_vm0, %v11742_v1 }
 0x321   : > { %v1943_v16 = vpop.f32.mrf.mxu0 }
 0x322   : > { %v1944_v17 = vadd.f32 %v1943_v16, %v1864_v15  ;;  %v12440_v15 = vld [vmem:[%s1838_s11 + $0x10] sm:$0xff] }
 0x323   : > { %v9842_v18 = vpop.f32.mrf.mxu0 }
 0x324   : > { %v1950_v19 = vsel %vm1949_vm3, %v1944_v17, 0.0 }
 0x325   : > { %1951 = vadd.xlane.f32.xlu0 %v1950_v19 }
 0x3ae   : > { %v1952_v20 = vpop.xlane.xlu0 %1951 }
 0x3af   : > { %v1954_v21 = vmul.f32 0.03125, %v1952_v20 }
 0x3b1   : > { %v1955_v22 = vsub.f32 %v1944_v17, %v1954_v21  ;;  %v12442_v17 = vld [vmem:[%s1838_s11 + $0x18] sm:$0xff]  ;;  %s13389_s11 = sld [smem:[#allocation75_spill]] }
 0x3b3   : > { %v1956_v23 = vmul.f32 %v1955_v22, %v1955_v22 }
 0x3b5   : > { %v1957_v24 = vsel %vm1949_vm3, %v1956_v23, 0.0 }
 0x3b6   : > { %1958 = vadd.xlane.f32.xlu1 %v1957_v24 }
 0x43f   : > { %v1959_v33 = vpop.xlane.xlu1 %1958 }
 0x440   : > { %v1960_v34 = vmul.f32 0.03125, %v1959_v33 }
 0x442   : > { %v1961_v35 = vadd.f32 1e-12, %v1960_v34 }
 0x444   : > { %10730 = vrsqrt.f32 %v1961_v35 }
 0x451   : > { %v10731_v36 = vpop.eup %10730 }
 0x452   : > { %v1963_v38 = vmul.f32 %v10731_v36, %v1955_v22 }
 0x454   : > { %v1970_v40 = vmul.f32 %v9378_v37, %v1963_v38 }
 0x456   : > { %v12370_v41 = vadd.f32 %v9379_v39, %v1970_v40 }
 0x458   : > { %9380 = vmatmul.mubr.msk.f32.vlgmr.msra.gmra.mxu1 %vm1949_vm3, %v12370_v41 }
 0x459   : > { %9844 = vmatpush3.msra.mxu1 %v1993_v42  ;;  %9851 = vmatprep.mubr.msk.f32.mxu1 %vm11743_vm0, %v11742_v1 }
 0x45a   : > { %9845 = vmatprep.subr.mxu1 %v11742_v1 }
 0x45b   : > { %9846 = vmatpush3.msra.mxu1 %v1990_v43 }
 0x45c   : > { %9847 = vmatprep.subr.mxu1 %v11742_v1 }
 0x45d   : > { %9848 = vmatpush3.msra.mxu1 %v1987_v44 }
 0x45e   : > { %9849 = vmatprep.subr.mxu1 %v11742_v1 }
 0x45f   : > { %9850 = vmatpush3.msra.mxu1 %v1984_v45 }
 0x460   : > { %9852 = vmatmul.mubr.msk.f32.vlgmr.msra.gmra.mxu1 %vm1949_vm3, %v12370_v41  ;;  %9854 = vmatprep.subr.mxu1 %v11742_v1 }
 0x461   : > { %9856 = vmatprep.mubr.msk.f32.mxu1 %vm11743_vm0, %v11742_v1 }
 0x518   : > { %v2080_v52 = vpop.f32.mrf.mxu1 }
 0x519   : > { %v2081_v53 = vadd.f32 %v2080_v52, %v1999_v50 }
 0x51a   : > { %v2082_v54 = vpop.f32.mrf.mxu1 }
 0x51b   : > { %v2083_v55 = vadd.f32 %v2082_v54, %v2003_v51  ;;  %2393 = vrot.lane.b32.xlu0 %v2081_v53, %s13266_s8  ;;  %2237 = vrot.lane.b32.xlu1 %v2081_v53, %s13272_s2 }
 0x51d   : > { %9855 = vmatpush3.xpose.msk.msra.mxu1 %vm2160_vm4, %v2083_v55 }
 0x51e   : > { %9859 = vmatprep.subr.mxu1 %v11742_v1 }
 0x51f   : > { %2239 = vrot.lane.b32.xlu1 %v2083_v55, %s13272_s2 }
 0x520   : > { %v2151_v56 = vpop.f32.mrf.mxu1  ;;  %9857 = vmatmul.mubr.msk.f32.vlgmr.msra.gmra.mxu1 %vm2160_vm4, %v2081_v53 }
 0x521   : > { %9861 = vmatprep.mubr.msk.f32.mxu1 %vm11743_vm0, %v11742_v1  ;;  %v12418_v2 = vadd.f32 %v2151_v56, %v2007_v62 }
 0x522   : > { %v9853_v57 = vpop.f32.mrf.mxu1 }
 0x523   : > { %2317 = vrot.lane.b32.xlu1 %v2083_v55, %s13270_s7 }
 0x527   : > { %2395 = vrot.lane.b32.xlu1 %v2083_v55, %s13266_s8 }
 0x52b   : > { %2315 = vrot.lane.b32.xlu1 %v2081_v53, %s13270_s7 }
 0x58d   : > { %v2238_v58 = vpop.permute.xlu1 %2237  ;;  %v2394_v0 = vpop.permute.xlu0 %2393 }
 0x591   : > { %v2240_v59 = vpop.permute.xlu1 %2239 }
 0x592   : > { %9860 = vmatpush3.xpose.msk.msra.mxu1 %vm2160_vm4, %v2240_v59 }
 0x593   : > { %9869 = vmatprep.subr.mxu1 %v11742_v1 }
 0x595   : > { %v2318_v61 = vpop.permute.xlu1 %2317  ;;  %9862 = vmatmul.mubr.msk.f32.vlgmr.msra.gmra.mxu1 %vm2160_vm4, %v2238_v58 }
 0x596   : > { %9865 = vmatpush3.xpose.msk.msra.mxu0 %vm2160_vm4, %v2318_v61  ;;  %9871 = vmatprep.mubr.msk.f32.mxu1 %vm11743_vm0, %v11742_v1 }
 0x597   : > { %9874 = vmatprep.subr.mxu0 %v11742_v1 }
 0x599   : > { %v2396_v63 = vpop.permute.xlu1 %2395 }
 0x59a   : > { %9870 = vmatpush3.xpose.msk.msra.mxu1 %vm2160_vm4, %v2396_v63 }
 0x59b   : > { %9879 = vmatprep.subr.mxu1 %v11742_v1 }
 0x59d   : > { %v2316_v3 = vpop.permute.xlu1 %2315  ;;  %9872 = vmatmul.mubr.msk.f32.vlgmr.msra.gmra.mxu1 %vm2160_vm4, %v2394_v0 }
 0x59e   : > { %9867 = vmatmul.mubr.msk.f32.vlgmr.msra.gmra.mxu0 %vm2160_vm4, %v2316_v3  ;;  %9881 = vmatprep.mubr.msk.f32.mxu1 %vm11743_vm0, %v11742_v1  ;;  %v2158_v3 = vld [vmem:[%s13386_s4 + $0x18] sm:$0xff] }
 0x59f   : > { %9875 = vmatpush3.msra.mxu0 %v12418_v2  ;;  %9876 = vmatprep.mubr.msk.f32.mxu0 %vm11743_vm0, %v11742_v1 }
 0x5a0   : > { %9884 = vmatprep.subr.mxu0 %v11742_v1 }
 0x5e0   : > { %v2233_v5 = vpop.f32.mrf.mxu1 }
 0x5e1   : > { %v2471_v6 = vadd.f32 %v2233_v5, %v12432_v4  ;;  %v2157_v5 = vld [vmem:[%s13386_s4 + $0x10] sm:$0xff] }
 0x5e2   : > { %v9858_v7 = vpop.f32.mrf.mxu1 }
 0x5e3   : > { %v2475_v8 = vsel %vm2160_vm4, %v2471_v6, -inf }
 0x5e4   : > { %2476 = vmax.xlane.f32.xlu1 %v2475_v8 }
 0x655   : > { %v2311_v10 = vpop.f32.mrf.mxu1 }
 0x656   : > { %v2472_v11 = vadd.f32 %v2311_v10, %v12436_v9 }
 0x657   : > { %v9863_v13 = vpop.f32.mrf.mxu1 }
 0x658   : > { %v2478_v14 = vsel %vm2160_vm4, %v2472_v11, -inf  ;;  %v2155_v13 = vld [vmem:[%s13386_s4] sm:$0xff] }
 0x659   : > { %2479 = vmax.xlane.f32.xlu0 %v2478_v14 }
 0x65d   : > { %v2467_v16 = vpop.f32.mrf.mxu1 }
 0x65e   : > { %v2389_v18 = vpop.f32.mrf.mxu0  ;;  %v2474_v22 = vadd.f32 %v2467_v16, %v12442_v17 }
 0x65f   : > { %v2473_v19 = vadd.f32 %v2389_v18, %v12440_v15  ;;  %v9873_v20 = vpop.f32.mrf.mxu1 }
 0x660   : > { %v9868_v21 = vpop.f32.mrf.mxu0  ;;  %v2484_v24 = vsel %vm2160_vm4, %v2474_v22, -inf }
 0x661   : > { %v2481_v23 = vsel %vm2160_vm4, %v2473_v19, -inf }
 0x662   : > { %2482 = vmax.xlane.f32.xlu1 %v2481_v23 }
 0x666   : > { %2485 = vmax.xlane.f32.xlu1 %v2484_v24  ;;  %v9394_v24 = vld [vmem:[%s13387_s26] ss:$0 sm:$0xff]  ;;  %s13391_s26 = sld [smem:[#allocation76_spill]] }
 0x66d   : > { %v2477_v25 = vpop.xlane.xlu1 %2476 }
 0x66e   : > { %v2487_v26 = vsub.f32 %v2471_v6, %v2477_v25  ;;  %v2156_v6 = vld [vmem:[%s13386_s4 + $0x8] sm:$0xff] }
 0x670   : > { %v2491_v27 = vmul.f32 1.442695, %v2487_v26 }
 0x672   : > { %10732 = vpow2.f32 %v2491_v27 }
 0x67f   : > { %v10733_v28 = vpop.eup %10732 }
 0x680   : > { %v2499_v29 = vsel %vm2160_vm4, %v10733_v28, 0.0 }
 0x681   : > { %2500 = vadd.xlane.f32.xlu1 %v2499_v29 }
 0x6e2   : > { %v2480_v30 = vpop.xlane.xlu0 %2479 }
 0x6e3   : > { %v2488_v31 = vsub.f32 %v2472_v11, %v2480_v30 }
 0x6e5   : > { %v2493_v32 = vmul.f32 1.442695, %v2488_v31 }
 0x6e7   : > { %10734 = vpow2.f32 %v2493_v32 }
 0x6eb   : > { %v2483_v33 = vpop.xlane.xlu1 %2482 }
 0x6ec   : > { %v2489_v34 = vsub.f32 %v2473_v19, %v2483_v33 }
 0x6ee   : > { %v2495_v35 = vmul.f32 1.442695, %v2489_v34 }
 0x6ef   : > { %v2486_v40 = vpop.xlane.xlu1 %2485 }
 0x6f0   : > { %10736 = vpow2.f32 %v2495_v35  ;;  %v2490_v43 = vsub.f32 %v2474_v22, %v2486_v40  ;;  %v2950_v35 = vld [vmem:[%s13389_s11 + $0x18] sm:$0xff] }
 0x6f2   : > { %v2497_v44 = vmul.f32 1.442695, %v2490_v43  ;;  %v9396_v43 = vld [vmem:[%s13390_s5] ss:$0 sm:$0xff] }
 0x6f4   : > { %v10735_v36 = vpop.eup %10734 }
 0x6f5   : > { %v2502_v37 = vsel %vm2160_vm4, %v10735_v36, 0.0 }
 0x6f6   : > { %2503 = vadd.xlane.f32.xlu1 %v2502_v37  ;;  %v2948_v37 = vld [vmem:[%s13389_s11 + $0x8] sm:$0xff] }
 0x6fd   : > { %v10737_v38 = vpop.eup %10736 }
 0x6fe   : > { %v2505_v39 = vsel %vm2160_vm4, %v10737_v38, 0.0 }
 0x6ff   : > { %2506 = vadd.xlane.f32.xlu0 %v2505_v39 }
 0x707   : > { %2669 = vrot.lane.b32.xlu1 %v12418_v2, %s13270_s7 }
 0x70a   : > { %v2501_v42 = vpop.xlane.xlu1 %2500 }
 0x70b   : > { %10738 = vrcp.f32 %v2501_v42 }
 0x70c   : > { %10740 = vpow2.f32 %v2497_v44 }
 0x715   : > { %2593 = vrot.lane.b32.xlu0 %v12418_v2, %s13272_s2 }
 0x718   : > { %v10739_v45 = vpop.eup %10738 }
 0x719   : > { %v2515_v46 = vmul.f32 %v10739_v45, %v10733_v28  ;;  %v10741_v48 = vpop.eup %10740  ;;  %v9397_v45 = vld [vmem:[#allocation8] ss:$0 sm:$0xff] }
 0x71a   : > { %v2508_v50 = vsel %vm2160_vm4, %v10741_v48, 0.0 }
 0x71b   : > { %9877 = vmatmul.mubr.msk.f32.vlgmr.msra.gmra.mxu0 %vm2160_vm4, %v2515_v46 }
 0x71c   : > { %9886 = vmatprep.mubr.msk.f32.mxu0 %vm11743_vm0, %v11742_v1 }
 0x72b   : > { %2509 = vadd.xlane.f32.xlu1 %v2508_v50  ;;  %v3047_v50 = vld [vmem:[%s13391_s26 + $0x38] sm:$0xff] }
 0x73c   : > { %2745 = vrot.lane.b32.xlu1 %v12418_v2, %s13266_s8 }
 0x77f   : > { %v2504_v51 = vpop.xlane.xlu1 %2503 }
 0x780   : > { %10742 = vrcp.f32 %v2504_v51 }
 0x783   : > { %v2670_v52 = vpop.permute.xlu1 %2669 }
 0x784   : > { %9885 = vmatpush3.msra.mxu0 %v2670_v52 }
 0x785   : > { %9894 = vmatprep.subr.mxu0 %v11742_v1 }
 0x788   : > { %v2507_v53 = vpop.xlane.xlu0 %2506 }
 0x789   : > { %10744 = vrcp.f32 %v2507_v53 }
 0x78c   : > { %v2594_v54 = vpop.permute.xlu0 %2593 }
 0x78d   : > { %v10743_v55 = vpop.eup %10742  ;;  %9880 = vmatpush3.msra.mxu1 %v2594_v54 }
 0x78e   : > { %v2516_v56 = vmul.f32 %v10743_v55, %v10735_v36  ;;  %9889 = vmatprep.subr.mxu1 %v11742_v1  ;;  %v2949_v36 = vld [vmem:[%s13389_s11 + $0x10] sm:$0xff] }
 0x790   : > { %9882 = vmatmul.mubr.msk.f32.vlgmr.msra.gmra.mxu1 %vm2160_vm4, %v2516_v56 }
 0x791   : > { %9891 = vmatprep.mubr.msk.f32.mxu1 %vm11743_vm0, %v11742_v1 }
 0x796   : > { %v10745_v57 = vpop.eup %10744 }
 0x797   : > { %v2517_v58 = vmul.f32 %v10745_v57, %v10737_v38 }
 0x799   : > { %9887 = vmatmul.mubr.msk.f32.vlgmr.msra.gmra.mxu0 %vm2160_vm4, %v2517_v58  ;;  %v9398_v58 = vld [vmem:[#allocation11] ss:$0 sm:$0xff] }
 0x79a   : > { %9902 = vmatprep.mubr.msk.f32.mxu0 %vm11743_vm0, %v11742_v1  ;;  %9895 = vmatpush3.msra.mxu0 %v2158_v3 }
 0x79b   : > { %9896 = vmatprep.subr.mxu0 %v11742_v1 }
 0x79c   : > { %9897 = vmatpush3.msra.mxu0 %v2157_v5 }
 0x79d   : > { %9898 = vmatprep.subr.mxu0 %v11742_v1 }
 0x79e   : > { %9899 = vmatpush3.msra.mxu0 %v2156_v6 }
 0x79f   : > { %9900 = vmatprep.subr.mxu0 %v11742_v1 }
 0x7a0   : > { %9901 = vmatpush3.msra.mxu0 %v2155_v13 }
 0x7a1   : > { %9916 = vmatprep.subr.mxu0 %v11742_v1 }
 0x7b4   : > { %v2510_v59 = vpop.xlane.xlu1 %2509 }
 0x7b5   : > { %10746 = vrcp.f32 %v2510_v59 }
 0x7b8   : > { %v2746_v61 = vpop.permute.xlu1 %2745 }
 0x7b9   : > { %9890 = vmatpush3.msra.mxu1 %v2746_v61 }
 0x7ba   : > { %9905 = vmatprep.subr.mxu1 %v11742_v1 }
 0x7c2   : > { %v10747_v62 = vpop.eup %10746 }
 0x7c3   : > { %v2518_v63 = vmul.f32 %v10747_v62, %v10741_v48 }
 0x7c5   : > { %9892 = vmatmul.mubr.msk.f32.vlgmr.msra.gmra.mxu1 %vm2160_vm4, %v2518_v63 }
 0x7c6   : > { %9913 = vmatprep.mubr.msk.f32.mxu1 %vm11743_vm0, %v11742_v1  ;;  %9906 = vmatpush3.msra.mxu1 %v2950_v35 }
 0x7c7   : > { %9907 = vmatprep.subr.mxu1 %v11742_v1 }
 0x7c8   : > { %9908 = vmatpush3.msra.mxu1 %v2949_v36 }
 0x7c9   : > { %9909 = vmatprep.subr.mxu1 %v11742_v1 }
 0x7ca   : > { %9910 = vmatpush3.msra.mxu1 %v2948_v37 }
 0x7cb   : > { %9911 = vmatprep.subr.mxu1 %v11742_v1 }
 0x7db   : > { %v2588_v0 = vpop.f32.mrf.mxu0 }
 0x7dd   : > { %v9878_v2 = vpop.f32.mrf.mxu0 }
 0x850   : > { %v2665_v7 = vpop.f32.mrf.mxu1 }
 0x851   : > { %2822 = vrot.lane.b32.xlu0 %v2665_v7, %s13264_s3 }
 0x852   : > { %v9883_v8 = vpop.f32.mrf.mxu1 }
 0x859   : > { %v2741_v10 = vpop.f32.mrf.mxu0 }
 0x85a   : > { %2826 = vrot.lane.b32.xlu1 %v2741_v10, %s13268_s22 }
 0x85b   : > { %v9888_v11 = vpop.f32.mrf.mxu0 }
 0x85c   : > { %v9400_v11 = vld [vmem:[#allocation13] ss:$0 sm:$0xff] }
 0x885   : > { %v2817_v14 = vpop.f32.mrf.mxu1 }
 0x886   : > { %2830 = vrot.lane.b32.xlu0 %v2817_v14, %s13262_s12  ;;  %s13392_s12 = smov %s13391_s26  ;;  %s13393_s26 = sld [smem:[#allocation73_spill]] }
 0x887   : > { %v9893_v16 = vpop.f32.mrf.mxu1  ;;  %v3046_v51 = vld [vmem:[%s13392_s12 + $0x30] sm:$0xff]  ;;  %v3045_v52 = vld [vmem:[%s13392_s12 + $0x28] sm:$0xff]  ;;  %v3044_v53 = vld [vmem:[%s13392_s12 + $0x20] sm:$0xff] }
 0x888   : > { %v3043_v54 = vld [vmem:[%s13392_s12 + $0x18] sm:$0xff]  ;;  %v3042_v55 = vld [vmem:[%s13392_s12 + $0x10] sm:$0xff]  ;;  %v3041_v56 = vld [vmem:[%s13392_s12 + $0x8] sm:$0xff] }
 0x889   : > { %v3040_v57 = vld [vmem:[%s13392_s12] sm:$0xff] }
 0x88c   : > { %s13394_s3 = smov %s13393_s26  ;;  %v9402_v37 = vld [vmem:[%s13393_s26] ss:$0 sm:$0xff]  ;;  %s13395_s26 = smov 8  }
 0x8c3   : > { %v2823_v18 = vpop.permute.xlu0 %2822 }
 0x8c4   : > { %v2833_v20 = vsel %vm2160_vm4, %v2588_v0, %v2823_v18 }
 0x8cc   : > { %v2827_v19 = vpop.permute.xlu1 %2826 }
 0x8cd   : > { %v2835_v21 = vsel %vm2834_vm5, %v2833_v20, %v2827_v19 }
 0x8f8   : > { %v2831_v22 = vpop.permute.xlu0 %2830 }
 0x8f9   : > { %v2837_v23 = vsel %vm2836_vm6, %v2835_v21, %v2831_v22 }
 0x8fa   : > { %9903 = vmatmul.mubr.msk.f32.vlgmr.msra.gmra.mxu0 %vm1949_vm3, %v2837_v23 }
 0x8fb   : > { %9932 = vmatprep.mubr.msk.f32.mxu0 %vm11743_vm0, %v11742_v1  ;;  %9917 = vmatpush3.msra.mxu0 %v3047_v50 }
 0x8fc   : > { %9918 = vmatprep.subr.mxu0 %v11742_v1 }
 0x8fd   : > { %9919 = vmatpush3.msra.mxu0 %v3046_v51 }
 0x8fe   : > { %9920 = vmatprep.subr.mxu0 %v11742_v1 }
 0x8ff   : > { %9921 = vmatpush3.msra.mxu0 %v3045_v52 }
 0x900   : > { %9922 = vmatprep.subr.mxu0 %v11742_v1 }
 0x901   : > { %9923 = vmatpush3.msra.mxu0 %v3044_v53 }
 0x902   : > { %9924 = vmatprep.subr.mxu0 %v11742_v1 }
 0x903   : > { %9925 = vmatpush3.msra.mxu0 %v3043_v54 }
 0x904   : > { %9926 = vmatprep.subr.mxu0 %v11742_v1 }
 0x905   : > { %9927 = vmatpush3.msra.mxu0 %v3042_v55 }
 0x906   : > { %9928 = vmatprep.subr.mxu0 %v11742_v1 }
 0x907   : > { %9929 = vmatpush3.msra.mxu0 %v3041_v56 }
 0x908   : > { %9930 = vmatprep.subr.mxu0 %v11742_v1 }
 0x909   : > { %9931 = vmatpush3.msra.mxu0 %v3040_v57 }
 0x90a   : > { %9946 = vmatprep.subr.mxu0 %v11742_v1 }
 0x9ba   : > { %v2913_v25 = vpop.f32.mrf.mxu0 }
 0x9bb   : > { %v2914_v26 = vadd.f32 %v9394_v24, %v2913_v25  ;;  %v9414_v25 = vld [vmem:[%s13384_s10 + $0xb0] sm:$0xff] }
 0x9bc   : > { %v9904_v27 = vpop.f32.mrf.mxu0 }
 0x9bd   : > { %v2917_v28 = vadd.f32 %v2914_v26, %v12370_v41  ;;  %v2947_v41 = vld [vmem:[%s13389_s11] sm:$0xff]  ;;  %v9413_v26 = vld [vmem:[%s13384_s10 + $0xa8] sm:$0xff]  ;;  %v9411_v27 = vld [vmem:[%s13384_s10 + $0x98] sm:$0xff] }
 0x9be   : > { %9912 = vmatpush3.msra.mxu1 %v2947_v41 }
 0x9bf   : > { %v2920_v29 = vsel %vm1949_vm3, %v2917_v28, 0.0  ;;  %3216 = vmatprep.subr.mxu1 %v9414_v25 }
 0x9c0   : > { %2921 = vadd.xlane.f32.xlu1 %v2920_v29  ;;  %v9408_v29 = vld [vmem:[%s13384_s10 + $0x80] sm:$0xff] }
 0xa49   : > { %v2922_v30 = vpop.xlane.xlu1 %2921 }
 0xa4a   : > { %v2923_v31 = vmul.f32 0.03125, %v2922_v30  ;;  %v9407_v30 = vld [vmem:[%s13384_s10 + $0x78] sm:$0xff] }
 0xa4c   : > { %v2924_v32 = vsub.f32 %v2917_v28, %v2923_v31  ;;  %v9410_v28 = vld [vmem:[%s13384_s10 + $0x90] sm:$0xff]  ;;  %v9405_v31 = vld [vmem:[%s13384_s10 + $0x68] sm:$0xff] }
 0xa4e   : > { %v2925_v33 = vmul.f32 %v2924_v32, %v2924_v32 }
 0xa50   : > { %v2926_v34 = vsel %vm1949_vm3, %v2925_v33, 0.0 }
 0xa51   : > { %2927 = vadd.xlane.f32.xlu0 %v2926_v34 }
 0xada   : > { %v2928_v38 = vpop.xlane.xlu0 %2927 }
 0xadb   : > { %v2929_v39 = vmul.f32 0.03125, %v2928_v38  ;;  %v9403_v38 = vld [vmem:[#allocation10] ss:$0 sm:$0xff] }
 0xadd   : > { %v2930_v40 = vadd.f32 1e-12, %v2929_v39 }
 0xadf   : > { %10748 = vrsqrt.f32 %v2930_v40 }
 0xaec   : > { %v10749_v42 = vpop.eup %10748 }
 0xaed   : > { %v2932_v44 = vmul.f32 %v10749_v42, %v2924_v32  ;;  %v9404_v32 = vld [vmem:[%s13384_s10 + $0x60] sm:$0xff]  ;;  %v9415_v42 = vld [vmem:[%s13384_s10 + $0xb8] sm:$0xff] }
 0xaef   : > { %v2939_v46 = vmul.f32 %v9396_v43, %v2932_v44  ;;  %v9412_v43 = vld [vmem:[%s13384_s10 + $0xa0] sm:$0xff]  ;;  %v9409_v44 = vld [vmem:[%s13384_s10 + $0x88] sm:$0xff] }
 0xaf1   : > { %v2946_v48 = vadd.f32 %v9397_v45, %v2939_v46  ;;  %v9406_v45 = vld [vmem:[%s13384_s10 + $0x70] sm:$0xff]  ;;  %v3172_v46 = vld [vmem:[#allocation7 + $0x3] sm:$0x7]  ;;  %s13409_s10 = sld [smem:[#allocation89_spill]] }
 0xaf2   : > { %v3181_v50 = vrot.slane %v3172_v46, %v12391_v49 }
 0xaf3   : > { %9914 = vmatmul.mubr.msk.f32.vlgmr.msra.gmra.mxu1 %vm1949_vm3, %v2946_v48 }
 0xaf4   : > { %3256 = vmatprep.mubr.f32.mxu1 %v11742_v1  ;;  %3217 = vmatpush1.msra.mxu1 %v9413_v26 }
 0xaf5   : > { %3218 = vmatprep.subr.mxu1 %v9411_v27 }
 0xaf6   : > { %3219 = vmatpush1.msra.mxu1 %v9410_v28 }
 0xaf7   : > { %3220 = vmatprep.subr.mxu1 %v9408_v29 }
 0xaf8   : > { %3221 = vmatpush1.msra.mxu1 %v9407_v30 }
 0xaf9   : > { %3222 = vmatprep.subr.mxu1 %v9405_v31 }
 0xafa   : > { %3223 = vmatpush1.msra.mxu1 %v9404_v32 }
 0xafb   : > { %9935 = vmatprep.subr.mxu1 %v11742_v1 }
 0xbb3   : > { %v3027_v59 = vpop.f32.mrf.mxu1 }
 0xbb4   : > { %v3028_v61 = vadd.f32 %v9398_v58, %v3027_v59  ;;  %v3185_v59 = vrot.slane %v3172_v46, %v12408_v60 }
 0xbb5   : > { %v9915_v62 = vpop.f32.mrf.mxu1 }
 0xbb6   : > { %v3032_v63 = vmul.f32 0.044715, %v3028_v61  ;;  %v3031_v7 = vmul.f32 0.5, %v3028_v61 }
 0xbb8   : > { %v3033_v0 = vmul.f32 %v3032_v63, %v3028_v61 }
 0xbba   : > { %v3034_v2 = vmul.f32 %v3033_v0, %v3028_v61 }
 0xbbc   : > { %v3035_v3 = vadd.f32 %v3034_v2, %v3028_v61 }
 0xbbe   : > { %v3036_v5 = vmul.f32 0.7978846, %v3035_v3 }
 0xbc0   : > { %10750 = vtanh.f32 %v3036_v5 }
 0xbcd   : > { %v10751_v6 = vpop.eup %10750 }
 0xbce   : > { %v3038_v8 = vadd.f32 1.0, %v10751_v6 }
 0xbd0   : > { %v3039_v10 = vmul.f32 %v3038_v8, %v3031_v7 }
 0xbd2   : > { %9933 = vmatmul.mubr.msk.f32.vlgmr.msra.gmra.mxu0 %vm1873_vm1, %v3039_v10 }
 0xbd3   : > { %9948 = vmatprep.mubr.msk.f32.mxu0 %vm11743_vm0, %v11742_v1 }
 0xc92   : > { %v3124_v13 = vpop.f32.mrf.mxu0 }
 0xc93   : > { %v3125_v14 = vadd.f32 %v9400_v11, %v3124_v13 }
 0xc94   : > { %v9934_v16 = vpop.f32.mrf.mxu0 }
 0xc95   : > { %v3128_v18 = vadd.f32 %v3125_v14, %v2946_v48  ;;  %v3177_v48 = vrot.slane %v3172_v46, %v12389_v47 }
 0xc97   : > { %v3131_v19 = vsel %vm1949_vm3, %v3128_v18, 0.0 }
 0xc98   : > { %3132 = vadd.xlane.f32.xlu0 %v3131_v19 }
 0xd21   : > { %v3133_v20 = vpop.xlane.xlu0 %3132 }
 0xd22   : > { %v3134_v21 = vmul.f32 0.03125, %v3133_v20 }
 0xd24   : > { %v3135_v22 = vsub.f32 %v3128_v18, %v3134_v21 }
 0xd26   : > { %v3136_v23 = vmul.f32 %v3135_v22, %v3135_v22 }
 0xd28   : > { %v3137_v24 = vsel %vm1949_vm3, %v3136_v23, 0.0 }
 0xd29   : > { %3138 = vadd.xlane.f32.xlu1 %v3137_v24 }
 0xdb2   : > { %v3139_v33 = vpop.xlane.xlu1 %3138 }
 0xdb3   : > { %v3140_v34 = vmul.f32 0.03125, %v3139_v33 }
 0xdb5   : > { %v3141_v35 = vadd.f32 1e-12, %v3140_v34 }
 0xdb7   : > { %10752 = vrsqrt.f32 %v3141_v35 }
 0xdc4   : > { %v10753_v36 = vpop.eup %10752 }
 0xdc5   : > { %v3143_v41 = vmul.f32 %v10753_v36, %v3135_v22 }
 0xdc7   : > { %v3150_v39 = vmul.f32 %v9402_v37, %v3143_v41 }
 0xdc9   : > { %v12535_v40 = vadd.f32 %v9403_v38, %v3150_v39 }
 0xdcb   : > { %9416 = vmatmul.mubr.msk.f32.vlgmr.msra.gmra.mxu1 %vm1949_vm3, %v12535_v40 }
 0xdcc   : > { %9936 = vmatpush3.msra.mxu1 %v9415_v42  ;;  %9943 = vmatprep.mubr.msk.f32.mxu1 %vm11743_vm0, %v11742_v1 }
 0xdcd   : > { %9937 = vmatprep.subr.mxu1 %v11742_v1 }
 0xdce   : > { %9938 = vmatpush3.msra.mxu1 %v9412_v43 }
 0xdcf   : > { %9939 = vmatprep.subr.mxu1 %v11742_v1 }
 0xdd0   : > { %9940 = vmatpush3.msra.mxu1 %v9409_v44 }
 0xdd1   : > { %9941 = vmatprep.subr.mxu1 %v11742_v1 }
 0xdd2   : > { %9942 = vmatpush3.msra.mxu1 %v9406_v45 }
 0xdd3   : > { %9944 = vmatmul.mubr.msk.f32.vlgmr.msra.gmra.mxu1 %vm1949_vm3, %v12535_v40  ;;  %9951 = vmatprep.subr.mxu1 %v11742_v1 }
 0xdd4   : > { %9953 = vmatprep.mubr.msk.f32.mxu1 %vm11743_vm0, %v11742_v1 }
 0xe8b   : > { %v3258_v51 = vpop.f32.mrf.mxu1 }
 0xe8c   : > { %v3259_v52 = vadd.f32 %v3258_v51, %v3177_v48 }
 0xe8d   : > { %v3260_v53 = vpop.f32.mrf.mxu1 }
 0xe8e   : > { %v3261_v54 = vadd.f32 %v3260_v53, %v3181_v50  ;;  %3416 = vrot.lane.b32.xlu1 %v3259_v52, %s13272_s2 }
 0xe90   : > { %3418 = vrot.lane.b32.xlu0 %v3261_v54, %s13272_s2  ;;  %9947 = vmatpush3.xpose.msk.msra.mxu0 %vm2160_vm4, %v3261_v54 }
 0xe91   : > { %9956 = vmatprep.subr.mxu0 %v11742_v1 }
 0xe92   : > { %3496 = vrot.lane.b32.xlu1 %v3261_v54, %s13270_s7 }
 0xe93   : > { %v3329_v55 = vpop.f32.mrf.mxu1  ;;  %9949 = vmatmul.mubr.msk.f32.vlgmr.msra.gmra.mxu0 %vm2160_vm4, %v3259_v52 }
 0xe94   : > { %3574 = vrot.lane.b32.xlu0 %v3261_v54, %s13266_s8  ;;  %9958 = vmatprep.mubr.msk.f32.mxu0 %vm11743_vm0, %v11742_v1  ;;  %v12575_v63 = vadd.f32 %v3329_v55, %v3185_v59 }
 0xe95   : > { %v9945_v56 = vpop.f32.mrf.mxu1 }
 0xe96   : > { %3494 = vrot.lane.b32.xlu1 %v3259_v52, %s13270_s7 }
 0xe98   : > { %3572 = vrot.lane.b32.xlu0 %v3259_v52, %s13266_s8 }
 0xf00   : > { %v3417_v57 = vpop.permute.xlu1 %3416 }
 0xf02   : > { %v3419_v58 = vpop.permute.xlu0 %3418 }
 0xf03   : > { %9952 = vmatpush3.xpose.msk.msra.mxu1 %vm2160_vm4, %v3419_v58 }
 0xf04   : > { %v3497_v61 = vpop.permute.xlu1 %3496  ;;  %9961 = vmatprep.subr.mxu1 %v11742_v1 }
 0xf05   : > { %9957 = vmatpush3.xpose.msk.msra.mxu0 %vm2160_vm4, %v3497_v61  ;;  %v9421_v61 = vld [vmem:[%s13386_s4 + $0x38] sm:$0xff] }
 0xf06   : > { %v3575_v62 = vpop.permute.xlu0 %3574  ;;  %9954 = vmatmul.mubr.msk.f32.vlgmr.msra.gmra.mxu1 %vm2160_vm4, %v3417_v57  ;;  %9966 = vmatprep.subr.mxu0 %v11742_v1 }
 0xf07   : > { %9962 = vmatpush3.xpose.msk.msra.mxu1 %vm2160_vm4, %v3575_v62  ;;  %9963 = vmatprep.mubr.msk.f32.mxu1 %vm11743_vm0, %v11742_v1  ;;  %v9420_v62 = vld [vmem:[%s13386_s4 + $0x30] sm:$0xff] }
 0xf08   : > { %v3495_v0 = vpop.permute.xlu1 %3494  ;;  %9971 = vmatprep.subr.mxu1 %v11742_v1 }
 0xf09   : > { %9959 = vmatmul.mubr.msk.f32.vlgmr.msra.gmra.mxu0 %vm2160_vm4, %v3495_v0 }
 0xf0a   : > { %9967 = vmatpush3.msra.mxu0 %v12575_v63  ;;  %v3573_v2 = vpop.permute.xlu0 %3572  ;;  %9968 = vmatprep.mubr.msk.f32.mxu0 %vm11743_vm0, %v11742_v1 }
 0xf0b   : > { %9964 = vmatmul.mubr.msk.f32.vlgmr.msra.gmra.mxu1 %vm2160_vm4, %v3573_v2  ;;  %9976 = vmatprep.subr.mxu0 %v11742_v1 }
 0xf0c   : > { %9973 = vmatprep.mubr.msk.f32.mxu1 %vm11743_vm0, %v11742_v1 }
 0xf53   : > { %v3412_v3 = vpop.f32.mrf.mxu0 }
 0xf54   : > { %v3650_v5 = vadd.f32 %v3412_v3, %v12432_v4 }
 0xf55   : > { %v9950_v6 = vpop.f32.mrf.mxu0 }
 0xf56   : > { %v3654_v7 = vsel %vm2160_vm4, %v3650_v5, -inf  ;;  %v9418_v6 = vld [vmem:[%s13386_s4 + $0x20] sm:$0xff] }
 0xf57   : > { %3655 = vmax.xlane.f32.xlu1 %v3654_v7 }
 0xfc6   : > { %v3490_v8 = vpop.f32.mrf.mxu1 }
 0xfc7   : > { %v3651_v10 = vadd.f32 %v3490_v8, %v12436_v9 }
 0xfc8   : > { %v9955_v11 = vpop.f32.mrf.mxu1 }
 0xfc9   : > { %v3568_v13 = vpop.f32.mrf.mxu0  ;;  %v3657_v14 = vsel %vm2160_vm4, %v3651_v10, -inf }
 0xfca   : > { %v3652_v16 = vadd.f32 %v3568_v13, %v12440_v15  ;;  %3658 = vmax.xlane.f32.xlu0 %v3657_v14 }
 0xfcb   : > { %v9960_v18 = vpop.f32.mrf.mxu0  ;;  %v3646_v19 = vpop.f32.mrf.mxu1 }
 0xfcc   : > { %v3653_v20 = vadd.f32 %v3646_v19, %v12442_v17  ;;  %v3660_v4 = vsel %vm2160_vm4, %v3652_v16, -inf  ;;  %v9435_v19 = vld [vmem:[%s13388_s1 + $0x1] ss:$0 sm:$0xff] }
 0xfcd   : > { %v9965_v21 = vpop.f32.mrf.mxu1 }
 0xfce   : > { %3661 = vmax.xlane.f32.xlu0 %v3660_v4  ;;  %v3663_v22 = vsel %vm2160_vm4, %v3653_v20, -inf }
 0xfcf   : > { %3664 = vmax.xlane.f32.xlu1 %v3663_v22 }
 0xfe0   : > { %v3656_v23 = vpop.xlane.xlu1 %3655 }
 0xfe1   : > { %v3666_v9 = vsub.f32 %v3650_v5, %v3656_v23 }
 0xfe3   : > { %v3670_v24 = vmul.f32 1.442695, %v3666_v9 }
 0xfe5   : > { %10754 = vpow2.f32 %v3670_v24 }
 0xff2   : > { %v10755_v25 = vpop.eup %10754 }
 0xff3   : > { %v3678_v26 = vsel %vm2160_vm4, %v10755_v25, 0.0 }
 0xff4   : > { %3679 = vadd.xlane.f32.xlu0 %v3678_v26 }
0x1053   : > { %v3659_v15 = vpop.xlane.xlu0 %3658 }
0x1054   : > { %v3667_v27 = vsub.f32 %v3651_v10, %v3659_v15 }
0x1056   : > { %v3672_v28 = vmul.f32 1.442695, %v3667_v27 }
0x1057   : > { %v3662_v29 = vpop.xlane.xlu0 %3661 }
0x1058   : > { %10756 = vpow2.f32 %v3672_v28  ;;  %v3668_v17 = vsub.f32 %v3652_v16, %v3662_v29  ;;  %v3665_v36 = vpop.xlane.xlu1 %3664  ;;  %v9443_v28 = vld [vmem:[%s13389_s11 + $0x38] sm:$0xff]  ;;  %v9442_v29 = vld [vmem:[%s13389_s11 + $0x30] sm:$0xff] }
0x1059   : > { %v3669_v37 = vsub.f32 %v3653_v20, %v3665_v36  ;;  %v9439_v36 = vld [vmem:[#allocation8 + $0x1] ss:$0 sm:$0xff] }
0x105a   : > { %v3674_v30 = vmul.f32 1.442695, %v3668_v17  ;;  %v9440_v17 = vld [vmem:[%s13389_s11 + $0x20] sm:$0xff] }
0x105b   : > { %v3676_v41 = vmul.f32 1.442695, %v3669_v37 }
0x105c   : > { %10758 = vpow2.f32 %v3674_v30 }
0x1065   : > { %v10757_v31 = vpop.eup %10756 }
0x1066   : > { %v3681_v32 = vsel %vm2160_vm4, %v10757_v31, 0.0 }
0x1067   : > { %3682 = vadd.xlane.f32.xlu1 %v3681_v32 }
0x1069   : > { %v10759_v33 = vpop.eup %10758 }
0x106a   : > { %v3684_v34 = vsel %vm2160_vm4, %v10759_v33, 0.0 }
0x106b   : > { %3685 = vadd.xlane.f32.xlu0 %v3684_v34  ;;  %v9438_v34 = vld [vmem:[%s13390_s5 + $0x1] ss:$0 sm:$0xff]  ;;  %s13406_s5 = sshll.u32 %s12324_s23, 5 }
0x1078   : > { %3848 = vrot.lane.b32.xlu1 %v12575_v63, %s13270_s7 }
0x107d   : > { %v3680_v35 = vpop.xlane.xlu0 %3679 }
0x107e   : > { %10760 = vrcp.f32 %v3680_v35 }
0x107f   : > { %10762 = vpow2.f32 %v3676_v41 }
0x1081   : > { %3772 = vrot.lane.b32.xlu0 %v12575_v63, %s13272_s2  ;;  %s13398_s2 = sld [smem:[#allocation78_spill]] }
0x108b   : > { %v10761_v38 = vpop.eup %10760 }
0x108c   : > { %v3694_v39 = vmul.f32 %v10761_v38, %v10755_v25  ;;  %v10763_v42 = vpop.eup %10762  ;;  %v4351_v38 = vld [vmem:[%s13398_s2 + $0x38] sm:$0xff] }
0x108d   : > { %v3687_v43 = vsel %vm2160_vm4, %v10763_v42, 0.0 }
0x108e   : > { %9969 = vmatmul.mubr.msk.f32.vlgmr.msra.gmra.mxu0 %vm2160_vm4, %v3694_v39  ;;  %v4350_v39 = vld [vmem:[%s13398_s2 + $0x30] sm:$0xff] }
0x108f   : > { %9978 = vmatprep.mubr.msk.f32.mxu0 %vm11743_vm0, %v11742_v1 }
0x109c   : > { %3688 = vadd.xlane.f32.xlu1 %v3687_v43  ;;  %v4348_v43 = vld [vmem:[%s13398_s2 + $0x20] sm:$0xff] }
0x10ad   : > { %3924 = vrot.lane.b32.xlu1 %v12575_v63, %s13266_s8  ;;  %v9419_v63 = vld [vmem:[%s13386_s4 + $0x28] sm:$0xff]  ;;  %s13396_s8 = smov 24   ;;  %s13405_s4 = sld [smem:[#allocation62_spill]] }
0x10b3   : > { %s12763_s9 = scalar_lea.vmem %s13405_s4, %s13406_s5  ;;  %s13407_s5 = sld [smem:[#allocation82_spill]] }
0x10b4   : > { %s13408_s4 = smov 16  }
0x10f0   : > { %v3683_v44 = vpop.xlane.xlu1 %3682 }
0x10f1   : > { %10764 = vrcp.f32 %v3683_v44  ;;  %v4347_v44 = vld [vmem:[%s13398_s2 + $0x18] sm:$0xff] }
0x10f4   : > { %v3849_v45 = vpop.permute.xlu1 %3848  ;;  %v3686_v46 = vpop.xlane.xlu0 %3685 }
0x10f5   : > { %10766 = vrcp.f32 %v3686_v46  ;;  %9977 = vmatpush3.msra.mxu0 %v3849_v45  ;;  %v4346_v45 = vld [vmem:[%s13398_s2 + $0x10] sm:$0xff] }
0x10f6   : > { %9986 = vmatprep.subr.mxu0 %v11742_v1 }
0x10f8   : > { %v3773_v48 = vpop.permute.xlu0 %3772 }
0x10f9   : > { %9972 = vmatpush3.msra.mxu1 %v3773_v48  ;;  %v4345_v48 = vld [vmem:[%s13398_s2 + $0x8] sm:$0xff] }
0x10fa   : > { %9981 = vmatprep.subr.mxu1 %v11742_v1 }
0x10fe   : > { %v10765_v50 = vpop.eup %10764 }
0x10ff   : > { %v3695_v51 = vmul.f32 %v10765_v50, %v10757_v31  ;;  %v4344_v50 = vld [vmem:[%s13398_s2] sm:$0xff] }
0x1101   : > { %9974 = vmatmul.mubr.msk.f32.vlgmr.msra.gmra.mxu1 %vm2160_vm4, %v3695_v51 }
0x1102   : > { %v10767_v52 = vpop.eup %10766  ;;  %9983 = vmatprep.mubr.msk.f32.mxu1 %vm11743_vm0, %v11742_v1 }
0x1103   : > { %v3696_v53 = vmul.f32 %v10767_v52, %v10759_v33  ;;  %v9453_v52 = vld [vmem:[%s13392_s12 + $0x78] sm:$0xff] }
0x1105   : > { %9979 = vmatmul.mubr.msk.f32.vlgmr.msra.gmra.mxu0 %vm2160_vm4, %v3696_v53  ;;  %v9452_v53 = vld [vmem:[%s13392_s12 + $0x70] sm:$0xff] }
0x1106   : > { %9994 = vmatprep.mubr.msk.f32.mxu0 %vm11743_vm0, %v11742_v1  ;;  %9987 = vmatpush3.msra.mxu0 %v9421_v61  ;;  %v9444_v61 = vld [vmem:[#allocation11 + $0x1] ss:$0 sm:$0xff] }
0x1107   : > { %9988 = vmatprep.subr.mxu0 %v11742_v1 }
0x1108   : > { %9989 = vmatpush3.msra.mxu0 %v9420_v62 }
0x1109   : > { %9990 = vmatprep.subr.mxu0 %v11742_v1 }
0x110a   : > { %9991 = vmatpush3.msra.mxu0 %v9419_v63 }
0x110b   : > { %9992 = vmatprep.subr.mxu0 %v11742_v1 }
0x110c   : > { %9993 = vmatpush3.msra.mxu0 %v9418_v6 }
0x110d   : > { %10008 = vmatprep.subr.mxu0 %v11742_v1 }
0x1125   : > { %v3689_v54 = vpop.xlane.xlu1 %3688 }
0x1126   : > { %10768 = vrcp.f32 %v3689_v54  ;;  %v9451_v54 = vld [vmem:[%s13392_s12 + $0x68] sm:$0xff] }
0x1129   : > { %v3925_v55 = vpop.permute.xlu1 %3924 }
0x112a   : > { %9982 = vmatpush3.msra.mxu1 %v3925_v55  ;;  %v9450_v55 = vld [vmem:[%s13392_s12 + $0x60] sm:$0xff] }
0x112b   : > { %9997 = vmatprep.subr.mxu1 %v11742_v1 }
0x1133   : > { %v10769_v56 = vpop.eup %10768 }
0x1134   : > { %v3697_v57 = vmul.f32 %v10769_v56, %v10763_v42  ;;  %v4349_v42 = vld [vmem:[%s13398_s2 + $0x28] sm:$0xff]  ;;  %v9449_v56 = vld [vmem:[%s13392_s12 + $0x58] sm:$0xff]  ;;  %s13404_s2 = smov 104  }
0x1136   : > { %9984 = vmatmul.mubr.msk.f32.vlgmr.msra.gmra.mxu1 %vm2160_vm4, %v3697_v57  ;;  %v9448_v57 = vld [vmem:[%s13392_s12 + $0x50] sm:$0xff] }
0x1137   : > { %10005 = vmatprep.mubr.msk.f32.mxu1 %vm11743_vm0, %v11742_v1  ;;  %9998 = vmatpush3.msra.mxu1 %v9443_v28 }
0x1138   : > { %9999 = vmatprep.subr.mxu1 %v11742_v1 }
0x1139   : > { %10000 = vmatpush3.msra.mxu1 %v9442_v29 }
0x113a   : > { %10001 = vmatprep.subr.mxu1 %v11742_v1 }
0x114e   : > { %v3767_v58 = vpop.f32.mrf.mxu0 }
0x1150   : > { %v9970_v59 = vpop.f32.mrf.mxu0 }
0x1151   : > { %v9446_v59 = vld [vmem:[%s13392_s12 + $0x40] sm:$0xff] }
0x11c1   : > { %v3844_v0 = vpop.f32.mrf.mxu1 }
0x11c2   : > { %4001 = vrot.lane.b32.xlu0 %v3844_v0, %s13395_s26 }
0x11c3   : > { %v9975_v2 = vpop.f32.mrf.mxu1 }
0x11c5   : > { %v3920_v3 = vpop.f32.mrf.mxu0 }
0x11c6   : > { %4005 = vrot.lane.b32.xlu1 %v3920_v3, %s13268_s22  ;;  %s13397_s22 = sld [smem:[#allocation61_spill]] }
0x11c7   : > { %v9980_v5 = vpop.f32.mrf.mxu0 }
0x11cc   : > { %s1842_s7 = scalar_lea.vmem %s13397_s22, %s12328_s16  ;;  %s13400_s22 = sld [smem:[#allocation80_spill]] }
0x11cd   : > { %v4343_v27 = vld [vmem:[%s1842_s7] sm:$0xff]  ;;  %s13399_s7 = sld [smem:[#allocation79_spill]] }
0x11d2   : > { %s13401_s1 = smov %s13400_s22 }
0x11d3   : > { %v4473_v28 = vld [vmem:[%s13401_s1 + $0x40] sm:$0xff] }
0x11d4   : > { %v4469_v29 = vld [vmem:[%s13401_s1 + $0x20] sm:$0xff] }
0x11f6   : > { %v3996_v7 = vpop.f32.mrf.mxu1 }
0x11f7   : > { %4009 = vrot.lane.b32.xlu0 %v3996_v7, %s13396_s8 }
0x11f8   : > { %v9985_v8 = vpop.f32.mrf.mxu1 }
0x11f9   : > { %v4352_v8 = vld [vmem:[%s13399_s7] sm:$0xff]  ;;  %s13402_s7 = smov 120  }
0x1234   : > { %v4002_v10 = vpop.permute.xlu0 %4001 }
0x1235   : > { %v4012_v13 = vsel %vm2160_vm4, %v3767_v58, %v4002_v10  ;;  %v9447_v58 = vld [vmem:[%s13392_s12 + $0x48] sm:$0xff] }
0x1238   : > { %v4006_v11 = vpop.permute.xlu1 %4005 }
0x1239   : > { %v4013_v14 = vsel %vm2834_vm5, %v4012_v13, %v4006_v11 }
0x1269   : > { %v4010_v16 = vpop.permute.xlu0 %4009 }
0x126a   : > { %v4014_v18 = vsel %vm2836_vm6, %v4013_v14, %v4010_v16 }
0x126b   : > { %9995 = vmatmul.mubr.msk.f32.vlgmr.msra.gmra.mxu0 %vm1949_vm3, %v4014_v18 }
0x126c   : > { %10024 = vmatprep.mubr.msk.f32.mxu0 %vm11743_vm0, %v11742_v1  ;;  %10009 = vmatpush3.msra.mxu0 %v9453_v52 }
0x126d   : > { %10010 = vmatprep.subr.mxu0 %v11742_v1 }
0x126e   : > { %10011 = vmatpush3.msra.mxu0 %v9452_v53 }
0x126f   : > { %10012 = vmatprep.subr.mxu0 %v11742_v1 }
0x1270   : > { %10013 = vmatpush3.msra.mxu0 %v9451_v54 }
0x1271   : > { %10014 = vmatprep.subr.mxu0 %v11742_v1 }
0x1272   : > { %10015 = vmatpush3.msra.mxu0 %v9450_v55 }
0x1273   : > { %10016 = vmatprep.subr.mxu0 %v11742_v1 }
0x1274   : > { %10017 = vmatpush3.msra.mxu0 %v9449_v56 }
0x1275   : > { %10018 = vmatprep.subr.mxu0 %v11742_v1 }
0x1276   : > { %10019 = vmatpush3.msra.mxu0 %v9448_v57 }
0x1277   : > { %10020 = vmatprep.subr.mxu0 %v11742_v1 }
0x1278   : > { %10021 = vmatpush3.msra.mxu0 %v9447_v58 }
0x1279   : > { %10022 = vmatprep.subr.mxu0 %v11742_v1 }
0x127a   : > { %10023 = vmatpush3.msra.mxu0 %v9446_v59 }
0x132b   : > { %v4090_v20 = vpop.f32.mrf.mxu0 }
0x132c   : > { %v4091_v4 = vadd.f32 %v9435_v19, %v4090_v20 }
0x132d   : > { %v9996_v21 = vpop.f32.mrf.mxu0 }
0x132e   : > { %v4094_v22 = vadd.f32 %v4091_v4, %v12535_v40  ;;  %v9441_v40 = vld [vmem:[%s13389_s11 + $0x28] sm:$0xff] }
0x132f   : > { %10002 = vmatpush3.msra.mxu1 %v9441_v40  ;;  %v4470_v40 = vld [vmem:[%s13401_s1 + $0x28] sm:$0xff] }
0x1330   : > { %v4099_v23 = vsel %vm1949_vm3, %v4094_v22, 0.0  ;;  %10003 = vmatprep.subr.mxu1 %v11742_v1 }
0x1331   : > { %4100 = vadd.xlane.f32.xlu1 %v4099_v23  ;;  %10004 = vmatpush3.msra.mxu1 %v9440_v17  ;;  %v4468_v17 = vld [vmem:[%s13401_s1 + $0x18] sm:$0xff] }
0x1332   : > { %10027 = vmatprep.subr.mxu1 %v11742_v1 }
0x13ba   : > { %v4101_v9 = vpop.xlane.xlu1 %4100 }
0x13bb   : > { %v4102_v24 = vmul.f32 0.03125, %v4101_v9 }
0x13bd   : > { %v4103_v25 = vsub.f32 %v4094_v22, %v4102_v24  ;;  %v4475_v24 = vld [vmem:[%s13400_s22 + $0x50] sm:$0xff]  ;;  %s13403_s22 = smov 112  }
0x13be   : > { %4521 = vmatprep.subr.mxu0 %v4475_v24 }
0x13bf   : > { %v4104_v26 = vmul.f32 %v4103_v25, %v4103_v25 }
0x13c1   : > { %v4105_v15 = vsel %vm1949_vm3, %v4104_v26, 0.0  ;;  %v4476_v26 = vld [vmem:[%s13401_s1 + $0x58] sm:$0xff] }
0x13c2   : > { %4106 = vadd.xlane.f32.xlu0 %v4105_v15  ;;  %v4472_v15 = vld [vmem:[%s13401_s1 + $0x38] sm:$0xff] }
0x13d8   : > { %4354 = vperm.xlu0 %10729, %v4343_v27   ;;  %v4471_v27 = vld [vmem:[%s13401_s1 + $0x30] sm:$0xff] }
0x144b   : > { %v4107_v30 = vpop.xlane.xlu0 %4106 }
0x144c   : > { %v4108_v31 = vmul.f32 0.03125, %v4107_v30  ;;  %v4466_v30 = vld [vmem:[%s13401_s1 + $0x8] sm:$0xff] }
0x144e   : > { %v4109_v32 = vadd.f32 1e-12, %v4108_v31  ;;  %v4467_v31 = vld [vmem:[%s13401_s1 + $0x10] sm:$0xff] }
0x1450   : > { %10770 = vrsqrt.f32 %v4109_v32  ;;  %v4465_v32 = vld [vmem:[%s13401_s1] sm:$0xff] }
0x1453   : > { %v4355_v46 = vpop.permute.xlu0 %4354 }
0x1454   : > { %vm4356_vm7 = vcmp.eq.s32.totalorder %v12351_v12, %v4355_v46  ;;  %v4477_v46 = vld [vmem:[#allocation14] sm:$0x7] }
0x1455   : > { %v9459_v51 = vsel %vm4356_vm7, 1.0, %v11742_v1  ;;  %v4490_v59 = vrot.slane %v4477_v46, %v12408_v60 }
0x145d   : > { %v10771_v33 = vpop.eup %10770 }
0x145e   : > { %v4111_v35 = vmul.f32 %v10771_v33, %v4103_v25  ;;  %v4474_v25 = vld [vmem:[%s13401_s1 + $0x48] sm:$0xff] }
0x1460   : > { %v4118_v37 = vmul.f32 %v9438_v34, %v4111_v35 }
0x1462   : > { %v12651_v41 = vadd.f32 %v9439_v36, %v4118_v37 }
0x1464   : > { %10006 = vmatmul.mubr.msk.f32.vlgmr.msra.gmra.mxu1 %vm1949_vm3, %v12651_v41 }
0x1465   : > { %10028 = vmatpush3.msra.mxu1 %v4351_v38  ;;  %10043 = vmatprep.mubr.msk.f32.mxu1 %vm11743_vm0, %v11742_v1 }
0x1466   : > { %10029 = vmatprep.subr.mxu1 %v11742_v1 }
0x1467   : > { %10030 = vmatpush3.msra.mxu1 %v4350_v39  ;;  %v9461_v39 = vld [vmem:[#allocation17] ss:$0 sm:$0xff] }
0x1468   : > { %10031 = vmatprep.subr.mxu1 %v11742_v1 }
0x1469   : > { %10032 = vmatpush3.msra.mxu1 %v4349_v42 }
0x146a   : > { %10033 = vmatprep.subr.mxu1 %v11742_v1 }
0x146b   : > { %10034 = vmatpush3.msra.mxu1 %v4348_v43  ;;  %v9462_v43 = vld [vmem:[#allocation19] ss:$0 sm:$0xff] }
0x146c   : > { %10035 = vmatprep.subr.mxu1 %v11742_v1 }
0x146d   : > { %10036 = vmatpush3.msra.mxu1 %v4347_v44 }
0x146e   : > { %10037 = vmatprep.subr.mxu1 %v11742_v1 }
0x146f   : > { %10038 = vmatpush3.msra.mxu1 %v4346_v45 }
0x1470   : > { %10039 = vmatprep.subr.mxu1 %v11742_v1 }
0x1471   : > { %10040 = vmatpush3.msra.mxu1 %v4345_v48  ;;  %v4482_v48 = vrot.slane %v4477_v46, %v12389_v47 }
0x1472   : > { %10041 = vmatprep.subr.mxu1 %v11742_v1 }
0x1473   : > { %10042 = vmatpush3.msra.mxu1 %v4344_v50  ;;  %v4486_v50 = vrot.slane %v4477_v46, %v12391_v49 }
0x1474   : > { %10044 = vmatmul.mubr.msk.f32.vlgmr.msra.gmra.mxu1 %vm1873_vm1, %v9459_v51  ;;  %10046 = vmatprep.subr.mxu1 %v11742_v1 }
0x1475   : > { %10054 = vmatprep.mubr.msk.f32.mxu1 %vm11743_vm0, %v11742_v1  ;;  %10047 = vmatpush3.msra.mxu1 %v4476_v26 }
0x1476   : > { %10048 = vmatprep.subr.mxu1 %v11742_v1 }
0x1477   : > { %10049 = vmatpush3.msra.mxu1 %v4473_v28 }
0x1478   : > { %10050 = vmatprep.subr.mxu1 %v11742_v1 }
0x1479   : > { %10051 = vmatpush3.msra.mxu1 %v4470_v40 }
0x147a   : > { %10052 = vmatprep.subr.mxu1 %v11742_v1 }
0x147b   : > { %10053 = vmatpush3.msra.mxu1 %v4467_v31 }
0x147c   : > { %10062 = vmatprep.subr.mxu1 %v11742_v1 }
0x1524   : > { %v4208_v62 = vpop.f32.mrf.mxu1 }
0x1525   : > { %v4209_v63 = vadd.f32 %v9444_v61, %v4208_v62 }
0x1526   : > { %v10007_v0 = vpop.f32.mrf.mxu1 }
0x1527   : > { %v4213_v2 = vmul.f32 0.044715, %v4209_v63  ;;  %v4212_v18 = vmul.f32 0.5, %v4209_v63 }
0x1529   : > { %v4214_v3 = vmul.f32 %v4213_v2, %v4209_v63 }
0x152b   : > { %v4215_v5 = vmul.f32 %v4214_v3, %v4209_v63  ;;  %v4432_v3 = vld [vmem:[%s12763_s9] sm:$0xff] }
0x152d   : > { %v4216_v6 = vadd.f32 %v4215_v5, %v4209_v63 }
0x152f   : > { %v4217_v7 = vmul.f32 0.7978846, %v4216_v6 }
0x1531   : > { %10772 = vtanh.f32 %v4217_v7 }
0x1534   : > { %v4428_v10 = vpop.f32.mrf.mxu1 }
0x1535   : > { %v12694_v11 = vadd.f32 %v4428_v10, %v4352_v8  ;;  %v4433_v10 = vld [vmem:[%s12763_s9 + $0x8] sm:$0xff] }
0x1536   : > { %v10045_v13 = vpop.f32.mrf.mxu1 }
0x1537   : > { %v4438_v14 = vsel %vm1949_vm3, %v12694_v11, 0.0 }
0x1538   : > { %4439 = vadd.xlane.f32.xlu1 %v4438_v14 }
0x153e   : > { %v10773_v16 = vpop.eup %10772 }
0x153f   : > { %v4219_v19 = vadd.f32 1.0, %v10773_v16  ;;  %v4434_v16 = vld [vmem:[%s12763_s9 + $0x10] sm:$0xff] }
0x1541   : > { %v4220_v20 = vmul.f32 %v4219_v19, %v4212_v18 }
0x1543   : > { %10025 = vmatmul.mubr.msk.f32.vlgmr.msra.gmra.mxu0 %vm1873_vm1, %v4220_v20 }
0x1544   : > { %4561 = vmatprep.mubr.f32.mxu0 %v11742_v1  ;;  %4522 = vmatpush1.msra.mxu0 %v4474_v25 }
0x1545   : > { %4523 = vmatprep.subr.mxu0 %v4472_v15 }
0x1546   : > { %4524 = vmatpush1.msra.mxu0 %v4471_v27 }
0x1547   : > { %4525 = vmatprep.subr.mxu0 %v4469_v29 }
0x1548   : > { %4526 = vmatpush1.msra.mxu0 %v4468_v17 }
0x1549   : > { %4527 = vmatprep.subr.mxu0 %v4466_v30 }
0x154a   : > { %4528 = vmatpush1.msra.mxu0 %v4465_v32 }
0x154b   : > { %10057 = vmatprep.subr.mxu0 %v11742_v1 }
0x15c1   : > { %v4440_v4 = vpop.xlane.xlu1 %4439 }
0x15c2   : > { %v4441_v21 = vmul.f32 0.03125, %v4440_v4  ;;  %v4435_v4 = vld [vmem:[%s12763_s9 + $0x18] sm:$0xff] }
0x15c4   : > { %v4442_v22 = vsub.f32 %v12694_v11, %v4441_v21 }
0x15c6   : > { %v4443_v23 = vmul.f32 %v4442_v22, %v4442_v22 }
0x15c8   : > { %v4444_v9 = vsel %vm1949_vm3, %v4443_v23, 0.0 }
0x15c9   : > { %4445 = vadd.xlane.f32.xlu1 %v4444_v9 }
0x1603   : > { %v12719_v33 = vpop.f32.mrf.mxu0 }
0x1605   : > { %v10026_v34 = vpop.f32.mrf.mxu0 }
0x1652   : > { %v4446_v35 = vpop.xlane.xlu1 %4445 }
0x1653   : > { %v4447_v36 = vmul.f32 0.03125, %v4446_v35 }
0x1655   : > { %v4448_v37 = vadd.f32 1e-05, %v4447_v36 }
0x1657   : > { %10774 = vrsqrt.f32 %v4448_v37 }
0x1664   : > { %v10775_v38 = vpop.eup %10774 }
0x1665   : > { %v4450_v42 = vmul.f32 %v10775_v38, %v4442_v22 }
0x1667   : > { %v4457_v44 = vmul.f32 %v9461_v39, %v4450_v42 }
0x1669   : > { %v4464_v45 = vadd.f32 %v9462_v43, %v4457_v44 }
0x166b   : > { %9463 = vmatmul.mubr.msk.f32.vlgmr.msra.gmra.mxu0 %vm1949_vm3, %v4464_v45  ;;  %10055 = vmatmul.mubr.msk.f32.vlgmr.msra.gmra.mxu1 %vm1949_vm3, %v4464_v45 }
0x166c   : > { %10059 = vmatprep.mubr.msk.f32.mxu0 %vm11743_vm0, %v11742_v1  ;;  %10064 = vmatprep.mubr.msk.f32.mxu1 %vm11743_vm0, %v11742_v1 }
0x172b   : > { %v4563_v51 = vpop.f32.mrf.mxu0  ;;  %v4634_v52 = vpop.f32.mrf.mxu1 }
0x172c   : > { %v4564_v53 = vadd.f32 %v4563_v51, %v4482_v48  ;;  %v12749_v63 = vadd.f32 %v4634_v52, %v4490_v59 }
0x172d   : > { %v4565_v54 = vpop.f32.mrf.mxu0  ;;  %v10056_v55 = vpop.f32.mrf.mxu1 }
0x172e   : > { %v4566_v56 = vadd.f32 %v4565_v54, %v4486_v50  ;;  %4719 = vrot.lane.b32.xlu0 %v4564_v53, %s13402_s7 }
0x1730   : > { %4721 = vrot.lane.b32.xlu1 %v4566_v56, %s13402_s7  ;;  %10058 = vmatpush3.xpose.msk.msra.mxu0 %vm2160_vm4, %v4566_v56 }
0x1731   : > { %10067 = vmatprep.subr.mxu0 %v11742_v1 }
0x1732   : > { %4799 = vrot.lane.b32.xlu0 %v4566_v56, %s13403_s22 }
0x1733   : > { %10060 = vmatmul.mubr.msk.f32.vlgmr.msra.gmra.mxu0 %vm2160_vm4, %v4564_v53 }
0x1734   : > { %4877 = vrot.lane.b32.xlu1 %v4566_v56, %s13404_s2  ;;  %10069 = vmatprep.mubr.msk.f32.mxu0 %vm11743_vm0, %v11742_v1 }
0x1736   : > { %4797 = vrot.lane.b32.xlu0 %v4564_v53, %s13403_s22 }
0x1738   : > { %4875 = vrot.lane.b32.xlu1 %v4564_v53, %s13404_s2 }
0x17a0   : > { %v4720_v57 = vpop.permute.xlu0 %4719 }
0x17a2   : > { %v4722_v58 = vpop.permute.xlu1 %4721 }
0x17a3   : > { %10063 = vmatpush3.xpose.msk.msra.mxu1 %vm2160_vm4, %v4722_v58 }
0x17a4   : > { %v4800_v61 = vpop.permute.xlu0 %4799  ;;  %10072 = vmatprep.subr.mxu1 %v11742_v1 }
0x17a5   : > { %10068 = vmatpush3.xpose.msk.msra.mxu0 %vm2160_vm4, %v4800_v61 }
0x17a6   : > { %v4878_v62 = vpop.permute.xlu1 %4877  ;;  %10065 = vmatmul.mubr.msk.f32.vlgmr.msra.gmra.mxu1 %vm2160_vm4, %v4720_v57  ;;  %10077 = vmatprep.subr.mxu0 %v11742_v1 }
0x17a7   : > { %10073 = vmatpush3.xpose.msk.msra.mxu1 %vm2160_vm4, %v4878_v62  ;;  %10074 = vmatprep.mubr.msk.f32.mxu1 %vm11743_vm0, %v11742_v1 }
0x17a8   : > { %v4798_v0 = vpop.permute.xlu0 %4797  ;;  %10082 = vmatprep.subr.mxu1 %v11742_v1 }
0x17a9   : > { %10070 = vmatmul.mubr.msk.f32.vlgmr.msra.gmra.mxu0 %vm2160_vm4, %v4798_v0 }
0x17aa   : > { %10078 = vmatpush3.msra.mxu0 %v12749_v63  ;;  %v4876_v2 = vpop.permute.xlu1 %4875  ;;  %10079 = vmatprep.mubr.msk.f32.mxu0 %vm11743_vm0, %v11742_v1 }
0x17ab   : > { %10075 = vmatmul.mubr.msk.f32.vlgmr.msra.gmra.mxu1 %vm2160_vm4, %v4876_v2  ;;  %10087 = vmatprep.subr.mxu0 %v11742_v1 }
0x17ac   : > { %10084 = vmatprep.mubr.msk.f32.mxu1 %vm11743_vm0, %v11742_v1 }
0x17f3   : > { %v4715_v5 = vpop.f32.mrf.mxu0 }
0x17f4   : > { %v4953_v6 = vadd.f32 %v4715_v5, %v4432_v3  ;;  %v4641_v5 = vld [vmem:[%s13407_s5 + $0x18] sm:$0xff] }
0x17f5   : > { %v10061_v7 = vpop.f32.mrf.mxu0 }
0x17f6   : > { %v4957_v8 = vsel %vm2160_vm4, %v4953_v6, -inf  ;;  %v4639_v7 = vld [vmem:[%s13407_s5 + $0x8] sm:$0xff] }
0x17f7   : > { %4958 = vmax.xlane.f32.xlu0 %v4957_v8  ;;  %v4638_v8 = vld [vmem:[%s13407_s5] sm:$0xff] }
0x1866   : > { %v4793_v13 = vpop.f32.mrf.mxu1 }
0x1867   : > { %v4954_v14 = vadd.f32 %v4793_v13, %v4433_v10 }
0x1868   : > { %v10066_v18 = vpop.f32.mrf.mxu1 }
0x1869   : > { %v4871_v19 = vpop.f32.mrf.mxu0  ;;  %v4960_v20 = vsel %vm2160_vm4, %v4954_v14, -inf }
0x186a   : > { %v4955_v21 = vadd.f32 %v4871_v19, %v4434_v16  ;;  %4961 = vmax.xlane.f32.xlu1 %v4960_v20  ;;  %v9454_v20 = vld [vmem:[#allocation13 + $0x1] ss:$0 sm:$0xff] }
0x186b   : > { %v10071_v22 = vpop.f32.mrf.mxu0  ;;  %v4949_v23 = vpop.f32.mrf.mxu1 }
0x186c   : > { %v4956_v9 = vadd.f32 %v4949_v23, %v4435_v4  ;;  %v4963_v24 = vsel %vm2160_vm4, %v4955_v21, -inf  ;;  %v4308_v4 = vadd.f32 %v9454_v20, %v12719_v33 }
0x186d   : > { %v10076_v25 = vpop.f32.mrf.mxu1  ;;  %4964 = vmax.xlane.f32.xlu0 %v4963_v24 }
0x186e   : > { %v4966_v26 = vsel %vm2160_vm4, %v4956_v9, -inf }
0x1871   : > { %4967 = vmax.xlane.f32.xlu0 %v4966_v26 }
0x187b   : > { %5075 = vrot.lane.b32.xlu1 %v12749_v63, %s13402_s7 }
0x1880   : > { %v4959_v15 = vpop.xlane.xlu0 %4958 }
0x1881   : > { %v4969_v27 = vsub.f32 %v4953_v6, %v4959_v15  ;;  %v4640_v6 = vld [vmem:[%s13407_s5 + $0x10] sm:$0xff] }
0x1883   : > { %v4973_v28 = vmul.f32 1.442695, %v4969_v27 }
0x1885   : > { %10776 = vpow2.f32 %v4973_v28 }
0x1892   : > { %v10777_v29 = vpop.eup %10776 }
0x1893   : > { %v4981_v40 = vsel %vm2160_vm4, %v10777_v29, 0.0 }
0x189f   : > { %4982 = vadd.xlane.f32.xlu1 %v4981_v40  ;;  %v5518_v40 = vld [vmem:[%s13409_s10 + $0x38] sm:$0xff] }
0x18f3   : > { %v4962_v17 = vpop.xlane.xlu1 %4961 }
0x18f4   : > { %v4970_v30 = vsub.f32 %v4954_v14, %v4962_v17  ;;  %v5517_v17 = vld [vmem:[%s13409_s10 + $0x30] sm:$0xff] }
0x18f6   : > { %v4975_v31 = vmul.f32 1.442695, %v4970_v30  ;;  %v4965_v32 = vpop.xlane.xlu0 %4964  ;;  %v5516_v30 = vld [vmem:[%s13409_s10 + $0x28] sm:$0xff] }
0x18f7   : > { %v4971_v34 = vsub.f32 %v4955_v21, %v4965_v32  ;;  %v5076_v35 = vpop.permute.xlu1 %5075  ;;  %v4311_v21 = vadd.f32 %v4308_v4, %v12651_v41  ;;  %v5514_v32 = vld [vmem:[%s13409_s10 + $0x18] sm:$0xff] }
0x18f8   : > { %10778 = vpow2.f32 %v4975_v31  ;;  %10083 = vmatpush3.msra.mxu1 %v5076_v35  ;;  %v5515_v31 = vld [vmem:[%s13409_s10 + $0x20] sm:$0xff]  ;;  %v5512_v35 = vld [vmem:[%s13409_s10 + $0x8] sm:$0xff] }
0x18f9   : > { %v4977_v36 = vmul.f32 1.442695, %v4971_v34  ;;  %10092 = vmatprep.subr.mxu1 %v11742_v1  ;;  %v4316_v22 = vsel %vm1949_vm3, %v4311_v21, 0.0  ;;  %v5513_v34 = vld [vmem:[%s13409_s10 + $0x10] sm:$0xff] }
0x18fa   : > { %v4968_v37 = vpop.xlane.xlu0 %4967 }
0x18fb   : > { %10780 = vpow2.f32 %v4977_v36  ;;  %v4972_v38 = vsub.f32 %v4956_v9, %v4968_v37  ;;  %v5511_v36 = vld [vmem:[%s13409_s10] sm:$0xff]  ;;  %v9477_v37 = vld [vmem:[#allocation16] ss:$0 sm:$0xff] }
0x18fd   : > { %v4979_v39 = vmul.f32 1.442695, %v4972_v38 }
0x18ff   : > { %10782 = vpow2.f32 %v4979_v39 }
0x1905   : > { %v10779_v42 = vpop.eup %10778 }
0x1906   : > { %v4984_v43 = vsel %vm2160_vm4, %v10779_v42, 0.0 }
0x1907   : > { %4985 = vadd.xlane.f32.xlu0 %v4984_v43 }
0x1908   : > { %v10781_v44 = vpop.eup %10780 }
0x1909   : > { %v4987_v45 = vsel %vm2160_vm4, %v10781_v44, 0.0 }
0x190a   : > { %4988 = vadd.xlane.f32.xlu1 %v4987_v45 }
0x190c   : > { %v10783_v46 = vpop.eup %10782 }
0x190d   : > { %v4990_v48 = vsel %vm2160_vm4, %v10783_v46, 0.0 }
0x190e   : > { %4991 = vadd.xlane.f32.xlu0 %v4990_v48 }
0x191b   : > { %5227 = vrot.lane.b32.xlu1 %v12749_v63, %s13404_s2 }
0x1924   : > { %5151 = vrot.lane.b32.xlu0 %v12749_v63, %s13403_s22 }
0x1928   : > { %v4983_v50 = vpop.xlane.xlu1 %4982 }
0x1929   : > { %10784 = vrcp.f32 %v4983_v50 }
0x1936   : > { %v10785_v51 = vpop.eup %10784 }
0x1937   : > { %v4997_v52 = vmul.f32 %v10785_v51, %v10777_v29  ;;  %v9457_v51 = vld [vmem:[%s13394_s3 + $0x1] ss:$0 sm:$0xff]  ;;  %s13410_s3 = sld [smem:[#allocation92_spill]] }
0x1939   : > { %10080 = vmatmul.mubr.msk.f32.vlgmr.msra.gmra.mxu0 %vm2160_vm4, %v4997_v52 }
0x193a   : > { %10089 = vmatprep.mubr.msk.f32.mxu0 %vm11743_vm0, %v11742_v1 }
0x1990   : > { %v4986_v53 = vpop.xlane.xlu0 %4985 }
0x1991   : > { %10786 = vrcp.f32 %v4986_v53  ;;  %v9458_v53 = vld [vmem:[#allocation10 + $0x1] ss:$0 sm:$0xff] }
0x1993   : > { %v4989_v54 = vpop.xlane.xlu1 %4988 }
0x1994   : > { %10788 = vrcp.f32 %v4989_v54 }
0x1997   : > { %v4992_v55 = vpop.xlane.xlu0 %4991  ;;  %v5228_v61 = vpop.permute.xlu1 %5227 }
0x1998   : > { %10790 = vrcp.f32 %v4992_v55 }
0x199b   : > { %v5152_v56 = vpop.permute.xlu0 %5151 }
0x199c   : > { %10088 = vmatpush3.msra.mxu0 %v5152_v56 }
0x199d   : > { %10097 = vmatprep.subr.mxu0 %v11742_v1 }
0x199e   : > { %v10787_v57 = vpop.eup %10786 }
0x199f   : > { %v4998_v58 = vmul.f32 %v10787_v57, %v10779_v42 }
0x19a1   : > { %v10789_v59 = vpop.eup %10788  ;;  %10085 = vmatmul.mubr.msk.f32.vlgmr.msra.gmra.mxu1 %vm2160_vm4, %v4998_v58 }
0x19a2   : > { %10093 = vmatpush3.msra.mxu1 %v5228_v61  ;;  %v4999_v62 = vmul.f32 %v10789_v59, %v10781_v44  ;;  %10094 = vmatprep.mubr.msk.f32.mxu1 %vm11743_vm0, %v11742_v1  ;;  %v5430_v61 = vld [vmem:[#allocation26 + $0x18] sm:$0xff] }
0x19a3   : > { %10108 = vmatprep.subr.mxu1 %v11742_v1 }
0x19a4   : > { %10090 = vmatmul.mubr.msk.f32.vlgmr.msra.gmra.mxu0 %vm2160_vm4, %v4999_v62  ;;  %v5429_v62 = vld [vmem:[#allocation26 + $0x10] sm:$0xff] }
0x19a5   : > { %v10791_v63 = vpop.eup %10790  ;;  %10105 = vmatprep.mubr.msk.f32.mxu0 %vm11743_vm0, %v11742_v1  ;;  %10098 = vmatpush3.msra.mxu0 %v4641_v5 }
0x19a6   : > { %v5000_v0 = vmul.f32 %v10791_v63, %v10783_v46  ;;  %10099 = vmatprep.subr.mxu0 %v11742_v1  ;;  %v5428_v63 = vld [vmem:[#allocation26 + $0x8] sm:$0xff] }
0x19a7   : > { %10100 = vmatpush3.msra.mxu0 %v4640_v6 }
0x19a8   : > { %10095 = vmatmul.mubr.msk.f32.vlgmr.msra.gmra.mxu1 %vm2160_vm4, %v5000_v0  ;;  %10101 = vmatprep.subr.mxu0 %v11742_v1  ;;  %v5427_v0 = vld [vmem:[#allocation26] sm:$0xff] }
0x19a9   : > { %10116 = vmatprep.mubr.msk.f32.mxu1 %vm11743_vm0, %v11742_v1  ;;  %10102 = vmatpush3.msra.mxu0 %v4639_v7 }
0x19aa   : > { %10103 = vmatprep.subr.mxu0 %v11742_v1  ;;  %10109 = vmatpush3.msra.mxu1 %v5430_v61 }
0x19ab   : > { %10104 = vmatpush3.msra.mxu0 %v4638_v8  ;;  %10110 = vmatprep.subr.mxu1 %v11742_v1 }
0x19ac   : > { %5558 = vmatprep.subr.mxu0 %v5518_v40  ;;  %10111 = vmatpush3.msra.mxu1 %v5429_v62 }
0x19ad   : > { %10112 = vmatprep.subr.mxu1 %v11742_v1 }
0x19ae   : > { %10113 = vmatpush3.msra.mxu1 %v5428_v63 }
0x19af   : > { %10114 = vmatprep.subr.mxu1 %v11742_v1 }
0x19b0   : > { %10115 = vmatpush3.msra.mxu1 %v5427_v0 }
0x19b1   : > { %10119 = vmatprep.subr.mxu1 %v11742_v1 }
0x19f9   : > { %v5070_v2 = vpop.f32.mrf.mxu0 }
0x19fb   : > { %v10081_v3 = vpop.f32.mrf.mxu0 }
0x1a61   : > { %v5147_v10 = vpop.f32.mrf.mxu1 }
0x1a62   : > { %5304 = vrot.lane.b32.xlu1 %v5147_v10, %s13395_s26 }
0x1a63   : > { %v10086_v13 = vpop.f32.mrf.mxu1 }
0x1a64   : > { %v5223_v14 = vpop.f32.mrf.mxu0 }
0x1a65   : > { %5308 = vrot.lane.b32.xlu0 %v5223_v14, %s13408_s4  ;;  %v9479_v14 = vld [vmem:[#allocation20] ss:$0 sm:$0xff] }
0x1a66   : > { %v10091_v16 = vpop.f32.mrf.mxu0 }
0x1a68   : > { %v5299_v18 = vpop.f32.mrf.mxu1 }
0x1a69   : > { %5312 = vrot.lane.b32.xlu1 %v5299_v18, %s13396_s8  ;;  %v9480_v18 = vld [vmem:[#allocation22] ss:$0 sm:$0xff] }
0x1a6a   : > { %v10096_v19 = vpop.f32.mrf.mxu1 }
0x1a84   : > { %4317 = vadd.xlane.f32.xlu0 %v4316_v22  ;;  %v9481_v22 = vld [vmem:[#allocation28] ss:$0 sm:$0xff] }
0x1ad4   : > { %v5305_v23 = vpop.permute.xlu1 %5304 }
0x1ad5   : > { %v5315_v24 = vsel %vm2160_vm4, %v5070_v2, %v5305_v23  ;;  %v5519_v2 = vld [vmem:[#allocation29] sm:$0x3] }
0x1ad6   : > { %v5524_v3 = vrot.slane %v5519_v2, %v12389_v47 }
0x1ad7   : > { %v5309_v9 = vpop.permute.xlu0 %5308 }
0x1ad8   : > { %v5316_v25 = vsel %vm2834_vm5, %v5315_v24, %v5309_v9 }
0x1adb   : > { %v5313_v26 = vpop.permute.xlu1 %5312 }
0x1adc   : > { %v5317_v15 = vsel %vm2836_vm6, %v5316_v25, %v5313_v26  ;;  %v5528_v25 = vrot.slane %v5519_v2, %v12391_v49 }
0x1add   : > { %10106 = vmatmul.mubr.msk.f32.vlgmr.msra.gmra.mxu0 %vm1949_vm3, %v5317_v15 }
0x1ade   : > { %5598 = vmatprep.mubr.f32.mxu0 %v11742_v1  ;;  %5559 = vmatpush1.msra.mxu0 %v5517_v17 }
0x1adf   : > { %5560 = vmatprep.subr.mxu0 %v5516_v30 }
0x1ae0   : > { %5561 = vmatpush1.msra.mxu0 %v5515_v31 }
0x1ae1   : > { %5562 = vmatprep.subr.mxu0 %v5514_v32 }
0x1ae2   : > { %5563 = vmatpush1.msra.mxu0 %v5513_v34 }
0x1ae3   : > { %5564 = vmatprep.subr.mxu0 %v5512_v35 }
0x1ae4   : > { %5565 = vmatpush1.msra.mxu0 %v5511_v36 }
0x1ae5   : > { %10129 = vmatprep.subr.mxu0 %v11742_v1 }
0x1b0d   : > { %v4318_v41 = vpop.xlane.xlu0 %4317 }
0x1b0e   : > { %v4319_v33 = vmul.f32 0.03125, %v4318_v41 }
0x1b10   : > { %v4320_v27 = vsub.f32 %v4311_v21, %v4319_v33 }
0x1b12   : > { %v4321_v28 = vmul.f32 %v4320_v27, %v4320_v27 }
0x1b14   : > { %v4322_v29 = vsel %vm1949_vm3, %v4321_v28, 0.0 }
0x1b15   : > { %4323 = vadd.xlane.f32.xlu0 %v4322_v29 }
0x1b9d   : > { %v5393_v38 = vpop.f32.mrf.mxu0 }
0x1b9e   : > { %v5394_v39 = vadd.f32 %v9477_v37, %v5393_v38  ;;  %v4324_v42 = vpop.xlane.xlu0 %4323 }
0x1b9f   : > { %v4325_v43 = vmul.f32 0.03125, %v4324_v42  ;;  %v10107_v44 = vpop.f32.mrf.mxu0 }
0x1ba0   : > { %v12827_v45 = vadd.f32 %v5394_v39, %v12694_v11 }
0x1ba1   : > { %v4326_v46 = vadd.f32 1e-12, %v4325_v43 }
0x1ba2   : > { %v5400_v48 = vsel %vm1949_vm3, %v12827_v45, 0.0 }
0x1ba3   : > { %10792 = vrsqrt.f32 %v4326_v46  ;;  %5401 = vadd.xlane.f32.xlu1 %v5400_v48 }
0x1bb0   : > { %v10793_v50 = vpop.eup %10792 }
0x1bb1   : > { %v4328_v52 = vmul.f32 %v10793_v50, %v4320_v27 }
0x1bb3   : > { %v4335_v54 = vmul.f32 %v9457_v51, %v4328_v52 }
0x1bb5   : > { %v12832_v55 = vadd.f32 %v9458_v53, %v4335_v54 }
0x1bb7   : > { %9483 = vmatmul.mubr.msk.f32.vlgmr.msra.gmra.mxu0 %vm1949_vm3, %v12832_v55 }
0x1bb8   : > { %10131 = vmatprep.mubr.msk.f32.mxu0 %vm11743_vm0, %v11742_v1 }
0x1c2c   : > { %v5402_v11 = vpop.xlane.xlu1 %5401 }
0x1c2d   : > { %v5403_v56 = vmul.f32 0.03125, %v5402_v11 }
0x1c2f   : > { %v5404_v57 = vsub.f32 %v12827_v45, %v5403_v56 }
0x1c31   : > { %v5405_v58 = vmul.f32 %v5404_v57, %v5404_v57 }
0x1c33   : > { %v5406_v59 = vsel %vm1949_vm3, %v5405_v58, 0.0 }
0x1c34   : > { %5407 = vadd.xlane.f32.xlu0 %v5406_v59 }
0x1c77   : > { %v5600_v5 = vpop.f32.mrf.mxu0 }
0x1c78   : > { %v5601_v6 = vadd.f32 %v5600_v5, %v5524_v3 }
0x1c79   : > { %v5602_v41 = vpop.f32.mrf.mxu0 }
0x1c7a   : > { %5688 = vrot.lane.b32.xlu1 %v5601_v6, %s13402_s7  ;;  %v5603_v33 = vadd.f32 %v5602_v41, %v5528_v25  ;;  %v5607_v25 = vld [vmem:[#allocation31 + $0x10] sm:$0xff] }
0x1c7e   : > { %5766 = vrot.lane.b32.xlu1 %v5601_v6, %s13403_s22 }
0x1c82   : > { %5844 = vrot.lane.b32.xlu1 %v5601_v6, %s13404_s2 }
0x1cbd   : > { %v5408_v7 = vpop.xlane.xlu0 %5407 }
0x1cbe   : > { %v5409_v8 = vmul.f32 0.03125, %v5408_v7 }
0x1cc0   : > { %v5410_v10 = vadd.f32 1e-05, %v5409_v8 }
0x1cc2   : > { %10794 = vrsqrt.f32 %v5410_v10 }
0x1ccf   : > { %v10795_v13 = vpop.eup %10794 }
0x1cd0   : > { %v5412_v16 = vmul.f32 %v10795_v13, %v5404_v57 }
0x1cd2   : > { %v5419_v19 = vmul.f32 %v9479_v14, %v5412_v16 }
0x1cd4   : > { %v5426_v20 = vadd.f32 %v9480_v18, %v5419_v19 }
0x1cd6   : > { %10117 = vmatmul.mubr.msk.f32.vlgmr.msra.gmra.mxu1 %vm1949_vm3, %v5426_v20 }
0x1cd7   : > { %10120 = vmatpush3.xpose.msk.msra.mxu1 %vm2160_vm4, %v5601_v6  ;;  %10121 = vmatprep.mubr.msk.f32.mxu1 %vm11743_vm0, %v11742_v1 }
0x1cd8   : > { %10124 = vmatprep.subr.mxu1 %v11742_v1 }
0x1cec   : > { %v5689_v4 = vpop.permute.xlu1 %5688 }
0x1cf0   : > { %v5767_v21 = vpop.permute.xlu1 %5766 }
0x1cf1   : > { %10130 = vmatpush3.xpose.msk.msra.mxu0 %vm2160_vm4, %v5767_v21 }
0x1cf2   : > { %10139 = vmatprep.subr.mxu0 %v11742_v1 }
0x1cf4   : > { %v5845_v26 = vpop.permute.xlu1 %5844 }
0x1d96   : > { %v5507_v23 = vpop.f32.mrf.mxu1 }
0x1d97   : > { %v5508_v9 = vadd.f32 %v9481_v22, %v5507_v23 }
0x1d98   : > { %v10118_v24 = vpop.f32.mrf.mxu1 }
0x1d99   : > { %5686 = vrot.lane.b32.xlu0 %v5508_v9, %s13402_s7  ;;  %5842 = vrot.lane.b32.xlu1 %v5508_v9, %s13404_s2  ;;  %v5608_v24 = vld [vmem:[#allocation31 + $0x18] sm:$0xff] }
0x1d9a   : > { %10122 = vmatmul.mubr.msk.f32.vlgmr.msra.gmra.mxu1 %vm2160_vm4, %v5508_v9 }
0x1d9b   : > { %10125 = vmatpush3.xpose.msk.msra.mxu1 %vm2160_vm4, %v5689_v4  ;;  %10126 = vmatprep.mubr.msk.f32.mxu1 %vm11743_vm0, %v11742_v1 }
0x1d9c   : > { %10134 = vmatprep.subr.mxu1 %v11742_v1 }
0x1d9d   : > { %5764 = vrot.lane.b32.xlu0 %v5508_v9, %s13403_s22 }
0x1e0b   : > { %v5687_v15 = vpop.permute.xlu0 %5686  ;;  %v5843_v27 = vpop.permute.xlu1 %5842 }
0x1e0c   : > { %10127 = vmatmul.mubr.msk.f32.vlgmr.msra.gmra.mxu1 %vm2160_vm4, %v5687_v15  ;;  %v5605_v15 = vld [vmem:[#allocation31] sm:$0xff] }
0x1e0d   : > { %10135 = vmatpush3.xpose.msk.msra.mxu1 %vm2160_vm4, %v5845_v26  ;;  %10136 = vmatprep.mubr.msk.f32.mxu1 %vm11743_vm0, %v11742_v1  ;;  %v5606_v26 = vld [vmem:[#allocation31 + $0x8] sm:$0xff] }
0x1e0e   : > { %10144 = vmatprep.subr.mxu1 %v11742_v1 }
0x1e0f   : > { %v5765_v28 = vpop.permute.xlu0 %5764 }
0x1e10   : > { %10132 = vmatmul.mubr.msk.f32.vlgmr.msra.gmra.mxu0 %vm2160_vm4, %v5765_v28  ;;  %10137 = vmatmul.mubr.msk.f32.vlgmr.msra.gmra.mxu1 %vm2160_vm4, %v5843_v27 }
0x1e11   : > { %10140 = vmatpush3.msra.mxu0 %v5603_v33  ;;  %10141 = vmatprep.mubr.msk.f32.mxu0 %vm11743_vm0, %v11742_v1 }
0x1e12   : > { %10149 = vmatprep.subr.mxu0 %v11742_v1  ;;  %10146 = vmatprep.mubr.msk.f32.mxu1 %vm11743_vm0, %v11742_v1 }
0x1e5a   : > { %v5682_v29 = vpop.f32.mrf.mxu1 }
0x1e5b   : > { %v5920_v40 = vsel %vm2160_vm4, %v5682_v29, -inf }
0x1e5c   : > { %5921 = vmax.xlane.f32.xlu0 %v5920_v40  ;;  %v10123_v17 = vpop.f32.mrf.mxu1 }
0x1ecc   : > { %v5760_v30 = vpop.f32.mrf.mxu1 }
0x1ecd   : > { %v5923_v31 = vsel %vm2160_vm4, %v5760_v30, -inf }
0x1ece   : > { %5924 = vmax.xlane.f32.xlu1 %v5923_v31  ;;  %v10128_v32 = vpop.f32.mrf.mxu1 }
0x1ed0   : > { %v5838_v34 = vpop.f32.mrf.mxu0  ;;  %v5916_v35 = vpop.f32.mrf.mxu1 }
0x1ed1   : > { %v5926_v36 = vsel %vm2160_vm4, %v5838_v34, -inf  ;;  %v5929_v39 = vsel %vm2160_vm4, %v5916_v35, -inf }
0x1ed2   : > { %v10133_v37 = vpop.f32.mrf.mxu0  ;;  %5927 = vmax.xlane.f32.xlu0 %v5926_v36  ;;  %v10138_v38 = vpop.f32.mrf.mxu1  ;;  %v9496_v36 = vld [vmem:[#allocation32] ss:$0 sm:$0xff] }
0x1ed6   : > { %5930 = vmax.xlane.f32.xlu0 %v5929_v39 }
0x1edf   : > { %6038 = vrot.lane.b32.xlu1 %v5603_v33, %s13402_s7 }
0x1ee5   : > { %v5922_v42 = vpop.xlane.xlu0 %5921 }
0x1ee6   : > { %v5932_v43 = vsub.f32 %v5682_v29, %v5922_v42 }
0x1ee8   : > { %v5936_v44 = vmul.f32 1.442695, %v5932_v43 }
0x1eea   : > { %10796 = vpow2.f32 %v5936_v44 }
0x1ef7   : > { %v10797_v46 = vpop.eup %10796 }
0x1ef8   : > { %v5944_v48 = vsel %vm2160_vm4, %v10797_v46, 0.0 }
0x1f03   : > { %5945 = vadd.xlane.f32.xlu1 %v5944_v48 }
0x1f57   : > { %v5925_v50 = vpop.xlane.xlu1 %5924 }
0x1f58   : > { %v5933_v51 = vsub.f32 %v5760_v30, %v5925_v50 }
0x1f5a   : > { %v5938_v52 = vmul.f32 1.442695, %v5933_v51 }
0x1f5b   : > { %v5928_v53 = vpop.xlane.xlu0 %5927  ;;  %v6039_v54 = vpop.permute.xlu1 %6038 }
0x1f5c   : > { %10798 = vpow2.f32 %v5938_v52  ;;  %v5934_v11 = vsub.f32 %v5838_v34, %v5928_v53  ;;  %10145 = vmatpush3.msra.mxu1 %v6039_v54  ;;  %v6393_v52 = vld [vmem:[#allocation34 + $0x18] sm:$0xff]  ;;  %v6392_v53 = vld [vmem:[#allocation34 + $0x10] sm:$0xff]  ;;  %v6391_v54 = vld [vmem:[#allocation34 + $0x8] sm:$0xff] }
0x1f5d   : > { %10154 = vmatprep.subr.mxu1 %v11742_v1 }
0x1f5e   : > { %v5940_v56 = vmul.f32 1.442695, %v5934_v11 }
0x1f5f   : > { %v5931_v57 = vpop.xlane.xlu0 %5930 }
0x1f60   : > { %10800 = vpow2.f32 %v5940_v56  ;;  %v5935_v58 = vsub.f32 %v5916_v35, %v5931_v57 }
0x1f62   : > { %v5942_v59 = vmul.f32 1.442695, %v5935_v58 }
0x1f64   : > { %10802 = vpow2.f32 %v5942_v59  ;;  %v9498_v59 = vld [vmem:[#allocation23] ss:$0 sm:$0xff] }
0x1f69   : > { %v10799_v61 = vpop.eup %10798 }
0x1f6a   : > { %v5947_v62 = vsel %vm2160_vm4, %v10799_v61, 0.0 }
0x1f6b   : > { %5948 = vadd.xlane.f32.xlu0 %v5947_v62  ;;  %v9499_v62 = vld [vmem:[#allocation25] ss:$0 sm:$0xff] }
0x1f6d   : > { %v10801_v63 = vpop.eup %10800 }
0x1f6e   : > { %v5950_v0 = vsel %vm2160_vm4, %v10801_v63, 0.0 }
0x1f6f   : > { %5951 = vadd.xlane.f32.xlu1 %v5950_v0 }
0x1f71   : > { %v10803_v2 = vpop.eup %10802 }
0x1f72   : > { %v5953_v3 = vsel %vm2160_vm4, %v10803_v2, 0.0 }
0x1f73   : > { %5954 = vadd.xlane.f32.xlu0 %v5953_v3  ;;  %v6489_v3 = vld [vmem:[%s13410_s3 + $0x30] sm:$0xff] }
0x1f80   : > { %6190 = vrot.lane.b32.xlu1 %v5603_v33, %s13404_s2 }
0x1f89   : > { %6114 = vrot.lane.b32.xlu0 %v5603_v33, %s13403_s22 }
0x1f8c   : > { %v5946_v5 = vpop.xlane.xlu1 %5945 }
0x1f8d   : > { %10804 = vrcp.f32 %v5946_v5  ;;  %v6488_v5 = vld [vmem:[%s13410_s3 + $0x28] sm:$0xff] }
0x1f9a   : > { %v10805_v6 = vpop.eup %10804 }
0x1f9b   : > { %v5960_v7 = vmul.f32 %v10805_v6, %v10797_v46  ;;  %v6487_v6 = vld [vmem:[%s13410_s3 + $0x20] sm:$0xff] }
0x1f9d   : > { %10142 = vmatmul.mubr.msk.f32.vlgmr.msra.gmra.mxu0 %vm2160_vm4, %v5960_v7  ;;  %v6486_v7 = vld [vmem:[%s13410_s3 + $0x18] sm:$0xff] }
0x1f9e   : > { %10151 = vmatprep.mubr.msk.f32.mxu0 %vm11743_vm0, %v11742_v1 }
0x1ff4   : > { %v5949_v8 = vpop.xlane.xlu0 %5948 }
0x1ff5   : > { %10806 = vrcp.f32 %v5949_v8  ;;  %v6485_v8 = vld [vmem:[%s13410_s3 + $0x10] sm:$0xff] }
0x1ff8   : > { %v5952_v10 = vpop.xlane.xlu1 %5951 }
0x1ff9   : > { %10808 = vrcp.f32 %v5952_v10  ;;  %v6484_v10 = vld [vmem:[%s13410_s3 + $0x8] sm:$0xff] }
0x1ffc   : > { %v5955_v13 = vpop.xlane.xlu0 %5954  ;;  %v6191_v19 = vpop.permute.xlu1 %6190 }
0x1ffd   : > { %10810 = vrcp.f32 %v5955_v13  ;;  %v6483_v13 = vld [vmem:[%s13410_s3] sm:$0xff] }
0x2000   : > { %v6115_v14 = vpop.permute.xlu0 %6114 }
0x2001   : > { %10150 = vmatpush3.msra.mxu0 %v6115_v14  ;;  %v9500_v14 = vld [vmem:[#allocation35] ss:$0 sm:$0xff] }
0x2002   : > { %v10807_v16 = vpop.eup %10806  ;;  %10159 = vmatprep.subr.mxu0 %v11742_v1 }
0x2003   : > { %v5961_v18 = vmul.f32 %v10807_v16, %v10799_v61 }
0x2005   : > { %10147 = vmatmul.mubr.msk.f32.vlgmr.msra.gmra.mxu1 %vm2160_vm4, %v5961_v18 }
0x2006   : > { %v10809_v20 = vpop.eup %10808  ;;  %10155 = vmatpush3.msra.mxu1 %v6191_v19  ;;  %10156 = vmatprep.mubr.msk.f32.mxu1 %vm11743_vm0, %v11742_v1 }
0x2007   : > { %v5962_v4 = vmul.f32 %v10809_v20, %v10801_v63  ;;  %10170 = vmatprep.subr.mxu1 %v11742_v1 }
0x2009   : > { %10152 = vmatmul.mubr.msk.f32.vlgmr.msra.gmra.mxu0 %vm2160_vm4, %v5962_v4 }
0x200a   : > { %v10811_v21 = vpop.eup %10810  ;;  %10167 = vmatprep.mubr.msk.f32.mxu0 %vm11743_vm0, %v11742_v1  ;;  %10160 = vmatpush3.msra.mxu0 %v5608_v24 }
0x200b   : > { %v5963_v22 = vmul.f32 %v10811_v21, %v10803_v2  ;;  %10161 = vmatprep.subr.mxu0 %v11742_v1  ;;  %v6490_v2 = vld [vmem:[%s13410_s3 + $0x38] sm:$0xff] }
0x200c   : > { %10162 = vmatpush3.msra.mxu0 %v5607_v25 }
0x200d   : > { %10157 = vmatmul.mubr.msk.f32.vlgmr.msra.gmra.mxu1 %vm2160_vm4, %v5963_v22  ;;  %10163 = vmatprep.subr.mxu0 %v11742_v1 }
0x200e   : > { %10178 = vmatprep.mubr.msk.f32.mxu1 %vm11743_vm0, %v11742_v1  ;;  %10164 = vmatpush3.msra.mxu0 %v5606_v26 }
0x200f   : > { %10165 = vmatprep.subr.mxu0 %v11742_v1  ;;  %10171 = vmatpush3.msra.mxu1 %v6393_v52 }
0x2010   : > { %10166 = vmatpush3.msra.mxu0 %v5605_v15  ;;  %10172 = vmatprep.subr.mxu1 %v11742_v1 }
0x2011   : > { %10181 = vmatprep.subr.mxu0 %v11742_v1  ;;  %10173 = vmatpush3.msra.mxu1 %v6392_v53  ;;  %v9505_v53 = vld [vmem:[#allocation19 + $0x1] ss:$0 sm:$0xff] }
0x2012   : > { %10174 = vmatprep.subr.mxu1 %v11742_v1 }
0x2013   : > { %10175 = vmatpush3.msra.mxu1 %v6391_v54 }
0x2014   : > { %10176 = vmatprep.subr.mxu1 %v11742_v1 }
0x205d   : > { %v6033_v23 = vpop.f32.mrf.mxu0 }
0x205f   : > { %v10143_v9 = vpop.f32.mrf.mxu0 }
0x20c5   : > { %v6110_v41 = vpop.f32.mrf.mxu1 }
0x20c6   : > { %6267 = vrot.lane.b32.xlu1 %v6110_v41, %s13395_s26  ;;  %v9503_v41 = vld [vmem:[#allocation37] ss:$0 sm:$0xff] }
0x20c7   : > { %v10148_v33 = vpop.f32.mrf.mxu1 }
0x20c9   : > { %v6186_v27 = vpop.f32.mrf.mxu0 }
0x20ca   : > { %6271 = vrot.lane.b32.xlu0 %v6186_v27, %s13408_s4 }
0x20cb   : > { %v10153_v28 = vpop.f32.mrf.mxu0 }
0x20cd   : > { %v6262_v29 = vpop.f32.mrf.mxu1 }
0x20ce   : > { %6275 = vrot.lane.b32.xlu1 %v6262_v29, %s13396_s8 }
0x20cf   : > { %v10158_v40 = vpop.f32.mrf.mxu1 }
0x2138   : > { %v6268_v17 = vpop.permute.xlu1 %6267 }
0x2139   : > { %v6278_v31 = vsel %vm2160_vm4, %v6033_v23, %v6268_v17 }
0x213c   : > { %v6272_v30 = vpop.permute.xlu0 %6271 }
0x213d   : > { %v6279_v32 = vsel %vm2834_vm5, %v6278_v31, %v6272_v30 }
0x2140   : > { %v6276_v34 = vpop.permute.xlu1 %6275 }
0x2141   : > { %v6280_v35 = vsel %vm2836_vm6, %v6279_v32, %v6276_v34  ;;  %v9516_v34 = vld [vmem:[%s13401_s1 + $0xb0] sm:$0xff] }
0x2142   : > { %10168 = vmatmul.mubr.msk.f32.vlgmr.msra.gmra.mxu0 %vm1949_vm3, %v6280_v35  ;;  %v9515_v35 = vld [vmem:[%s13401_s1 + $0xa8] sm:$0xff] }
0x2143   : > { %10197 = vmatprep.mubr.msk.f32.mxu0 %vm11743_vm0, %v11742_v1  ;;  %10182 = vmatpush3.msra.mxu0 %v6490_v2 }
0x2144   : > { %10183 = vmatprep.subr.mxu0 %v11742_v1 }
0x2145   : > { %10184 = vmatpush3.msra.mxu0 %v6489_v3 }
0x2146   : > { %10185 = vmatprep.subr.mxu0 %v11742_v1 }
0x2147   : > { %10186 = vmatpush3.msra.mxu0 %v6488_v5 }
0x2148   : > { %10187 = vmatprep.subr.mxu0 %v11742_v1 }
0x2149   : > { %10188 = vmatpush3.msra.mxu0 %v6487_v6 }
0x214a   : > { %10189 = vmatprep.subr.mxu0 %v11742_v1 }
0x214b   : > { %10190 = vmatpush3.msra.mxu0 %v6486_v7 }
0x214c   : > { %10191 = vmatprep.subr.mxu0 %v11742_v1 }
0x214d   : > { %10192 = vmatpush3.msra.mxu0 %v6485_v8 }
0x214e   : > { %10193 = vmatprep.subr.mxu0 %v11742_v1 }
0x214f   : > { %10194 = vmatpush3.msra.mxu0 %v6484_v10 }
0x2150   : > { %10195 = vmatprep.subr.mxu0 %v11742_v1 }
0x2151   : > { %10196 = vmatpush3.msra.mxu0 %v6483_v13 }
0x2152   : > { %10211 = vmatprep.subr.mxu0 %v11742_v1 }
0x2202   : > { %v6356_v37 = vpop.f32.mrf.mxu0 }
0x2203   : > { %v6357_v38 = vadd.f32 %v9496_v36, %v6356_v37  ;;  %v9513_v36 = vld [vmem:[%s13401_s1 + $0x98] sm:$0xff]  ;;  %v9512_v37 = vld [vmem:[%s13401_s1 + $0x90] sm:$0xff] }
0x2204   : > { %v10169_v39 = vpop.f32.mrf.mxu0 }
0x2205   : > { %v12916_v42 = vadd.f32 %v6357_v38, %v12827_v45  ;;  %v6390_v45 = vld [vmem:[#allocation34] sm:$0xff]  ;;  %v9510_v38 = vld [vmem:[%s13401_s1 + $0x80] sm:$0xff]  ;;  %v9509_v39 = vld [vmem:[%s13401_s1 + $0x78] sm:$0xff] }
0x2206   : > { %10177 = vmatpush3.msra.mxu1 %v6390_v45 }
0x2207   : > { %v6363_v43 = vsel %vm1949_vm3, %v12916_v42, 0.0  ;;  %6662 = vmatprep.subr.mxu1 %v9516_v34 }
0x2208   : > { %6364 = vadd.xlane.f32.xlu0 %v6363_v43  ;;  %v9506_v43 = vld [vmem:[%s13401_s1 + $0x60] sm:$0xff] }
0x2291   : > { %v6365_v44 = vpop.xlane.xlu0 %6364 }
0x2292   : > { %v6366_v46 = vmul.f32 0.03125, %v6365_v44 }
0x2294   : > { %v6367_v48 = vsub.f32 %v12916_v42, %v6366_v46 }
0x2296   : > { %v6368_v50 = vmul.f32 %v6367_v48, %v6367_v48 }
0x2298   : > { %v6369_v51 = vsel %vm1949_vm3, %v6368_v50, 0.0 }
0x2299   : > { %6370 = vadd.xlane.f32.xlu1 %v6369_v51  ;;  %v9504_v51 = vld [vmem:[#allocation17 + $0x1] ss:$0 sm:$0xff] }
0x2322   : > { %v6371_v11 = vpop.xlane.xlu1 %6370 }
0x2323   : > { %v6372_v56 = vmul.f32 0.03125, %v6371_v11  ;;  %v9517_v11 = vld [vmem:[%s13401_s1 + $0xb8] sm:$0xff] }
0x2325   : > { %v6373_v57 = vadd.f32 1e-05, %v6372_v56  ;;  %v9514_v56 = vld [vmem:[%s13401_s1 + $0xa0] sm:$0xff] }
0x2327   : > { %10812 = vrsqrt.f32 %v6373_v57  ;;  %v9511_v57 = vld [vmem:[%s13401_s1 + $0x88] sm:$0xff] }
0x2334   : > { %v10813_v58 = vpop.eup %10812 }
0x2335   : > { %v6375_v61 = vmul.f32 %v10813_v58, %v6367_v48  ;;  %v9508_v58 = vld [vmem:[%s13401_s1 + $0x70] sm:$0xff] }
0x2337   : > { %v6382_v63 = vmul.f32 %v9498_v59, %v6375_v61  ;;  %v6618_v59 = vld [vmem:[#allocation14 + $0x3] sm:$0x7] }
0x2338   : > { %v6623_v61 = vrot.slane %v6618_v59, %v12389_v47  ;;  %v6631_v10 = vrot.slane %v6618_v59, %v12408_v60 }
0x2339   : > { %v6389_v0 = vadd.f32 %v9499_v62, %v6382_v63  ;;  %v6627_v62 = vrot.slane %v6618_v59, %v12391_v49 }
0x233b   : > { %10179 = vmatmul.mubr.msk.f32.vlgmr.msra.gmra.mxu1 %vm1949_vm3, %v6389_v0 }
0x233c   : > { %6702 = vmatprep.mubr.f32.mxu1 %v11742_v1  ;;  %6663 = vmatpush1.msra.mxu1 %v9515_v35 }
0x233d   : > { %6664 = vmatprep.subr.mxu1 %v9513_v36 }
0x233e   : > { %6665 = vmatpush1.msra.mxu1 %v9512_v37 }
0x233f   : > { %6666 = vmatprep.subr.mxu1 %v9510_v38 }
0x2340   : > { %6667 = vmatpush1.msra.mxu1 %v9509_v39 }
0x23fb   : > { %v6470_v16 = vpop.f32.mrf.mxu1 }
0x23fc   : > { %v6471_v18 = vadd.f32 %v9500_v14, %v6470_v16 }
0x23fd   : > { %v10180_v19 = vpop.f32.mrf.mxu1 }
0x23fe   : > { %v6475_v20 = vmul.f32 0.044715, %v6471_v18  ;;  %v6474_v24 = vmul.f32 0.5, %v6471_v18 }
0x2400   : > { %v6476_v4 = vmul.f32 %v6475_v20, %v6471_v18  ;;  %v10862_v20 = vld [vmem:[%s12763_s9] sm:$0xff] }
0x2402   : > { %v6477_v21 = vmul.f32 %v6476_v4, %v6471_v18 }
0x2404   : > { %v6478_v22 = vadd.f32 %v6477_v21, %v6471_v18 }
0x2406   : > { %v6479_v23 = vmul.f32 0.7978846, %v6478_v22 }
0x2408   : > { %10814 = vtanh.f32 %v6479_v23 }
0x2415   : > { %v10815_v9 = vpop.eup %10814 }
0x2416   : > { %v6481_v25 = vadd.f32 1.0, %v10815_v9  ;;  %v10863_v9 = vld [vmem:[%s12763_s9 + $0x8] sm:$0xff] }
0x2418   : > { %v6482_v26 = vmul.f32 %v6481_v25, %v6474_v24 }
0x241a   : > { %10198 = vmatmul.mubr.msk.f32.vlgmr.msra.gmra.mxu0 %vm1873_vm1, %v6482_v26 }
0x241b   : > { %10213 = vmatprep.mubr.msk.f32.mxu0 %vm11743_vm0, %v11742_v1 }
0x24da   : > { %v6560_v15 = vpop.f32.mrf.mxu0 }
0x24db   : > { %v6564_v33 = vadd.f32 %v6560_v15, %v12916_v42  ;;  %v9507_v42 = vld [vmem:[%s13401_s1 + $0x68] sm:$0xff] }
0x24dc   : > { %v10199_v27 = vpop.f32.mrf.mxu0  ;;  %6668 = vmatprep.subr.mxu1 %v9507_v42 }
0x24dd   : > { %v12947_v28 = vadd.f32 %v9503_v41, %v6564_v33  ;;  %6669 = vmatpush1.msra.mxu1 %v9506_v43  ;;  %v10864_v41 = vld [vmem:[%s12763_s9 + $0x10] sm:$0xff] }
0x24de   : > { %10200 = vmatprep.subr.mxu1 %v11742_v1 }
0x24df   : > { %v6577_v29 = vsel %vm1949_vm3, %v12947_v28, 0.0 }
0x24e0   : > { %6578 = vadd.xlane.f32.xlu0 %v6577_v29 }
0x2569   : > { %v6579_v40 = vpop.xlane.xlu0 %6578 }
0x256a   : > { %v6580_v17 = vmul.f32 0.03125, %v6579_v40 }
0x256c   : > { %v6581_v30 = vsub.f32 %v12947_v28, %v6580_v17  ;;  %v10865_v17 = vld [vmem:[%s12763_s9 + $0x18] sm:$0xff]  ;;  %s13411_s9 = sld [smem:[#allocation63_spill]] }
0x256e   : > { %v6582_v31 = vmul.f32 %v6581_v30, %v6581_v30 }
0x2570   : > { %v6583_v32 = vsel %vm1949_vm3, %v6582_v31, 0.0 }
0x2571   : > { %6584 = vadd.xlane.f32.xlu0 %v6583_v32 }
0x25fa   : > { %v6585_v44 = vpop.xlane.xlu0 %6584 }
0x25fb   : > { %v6586_v46 = vmul.f32 0.03125, %v6585_v44 }
0x25fd   : > { %v6587_v48 = vadd.f32 1e-05, %v6586_v46 }
0x25ff   : > { %10816 = vrsqrt.f32 %v6587_v48 }
0x260c   : > { %v10817_v50 = vpop.eup %10816 }
0x260d   : > { %v6589_v52 = vmul.f32 %v10817_v50, %v6581_v30 }
0x260f   : > { %v6596_v54 = vmul.f32 %v9504_v51, %v6589_v52 }
0x2611   : > { %v6603_v45 = vadd.f32 %v9505_v53, %v6596_v54 }
0x2613   : > { %9518 = vmatmul.mubr.msk.f32.vlgmr.msra.gmra.mxu1 %vm1949_vm3, %v6603_v45 }
0x2614   : > { %10201 = vmatpush3.msra.mxu1 %v9517_v11  ;;  %10208 = vmatprep.mubr.msk.f32.mxu1 %vm11743_vm0, %v11742_v1 }
0x2615   : > { %10202 = vmatprep.subr.mxu1 %v11742_v1 }
0x2616   : > { %10203 = vmatpush3.msra.mxu1 %v9514_v56 }
0x2617   : > { %10204 = vmatprep.subr.mxu1 %v11742_v1 }
0x2618   : > { %10205 = vmatpush3.msra.mxu1 %v9511_v57 }
0x2619   : > { %10206 = vmatprep.subr.mxu1 %v11742_v1 }
0x261a   : > { %10207 = vmatpush3.msra.mxu1 %v9508_v58 }
0x261b   : > { %10209 = vmatmul.mubr.msk.f32.vlgmr.msra.gmra.mxu1 %vm1949_vm3, %v6603_v45  ;;  %10216 = vmatprep.subr.mxu1 %v11742_v1 }
0x261c   : > { %10218 = vmatprep.mubr.msk.f32.mxu1 %vm11743_vm0, %v11742_v1 }
0x26d3   : > { %v6704_v63 = vpop.f32.mrf.mxu1 }
0x26d4   : > { %v6705_v0 = vadd.f32 %v6704_v63, %v6623_v61 }
0x26d5   : > { %v6706_v2 = vpop.f32.mrf.mxu1 }
0x26d6   : > { %v6707_v3 = vadd.f32 %v6706_v2, %v6627_v62  ;;  %6862 = vrot.lane.b32.xlu0 %v6705_v0, %s13402_s7 }
0x26d8   : > { %6864 = vrot.lane.b32.xlu1 %v6707_v3, %s13402_s7  ;;  %10212 = vmatpush3.xpose.msk.msra.mxu0 %vm2160_vm4, %v6707_v3 }
0x26d9   : > { %10221 = vmatprep.subr.mxu0 %v11742_v1 }
0x26da   : > { %6940 = vrot.lane.b32.xlu0 %v6705_v0, %s13403_s22 }
0x26db   : > { %v6775_v5 = vpop.f32.mrf.mxu1  ;;  %10214 = vmatmul.mubr.msk.f32.vlgmr.msra.gmra.mxu0 %vm2160_vm4, %v6705_v0 }
0x26dc   : > { %6942 = vrot.lane.b32.xlu1 %v6707_v3, %s13403_s22  ;;  %10223 = vmatprep.mubr.msk.f32.mxu0 %vm11743_vm0, %v11742_v1  ;;  %v12997_v14 = vadd.f32 %v6775_v5, %v6631_v10 }
0x26dd   : > { %v10210_v6 = vpop.f32.mrf.mxu1 }
0x26e0   : > { %7020 = vrot.lane.b32.xlu1 %v6707_v3, %s13404_s2 }
0x26e4   : > { %7018 = vrot.lane.b32.xlu1 %v6705_v0, %s13404_s2 }
0x2748   : > { %v6863_v8 = vpop.permute.xlu0 %6862 }
0x274a   : > { %v6865_v7 = vpop.permute.xlu1 %6864 }
0x274b   : > { %10217 = vmatpush3.xpose.msk.msra.mxu1 %vm2160_vm4, %v6865_v7 }
0x274c   : > { %10226 = vmatprep.subr.mxu1 %v11742_v1  ;;  %v6941_v16 = vpop.permute.xlu0 %6940 }
0x274e   : > { %v6943_v13 = vpop.permute.xlu1 %6942  ;;  %10219 = vmatmul.mubr.msk.f32.vlgmr.msra.gmra.mxu1 %vm2160_vm4, %v6863_v8 }
0x274f   : > { %10222 = vmatpush3.xpose.msk.msra.mxu0 %vm2160_vm4, %v6943_v13  ;;  %10228 = vmatprep.mubr.msk.f32.mxu1 %vm11743_vm0, %v11742_v1 }
0x2750   : > { %10231 = vmatprep.subr.mxu0 %v11742_v1 }
0x2752   : > { %v7021_v18 = vpop.permute.xlu1 %7020  ;;  %10224 = vmatmul.mubr.msk.f32.vlgmr.msra.gmra.mxu0 %vm2160_vm4, %v6941_v16 }
0x2753   : > { %10227 = vmatpush3.xpose.msk.msra.mxu1 %vm2160_vm4, %v7021_v18  ;;  %10232 = vmatpush3.msra.mxu0 %v12997_v14 }
0x2754   : > { %10236 = vmatprep.subr.mxu1 %v11742_v1  ;;  %10233 = vmatprep.mubr.msk.f32.mxu0 %vm11743_vm0, %v11742_v1 }
0x2755   : > { %10241 = vmatprep.subr.mxu0 %v11742_v1 }
0x2756   : > { %v7019_v60 = vpop.permute.xlu1 %7018 }
0x2757   : > { %10229 = vmatmul.mubr.msk.f32.vlgmr.msra.gmra.mxu1 %vm2160_vm4, %v7019_v60  ;;  %v9523_v60 = vld [vmem:[%s13407_s5 + $0x38] sm:$0xff] }
0x2758   : > { %10238 = vmatprep.mubr.msk.f32.mxu1 %vm11743_vm0, %v11742_v1 }
0x279b   : > { %v6858_v19 = vpop.f32.mrf.mxu0 }
0x279c   : > { %v7096_v4 = vadd.f32 %v10862_v20, %v6858_v19  ;;  %v9522_v19 = vld [vmem:[%s13407_s5 + $0x30] sm:$0xff]  ;;  %v9521_v20 = vld [vmem:[%s13407_s5 + $0x28] sm:$0xff] }
0x279d   : > { %v10215_v21 = vpop.f32.mrf.mxu0 }
0x279e   : > { %v7100_v22 = vsel %vm2160_vm4, %v7096_v4, -inf  ;;  %v9549_v21 = vld [vmem:[%s13409_s10 + $0x78] sm:$0xff] }
0x279f   : > { %7101 = vmax.xlane.f32.xlu0 %v7100_v22 }
0x280e   : > { %v6936_v23 = vpop.f32.mrf.mxu1 }
0x280f   : > { %v7097_v24 = vadd.f32 %v10863_v9, %v6936_v23 }
0x2810   : > { %v10220_v25 = vpop.f32.mrf.mxu1 }
0x2811   : > { %v7103_v26 = vsel %vm2160_vm4, %v7097_v24, -inf }
0x2812   : > { %7104 = vmax.xlane.f32.xlu1 %v7103_v26  ;;  %v7014_v15 = vpop.f32.mrf.mxu0 }
0x2813   : > { %v7098_v33 = vadd.f32 %v10864_v41, %v7014_v15 }
0x2814   : > { %v10225_v27 = vpop.f32.mrf.mxu0 }
0x2815   : > { %v7106_v29 = vsel %vm2160_vm4, %v7098_v33, -inf }
0x2816   : > { %7107 = vmax.xlane.f32.xlu0 %v7106_v29 }
0x2817   : > { %v7092_v40 = vpop.f32.mrf.mxu1 }
0x2818   : > { %v7099_v30 = vadd.f32 %v10865_v17, %v7092_v40  ;;  %v9548_v40 = vld [vmem:[%s13409_s10 + $0x70] sm:$0xff] }
0x2819   : > { %v10230_v31 = vpop.f32.mrf.mxu1 }
0x281a   : > { %v7109_v32 = vsel %vm2160_vm4, %v7099_v30, -inf  ;;  %v9546_v31 = vld [vmem:[%s13409_s10 + $0x60] sm:$0xff] }
0x281b   : > { %7110 = vmax.xlane.f32.xlu0 %v7109_v32  ;;  %v9545_v32 = vld [vmem:[%s13409_s10 + $0x58] sm:$0xff] }
0x2823   : > { %7218 = vrot.lane.b32.xlu1 %v12997_v14, %s13402_s7 }
0x2828   : > { %v7102_v34 = vpop.xlane.xlu0 %7101 }
0x2829   : > { %v7112_v35 = vsub.f32 %v7096_v4, %v7102_v34  ;;  %v9520_v4 = vld [vmem:[%s13407_s5 + $0x20] sm:$0xff]  ;;  %v9544_v34 = vld [vmem:[%s13409_s10 + $0x50] sm:$0xff] }
0x282b   : > { %v7116_v36 = vmul.f32 1.442695, %v7112_v35  ;;  %v9543_v35 = vld [vmem:[%s13409_s10 + $0x48] sm:$0xff] }
0x282d   : > { %10818 = vpow2.f32 %v7116_v36  ;;  %v9542_v36 = vld [vmem:[%s13409_s10 + $0x40] sm:$0xff] }
0x283a   : > { %v10819_v37 = vpop.eup %10818 }
0x283b   : > { %v7124_v38 = vsel %vm2160_vm4, %v10819_v37, 0.0 }
0x2847   : > { %7125 = vadd.xlane.f32.xlu1 %v7124_v38 }
0x289b   : > { %v7105_v39 = vpop.xlane.xlu1 %7104 }
0x289c   : > { %v7113_v42 = vsub.f32 %v7097_v24, %v7105_v39 }
0x289e   : > { %v7118_v43 = vmul.f32 1.442695, %v7113_v42 }
0x289f   : > { %v7219_v44 = vpop.permute.xlu1 %7218  ;;  %v7108_v46 = vpop.xlane.xlu0 %7107 }
0x28a0   : > { %10820 = vpow2.f32 %v7118_v43  ;;  %v7114_v48 = vsub.f32 %v7098_v33, %v7108_v46  ;;  %10237 = vmatpush3.msra.mxu1 %v7219_v44  ;;  %v7668_v46 = vld [vmem:[#allocation29 + $0x2] sm:$0x3] }
0x28a1   : > { %10246 = vmatprep.subr.mxu1 %v11742_v1 }
0x28a2   : > { %v7120_v50 = vmul.f32 1.442695, %v7114_v48  ;;  %v7673_v48 = vrot.slane %v7668_v46, %v12389_v47  ;;  %v7576_v47 = vld [vmem:[#allocation26 + $0x38] sm:$0xff] }
0x28a4   : > { %10822 = vpow2.f32 %v7120_v50  ;;  %v7111_v51 = vpop.xlane.xlu0 %7110 }
0x28a5   : > { %v7115_v52 = vsub.f32 %v7099_v30, %v7111_v51  ;;  %v9547_v30 = vld [vmem:[%s13409_s10 + $0x68] sm:$0xff] }
0x28a7   : > { %v7122_v53 = vmul.f32 1.442695, %v7115_v52 }
0x28a9   : > { %10824 = vpow2.f32 %v7122_v53 }
0x28ad   : > { %v10821_v54 = vpop.eup %10820 }
0x28ae   : > { %v7127_v45 = vsel %vm2160_vm4, %v10821_v54, 0.0 }
0x28af   : > { %7128 = vadd.xlane.f32.xlu0 %v7127_v45 }
0x28b1   : > { %v10823_v11 = vpop.eup %10822 }
0x28b2   : > { %v7130_v56 = vsel %vm2160_vm4, %v10823_v11, 0.0 }
0x28b3   : > { %7131 = vadd.xlane.f32.xlu1 %v7130_v56  ;;  %v7575_v56 = vld [vmem:[#allocation26 + $0x30] sm:$0xff] }
0x28b6   : > { %v10825_v57 = vpop.eup %10824 }
0x28b7   : > { %v7133_v58 = vsel %vm2160_vm4, %v10825_v57, 0.0 }
0x28b8   : > { %7134 = vadd.xlane.f32.xlu0 %v7133_v58  ;;  %v7573_v58 = vld [vmem:[#allocation26 + $0x20] sm:$0xff] }
0x28c4   : > { %7370 = vrot.lane.b32.xlu1 %v12997_v14, %s13404_s2 }
0x28ce   : > { %7294 = vrot.lane.b32.xlu0 %v12997_v14, %s13403_s22 }
0x28d0   : > { %v7126_v59 = vpop.xlane.xlu1 %7125 }
0x28d1   : > { %10826 = vrcp.f32 %v7126_v59 }
0x28de   : > { %v10827_v61 = vpop.eup %10826 }
0x28df   : > { %v7140_v62 = vmul.f32 %v10827_v61, %v10819_v37  ;;  %v9536_v37 = vld [vmem:[#allocation16 + $0x1] ss:$0 sm:$0xff] }
0x28e1   : > { %10234 = vmatmul.mubr.msk.f32.vlgmr.msra.gmra.mxu0 %vm2160_vm4, %v7140_v62 }
0x28e2   : > { %10243 = vmatprep.mubr.msk.f32.mxu0 %vm11743_vm0, %v11742_v1 }
0x2938   : > { %v7129_v63 = vpop.xlane.xlu0 %7128 }
0x2939   : > { %10828 = vrcp.f32 %v7129_v63 }
0x293c   : > { %v7132_v0 = vpop.xlane.xlu1 %7131 }
0x293d   : > { %10830 = vrcp.f32 %v7132_v0  ;;  %v9538_v0 = vld [vmem:[#allocation20 + $0x1] ss:$0 sm:$0xff] }
0x2940   : > { %v7371_v7 = vpop.permute.xlu1 %7370 }
0x2941   : > { %v7135_v2 = vpop.xlane.xlu0 %7134 }
0x2942   : > { %10832 = vrcp.f32 %v7135_v2 }
0x2945   : > { %v7295_v3 = vpop.permute.xlu0 %7294 }
0x2946   : > { %v10829_v5 = vpop.eup %10828  ;;  %10242 = vmatpush3.msra.mxu0 %v7295_v3  ;;  %v9539_v3 = vld [vmem:[#allocation22 + $0x1] ss:$0 sm:$0xff] }
0x2947   : > { %v7141_v6 = vmul.f32 %v10829_v5, %v10821_v54  ;;  %10251 = vmatprep.subr.mxu0 %v11742_v1 }
0x2949   : > { %10239 = vmatmul.mubr.msk.f32.vlgmr.msra.gmra.mxu1 %vm2160_vm4, %v7141_v6 }
0x294a   : > { %v10831_v8 = vpop.eup %10830  ;;  %10247 = vmatpush3.msra.mxu1 %v7371_v7  ;;  %10248 = vmatprep.mubr.msk.f32.mxu1 %vm11743_vm0, %v11742_v1  ;;  %v9540_v7 = vld [vmem:[#allocation28 + $0x1] ss:$0 sm:$0xff] }
0x294b   : > { %v7142_v10 = vmul.f32 %v10831_v8, %v10823_v11  ;;  %10262 = vmatprep.subr.mxu1 %v11742_v1 }
0x294d   : > { %10244 = vmatmul.mubr.msk.f32.vlgmr.msra.gmra.mxu0 %vm2160_vm4, %v7142_v10 }
0x294e   : > { %10259 = vmatprep.mubr.msk.f32.mxu0 %vm11743_vm0, %v11742_v1  ;;  %10252 = vmatpush3.msra.mxu0 %v9523_v60 }
0x294f   : > { %v10833_v13 = vpop.eup %10832  ;;  %10253 = vmatprep.subr.mxu0 %v11742_v1 }
0x2950   : > { %v7143_v14 = vmul.f32 %v10833_v13, %v10825_v57  ;;  %10254 = vmatpush3.msra.mxu0 %v9522_v19  ;;  %v7574_v57 = vld [vmem:[#allocation26 + $0x28] sm:$0xff] }
0x2951   : > { %10255 = vmatprep.subr.mxu0 %v11742_v1 }
0x2952   : > { %10249 = vmatmul.mubr.msk.f32.vlgmr.msra.gmra.mxu1 %vm2160_vm4, %v7143_v14  ;;  %10256 = vmatpush3.msra.mxu0 %v9521_v20  ;;  %v7677_v14 = vrot.slane %v7668_v46, %v12391_v49 }
0x2953   : > { %10270 = vmatprep.mubr.msk.f32.mxu1 %vm11743_vm0, %v11742_v1  ;;  %10257 = vmatprep.subr.mxu0 %v11742_v1 }
0x2954   : > { %10258 = vmatpush3.msra.mxu0 %v9520_v4  ;;  %10263 = vmatpush3.msra.mxu1 %v7576_v47 }
0x2955   : > { %7704 = vmatprep.subr.mxu0 %v9549_v21  ;;  %10264 = vmatprep.subr.mxu1 %v11742_v1 }
0x2956   : > { %10265 = vmatpush3.msra.mxu1 %v7575_v56 }
0x2957   : > { %10266 = vmatprep.subr.mxu1 %v11742_v1 }
0x2958   : > { %10267 = vmatpush3.msra.mxu1 %v7574_v57 }
0x2959   : > { %10268 = vmatprep.subr.mxu1 %v11742_v1 }
0x295a   : > { %10269 = vmatpush3.msra.mxu1 %v7573_v58 }
0x295b   : > { %10273 = vmatprep.subr.mxu1 %v11742_v1 }
0x29a1   : > { %v7213_v16 = vpop.f32.mrf.mxu0 }
0x29a3   : > { %v10235_v18 = vpop.f32.mrf.mxu0 }
0x2a09   : > { %v7290_v22 = vpop.f32.mrf.mxu1 }
0x2a0a   : > { %7447 = vrot.lane.b32.xlu1 %v7290_v22, %s13395_s26 }
0x2a0b   : > { %v10240_v23 = vpop.f32.mrf.mxu1 }
0x2a0d   : > { %v7366_v9 = vpop.f32.mrf.mxu0 }
0x2a0e   : > { %7451 = vrot.lane.b32.xlu0 %v7366_v9, %s13408_s4 }
0x2a0f   : > { %v10245_v24 = vpop.f32.mrf.mxu0 }
0x2a12   : > { %v7442_v25 = vpop.f32.mrf.mxu1 }
0x2a13   : > { %7455 = vrot.lane.b32.xlu1 %v7442_v25, %s13396_s8 }
0x2a14   : > { %v10250_v26 = vpop.f32.mrf.mxu1 }
0x2a7c   : > { %v7448_v15 = vpop.permute.xlu1 %7447 }
0x2a7d   : > { %v7458_v33 = vsel %vm2160_vm4, %v7213_v16, %v7448_v15 }
0x2a80   : > { %v7452_v41 = vpop.permute.xlu0 %7451 }
0x2a81   : > { %v7459_v27 = vsel %vm2834_vm5, %v7458_v33, %v7452_v41 }
0x2a85   : > { %v7456_v29 = vpop.permute.xlu1 %7455 }
0x2a86   : > { %v7460_v17 = vsel %vm2836_vm6, %v7459_v27, %v7456_v29 }
0x2a87   : > { %10260 = vmatmul.mubr.msk.f32.vlgmr.msra.gmra.mxu0 %vm1949_vm3, %v7460_v17 }
0x2a88   : > { %7705 = vmatpush1.msra.mxu0 %v9548_v40  ;;  %7744 = vmatprep.mubr.f32.mxu0 %v11742_v1 }
0x2a89   : > { %7706 = vmatprep.subr.mxu0 %v9547_v30 }
0x2a8a   : > { %7707 = vmatpush1.msra.mxu0 %v9546_v31 }
0x2a8b   : > { %7708 = vmatprep.subr.mxu0 %v9545_v32 }
0x2a8c   : > { %7709 = vmatpush1.msra.mxu0 %v9544_v34 }
0x2a8d   : > { %7710 = vmatprep.subr.mxu0 %v9543_v35 }
0x2a8e   : > { %7711 = vmatpush1.msra.mxu0 %v9542_v36 }
0x2a8f   : > { %9550 = vmatmul.mubr.msk.f32.vlgmr.msra.gmra.mxu0 %vm1949_vm3, %v12832_v55  ;;  %10283 = vmatprep.subr.mxu0 %v11742_v1 }
0x2a90   : > { %10285 = vmatprep.mubr.msk.f32.mxu0 %vm11743_vm0, %v11742_v1 }
0x2b47   : > { %v7536_v38 = vpop.f32.mrf.mxu0 }
0x2b48   : > { %v7537_v39 = vadd.f32 %v9536_v37, %v7536_v38 }
0x2b49   : > { %v10261_v42 = vpop.f32.mrf.mxu0 }
0x2b4a   : > { %v13071_v43 = vadd.f32 %v7537_v39, %v12947_v28 }
0x2b4c   : > { %v7545_v44 = vsel %vm1949_vm3, %v13071_v43, 0.0 }
0x2b4d   : > { %7546 = vadd.xlane.f32.xlu0 %v7545_v44 }
0x2b4f   : > { %v7746_v55 = vpop.f32.mrf.mxu0 }
0x2b50   : > { %v7747_v50 = vadd.f32 %v7746_v55, %v7673_v48 }
0x2b51   : > { %v7748_v18 = vpop.f32.mrf.mxu0 }
0x2b52   : > { %v7749_v60 = vadd.f32 %v7748_v18, %v7677_v14 }
0x2b63   : > { %7836 = vrot.lane.b32.xlu0 %v7747_v50, %s13402_s7 }
0x2b67   : > { %7914 = vrot.lane.b32.xlu0 %v7747_v50, %s13403_s22 }
0x2bd6   : > { %v7547_v51 = vpop.xlane.xlu0 %7546 }
0x2bd7   : > { %v7548_v52 = vmul.f32 0.03125, %v7547_v51 }
0x2bd9   : > { %v7549_v53 = vsub.f32 %v13071_v43, %v7548_v52 }
0x2bda   : > { %v7837_v54 = vpop.permute.xlu0 %7836 }
0x2bdb   : > { %v7550_v28 = vmul.f32 %v7549_v53, %v7549_v53 }
0x2bdd   : > { %v7551_v45 = vsel %vm1949_vm3, %v7550_v28, 0.0 }
0x2bde   : > { %7552 = vadd.xlane.f32.xlu1 %v7551_v45  ;;  %v7915_v11 = vpop.permute.xlu0 %7914 }
0x2bdf   : > { %10284 = vmatpush3.xpose.msk.msra.mxu0 %vm2160_vm4, %v7915_v11 }
0x2be0   : > { %10293 = vmatprep.subr.mxu0 %v11742_v1 }
0x2bef   : > { %7992 = vrot.lane.b32.xlu1 %v7747_v50, %s13404_s2 }
0x2c67   : > { %v7553_v59 = vpop.xlane.xlu1 %7552 }
0x2c68   : > { %v7554_v61 = vmul.f32 0.03125, %v7553_v59 }
0x2c6a   : > { %v7555_v62 = vadd.f32 1e-05, %v7554_v61 }
0x2c6b   : > { %v7993_v16 = vpop.permute.xlu1 %7992 }
0x2c6c   : > { %10834 = vrsqrt.f32 %v7555_v62 }
0x2c79   : > { %v10835_v63 = vpop.eup %10834 }
0x2c7a   : > { %v7557_v2 = vmul.f32 %v10835_v63, %v7549_v53 }
0x2c7c   : > { %v7564_v5 = vmul.f32 %v9538_v0, %v7557_v2 }
0x2c7e   : > { %v7571_v6 = vadd.f32 %v9539_v3, %v7564_v5  ;;  %v7755_v3 = vld [vmem:[#allocation31 + $0x38] sm:$0xff] }
0x2c80   : > { %10271 = vmatmul.mubr.msk.f32.vlgmr.msra.gmra.mxu1 %vm1949_vm3, %v7571_v6 }
0x2c81   : > { %10274 = vmatpush3.xpose.msk.msra.mxu1 %vm2160_vm4, %v7747_v50  ;;  %10275 = vmatprep.mubr.msk.f32.mxu1 %vm11743_vm0, %v11742_v1 }
0x2c82   : > { %10278 = vmatprep.subr.mxu1 %v11742_v1 }
0x2d40   : > { %v7654_v8 = vpop.f32.mrf.mxu1 }
0x2d41   : > { %v7655_v10 = vadd.f32 %v9540_v7, %v7654_v8  ;;  %v7754_v7 = vld [vmem:[#allocation31 + $0x30] sm:$0xff]  ;;  %v7753_v8 = vld [vmem:[#allocation31 + $0x28] sm:$0xff] }
0x2d42   : > { %v10272_v13 = vpop.f32.mrf.mxu1 }
0x2d43   : > { %7834 = vrot.lane.b32.xlu1 %v7655_v10, %s13402_s7  ;;  %7912 = vrot.lane.b32.xlu0 %v7655_v10, %s13403_s22 }
0x2d44   : > { %10276 = vmatmul.mubr.msk.f32.vlgmr.msra.gmra.mxu1 %vm2160_vm4, %v7655_v10 }
0x2d45   : > { %10279 = vmatpush3.xpose.msk.msra.mxu1 %vm2160_vm4, %v7837_v54  ;;  %10280 = vmatprep.mubr.msk.f32.mxu1 %vm11743_vm0, %v11742_v1 }
0x2d46   : > { %10288 = vmatprep.subr.mxu1 %v11742_v1 }
0x2d47   : > { %7990 = vrot.lane.b32.xlu1 %v7655_v10, %s13404_s2  ;;  %v7752_v10 = vld [vmem:[#allocation31 + $0x20] sm:$0xff] }
0x2db5   : > { %v7835_v19 = vpop.permute.xlu1 %7834  ;;  %v7913_v20 = vpop.permute.xlu0 %7912 }
0x2db6   : > { %10281 = vmatmul.mubr.msk.f32.vlgmr.msra.gmra.mxu1 %vm2160_vm4, %v7835_v19  ;;  %10286 = vmatmul.mubr.msk.f32.vlgmr.msra.gmra.mxu0 %vm2160_vm4, %v7913_v20 }
0x2db7   : > { %10289 = vmatpush3.xpose.msk.msra.mxu1 %vm2160_vm4, %v7993_v16  ;;  %10294 = vmatpush3.msra.mxu0 %v7749_v60 }
0x2db8   : > { %10290 = vmatprep.mubr.msk.f32.mxu1 %vm11743_vm0, %v11742_v1  ;;  %10298 = vmatprep.subr.mxu1 %v11742_v1 }
0x2db9   : > { %v7991_v4 = vpop.permute.xlu1 %7990  ;;  %10295 = vmatprep.mubr.msk.f32.mxu0 %vm11743_vm0, %v11742_v1  ;;  %10303 = vmatprep.subr.mxu0 %v11742_v1 }
0x2dba   : > { %10291 = vmatmul.mubr.msk.f32.vlgmr.msra.gmra.mxu1 %vm2160_vm4, %v7991_v4 }
0x2dbb   : > { %10300 = vmatprep.mubr.msk.f32.mxu1 %vm11743_vm0, %v11742_v1 }
0x2e04   : > { %v7830_v49 = vpop.f32.mrf.mxu1 }
0x2e05   : > { %v8068_v21 = vsel %vm2160_vm4, %v7830_v49, -inf }
0x2e06   : > { %8069 = vmax.xlane.f32.xlu0 %v8068_v21  ;;  %v10277_v22 = vpop.f32.mrf.mxu1 }
0x2e76   : > { %v7908_v23 = vpop.f32.mrf.mxu1  ;;  %v7986_v9 = vpop.f32.mrf.mxu0 }
0x2e77   : > { %v8074_v24 = vsel %vm2160_vm4, %v7986_v9, -inf  ;;  %v8071_v25 = vsel %vm2160_vm4, %v7908_v23, -inf }
0x2e78   : > { %v10287_v26 = vpop.f32.mrf.mxu0  ;;  %8075 = vmax.xlane.f32.xlu0 %v8074_v24  ;;  %8072 = vmax.xlane.f32.xlu1 %v8071_v25  ;;  %v10282_v15 = vpop.f32.mrf.mxu1 }
0x2e7a   : > { %v8064_v41 = vpop.f32.mrf.mxu1 }
0x2e7b   : > { %v8077_v33 = vsel %vm2160_vm4, %v8064_v41, -inf }
0x2e7c   : > { %8078 = vmax.xlane.f32.xlu0 %v8077_v33  ;;  %v10292_v27 = vpop.f32.mrf.mxu1 }
0x2e89   : > { %8186 = vrot.lane.b32.xlu1 %v7749_v60, %s13402_s7 }
0x2e8f   : > { %v8070_v29 = vpop.xlane.xlu0 %8069 }
0x2e90   : > { %v8080_v40 = vsub.f32 %v7830_v49, %v8070_v29 }
0x2e92   : > { %v8084_v17 = vmul.f32 1.442695, %v8080_v40 }
0x2e94   : > { %10836 = vpow2.f32 %v8084_v17 }
0x2ea1   : > { %v10837_v30 = vpop.eup %10836 }
0x2ea2   : > { %v8092_v31 = vsel %vm2160_vm4, %v10837_v30, 0.0 }
0x2ead   : > { %8093 = vadd.xlane.f32.xlu1 %v8092_v31  ;;  %v8543_v31 = vld [vmem:[#allocation34 + $0x30] sm:$0xff] }
0x2f01   : > { %v8076_v32 = vpop.xlane.xlu0 %8075  ;;  %v8073_v34 = vpop.xlane.xlu1 %8072 }
0x2f02   : > { %v8082_v35 = vsub.f32 %v7986_v9, %v8076_v32  ;;  %v8081_v36 = vsub.f32 %v7908_v23, %v8073_v34  ;;  %v9563_v9 = vld [vmem:[#allocation32 + $0x1] ss:$0 sm:$0xff]  ;;  %v8542_v32 = vld [vmem:[#allocation34 + $0x28] sm:$0xff] }
0x2f04   : > { %v8088_v37 = vmul.f32 1.442695, %v8082_v35  ;;  %v8086_v38 = vmul.f32 1.442695, %v8081_v36 }
0x2f05   : > { %v8187_v39 = vpop.permute.xlu1 %8186  ;;  %v8079_v42 = vpop.xlane.xlu0 %8078 }
0x2f06   : > { %10838 = vpow2.f32 %v8088_v37  ;;  %v8083_v44 = vsub.f32 %v8064_v41, %v8079_v42  ;;  %10299 = vmatpush3.msra.mxu1 %v8187_v39  ;;  %v9566_v42 = vld [vmem:[#allocation25 + $0x1] ss:$0 sm:$0xff] }
0x2f07   : > { %10840 = vpow2.f32 %v8086_v38  ;;  %10308 = vmatprep.subr.mxu1 %v11742_v1  ;;  %v9565_v38 = vld [vmem:[#allocation23 + $0x1] ss:$0 sm:$0xff] }
0x2f08   : > { %v8090_v46 = vmul.f32 1.442695, %v8083_v44 }
0x2f0a   : > { %10842 = vpow2.f32 %v8090_v46 }
0x2f13   : > { %v10839_v48 = vpop.eup %10838 }
0x2f14   : > { %v10841_v55 = vpop.eup %10840  ;;  %v8098_v50 = vsel %vm2160_vm4, %v10839_v48, 0.0 }
0x2f15   : > { %8099 = vadd.xlane.f32.xlu1 %v8098_v50  ;;  %v8095_v51 = vsel %vm2160_vm4, %v10841_v55, 0.0  ;;  %v9574_v50 = vld [vmem:[%s13410_s3 + $0x68] sm:$0xff] }
0x2f16   : > { %8096 = vadd.xlane.f32.xlu0 %v8095_v51  ;;  %v9573_v51 = vld [vmem:[%s13410_s3 + $0x60] sm:$0xff] }
0x2f17   : > { %v10843_v52 = vpop.eup %10842 }
0x2f18   : > { %v8101_v53 = vsel %vm2160_vm4, %v10843_v52, 0.0 }
0x2f1a   : > { %8102 = vadd.xlane.f32.xlu0 %v8101_v53  ;;  %v9571_v53 = vld [vmem:[%s13410_s3 + $0x50] sm:$0xff] }
0x2f26   : > { %8338 = vrot.lane.b32.xlu1 %v7749_v60, %s13404_s2 }
0x2f30   : > { %8262 = vrot.lane.b32.xlu0 %v7749_v60, %s13403_s22  ;;  %s9584_s22 = sshll.u32 %s12017_s28, 7 }
0x2f36   : > { %v8094_v54 = vpop.xlane.xlu1 %8093 }
0x2f37   : > { %10844 = vrcp.f32 %v8094_v54  ;;  %v9570_v54 = vld [vmem:[%s13410_s3 + $0x48] sm:$0xff] }
0x2f44   : > { %v10845_v28 = vpop.eup %10844 }
0x2f45   : > { %v8108_v45 = vmul.f32 %v10845_v28, %v10837_v30  ;;  %v8544_v30 = vld [vmem:[#allocation34 + $0x38] sm:$0xff] }
0x2f46   : > { %v9569_v28 = vld [vmem:[%s13410_s3 + $0x40] sm:$0xff] }
0x2f47   : > { %10296 = vmatmul.mubr.msk.f32.vlgmr.msra.gmra.mxu0 %vm2160_vm4, %v8108_v45  ;;  %v9567_v45 = vld [vmem:[#allocation35 + $0x1] ss:$0 sm:$0xff] }
0x2f48   : > { %10305 = vmatprep.mubr.msk.f32.mxu0 %vm11743_vm0, %v11742_v1 }
0x2f9e   : > { %v8100_v11 = vpop.xlane.xlu1 %8099 }
0x2f9f   : > { %10846 = vrcp.f32 %v8100_v11  ;;  %v8097_v47 = vpop.xlane.xlu0 %8096 }
0x2fa0   : > { %10848 = vrcp.f32 %v8097_v47 }
0x2fa2   : > { %v8339_v63 = vpop.permute.xlu1 %8338 }
0x2fa3   : > { %v8103_v56 = vpop.xlane.xlu0 %8102 }
0x2fa4   : > { %10850 = vrcp.f32 %v8103_v56 }
0x2fa7   : > { %v8263_v57 = vpop.permute.xlu0 %8262 }
0x2fa8   : > { %10304 = vmatpush3.msra.mxu0 %v8263_v57 }
0x2fa9   : > { %10313 = vmatprep.subr.mxu0 %v11742_v1 }
0x2fac   : > { %v10847_v58 = vpop.eup %10846 }
0x2fad   : > { %v10849_v59 = vpop.eup %10848  ;;  %v8110_v61 = vmul.f32 %v10847_v58, %v10839_v48  ;;  %v9576_v48 = vld [vmem:[%s13410_s3 + $0x78] sm:$0xff] }
0x2fae   : > { %v8109_v62 = vmul.f32 %v10849_v59, %v10841_v55  ;;  %v9575_v55 = vld [vmem:[%s13410_s3 + $0x70] sm:$0xff] }
0x2faf   : > { %10306 = vmatmul.mubr.msk.f32.vlgmr.msra.gmra.mxu0 %vm2160_vm4, %v8110_v61 }
0x2fb0   : > { %10301 = vmatmul.mubr.msk.f32.vlgmr.msra.gmra.mxu1 %vm2160_vm4, %v8109_v62  ;;  %10321 = vmatprep.mubr.msk.f32.mxu0 %vm11743_vm0, %v11742_v1 }
0x2fb1   : > { %v10851_v0 = vpop.eup %10850  ;;  %10309 = vmatpush3.msra.mxu1 %v8339_v63  ;;  %10310 = vmatprep.mubr.msk.f32.mxu1 %vm11743_vm0, %v11742_v1 }
0x2fb2   : > { %v8111_v2 = vmul.f32 %v10851_v0, %v10843_v52  ;;  %10324 = vmatprep.subr.mxu1 %v11742_v1  ;;  %10314 = vmatpush3.msra.mxu0 %v7755_v3  ;;  %v9572_v52 = vld [vmem:[%s13410_s3 + $0x58] sm:$0xff] }
0x2fb3   : > { %10315 = vmatprep.subr.mxu0 %v11742_v1 }
0x2fb4   : > { %10311 = vmatmul.mubr.msk.f32.vlgmr.msra.gmra.mxu1 %vm2160_vm4, %v8111_v2  ;;  %10316 = vmatpush3.msra.mxu0 %v7754_v7 }
0x2fb5   : > { %10332 = vmatprep.mubr.msk.f32.mxu1 %vm11743_vm0, %v11742_v1  ;;  %10317 = vmatprep.subr.mxu0 %v11742_v1 }
0x2fb6   : > { %10318 = vmatpush3.msra.mxu0 %v7753_v8  ;;  %10325 = vmatpush3.msra.mxu1 %v8544_v30 }
0x2fb7   : > { %10319 = vmatprep.subr.mxu0 %v11742_v1  ;;  %10326 = vmatprep.subr.mxu1 %v11742_v1 }
0x2fb8   : > { %10320 = vmatpush3.msra.mxu0 %v7752_v10  ;;  %10327 = vmatpush3.msra.mxu1 %v8543_v31 }
0x2fb9   : > { %10335 = vmatprep.subr.mxu0 %v11742_v1  ;;  %10328 = vmatprep.subr.mxu1 %v11742_v1 }
0x2fba   : > { %10329 = vmatpush3.msra.mxu1 %v8542_v32 }
0x2fbb   : > { %10330 = vmatprep.subr.mxu1 %v11742_v1 }
0x3007   : > { %v8181_v5 = vpop.f32.mrf.mxu0 }
0x3009   : > { %v10297_v6 = vpop.f32.mrf.mxu0 }
0x300a   : > { %v9578_v6 = vld [vmem:[#allocation37 + $0x1] ss:$0 sm:$0xff] }
0x306f   : > { %v8334_v13 = vpop.f32.mrf.mxu0 }
0x3070   : > { %v8258_v14 = vpop.f32.mrf.mxu1  ;;  %8419 = vrot.lane.b32.xlu0 %v8334_v13, %s13408_s4  ;;  %s8884_s4 = scalar_lea.hbm %s11989_s6, %s9584_s22 }
0x3071   : > { %8415 = vrot.lane.b32.xlu1 %v8258_v14, %s13395_s26  ;;  %v10307_v16 = vpop.f32.mrf.mxu0 }
0x3072   : > { %v10302_v18 = vpop.f32.mrf.mxu1 }
0x3074   : > { %v8410_v60 = vpop.f32.mrf.mxu1 }
0x3075   : > { %8423 = vrot.lane.b32.xlu1 %v8410_v60, %s13396_s8  ;;  %s1851_s8 = scalar_lea.vmem %s13411_s9, %s12328_s16  ;;  %s1822_s16 = sand.u32 1, %s11650_s0  }
0x3076   : > { %v10312_v19 = vpop.f32.mrf.mxu1  ;;  %s9368_s2 = sshll.u32 %s1822_s16, 3  ;;  %s8870_s9 = scalar_lea.sflag [#allocation4], %s1822_s16 }
0x3077   : > { %s1824_s26 = scalar_lea.vmem [#allocation43], %s9368_s2  ;;  %s11750_s2 = smov [#allocation43]  }
0x3078   : > { %s8886_s7 = sshll.u32 %s1824_s26, 4  ;;  %s11546_s1 = sshll.u32 %s11750_s2, 4  ;;  %s8887_s7 = int_to_ptr.vmem [resolvable:$true] %s8886_s7  ;;  %s11547_s1 = int_to_ptr.vmem [resolvable:$false] %s11546_s1 }
0x3079   : > { %s11548_s3 = scalar_lea.vmem %s11547_s1, 256  ;;  %p11549_p12 = scmp.lt.s32.totalorder %s8887_s7, %s11547_s1 }
0x30e2   : > { %v8420_v4 = vpop.permute.xlu0 %8419 }
0x30e3   : > { %v8416_v20 = vpop.permute.xlu1 %8415 }
0x30e4   : > { %v8426_v49 = vsel %vm2160_vm4, %v8181_v5, %v8416_v20  ;;  %v13187_v20 = vld [vmem:[%s1851_s8] sm:$0xff]  ;;  %s11542_s8 = scalar_lea.vmem %s8887_s7, 128 }
0x30e5   : > { %v8427_v21 = vsel %vm2834_vm5, %v8426_v49, %v8420_v4  ;;  %v8759_v4 = vld [vmem:[#allocation41 + $0x18] sm:$0xff]  ;;  %v8758_v49 = vld [vmem:[#allocation41 + $0x10] sm:$0xff]  ;;  %p11543_p13 = scmp.ne.s32.totalorder %s8887_s7, %s11542_s8  ;;  %p11550_p3 = scmp.lt.s32.totalorder %s11548_s3, %s11542_s8 }
0x30e7   : > { %v8424_v22 = vpop.permute.xlu1 %8423  ;;  %p11544_p11 = pnand %p11543_p13, %p13412_p0  ;;  %p11551_p9 = por %p11550_p3, %p11549_p12 }
0x30e8   : > { %v8428_v23 = vsel %vm2836_vm6, %v8427_v21, %v8424_v22  ;;  %v8757_v21 = vld [vmem:[#allocation41 + $0x8] sm:$0xff]  ;;  %v8756_v22 = vld [vmem:[#allocation41] sm:$0xff] }
0x30e9   : > { %10322 = vmatmul.mubr.msk.f32.vlgmr.msra.gmra.mxu0 %vm1949_vm3, %v8428_v23  ;;  %p11545_p1 = pneg %p11544_p11 }
0x30ea   : > { %10351 = vmatprep.mubr.msk.f32.mxu0 %vm11743_vm0, %v11742_v1  ;;  %10336 = vmatpush3.msra.mxu0 %v9576_v48 }
0x30eb   : > { %10337 = vmatprep.subr.mxu0 %v11742_v1  ;;  %p11552_p4 = pnand %p11551_p9, %p11545_p1 }
0x30ec   : > { %10338 = vmatpush3.msra.mxu0 %v9575_v55 }
0x30ed   : > { %10339 = vmatprep.subr.mxu0 %v11742_v1 }
0x30ee   : > { %10340 = vmatpush3.msra.mxu0 %v9574_v50 }
0x30ef   : > { %10341 = vmatprep.subr.mxu0 %v11742_v1 }
0x30f0   : > { %10342 = vmatpush3.msra.mxu0 %v9573_v51 }
0x30f1   : > { %10343 = vmatprep.subr.mxu0 %v11742_v1 }
0x30f2   : > { %10344 = vmatpush3.msra.mxu0 %v9572_v52 }
0x30f3   : > { %10345 = vmatprep.subr.mxu0 %v11742_v1 }
0x30f4   : > { %10346 = vmatpush3.msra.mxu0 %v9571_v53 }
0x30f5   : > { %10347 = vmatprep.subr.mxu0 %v11742_v1 }
0x30f6   : > { %10348 = vmatpush3.msra.mxu0 %v9570_v54 }
0x30f7   : > { %10349 = vmatprep.subr.mxu0 %v11742_v1 }
0x30f8   : > { %10350 = vmatpush3.msra.mxu0 %v9569_v28 }
0x31a9   : > { %v8504_v24 = vpop.f32.mrf.mxu0 }
0x31aa   : > { %v8505_v25 = vadd.f32 %v9563_v9, %v8504_v24 }
0x31ab   : > { %v10323_v26 = vpop.f32.mrf.mxu0 }
0x31ac   : > { %v13153_v15 = vadd.f32 %v8505_v25, %v13071_v43  ;;  %v8541_v43 = vld [vmem:[#allocation34 + $0x20] sm:$0xff] }
0x31ad   : > { %10331 = vmatpush3.msra.mxu1 %v8541_v43  ;;  %v9579_v26 = vld [vmem:[#allocation38] ss:$0 sm:$0xff] }
0x31ae   : > { %v8513_v41 = vsel %vm1949_vm3, %v13153_v15, 0.0  ;;  %10354 = vmatprep.subr.mxu1 %v11742_v1 }
0x31af   : > { %8514 = vadd.xlane.f32.xlu0 %v8513_v41  ;;  %v9580_v41 = vld [vmem:[#allocation40] ss:$0 sm:$0xff] }
0x3238   : > { %v8515_v33 = vpop.xlane.xlu0 %8514 }
0x3239   : > { %v8516_v27 = vmul.f32 0.03125, %v8515_v33 }
0x323b   : > { %v8517_v29 = vsub.f32 %v13153_v15, %v8516_v27 }
0x323d   : > { %v8518_v40 = vmul.f32 %v8517_v29, %v8517_v29 }
0x323f   : > { %v8519_v17 = vsel %vm1949_vm3, %v8518_v40, 0.0 }
0x3240   : > { %8520 = vadd.xlane.f32.xlu1 %v8519_v17 }
0x32c9   : > { %v8521_v34 = vpop.xlane.xlu1 %8520 }
0x32ca   : > { %v8522_v35 = vmul.f32 0.03125, %v8521_v34 }
0x32cc   : > { %v8523_v36 = vadd.f32 1e-05, %v8522_v35 }
0x32ce   : > { %10852 = vrsqrt.f32 %v8523_v36 }
0x32db   : > { %v10853_v37 = vpop.eup %10852 }
0x32dc   : > { %v8525_v39 = vmul.f32 %v10853_v37, %v8517_v29 }
0x32de   : > { %v8532_v44 = vmul.f32 %v9565_v38, %v8525_v39 }
0x32e0   : > { %v8539_v46 = vadd.f32 %v9566_v42, %v8532_v44 }
0x32e2   : > { %10333 = vmatmul.mubr.msk.f32.vlgmr.msra.gmra.mxu1 %vm1949_vm3, %v8539_v46 }
0x32e3   : > { %10362 = vmatprep.mubr.msk.f32.mxu1 %vm11743_vm0, %v11742_v1  ;;  %10355 = vmatpush3.msra.mxu1 %v8759_v4 }
0x32e4   : > { %10356 = vmatprep.subr.mxu1 %v11742_v1 }
0x32e5   : > { %10357 = vmatpush3.msra.mxu1 %v8758_v49 }
0x32e6   : > { %10358 = vmatprep.subr.mxu1 %v11742_v1 }
0x32e7   : > { %10359 = vmatpush3.msra.mxu1 %v8757_v21 }
0x32e8   : > { %10360 = vmatprep.subr.mxu1 %v11742_v1 }
0x32e9   : > { %10361 = vmatpush3.msra.mxu1 %v8756_v22 }
0x33a2   : > { %v8622_v11 = vpop.f32.mrf.mxu1 }
0x33a3   : > { %v8623_v47 = vadd.f32 %v9567_v45, %v8622_v11 }
0x33a4   : > { %v10334_v56 = vpop.f32.mrf.mxu1 }
0x33a5   : > { %v8627_v57 = vmul.f32 0.044715, %v8623_v47  ;;  %v8626_v0 = vmul.f32 0.5, %v8623_v47 }
0x33a7   : > { %v8628_v58 = vmul.f32 %v8627_v57, %v8623_v47 }
0x33a9   : > { %v8629_v59 = vmul.f32 %v8628_v58, %v8623_v47 }
0x33ab   : > { %v8630_v61 = vadd.f32 %v8629_v59, %v8623_v47 }
0x33ad   : > { %v8631_v62 = vmul.f32 0.7978846, %v8630_v61 }
0x33af   : > { %10854 = vtanh.f32 %v8631_v62 }
0x33bc   : > { %v10855_v63 = vpop.eup %10854 }
0x33bd   : > { %v8633_v2 = vadd.f32 1.0, %v10855_v63 }
0x33bf   : > { %v8634_v3 = vmul.f32 %v8633_v2, %v8626_v0 }
0x33c1   : > { %10352 = vmatmul.mubr.msk.f32.vlgmr.msra.gmra.mxu0 %vm1873_vm1, %v8634_v3 }
0x3481   : > { %v8713_v5 = vpop.f32.mrf.mxu0 }
0x3482   : > { %v8717_v7 = vadd.f32 %v8713_v5, %v13153_v15 }
0x3483   : > { %v10353_v8 = vpop.f32.mrf.mxu0 }
0x3484   : > { %v8726_v10 = vadd.f32 %v9578_v6, %v8717_v7 }
0x3486   : > { %v8729_v13 = vsel %vm1949_vm3, %v8726_v10, 0.0 }
0x3487   : > { %8730 = vadd.xlane.f32.xlu0 %v8729_v13 }
0x3510   : > { %v8731_v14 = vpop.xlane.xlu0 %8730 }
0x3511   : > { %v8732_v16 = vmul.f32 0.03125, %v8731_v14 }
0x3513   : > { %v8733_v18 = vsub.f32 %v8726_v10, %v8732_v16 }
0x3515   : > { %v8734_v60 = vmul.f32 %v8733_v18, %v8733_v18 }
0x3517   : > { %v8735_v19 = vsel %vm1949_vm3, %v8734_v60, 0.0 }
0x3518   : > { %8736 = vadd.xlane.f32.xlu0 %v8735_v19 }
0x352e   : > { %8848 = vperm.xlu0 %10729, %v13187_v20  }
0x35a1   : > { %v8737_v23 = vpop.xlane.xlu0 %8736 }
0x35a2   : > { %v8738_v9 = vmul.f32 0.03125, %v8737_v23 }
0x35a4   : > { %v8739_v24 = vadd.f32 1e-05, %v8738_v9 }
0x35a6   : > { %10856 = vrsqrt.f32 %v8739_v24 }
0x35a9   : > { %v8849_v34 = vpop.permute.xlu0 %8848 }
0x35aa   : > { %vm8850_vm9 = vcmp.eq.s32.totalorder %v12351_v12, %v8849_v34 }
0x35b3   : > { %v10857_v25 = vpop.eup %10856 }
0x35b4   : > { %v8741_v15 = vmul.f32 %v10857_v25, %v8733_v18 }
0x35b6   : > { %v8748_v33 = vmul.f32 %v9579_v26, %v8741_v15 }
0x35b8   : > { %v8755_v27 = vadd.f32 %v9580_v41, %v8748_v33 }
0x35ba   : > { %10363 = vmatmul.mubr.msk.f32.vlgmr.msra.gmra.mxu1 %vm1949_vm3, %v8755_v27 }
0x367a   : > { %v8829_v29 = vpop.f32.mrf.mxu1 }
0x367b   : > { %8833 = vst [vmem:[%s1824_s26] sm:$0xff] %v8829_v29  ;;  %v8836_v40 = vsel %vm8835_vm8, %v8829_v29, -1e+09 }
0x367c   : > { %8837 = vmax.xlane.f32.xlu1 %v8836_v40  ;;  %v10364_v17 = vpop.f32.mrf.mxu1  ;;  %v8851_v35 = vsel %vm8850_vm9, %v8836_v40, 0.0 }
0x3705   : > { %v8838_v30 = vpop.xlane.xlu1 %8837 }
0x3706   : > { %v8839_v31 = vsub.f32 %v8836_v40, %v8838_v30 }
0x3708   : > { %v8840_v32 = vmul.f32 1.442695, %v8839_v31 }
0x370a   : > { %10858 = vpow2.f32 %v8840_v32 }
0x3717   : > { %v10859_v43 = vpop.eup %10858 }
0x3718   : > { %8842 = vadd.xlane.f32.xlu1 %v10859_v43 }
0x371c   : > { %8852 = vadd.xlane.f32.xlu1 %v8851_v35 }
0x371d   : > { %11555 = shalt.err (!%p11552_p4)
}
0x371e   : > { %s11556_s5 = scalar_lea.hbm %s8884_s4, 128  ;;  %s11560_s28 = scalar_lea.hbm %s11989_s6, 256 }
0x371f   : > { %p11557_p2 = scmp.ne.s32.totalorder %s8884_s4, %s11556_s5  ;;  %p11561_p7 = scmp.lt.s32.totalorder %s8884_s4, %s11989_s6 }
0x3720   : > { %p11562_p10 = scmp.lt.s32.totalorder %s11560_s28, %s11556_s5 }
0x3721   : > { %p11558_p6 = pnand %p11557_p2, %p13412_p0 }
0x3722   : > { %p11563_p8 = por %p11562_p10, %p11561_p7 }
0x3723   : > { %p11559_p5 = pneg %p11558_p6 }
0x3725   : > { %p11564_p13 = pnand %p11563_p8, %p11559_p5 }
0x3727   : > { %11567 = shalt.err (!%p11564_p13)
}
0x3728   : > { %10469 = dma.vmem_to_hbm [thread:$0]  (%p13412_p0), %s8887_s7, 128, %s8884_s4, %s8870_s9   ;;  %vm8854_vm10 = vcmp.ge.s32.totalorder %v13187_v20, 0  ;;  %vm8859_vm11 = vcmask 7168   ;;  %vm8867_vm12 = vcmask 0  }
0x3729   : > { %v9582_v39 = vsel %vm8854_vm10, 1.0, %v11742_v1  ;;  %s1854_s15 = scalar_lea.vmem %s11994_s27, %s12324_s23 }
0x37a1   : > { %v8843_v12 = vpop.xlane.xlu1 %8842 }
0x37a2   : > { %10860 = vlog2.f32 %v8843_v12 }
0x37a5   : > { %v8853_v42 = vpop.xlane.xlu1 %8852 }
0x37af   : > { %v10861_v36 = vpop.eup %10860 }
0x37b0   : > { %v8845_v37 = vmul.f32 0.6931472, %v10861_v36 }
0x37b2   : > { %v8846_v38 = vadd.f32 %v8845_v37, %v8838_v30 }
0x37b4   : > { %v8857_v44 = vsub.f32 %v8846_v38, %v8853_v42 }
0x37b6   : > { %v8858_v46 = vmul.f32 %v9582_v39, %v8857_v44 }
0x37b8   : > { %v8860_v48 = vsel %vm8859_vm11, %v8858_v46, 0.0 }
0x37b9   : > { %v8861_v55 = vrot.slane %v8860_v48, 4 }
0x37bb   : > { %v8862_v50 = vadd.f32 %v8861_v55, %v8860_v48 }
0x37bd   : > { %v8863_v51 = vrot.slane %v8862_v50, 2 }
0x37bf   : > { %v8864_v52 = vadd.f32 %v8863_v51, %v8862_v50 }
0x37c1   : > { %v8865_v53 = vrot.slane %v8864_v52, 1 }
0x37c3   : > { %v8866_v54 = vadd.f32 %v8865_v53, %v8864_v52 }
0x37c5   : > { %8868 = vst.msk [vmem:[%s1854_s15] sm:$0x1] %vm8867_vm12, %v8866_v54 }
0x37c6 PF: > { %s13413_s3 = sld [smem:[#allocation97_spill]] }
0x37c7   : > { %s13414_s1 = sld [smem:[#allocation95_spill]] }
0x37c8   : > { %s13415_s5 = sld [smem:[#allocation100_spill]] }
0x37cc   : > { %p10606_p0 = scmp.ge.s32.totalorder %s13413_s3, 2 }
0x37cd   : > { %s8901_s16 = sand.u32 1, %s13414_s1  }
0x37ce   : > { %p13416_p11 = scmp.ne.s32.totalorder %s13415_s5, 0  ;;  %s8902_s26 = scalar_lea.sflag [#allocation4], %s8901_s16 }
0x37d0   : > { %p10551_p1 = pnand %p10606_p0, %p13416_p11 }
0x37d2   : > { %p10552_p12 = pneg %p10551_p1 }
0x37d4   : > { %11641 = dma.done.wait (%p10552_p12), %s8902_s26, 128  }
0x37d5   : > { %11643 = vsyncadd (%p10552_p12), %s8902_s26, 4294967168  ;;  %s13417_s26 = sld [smem:[#allocation98_spill]]  ;;  %s13420_s22 = smov %s11650_s0 }
0x37d6   : > { %s13418_s7 = sld [smem:[#allocation96_spill]] }
0x37d7   : > { %s13419_s23 = sld [smem:[#allocation99_spill]] }
0x37db   : > { %p120_p3 = scmp.ge.s32.totalorder %s13417_s26, 4  }
0x37dc   : > { %s13421_s0 = smov %s13418_s7 }
0x37dd   :  { %122 = sbr.rel (!%p120_p3) target bundleno = 103 (0x67), region = 447 }
0x37e2   :  { %8913 = vsyncpa [#allocation3], 1 }
0x37e3   :  { %8915 = vsyncpa [#allocation3 + $0x1], 1 }
0x37e4   :  { %8916 = vsyncpa [#allocation6], 1 }
0x37e5   :  { %8917 = vsyncpa [#allocation9], 1 }
0x37e6   :  { %8918 = vsyncpa [#allocation12], 1 }
0x37e7   :  { %8919 = vsyncpa [#allocation15], 1 }
0x37e8   :  { %8920 = vsyncpa [#allocation18], 1 }
0x37e9   :  { %8921 = vsyncpa [#allocation21], 1 }
0x37ea   :  { %8922 = vsyncpa [#allocation24], 1 }
0x37eb   :  { %8923 = vsyncpa [#allocation27], 1 }
0x37ec   :  { %8924 = vsyncpa [#allocation30], 1 }
0x37ed   :  { %8925 = vsyncpa [#allocation33], 1 }
0x37ee   :  { %8926 = vsyncpa [#allocation36], 1 }
0x37ef   :  { %8927 = vsyncpa [#allocation39], 1 }
0x37f0   :  { %8928 = vsyncpa [#allocation42], 1 }
0x37f1   :  { %8929 = vsyncpa [#allocation4], 1 }
0x37f2   :  { %8931 = vsyncpa [#allocation4 + $0x1], 1 }

</bundles_post_ra>
